<compile_context>
chip_gen: v6e
topology: v6e:2x2x1
jax: 0.10.0
libtpu: 0.0.40
codegen_flags: <defaults>
</compile_context>

<pallas_src>
import jax
import jax.numpy as jnp
from jax import lax
from jax.experimental import pallas as pl
from jax.experimental.pallas import tpu as pltpu


def _decoder_kernel(x_ref, w2_ref, b2_ref, w3_ref, b3_ref, w4_ref, b4_ref,
                    w5_ref, b5_ref, o_ref):
    # x_ref : (1, H, W, 64)        one batch element, NHWC
    # wK_ref: (9*Cin, Cout)        im2col-packed weights (layers 2..4)
    # bK_ref: (1, Cout)            biases (layers 2..4)
    # w5_ref: (9, 16)              last layer: per-tap channel vectors
    # b5_ref: (1, 1)               last layer bias
    # o_ref : (1, H, W)            lane-dense output (single channel dropped)
    H = o_ref.shape[1]
    W = o_ref.shape[2]

    def reflect_pad(x):
        # ReflectionPad2d(1) on a (h, w, C) VMEM value -> (h+2, w+2, C).
        h, w = x.shape[0], x.shape[1]
        x = jnp.concatenate([x[1:2], x, x[h - 2:h - 1]], axis=0)
        x = jnp.concatenate([x[:, 1:2], x, x[:, w - 2:w - 1]], axis=1)
        return x

    def conv3x3(xp, w_ref_, b_ref_, relu):
        # xp: (H+2, W+2, Cin) reflection-padded activation.
        # One long-K matmul: im2col slab (H*W, 9*Cin) x (9*Cin, Cout).
        cin = xp.shape[2]
        cout = w_ref_.shape[1]
        # Pack the 3 horizontal taps, then the 3 vertical taps, into the
        # channel (lane) axis.  Channel ordering is (dy, dx, cin), matching
        # w_hwio.reshape(9*Cin, Cout).
        cols = jnp.concatenate(
            [xp[:, 0:W, :], xp[:, 1:W + 1, :], xp[:, 2:W + 2, :]], axis=2)
        rows = jnp.concatenate(
            [cols[0:H], cols[1:H + 1], cols[2:H + 2]], axis=2)
        im2col = rows.reshape(H * W, 9 * cin)
        acc = jnp.dot(im2col, w_ref_[...],
                      preferred_element_type=jnp.float32)
        acc = acc + b_ref_[...].astype(jnp.float32)
        if relu:
            acc = jnp.maximum(acc, 0.0)
        return acc.reshape(H, W, cout)

    x = x_ref[0].astype(jnp.float32)                       # (H, W, 64)
    x = conv3x3(reflect_pad(x), w2_ref, b2_ref, relu=True)   # (H, W, 64)
    x = conv3x3(reflect_pad(x), w3_ref, b3_ref, relu=True)   # (H, W, 32)
    x = conv3x3(reflect_pad(x), w4_ref, b4_ref, relu=True)   # (H, W, 16)

    # Last layer: 16 -> 1, no ReLU.  Keep the output lane-dense (H, W):
    # a VPU multiply + lane reduction per tap instead of a 1-column matmul
    # followed by a masked (lane-width-1) store.
    xp = reflect_pad(x)                                      # (H+2, W+2, 16)
    cin5 = xp.shape[2]
    w5 = w5_ref[...].astype(jnp.float32)                     # (9, 16)
    acc = jnp.zeros((H, W), dtype=jnp.float32) + b5_ref[...]
    for dy in range(3):
        for dx in range(3):
            wvec = w5[dy * 3 + dx:dy * 3 + dx + 1, :].reshape(1, 1, cin5)
            patch = xp[dy:dy + H, dx:dx + W, :]              # (H, W, 16)
            acc = acc + jnp.sum(patch * wvec, axis=-1)
    o_ref[0] = acc.astype(o_ref.dtype)


def init_decoder_params(key):
    """Deterministic init of the Decoder's conv weights (HWIO) and biases."""
    shapes = [  # (Cin, Cout) per layer: C2, C3, C4, C5
        (64, 64),
        (64, 32),
        (32, 16),
        (16, 1),
    ]
    params = []
    for i, (cin, cout) in enumerate(shapes):
        kw, kb = jax.random.split(jax.random.fold_in(key, i))
        fan_in = cin * 9
        bound = (1.0 / fan_in) ** 0.5  # matches PyTorch conv default scale
        w = jax.random.uniform(kw, (3, 3, cin, cout), jnp.float32,
                               minval=-bound, maxval=bound)
        b = jax.random.uniform(kb, (cout,), jnp.float32,
                               minval=-bound, maxval=bound)
        params.append((w, b))
    return params


def decoder_forward(x_nchw, params):
    """Full Decoder forward. Input NCHW (N, 64, H, W); output NCHW (N, 1, H, W)."""
    N, C, H, W = x_nchw.shape
    assert C == 64 and H >= 2 and W >= 2
    x = jnp.transpose(x_nchw, (0, 2, 3, 1))  # -> NHWC

    (w2, b2), (w3, b3), (w4, b4), (w5, b5) = params
    # HWIO (3,3,Cin,Cout) -> (9*Cin, Cout) im2col-packed weights (host side).
    w2m = w2.reshape(9 * 64, 64)
    w3m = w3.reshape(9 * 64, 32)
    w4m = w4.reshape(9 * 32, 16)
    w5m = w5.reshape(9, 16)          # (3,3,16,1) -> (9,16) per-tap vectors

    out = pl.pallas_call(
        _decoder_kernel,
        out_shape=jax.ShapeDtypeStruct((N, H, W), x.dtype),
        grid_spec=pltpu.PrefetchScalarGridSpec(
            num_scalar_prefetch=0,
            grid=(N,),
            in_specs=[
                pl.BlockSpec((1, H, W, 64), lambda n: (n, 0, 0, 0)),
                # Weights / biases: constant block index -> loaded once,
                # resident in VMEM across all grid steps.
                pl.BlockSpec((9 * 64, 64), lambda n: (0, 0)),
                pl.BlockSpec((1, 64), lambda n: (0, 0)),
                pl.BlockSpec((9 * 64, 32), lambda n: (0, 0)),
                pl.BlockSpec((1, 32), lambda n: (0, 0)),
                pl.BlockSpec((9 * 32, 16), lambda n: (0, 0)),
                pl.BlockSpec((1, 16), lambda n: (0, 0)),
                pl.BlockSpec((9, 16), lambda n: (0, 0)),
                pl.BlockSpec((1, 1), lambda n: (0, 0)),
            ],
            out_specs=pl.BlockSpec((1, H, W), lambda n: (n, 0, 0)),
        ),
        compiler_params=pltpu.CompilerParams(
            dimension_semantics=("parallel",)),
    )(x, w2m, b2.reshape(1, 64), w3m, b3.reshape(1, 32),
      w4m, b4.reshape(1, 16), w5m, b5.reshape(1, 1))

    return out[:, None, :, :]  # -> NCHW (N, 1, H, W)


def _reference_forward(x_nchw, params):
    """Pure-JAX reference (lax.conv) for correctness checking."""
    x = x_nchw
    dn = lax.conv_dimension_numbers(x.shape, (1, 1, 3, 3),
                                    ("NCHW", "OIHW", "NCHW"))
    for i, (w_hwio, b) in enumerate(params):
        x = jnp.pad(x, ((0, 0), (0, 0), (1, 1), (1, 1)), mode="reflect")
        w_oihw = jnp.transpose(w_hwio, (3, 2, 0, 1))
        x = lax.conv_general_dilated(x, w_oihw, (1, 1), "VALID",
                                     dimension_numbers=dn)
        x = x + b.reshape(1, -1, 1, 1)
        if i < 3:
            x = jnp.maximum(x, 0.0)
    return x


if __name__ == "__main__":
    key = jax.random.PRNGKey(0)
    k_x, k_p = jax.random.split(key)

    # Decoder expects 64 input channels; small spatial size.
    N, C, H, W = 2, 64, 16, 16
    x = jax.random.normal(k_x, (N, C, H, W), dtype=jnp.float32)
    params = init_decoder_params(k_p)

    fwd = jax.jit(decoder_forward)
    out = jax.block_until_ready(fwd(x, params))

    ref = _reference_forward(x, params)
    assert out.shape == (N, 1, H, W), out.shape
    assert jnp.allclose(out, ref, atol=2e-4, rtol=2e-4), (
        float(jnp.max(jnp.abs(out - ref))))

    print("KERNEL_OK")
</pallas_src>

<mosaic_0001>
module attributes {stable_mosaic.version = 11 : i64} {
  func.func @_decoder_kernel(%arg0: i32, %arg1: memref<1x16x16x64xf32, #tpu.memory_space<vmem>>, %arg2: memref<576x64xf32, #tpu.memory_space<vmem>>, %arg3: memref<1x64xf32, #tpu.memory_space<vmem>>, %arg4: memref<576x32xf32, #tpu.memory_space<vmem>>, %arg5: memref<1x32xf32, #tpu.memory_space<vmem>>, %arg6: memref<288x16xf32, #tpu.memory_space<vmem>>, %arg7: memref<1x16xf32, #tpu.memory_space<vmem>>, %arg8: memref<9x16xf32, #tpu.memory_space<vmem>>, %arg9: memref<1x1xf32, #tpu.memory_space<vmem>>, %arg10: memref<1x16x16xf32, #tpu.memory_space<vmem>>) attributes {dimension_semantics = [#tpu.dimension_semantics<parallel>], iteration_bounds = array<i64: 2>, scalar_prefetch = 0 : i64, scratch_operands = 0 : i64, tpu.core_type = #tpu.core_type<tc>, window_params = [{transform_indices = @transform_0, window_bounds = array<i64: 1, 16, 16, 64>}, {pipeline_mode = #tpu.pipeline_mode<synchronous>, transform_indices = @transform_1, window_bounds = array<i64: 576, 64>}, {pipeline_mode = #tpu.pipeline_mode<synchronous>, transform_indices = @transform_2, window_bounds = array<i64: 1, 64>}, {pipeline_mode = #tpu.pipeline_mode<synchronous>, transform_indices = @transform_3, window_bounds = array<i64: 576, 32>}, {pipeline_mode = #tpu.pipeline_mode<synchronous>, transform_indices = @transform_4, window_bounds = array<i64: 1, 32>}, {pipeline_mode = #tpu.pipeline_mode<synchronous>, transform_indices = @transform_5, window_bounds = array<i64: 288, 16>}, {pipeline_mode = #tpu.pipeline_mode<synchronous>, transform_indices = @transform_6, window_bounds = array<i64: 1, 16>}, {pipeline_mode = #tpu.pipeline_mode<synchronous>, transform_indices = @transform_7, window_bounds = array<i64: 9, 16>}, {pipeline_mode = #tpu.pipeline_mode<synchronous>, transform_indices = @transform_8, window_bounds = array<i64: 1, 1>}, {transform_indices = @transform_9, window_bounds = array<i64: 1, 16, 16>}]} {
    %c0 = arith.constant 0 : index
    %c0_0 = arith.constant 0 : index
    %c0_1 = arith.constant 0 : index
    %c0_2 = arith.constant 0 : index
    %0 = vector.load %arg1[%c0, %c0_0, %c0_1, %c0_2] : memref<1x16x16x64xf32, #tpu.memory_space<vmem>>, vector<1x16x16x64xf32>
    %1 = vector.shape_cast %0 : vector<1x16x16x64xf32> to vector<16x16x64xf32>
    %2 = vector.extract_strided_slice %1 {offsets = [1, 0, 0], sizes = [1, 16, 64], strides = [1, 1, 1]} : vector<16x16x64xf32> to vector<1x16x64xf32>
    %3 = vector.extract_strided_slice %1 {offsets = [14, 0, 0], sizes = [1, 16, 64], strides = [1, 1, 1]} : vector<16x16x64xf32> to vector<1x16x64xf32>
    %4 = tpu.concatenate %2, %1, %3 in 0 : vector<1x16x64xf32>, vector<16x16x64xf32>, vector<1x16x64xf32> -> vector<18x16x64xf32>
    %5 = vector.extract_strided_slice %4 {offsets = [0, 1, 0], sizes = [18, 1, 64], strides = [1, 1, 1]} : vector<18x16x64xf32> to vector<18x1x64xf32>
    %6 = vector.extract_strided_slice %4 {offsets = [0, 14, 0], sizes = [18, 1, 64], strides = [1, 1, 1]} : vector<18x16x64xf32> to vector<18x1x64xf32>
    %7 = tpu.concatenate %5, %4, %6 in 1 : vector<18x1x64xf32>, vector<18x16x64xf32>, vector<18x1x64xf32> -> vector<18x18x64xf32>
    %8 = vector.extract_strided_slice %7 {offsets = [0, 0, 0], sizes = [18, 16, 64], strides = [1, 1, 1]} : vector<18x18x64xf32> to vector<18x16x64xf32>
    %9 = vector.extract_strided_slice %7 {offsets = [0, 1, 0], sizes = [18, 16, 64], strides = [1, 1, 1]} : vector<18x18x64xf32> to vector<18x16x64xf32>
    %10 = vector.extract_strided_slice %7 {offsets = [0, 2, 0], sizes = [18, 16, 64], strides = [1, 1, 1]} : vector<18x18x64xf32> to vector<18x16x64xf32>
    %11 = tpu.concatenate %8, %9, %10 in 2 : vector<18x16x64xf32>, vector<18x16x64xf32>, vector<18x16x64xf32> -> vector<18x16x192xf32>
    %12 = vector.extract_strided_slice %11 {offsets = [0, 0, 0], sizes = [16, 16, 192], strides = [1, 1, 1]} : vector<18x16x192xf32> to vector<16x16x192xf32>
    %13 = vector.extract_strided_slice %11 {offsets = [1, 0, 0], sizes = [16, 16, 192], strides = [1, 1, 1]} : vector<18x16x192xf32> to vector<16x16x192xf32>
    %14 = vector.extract_strided_slice %11 {offsets = [2, 0, 0], sizes = [16, 16, 192], strides = [1, 1, 1]} : vector<18x16x192xf32> to vector<16x16x192xf32>
    %15 = tpu.concatenate %12, %13, %14 in 2 : vector<16x16x192xf32>, vector<16x16x192xf32>, vector<16x16x192xf32> -> vector<16x16x576xf32>
    %16 = vector.shape_cast %15 : vector<16x16x576xf32> to vector<256x576xf32>
    %c0_3 = arith.constant 0 : index
    %c0_4 = arith.constant 0 : index
    %17 = vector.load %arg2[%c0_3, %c0_4] : memref<576x64xf32, #tpu.memory_space<vmem>>, vector<576x64xf32>
    %cst = arith.constant dense<0.000000e+00> : vector<256x64xf32>
    %18 = tpu.matmul %16, %17, %cst {dimension_numbers = #tpu.dot_dimension_numbers<[1], [0], [0], [1], [0, 0, 1, 1], [], []>} : vector<256x576xf32>, vector<576x64xf32>, vector<256x64xf32> -> vector<256x64xf32>
    %c0_5 = arith.constant 0 : index
    %c0_6 = arith.constant 0 : index
    %19 = vector.load %arg3[%c0_5, %c0_6] : memref<1x64xf32, #tpu.memory_space<vmem>>, vector<1x64xf32>
    %20 = vector.broadcast %19 : vector<1x64xf32> to vector<256x64xf32>
    %21 = arith.addf %18, %20 : vector<256x64xf32>
    %cst_7 = arith.constant 0.000000e+00 : f32
    %22 = vector.broadcast %cst_7 : f32 to vector<256x64xf32>
    %23 = arith.maximumf %21, %22 : vector<256x64xf32>
    %24 = vector.shape_cast %23 : vector<256x64xf32> to vector<16x16x64xf32>
    %25 = vector.extract_strided_slice %24 {offsets = [1, 0, 0], sizes = [1, 16, 64], strides = [1, 1, 1]} : vector<16x16x64xf32> to vector<1x16x64xf32>
    %26 = vector.extract_strided_slice %24 {offsets = [14, 0, 0], sizes = [1, 16, 64], strides = [1, 1, 1]} : vector<16x16x64xf32> to vector<1x16x64xf32>
    %27 = tpu.concatenate %25, %24, %26 in 0 : vector<1x16x64xf32>, vector<16x16x64xf32>, vector<1x16x64xf32> -> vector<18x16x64xf32>
    %28 = vector.extract_strided_slice %27 {offsets = [0, 1, 0], sizes = [18, 1, 64], strides = [1, 1, 1]} : vector<18x16x64xf32> to vector<18x1x64xf32>
    %29 = vector.extract_strided_slice %27 {offsets = [0, 14, 0], sizes = [18, 1, 64], strides = [1, 1, 1]} : vector<18x16x64xf32> to vector<18x1x64xf32>
    %30 = tpu.concatenate %28, %27, %29 in 1 : vector<18x1x64xf32>, vector<18x16x64xf32>, vector<18x1x64xf32> -> vector<18x18x64xf32>
    %31 = vector.extract_strided_slice %30 {offsets = [0, 0, 0], sizes = [18, 16, 64], strides = [1, 1, 1]} : vector<18x18x64xf32> to vector<18x16x64xf32>
    %32 = vector.extract_strided_slice %30 {offsets = [0, 1, 0], sizes = [18, 16, 64], strides = [1, 1, 1]} : vector<18x18x64xf32> to vector<18x16x64xf32>
    %33 = vector.extract_strided_slice %30 {offsets = [0, 2, 0], sizes = [18, 16, 64], strides = [1, 1, 1]} : vector<18x18x64xf32> to vector<18x16x64xf32>
    %34 = tpu.concatenate %31, %32, %33 in 2 : vector<18x16x64xf32>, vector<18x16x64xf32>, vector<18x16x64xf32> -> vector<18x16x192xf32>
    %35 = vector.extract_strided_slice %34 {offsets = [0, 0, 0], sizes = [16, 16, 192], strides = [1, 1, 1]} : vector<18x16x192xf32> to vector<16x16x192xf32>
    %36 = vector.extract_strided_slice %34 {offsets = [1, 0, 0], sizes = [16, 16, 192], strides = [1, 1, 1]} : vector<18x16x192xf32> to vector<16x16x192xf32>
    %37 = vector.extract_strided_slice %34 {offsets = [2, 0, 0], sizes = [16, 16, 192], strides = [1, 1, 1]} : vector<18x16x192xf32> to vector<16x16x192xf32>
    %38 = tpu.concatenate %35, %36, %37 in 2 : vector<16x16x192xf32>, vector<16x16x192xf32>, vector<16x16x192xf32> -> vector<16x16x576xf32>
    %39 = vector.shape_cast %38 : vector<16x16x576xf32> to vector<256x576xf32>
    %c0_8 = arith.constant 0 : index
    %c0_9 = arith.constant 0 : index
    %40 = vector.load %arg4[%c0_8, %c0_9] : memref<576x32xf32, #tpu.memory_space<vmem>>, vector<576x32xf32>
    %cst_10 = arith.constant dense<0.000000e+00> : vector<256x32xf32>
    %41 = tpu.matmul %39, %40, %cst_10 {dimension_numbers = #tpu.dot_dimension_numbers<[1], [0], [0], [1], [0, 0, 1, 1], [], []>} : vector<256x576xf32>, vector<576x32xf32>, vector<256x32xf32> -> vector<256x32xf32>
    %c0_11 = arith.constant 0 : index
    %c0_12 = arith.constant 0 : index
    %42 = vector.load %arg5[%c0_11, %c0_12] : memref<1x32xf32, #tpu.memory_space<vmem>>, vector<1x32xf32>
    %43 = vector.broadcast %42 : vector<1x32xf32> to vector<256x32xf32>
    %44 = arith.addf %41, %43 : vector<256x32xf32>
    %cst_13 = arith.constant 0.000000e+00 : f32
    %45 = vector.broadcast %cst_13 : f32 to vector<256x32xf32>
    %46 = arith.maximumf %44, %45 : vector<256x32xf32>
    %47 = vector.shape_cast %46 : vector<256x32xf32> to vector<16x16x32xf32>
    %48 = vector.extract_strided_slice %47 {offsets = [1, 0, 0], sizes = [1, 16, 32], strides = [1, 1, 1]} : vector<16x16x32xf32> to vector<1x16x32xf32>
    %49 = vector.extract_strided_slice %47 {offsets = [14, 0, 0], sizes = [1, 16, 32], strides = [1, 1, 1]} : vector<16x16x32xf32> to vector<1x16x32xf32>
    %50 = tpu.concatenate %48, %47, %49 in 0 : vector<1x16x32xf32>, vector<16x16x32xf32>, vector<1x16x32xf32> -> vector<18x16x32xf32>
    %51 = vector.extract_strided_slice %50 {offsets = [0, 1, 0], sizes = [18, 1, 32], strides = [1, 1, 1]} : vector<18x16x32xf32> to vector<18x1x32xf32>
    %52 = vector.extract_strided_slice %50 {offsets = [0, 14, 0], sizes = [18, 1, 32], strides = [1, 1, 1]} : vector<18x16x32xf32> to vector<18x1x32xf32>
    %53 = tpu.concatenate %51, %50, %52 in 1 : vector<18x1x32xf32>, vector<18x16x32xf32>, vector<18x1x32xf32> -> vector<18x18x32xf32>
    %54 = vector.extract_strided_slice %53 {offsets = [0, 0, 0], sizes = [18, 16, 32], strides = [1, 1, 1]} : vector<18x18x32xf32> to vector<18x16x32xf32>
    %55 = vector.extract_strided_slice %53 {offsets = [0, 1, 0], sizes = [18, 16, 32], strides = [1, 1, 1]} : vector<18x18x32xf32> to vector<18x16x32xf32>
    %56 = vector.extract_strided_slice %53 {offsets = [0, 2, 0], sizes = [18, 16, 32], strides = [1, 1, 1]} : vector<18x18x32xf32> to vector<18x16x32xf32>
    %57 = tpu.concatenate %54, %55, %56 in 2 : vector<18x16x32xf32>, vector<18x16x32xf32>, vector<18x16x32xf32> -> vector<18x16x96xf32>
    %58 = vector.extract_strided_slice %57 {offsets = [0, 0, 0], sizes = [16, 16, 96], strides = [1, 1, 1]} : vector<18x16x96xf32> to vector<16x16x96xf32>
    %59 = vector.extract_strided_slice %57 {offsets = [1, 0, 0], sizes = [16, 16, 96], strides = [1, 1, 1]} : vector<18x16x96xf32> to vector<16x16x96xf32>
    %60 = vector.extract_strided_slice %57 {offsets = [2, 0, 0], sizes = [16, 16, 96], strides = [1, 1, 1]} : vector<18x16x96xf32> to vector<16x16x96xf32>
    %61 = tpu.concatenate %58, %59, %60 in 2 : vector<16x16x96xf32>, vector<16x16x96xf32>, vector<16x16x96xf32> -> vector<16x16x288xf32>
    %62 = vector.shape_cast %61 : vector<16x16x288xf32> to vector<256x288xf32>
    %c0_14 = arith.constant 0 : index
    %c0_15 = arith.constant 0 : index
    %63 = vector.load %arg6[%c0_14, %c0_15] : memref<288x16xf32, #tpu.memory_space<vmem>>, vector<288x16xf32>
    %cst_16 = arith.constant dense<0.000000e+00> : vector<256x16xf32>
    %64 = tpu.matmul %62, %63, %cst_16 {dimension_numbers = #tpu.dot_dimension_numbers<[1], [0], [0], [1], [0, 0, 1, 1], [], []>} : vector<256x288xf32>, vector<288x16xf32>, vector<256x16xf32> -> vector<256x16xf32>
    %c0_17 = arith.constant 0 : index
    %c0_18 = arith.constant 0 : index
    %65 = vector.load %arg7[%c0_17, %c0_18] : memref<1x16xf32, #tpu.memory_space<vmem>>, vector<1x16xf32>
    %66 = vector.broadcast %65 : vector<1x16xf32> to vector<256x16xf32>
    %67 = arith.addf %64, %66 : vector<256x16xf32>
    %cst_19 = arith.constant 0.000000e+00 : f32
    %68 = vector.broadcast %cst_19 : f32 to vector<256x16xf32>
    %69 = arith.maximumf %67, %68 : vector<256x16xf32>
    %70 = vector.shape_cast %69 : vector<256x16xf32> to vector<16x16x16xf32>
    %71 = vector.extract_strided_slice %70 {offsets = [1, 0, 0], sizes = [1, 16, 16], strides = [1, 1, 1]} : vector<16x16x16xf32> to vector<1x16x16xf32>
    %72 = vector.extract_strided_slice %70 {offsets = [14, 0, 0], sizes = [1, 16, 16], strides = [1, 1, 1]} : vector<16x16x16xf32> to vector<1x16x16xf32>
    %73 = tpu.concatenate %71, %70, %72 in 0 : vector<1x16x16xf32>, vector<16x16x16xf32>, vector<1x16x16xf32> -> vector<18x16x16xf32>
    %74 = vector.extract_strided_slice %73 {offsets = [0, 1, 0], sizes = [18, 1, 16], strides = [1, 1, 1]} : vector<18x16x16xf32> to vector<18x1x16xf32>
    %75 = vector.extract_strided_slice %73 {offsets = [0, 14, 0], sizes = [18, 1, 16], strides = [1, 1, 1]} : vector<18x16x16xf32> to vector<18x1x16xf32>
    %76 = tpu.concatenate %74, %73, %75 in 1 : vector<18x1x16xf32>, vector<18x16x16xf32>, vector<18x1x16xf32> -> vector<18x18x16xf32>
    %c0_20 = arith.constant 0 : index
    %c0_21 = arith.constant 0 : index
    %77 = vector.load %arg8[%c0_20, %c0_21] : memref<9x16xf32, #tpu.memory_space<vmem>>, vector<9x16xf32>
    %cst_22 = arith.constant 0.000000e+00 : f32
    %78 = vector.broadcast %cst_22 : f32 to vector<16x16xf32>
    %c0_23 = arith.constant 0 : index
    %c0_24 = arith.constant 0 : index
    %79 = vector.load %arg9[%c0_23, %c0_24] : memref<1x1xf32, #tpu.memory_space<vmem>>, vector<1x1xf32>
    %80 = vector.broadcast %79 : vector<1x1xf32> to vector<16x16xf32>
    %81 = arith.addf %78, %80 : vector<16x16xf32>
    %82 = vector.extract_strided_slice %77 {offsets = [0, 0], sizes = [1, 16], strides = [1, 1]} : vector<9x16xf32> to vector<1x16xf32>
    %83 = vector.shape_cast %82 : vector<1x16xf32> to vector<1x1x16xf32>
    %84 = vector.extract_strided_slice %76 {offsets = [0, 0, 0], sizes = [16, 16, 16], strides = [1, 1, 1]} : vector<18x18x16xf32> to vector<16x16x16xf32>
    %85 = vector.broadcast %83 : vector<1x1x16xf32> to vector<16x16x16xf32>
    %86 = arith.mulf %84, %85 : vector<16x16x16xf32>
    %cst_25 = arith.constant dense<0.000000e+00> : vector<16x16xf32>
    %87 = vector.multi_reduction <add>, %86, %cst_25 [2] : vector<16x16x16xf32> to vector<16x16xf32>
    %88 = arith.addf %81, %87 : vector<16x16xf32>
    %89 = vector.extract_strided_slice %77 {offsets = [1, 0], sizes = [1, 16], strides = [1, 1]} : vector<9x16xf32> to vector<1x16xf32>
    %90 = vector.shape_cast %89 : vector<1x16xf32> to vector<1x1x16xf32>
    %91 = vector.extract_strided_slice %76 {offsets = [0, 1, 0], sizes = [16, 16, 16], strides = [1, 1, 1]} : vector<18x18x16xf32> to vector<16x16x16xf32>
    %92 = vector.broadcast %90 : vector<1x1x16xf32> to vector<16x16x16xf32>
    %93 = arith.mulf %91, %92 : vector<16x16x16xf32>
    %cst_26 = arith.constant dense<0.000000e+00> : vector<16x16xf32>
    %94 = vector.multi_reduction <add>, %93, %cst_26 [2] : vector<16x16x16xf32> to vector<16x16xf32>
    %95 = arith.addf %88, %94 : vector<16x16xf32>
    %96 = vector.extract_strided_slice %77 {offsets = [2, 0], sizes = [1, 16], strides = [1, 1]} : vector<9x16xf32> to vector<1x16xf32>
    %97 = vector.shape_cast %96 : vector<1x16xf32> to vector<1x1x16xf32>
    %98 = vector.extract_strided_slice %76 {offsets = [0, 2, 0], sizes = [16, 16, 16], strides = [1, 1, 1]} : vector<18x18x16xf32> to vector<16x16x16xf32>
    %99 = vector.broadcast %97 : vector<1x1x16xf32> to vector<16x16x16xf32>
    %100 = arith.mulf %98, %99 : vector<16x16x16xf32>
    %cst_27 = arith.constant dense<0.000000e+00> : vector<16x16xf32>
    %101 = vector.multi_reduction <add>, %100, %cst_27 [2] : vector<16x16x16xf32> to vector<16x16xf32>
    %102 = arith.addf %95, %101 : vector<16x16xf32>
    %103 = vector.extract_strided_slice %77 {offsets = [3, 0], sizes = [1, 16], strides = [1, 1]} : vector<9x16xf32> to vector<1x16xf32>
    %104 = vector.shape_cast %103 : vector<1x16xf32> to vector<1x1x16xf32>
    %105 = vector.extract_strided_slice %76 {offsets = [1, 0, 0], sizes = [16, 16, 16], strides = [1, 1, 1]} : vector<18x18x16xf32> to vector<16x16x16xf32>
    %106 = vector.broadcast %104 : vector<1x1x16xf32> to vector<16x16x16xf32>
    %107 = arith.mulf %105, %106 : vector<16x16x16xf32>
    %cst_28 = arith.constant dense<0.000000e+00> : vector<16x16xf32>
    %108 = vector.multi_reduction <add>, %107, %cst_28 [2] : vector<16x16x16xf32> to vector<16x16xf32>
    %109 = arith.addf %102, %108 : vector<16x16xf32>
    %110 = vector.extract_strided_slice %77 {offsets = [4, 0], sizes = [1, 16], strides = [1, 1]} : vector<9x16xf32> to vector<1x16xf32>
    %111 = vector.shape_cast %110 : vector<1x16xf32> to vector<1x1x16xf32>
    %112 = vector.extract_strided_slice %76 {offsets = [1, 1, 0], sizes = [16, 16, 16], strides = [1, 1, 1]} : vector<18x18x16xf32> to vector<16x16x16xf32>
    %113 = vector.broadcast %111 : vector<1x1x16xf32> to vector<16x16x16xf32>
    %114 = arith.mulf %112, %113 : vector<16x16x16xf32>
    %cst_29 = arith.constant dense<0.000000e+00> : vector<16x16xf32>
    %115 = vector.multi_reduction <add>, %114, %cst_29 [2] : vector<16x16x16xf32> to vector<16x16xf32>
    %116 = arith.addf %109, %115 : vector<16x16xf32>
    %117 = vector.extract_strided_slice %77 {offsets = [5, 0], sizes = [1, 16], strides = [1, 1]} : vector<9x16xf32> to vector<1x16xf32>
    %118 = vector.shape_cast %117 : vector<1x16xf32> to vector<1x1x16xf32>
    %119 = vector.extract_strided_slice %76 {offsets = [1, 2, 0], sizes = [16, 16, 16], strides = [1, 1, 1]} : vector<18x18x16xf32> to vector<16x16x16xf32>
    %120 = vector.broadcast %118 : vector<1x1x16xf32> to vector<16x16x16xf32>
    %121 = arith.mulf %119, %120 : vector<16x16x16xf32>
    %cst_30 = arith.constant dense<0.000000e+00> : vector<16x16xf32>
    %122 = vector.multi_reduction <add>, %121, %cst_30 [2] : vector<16x16x16xf32> to vector<16x16xf32>
    %123 = arith.addf %116, %122 : vector<16x16xf32>
    %124 = vector.extract_strided_slice %77 {offsets = [6, 0], sizes = [1, 16], strides = [1, 1]} : vector<9x16xf32> to vector<1x16xf32>
    %125 = vector.shape_cast %124 : vector<1x16xf32> to vector<1x1x16xf32>
    %126 = vector.extract_strided_slice %76 {offsets = [2, 0, 0], sizes = [16, 16, 16], strides = [1, 1, 1]} : vector<18x18x16xf32> to vector<16x16x16xf32>
    %127 = vector.broadcast %125 : vector<1x1x16xf32> to vector<16x16x16xf32>
    %128 = arith.mulf %126, %127 : vector<16x16x16xf32>
    %cst_31 = arith.constant dense<0.000000e+00> : vector<16x16xf32>
    %129 = vector.multi_reduction <add>, %128, %cst_31 [2] : vector<16x16x16xf32> to vector<16x16xf32>
    %130 = arith.addf %123, %129 : vector<16x16xf32>
    %131 = vector.extract_strided_slice %77 {offsets = [7, 0], sizes = [1, 16], strides = [1, 1]} : vector<9x16xf32> to vector<1x16xf32>
    %132 = vector.shape_cast %131 : vector<1x16xf32> to vector<1x1x16xf32>
    %133 = vector.extract_strided_slice %76 {offsets = [2, 1, 0], sizes = [16, 16, 16], strides = [1, 1, 1]} : vector<18x18x16xf32> to vector<16x16x16xf32>
    %134 = vector.broadcast %132 : vector<1x1x16xf32> to vector<16x16x16xf32>
    %135 = arith.mulf %133, %134 : vector<16x16x16xf32>
    %cst_32 = arith.constant dense<0.000000e+00> : vector<16x16xf32>
    %136 = vector.multi_reduction <add>, %135, %cst_32 [2] : vector<16x16x16xf32> to vector<16x16xf32>
    %137 = arith.addf %130, %136 : vector<16x16xf32>
    %138 = vector.extract_strided_slice %77 {offsets = [8, 0], sizes = [1, 16], strides = [1, 1]} : vector<9x16xf32> to vector<1x16xf32>
    %139 = vector.shape_cast %138 : vector<1x16xf32> to vector<1x1x16xf32>
    %140 = vector.extract_strided_slice %76 {offsets = [2, 2, 0], sizes = [16, 16, 16], strides = [1, 1, 1]} : vector<18x18x16xf32> to vector<16x16x16xf32>
    %141 = vector.broadcast %139 : vector<1x1x16xf32> to vector<16x16x16xf32>
    %142 = arith.mulf %140, %141 : vector<16x16x16xf32>
    %cst_33 = arith.constant dense<0.000000e+00> : vector<16x16xf32>
    %143 = vector.multi_reduction <add>, %142, %cst_33 [2] : vector<16x16x16xf32> to vector<16x16xf32>
    %144 = arith.addf %137, %143 : vector<16x16xf32>
    %c0_34 = arith.constant 0 : index
    %c0_35 = arith.constant 0 : index
    %c0_36 = arith.constant 0 : index
    %145 = vector.load %arg10[%c0_34, %c0_35, %c0_36] : memref<1x16x16xf32, #tpu.memory_space<vmem>>, vector<1x16x16xf32>
    %146 = vector.shape_cast %145 : vector<1x16x16xf32> to vector<16x16xf32>
    %147 = vector.shape_cast %144 : vector<16x16xf32> to vector<1x16x16xf32>
    tpu.vector_store %arg10[%c0_34, %c0_35, %c0_36], %147 {strides = array<i32>} : memref<1x16x16xf32, #tpu.memory_space<vmem>>, vector<1x16x16xf32>,
    return
  }
  func.func @transform_0(%arg0: i32) -> (i32, i32, i32, i32) {
    %c0_i32 = arith.constant 0 : i32
    %c0_i32_0 = arith.constant 0 : i32
    %c0_i32_1 = arith.constant 0 : i32
    %c0_i32_2 = arith.constant 0 : i32
    return %arg0, %c0_i32, %c0_i32_0, %c0_i32_1 : i32, i32, i32, i32
  }
  func.func @transform_1(%arg0: i32) -> (i32, i32) {
    %c0_i32 = arith.constant 0 : i32
    %c0_i32_0 = arith.constant 0 : i32
    %c0_i32_1 = arith.constant 0 : i32
    return %c0_i32, %c0_i32_0 : i32, i32
  }
  func.func @transform_2(%arg0: i32) -> (i32, i32) {
    %c0_i32 = arith.constant 0 : i32
    %c0_i32_0 = arith.constant 0 : i32
    %c0_i32_1 = arith.constant 0 : i32
    return %c0_i32, %c0_i32_0 : i32, i32
  }
  func.func @transform_3(%arg0: i32) -> (i32, i32) {
    %c0_i32 = arith.constant 0 : i32
    %c0_i32_0 = arith.constant 0 : i32
    %c0_i32_1 = arith.constant 0 : i32
    return %c0_i32, %c0_i32_0 : i32, i32
  }
  func.func @transform_4(%arg0: i32) -> (i32, i32) {
    %c0_i32 = arith.constant 0 : i32
    %c0_i32_0 = arith.constant 0 : i32
    %c0_i32_1 = arith.constant 0 : i32
    return %c0_i32, %c0_i32_0 : i32, i32
  }
  func.func @transform_5(%arg0: i32) -> (i32, i32) {
    %c0_i32 = arith.constant 0 : i32
    %c0_i32_0 = arith.constant 0 : i32
    %c0_i32_1 = arith.constant 0 : i32
    return %c0_i32, %c0_i32_0 : i32, i32
  }
  func.func @transform_6(%arg0: i32) -> (i32, i32) {
    %c0_i32 = arith.constant 0 : i32
    %c0_i32_0 = arith.constant 0 : i32
    %c0_i32_1 = arith.constant 0 : i32
    return %c0_i32, %c0_i32_0 : i32, i32
  }
  func.func @transform_7(%arg0: i32) -> (i32, i32) {
    %c0_i32 = arith.constant 0 : i32
    %c0_i32_0 = arith.constant 0 : i32
    %c0_i32_1 = arith.constant 0 : i32
    return %c0_i32, %c0_i32_0 : i32, i32
  }
  func.func @transform_8(%arg0: i32) -> (i32, i32) {
    %c0_i32 = arith.constant 0 : i32
    %c0_i32_0 = arith.constant 0 : i32
    %c0_i32_1 = arith.constant 0 : i32
    return %c0_i32, %c0_i32_0 : i32, i32
  }
  func.func @transform_9(%arg0: i32) -> (i32, i32, i32) {
    %c0_i32 = arith.constant 0 : i32
    %c0_i32_0 = arith.constant 0 : i32
    %c0_i32_1 = arith.constant 0 : i32
    return %arg0, %c0_i32, %c0_i32_0 : i32, i32, i32
  }
}

</mosaic_0001>

<bundles_post_ra>
// kernel: decoder_forward.1
= control target key start
LH: loop header
LB: loop body
LE: loop exit
PB: predicated region body
PF: predicated region fallthrough
CT: control target
= control target key end

     0   :  { %s16500_s0 = inlined_call_operand.vmem [shape: f32[2,16,16,64], index: 0, kind: input, shape index: {}]   ;;  %s16501_s1 = inlined_call_operand.vmem [shape: f32[576,64], index: 1, kind: input, shape index: {}]   ;;  %s16502_s2 = inlined_call_operand.vmem [shape: f32[1,64], index: 2, kind: input, shape index: {}]   ;;  %s16503_s3 = inlined_call_operand.vmem [shape: f32[576,32], index: 3, kind: input, shape index: {}]   ;;  %s16504_s4 = inlined_call_operand.vmem [shape: f32[1,32], index: 4, kind: input, shape index: {}]   ;;  %s16505_s5 = inlined_call_operand.vmem [shape: f32[288,16], index: 5, kind: input, shape index: {}]   ;;  %s16506_s6 = inlined_call_operand.vmem [shape: f32[1,16], index: 6, kind: input, shape index: {}]   ;;  %s16507_s7 = inlined_call_operand.vmem [shape: f32[9,16], index: 7, kind: input, shape index: {}]   ;;  %s16508_s8 = inlined_call_operand.<no memory space> [shape: f32[1,1], index: 8, kind: input, shape index: {}]   ;;  %s16509_s9 = inlined_call_operand.hbm [shape: f32[2,16,16], index: 9, kind: output, shape index: {}]  }
   0x1   :  { %v14_v0 = vstv %s16508_s8 }
   0x2   :  { %15 = vst [vmem:[#allocation2] sm:$0x1] %v14_v0 }
   0x3   :  { %16 = vsyncpa [#allocation4], 0 }
   0x4   :  { %18 = vsyncpa [#allocation4 + $0x1], 0  ;;  %s9883_s11 = smov 0   ;;  %s9885_s12 = smov 0  }
   0x5   :  { %s9887_s13 = smov 0   ;;  %s9889_s14 = smov 0  }
   0x6 LB: > { %s9904_s8 = sadd.s32 4294967295, %s9820_s14   ;;  %s8655_s15 = sadd.s32 4294967294, %s9820_s14   ;;  %s9820_s14 = sphi %s9889_s14, %s17007_s14   ;;  %s9816_s13 = sphi %s9887_s13, %s17006_s13   ;;  %s9812_s12 = sphi %s9885_s12, %s17005_s12   ;;  %s9808_s11 = sphi %s9883_s11, %s17004_s11  }
   0x7   : > { %s9908_s16 = sadd.s32 1, %s9820_s14   ;;  %s225_s17 = sadd.s32 1, %s9816_s13 }
   0x8   : > { %s222_s18 = ssub.s32 %s9820_s14, %s9908_s16  ;;  %p235_p0 = scmp.ne.s32.totalorder %s9816_s13, %s9812_s12 }
   0x9   : > { %p223_p1 = scmp.eq.s32.totalorder %s222_s18, 0  ;;  %p236_p2 = scmp.eq.s32.totalorder %s9904_s8, 1 }
   0xa   : > { %p241_p3 = scmp.ne.s32.totalorder %s9812_s12, %s9808_s11  ;;  %p242_p4 = scmp.eq.s32.totalorder %s8655_s15, 1 }
   0xb   : > { %s9919_s19 = scalar_select %p223_p1, %s9816_s13, %s225_s17  }
   0xc   : > { %p9921_p5 = por %p236_p2, %p235_p0  ;;  %p9925_p6 = por %p242_p4, %p241_p3 }
   0xd   : > { %p8658_p7 = scmp.ge.s32.totalorder %s9820_s14, 1  ;;  %p292_p8 = scmp.lt.s32.totalorder %s9820_s14, 3 }
   0xf   : > { %p293_p9 = pnand %p8658_p7, %p292_p8 }
  0x11   : > { %296 = sbr.rel (%p293_p9) target bundleno = 2915 (0xb63), region = 56 }
  0x16   : > { %p328_p10 = scmp.lt.s32.totalorder %s9904_s8, 1  ;;  %vm429_vm0 = vcmask 1040384   ;;  %vm622_vm1 = vcmask 1046528   ;;  %s9822_s27 = smov 64   ;;  %vm910_vm2 = vcmask 523264   ;;  %vm799_vm3 = vcmask 1045504  }
  0x17   : > { %vm4393_vm4 = vcmask 261120   ;;  %vm4676_vm5 = vcmask 785408   ;;  %vm5767_vm6 = vcmask 130049   ;;  %vm5597_vm7 = vcmask 130048   ;;  %s8769_s10 = sshll.u32 %s9904_s8, 8  ;;  %s9827_s25 = smov [#allocation3]  }
  0x18   : > { %s329_s22 = scalar_select %p328_p10, %s9904_s8, 1  ;;  %vm6133_vm8 = vcmask 130050   ;;  %vm5774_vm9 = vcmask 122880   ;;  %vm6140_vm10 = vcmask 123904   ;;  %vm8417_vm11 = vcmask 130112  }
  0x19   : > { %vm8554_vm12 = vcmask 1041409   ;;  %vm8556_vm13 = vcmask 1042434   ;;  %vm8558_vm14 = vcmask 1043459   ;;  %vm8560_vm15 = vcmask 1044484  }
  0x1a   : > { %s8768_s23 = sshll.u32 %s329_s22, 8  ;;  %s9825_s22 = smov 32  }
  0x1b   : > { %s9936_s26 = scalar_lea.vmem %s16500_s0, %s8768_s23  ;;  %s16449_s23 = scalar_lea.hbm %s16509_s9, %s8769_s10 }
  0x1c   : > { %v333_v1 = vld [vmem:[%s9936_s26] sm:$0xff]  ;;  %v334_v2 = vld [vmem:[%s9936_s26 + $0x8] sm:$0xff]  ;;  %v335_v3 = vld [vmem:[%s9936_s26 + $0x10] sm:$0xff] }
  0x1d   : > { %v382_v4 = vrot.slane %v333_v1, 1  ;;  %v433_v5 = vrot.slane %v333_v1, 7  ;;  %v434_v6 = vrot.slane %v334_v2, 7  ;;  %v336_v7 = vld [vmem:[%s9936_s26 + $0x18] sm:$0xff]  ;;  %v381_v8 = vrot.slane %v335_v3, 1  ;;  %v337_v9 = vld [vmem:[%s9936_s26 + $0x20] sm:$0xff] }
  0x1e   : > { %v430_v10 = vrot.slane %v335_v3, 7  ;;  %v431_v11 = vrot.slane %v336_v7, 7  ;;  %v526_v12 = vrot.slane %v336_v7, 5  ;;  %v527_v13 = vrot.slane %v334_v2, 5  ;;  %v338_v22 = vld [vmem:[%s9936_s26 + $0x28] sm:$0xff]  ;;  %v339_v32 = vld [vmem:[%s9936_s26 + $0x30] sm:$0xff] }
  0x1f   : > { %v9944_v14 = vsel %vm429_vm0, %v433_v5, %v434_v6  ;;  %v9947_v15 = vsel %vm429_vm0, %v382_v4, %v433_v5  ;;  %v383_v16 = vrot.slane %v337_v9, 1  ;;  %v436_v17 = vrot.slane %v337_v9, 7  ;;  %v340_v36 = vld [vmem:[%s9936_s26 + $0x38] sm:$0xff]  ;;  %v341_v37 = vld [vmem:[%s9936_s26 + $0x40] sm:$0xff]  ;;  %v342_v42 = vld [vmem:[%s9936_s26 + $0x48] sm:$0xff] }
  0x20   : > { %v628_v18 = vrot.slane %v9947_v15, 1  ;;  %v629_v19 = vrot.slane %v9944_v14, 1  ;;  %v9952_v20 = vsel %vm429_vm0, %v430_v10, %v431_v11  ;;  %v9955_v21 = vsel %vm429_vm0, %v381_v8, %v430_v10  ;;  %v343_v55 = vld [vmem:[%s9936_s26 + $0x50] sm:$0xff]  ;;  %v344_v0 = vld [vmem:[%s9936_s26 + $0x58] sm:$0xff]  ;;  %v345_v5 = vld [vmem:[%s9936_s26 + $0x60] sm:$0xff] }
  0x21   : > { %v9959_v23 = vsel %vm429_vm0, %v431_v11, %v526_v12  ;;  %v623_v24 = vrot.slane %v9955_v21, 1  ;;  %v624_v25 = vrot.slane %v9952_v20, 1  ;;  %v9968_v29 = vsel %vm429_vm0, %v434_v6, %v527_v13 }
  0x22   : > { %v630_v26 = vsel %vm622_vm1, %v628_v18, %v629_v19  ;;  %v626_v27 = vrot.slane %v9959_v23, 1  ;;  %v437_v30 = vrot.slane %v338_v22, 7  ;;  %v528_v31 = vrot.slane %v338_v22, 5 }
  0x23   : > { %707 = vrot.lane.b32.xlu0 %v630_v26, %s9822_s27  ;;  %v625_v28 = vsel %vm622_vm1, %v623_v24, %v624_v25  ;;  %v631_v34 = vrot.slane %v9968_v29, 1  ;;  %v9974_v35 = vsel %vm429_vm0, %v383_v16, %v436_v17  ;;  %v384_v46 = vrot.slane %v339_v32, 1  ;;  %v346_v16 = vld [vmem:[%s9936_s26 + $0x68] sm:$0xff]  ;;  %v347_v24 = vld [vmem:[%s9936_s26 + $0x70] sm:$0xff] }
  0x24   : > { %v627_v33 = vsel %vm622_vm1, %v624_v25, %v626_v27  ;;  %v9979_v39 = vsel %vm429_vm0, %v436_v17, %v437_v30  ;;  %v9982_v40 = vsel %vm429_vm0, %v437_v30, %v528_v31  ;;  %v633_v41 = vrot.slane %v9974_v35, 1 }
  0x25   : > { %v9180_v38 = vpack.i.bf16 %v627_v33, %v625_v28  ;;  %v632_v43 = vsel %vm622_vm1, %v629_v19, %v631_v34  ;;  %v634_v44 = vrot.slane %v9979_v39, 1  ;;  %v636_v45 = vrot.slane %v9982_v40, 1 }
  0x26   : > { %v439_v47 = vrot.slane %v339_v32, 7  ;;  %v440_v48 = vrot.slane %v340_v36, 7  ;;  %v529_v49 = vrot.slane %v340_v36, 5  ;;  %v385_v50 = vrot.slane %v341_v37, 1 }
  0x27   : > { %9181 = vrot.lane.b32.xlu1 %v9180_v38, %s9822_s27  ;;  %709 = vrot.lane.b32.xlu0 %v632_v43, %s9822_s27  ;;  %v635_v51 = vsel %vm622_vm1, %v633_v41, %v634_v44  ;;  %v637_v52 = vsel %vm622_vm1, %v634_v44, %v636_v45  ;;  %v442_v53 = vrot.slane %v341_v37, 7  ;;  %v443_v54 = vrot.slane %v342_v42, 7  ;;  %v348_v38 = vld [vmem:[%s9936_s26 + $0x78] sm:$0xff] }
  0x28   : > { %v9185_v56 = vpack.i.bf16 %v637_v52, %v635_v51  ;;  %v9995_v57 = vsel %vm429_vm0, %v439_v47, %v440_v48  ;;  %v9998_v58 = vsel %vm429_vm0, %v384_v46, %v439_v47  ;;  %v10001_v59 = vsel %vm429_vm0, %v440_v48, %v529_v49  ;;  %v350_v47 = vld [vmem:[%s9936_s26 + $0x88] sm:$0xff] }
  0x29   : > { %v638_v60 = vrot.slane %v9998_v58, 1  ;;  %v639_v61 = vrot.slane %v9995_v57, 1  ;;  %v641_v62 = vrot.slane %v10001_v59, 1  ;;  %v10007_v63 = vsel %vm429_vm0, %v442_v53, %v443_v54 }
  0x2a   : > { %v530_v1 = vrot.slane %v342_v42, 5  ;;  %v10012_v2 = vsel %vm429_vm0, %v385_v50, %v442_v53  ;;  %v644_v3 = vrot.slane %v10007_v63, 1  ;;  %v386_v4 = vrot.slane %v343_v55, 1  ;;  %v349_v42 = vld [vmem:[%s9936_s26 + $0x80] sm:$0xff] }
  0x2b   : > { %9186 = vrot.lane.b32.xlu1 %v9185_v56, %s9822_s27  ;;  %v640_v6 = vsel %vm622_vm1, %v638_v60, %v639_v61  ;;  %v642_v7 = vsel %vm622_vm1, %v639_v61, %v641_v62  ;;  %v643_v8 = vrot.slane %v10012_v2, 1  ;;  %v445_v9 = vrot.slane %v343_v55, 7 }
  0x2c   : > { %v9190_v10 = vpack.i.bf16 %v642_v7, %v640_v6  ;;  %v10020_v11 = vsel %vm429_vm0, %v443_v54, %v530_v1  ;;  %v446_v12 = vrot.slane %v344_v0, 7  ;;  %v531_v13 = vrot.slane %v344_v0, 5  ;;  %v351_v0 = vld [vmem:[%s9936_s26 + $0x90] sm:$0xff] }
  0x2d   : > { %v645_v17 = vsel %vm622_vm1, %v643_v8, %v644_v3  ;;  %v646_v18 = vrot.slane %v10020_v11, 1  ;;  %v10026_v19 = vsel %vm429_vm0, %v386_v4, %v445_v9  ;;  %v387_v22 = vrot.slane %v345_v5, 1 }
  0x2e   : > { %9191 = vrot.lane.b32.xlu0 %v9190_v10, %s9822_s27  ;;  %v10031_v25 = vsel %vm429_vm0, %v445_v9, %v446_v12  ;;  %v10034_v26 = vsel %vm429_vm0, %v446_v12, %v531_v13  ;;  %v648_v27 = vrot.slane %v10026_v19, 1  ;;  %v448_v28 = vrot.slane %v345_v5, 7  ;;  %v352_v10 = vld [vmem:[%s9936_s26 + $0x98] sm:$0xff] }
  0x2f   : > { %v647_v30 = vsel %vm622_vm1, %v644_v3, %v646_v18  ;;  %v649_v31 = vrot.slane %v10031_v25, 1  ;;  %v651_v32 = vrot.slane %v10034_v26, 1  ;;  %v449_v33 = vrot.slane %v346_v16, 7  ;;  %v353_v18 = vld [vmem:[%s9936_s26 + $0xa0] sm:$0xff] }
  0x30   : > { %v9195_v34 = vpack.i.bf16 %v647_v30, %v645_v17  ;;  %v532_v36 = vrot.slane %v346_v16, 5  ;;  %v10041_v37 = vsel %vm429_vm0, %v387_v22, %v448_v28  ;;  %v388_v41 = vrot.slane %v347_v24, 1 }
  0x31   : > { %v650_v43 = vsel %vm622_vm1, %v648_v27, %v649_v31  ;;  %v652_v44 = vsel %vm622_vm1, %v649_v31, %v651_v32  ;;  %v10048_v45 = vsel %vm429_vm0, %v448_v28, %v449_v33  ;;  %v653_v46 = vrot.slane %v10041_v37, 1 }
  0x32   : > { %9196 = vrot.lane.b32.xlu1 %v9195_v34, %s9822_s27  ;;  %v9200_v48 = vpack.i.bf16 %v652_v44, %v650_v43  ;;  %v10054_v49 = vsel %vm429_vm0, %v449_v33, %v532_v36  ;;  %v654_v50 = vrot.slane %v10048_v45, 1  ;;  %v451_v51 = vrot.slane %v347_v24, 7  ;;  %v354_v34 = vld [vmem:[%s9936_s26 + $0xa8] sm:$0xff]  ;;  %v355_v43 = vld [vmem:[%s9936_s26 + $0xb0] sm:$0xff] }
  0x33   : > { %v656_v52 = vrot.slane %v10054_v49, 1  ;;  %v452_v53 = vrot.slane %v348_v38, 7  ;;  %v533_v54 = vrot.slane %v348_v38, 5  ;;  %v389_v55 = vrot.slane %v349_v42, 1 }
  0x34   : > { %9201 = vrot.lane.b32.xlu0 %v9200_v48, %s9822_s27  ;;  %v655_v56 = vsel %vm622_vm1, %v653_v46, %v654_v50  ;;  %v10061_v60 = vsel %vm429_vm0, %v388_v41, %v451_v51  ;;  %v454_v61 = vrot.slane %v349_v42, 7  ;;  %v455_v62 = vrot.slane %v350_v47, 7 }
  0x35   : > { %v657_v1 = vsel %vm622_vm1, %v654_v50, %v656_v52  ;;  %v10066_v3 = vsel %vm429_vm0, %v451_v51, %v452_v53  ;;  %v10069_v4 = vsel %vm429_vm0, %v452_v53, %v533_v54  ;;  %v658_v5 = vrot.slane %v10061_v60, 1 }
  0x36   : > { %v9205_v6 = vpack.i.bf16 %v657_v1, %v655_v56  ;;  %v659_v7 = vrot.slane %v10066_v3, 1  ;;  %v661_v8 = vrot.slane %v10069_v4, 1  ;;  %v10075_v9 = vsel %vm429_vm0, %v454_v61, %v455_v62 }
  0x37   : > { %v534_v12 = vrot.slane %v350_v47, 5  ;;  %v10079_v13 = vsel %vm429_vm0, %v389_v55, %v454_v61  ;;  %v664_v16 = vrot.slane %v10075_v9, 1  ;;  %v390_v17 = vrot.slane %v351_v0, 1  ;;  %v356_v61 = vld [vmem:[%s9936_s26 + $0xb8] sm:$0xff] }
  0x38   : > { %9206 = vrot.lane.b32.xlu1 %v9205_v6, %s9822_s27  ;;  %v660_v22 = vsel %vm622_vm1, %v658_v5, %v659_v7  ;;  %v662_v24 = vsel %vm622_vm1, %v659_v7, %v661_v8  ;;  %v663_v27 = vrot.slane %v10079_v13, 1  ;;  %v457_v28 = vrot.slane %v351_v0, 7  ;;  %v357_v0 = vld [vmem:[%s9936_s26 + $0xc0] sm:$0xff]  ;;  %v358_v8 = vld [vmem:[%s9936_s26 + $0xc8] sm:$0xff] }
  0x39   : > { %v9210_v30 = vpack.i.bf16 %v662_v24, %v660_v22  ;;  %v10088_v31 = vsel %vm429_vm0, %v455_v62, %v534_v12  ;;  %v458_v32 = vrot.slane %v352_v10, 7  ;;  %v535_v33 = vrot.slane %v352_v10, 5 }
  0x3a   : > { %v665_v36 = vsel %vm622_vm1, %v663_v27, %v664_v16  ;;  %v666_v38 = vrot.slane %v10088_v31, 1  ;;  %v10094_v41 = vsel %vm429_vm0, %v390_v17, %v457_v28  ;;  %v391_v42 = vrot.slane %v353_v18, 1 }
  0x3b   : > { %9211 = vrot.lane.b32.xlu0 %v9210_v30, %s9822_s27  ;;  %v10099_v44 = vsel %vm429_vm0, %v457_v28, %v458_v32  ;;  %v10102_v46 = vsel %vm429_vm0, %v458_v32, %v535_v33  ;;  %v668_v47 = vrot.slane %v10094_v41, 1  ;;  %v460_v48 = vrot.slane %v353_v18, 7 }
  0x3c   : > { %v667_v50 = vsel %vm622_vm1, %v664_v16, %v666_v38  ;;  %v669_v51 = vrot.slane %v10099_v44, 1  ;;  %v671_v52 = vrot.slane %v10102_v46, 1  ;;  %v461_v53 = vrot.slane %v354_v34, 7 }
  0x3d   : > { %v9215_v54 = vpack.i.bf16 %v667_v50, %v665_v36  ;;  %v536_v55 = vrot.slane %v354_v34, 5  ;;  %v10109_v56 = vsel %vm429_vm0, %v391_v42, %v460_v48  ;;  %v392_v62 = vrot.slane %v355_v43, 1  ;;  %v359_v34 = vld [vmem:[%s9936_s26 + $0xd0] sm:$0xff] }
  0x3e   : > { %v670_v1 = vsel %vm622_vm1, %v668_v47, %v669_v51  ;;  %v672_v5 = vsel %vm622_vm1, %v669_v51, %v671_v52  ;;  %v10116_v6 = vsel %vm429_vm0, %v460_v48, %v461_v53  ;;  %v673_v7 = vrot.slane %v10109_v56, 1  ;;  %v360_v52 = vld [vmem:[%s9936_s26 + $0xd8] sm:$0xff] }
  0x3f   : > { %9216 = vrot.lane.b32.xlu1 %v9215_v54, %s9822_s27  ;;  %v9220_v10 = vpack.i.bf16 %v672_v5, %v670_v1  ;;  %v10122_v12 = vsel %vm429_vm0, %v461_v53, %v536_v55  ;;  %v674_v16 = vrot.slane %v10116_v6, 1  ;;  %v463_v17 = vrot.slane %v355_v43, 7 }
  0x40   : > { %v676_v18 = vrot.slane %v10122_v12, 1  ;;  %v464_v22 = vrot.slane %v356_v61, 7  ;;  %v537_v24 = vrot.slane %v356_v61, 5  ;;  %v393_v27 = vrot.slane %v357_v0, 1 }
  0x41   : > { %9221 = vrot.lane.b32.xlu0 %v9220_v10, %s9822_s27  ;;  %v675_v28 = vsel %vm622_vm1, %v673_v7, %v674_v16  ;;  %v10129_v30 = vsel %vm429_vm0, %v392_v62, %v463_v17  ;;  %v466_v32 = vrot.slane %v357_v0, 7  ;;  %v467_v33 = vrot.slane %v358_v8, 7 }
  0x42   : > { %v677_v36 = vsel %vm622_vm1, %v674_v16, %v676_v18  ;;  %v10134_v38 = vsel %vm429_vm0, %v463_v17, %v464_v22  ;;  %v10137_v42 = vsel %vm429_vm0, %v464_v22, %v537_v24  ;;  %v678_v43 = vrot.slane %v10129_v30, 1 }
  0x43   : > { %v9225_v47 = vpack.i.bf16 %v677_v36, %v675_v28  ;;  %v679_v48 = vrot.slane %v10134_v38, 1  ;;  %v681_v50 = vrot.slane %v10137_v42, 1  ;;  %v10143_v51 = vsel %vm429_vm0, %v466_v32, %v467_v33 }
  0x44   : > { %v538_v53 = vrot.slane %v358_v8, 5  ;;  %v10147_v54 = vsel %vm429_vm0, %v393_v27, %v466_v32  ;;  %v684_v55 = vrot.slane %v10143_v51, 1  ;;  %v394_v61 = vrot.slane %v359_v34, 1 }
  0x45   : > { %9226 = vrot.lane.b32.xlu1 %v9225_v47, %s9822_s27  ;;  %v680_v62 = vsel %vm622_vm1, %v678_v43, %v679_v48  ;;  %v682_v0 = vsel %vm622_vm1, %v679_v48, %v681_v50  ;;  %v683_v1 = vrot.slane %v10147_v54, 1  ;;  %v469_v5 = vrot.slane %v359_v34, 7  ;;  %v1246_v50 = vld [vmem:[%s16501_s1 + $0x78] sm:$0xff] }
  0x46   : > { %v9230_v7 = vpack.i.bf16 %v682_v0, %v680_v62  ;;  %v10155_v10 = vsel %vm429_vm0, %v467_v33, %v538_v53  ;;  %v470_v8 = vrot.slane %v360_v52, 7  ;;  %v539_v16 = vrot.slane %v360_v52, 5  ;;  %v1278_v52 = vld [vmem:[%s16501_s1 + $0x178] sm:$0xff]  ;;  %v1244_v62 = vld [vmem:[%s16501_s1 + $0x68] sm:$0xff] }
  0x47   : > { %v685_v17 = vsel %vm622_vm1, %v683_v1, %v684_v55  ;;  %v686_v18 = vrot.slane %v10155_v10, 1  ;;  %v10160_v22 = vsel %vm429_vm0, %v394_v61, %v469_v5  ;;  %v16513_v53 = vmov 0.0   ;;  %v1277_v61 = vld [vmem:[%s16501_s1 + $0x170] sm:$0xff]  ;;  %v1276_v0 = vld [vmem:[%s16501_s1 + $0x168] sm:$0xff]  ;;  %v1243_v1 = vld [vmem:[%s16501_s1 + $0x60] sm:$0xff] }
  0x48   : > { %9231 = vrot.lane.b32.xlu0 %v9230_v7, %s9822_s27  ;;  %v10164_v24 = vsel %vm429_vm0, %v469_v5, %v470_v8  ;;  %v10167_v27 = vsel %vm429_vm0, %v470_v8, %v539_v16  ;;  %v688_v28 = vrot.slane %v10160_v22, 1  ;;  %1370 = vmatprep.subr.mxu0 %v16513_v53  ;;  %v1275_v5 = vld [vmem:[%s16501_s1 + $0x160] sm:$0xff]  ;;  %v1242_v7 = vld [vmem:[%s16501_s1 + $0x58] sm:$0xff]  ;;  %v1241_v16 = vld [vmem:[%s16501_s1 + $0x50] sm:$0xff] }
  0x49   : > { %v687_v32 = vsel %vm622_vm1, %v684_v55, %v686_v18  ;;  %v689_v33 = vrot.slane %v10164_v24, 1  ;;  %v691_v34 = vrot.slane %v10167_v27, 1  ;;  %v1245_v55 = vld [vmem:[%s16501_s1 + $0x70] sm:$0xff]  ;;  %1595 = vmatprep.subr.mxu1 %v16513_v53  ;;  %1371 = vmatpush1.msra.mxu0 %v1246_v50  ;;  %v1274_v8 = vld [vmem:[%s16501_s1 + $0x158] sm:$0xff]  ;;  %v1240_v18 = vld [vmem:[%s16501_s1 + $0x48] sm:$0xff] }
  0x4a   : > { %v9235_v36 = vpack.i.bf16 %v687_v32, %v685_v17  ;;  %1596 = vmatpush1.msra.mxu1 %v1278_v52  ;;  %1372 = vmatprep.subr.mxu0 %v16513_v53  ;;  %v1273_v17 = vld [vmem:[%s16501_s1 + $0x150] sm:$0xff]  ;;  %v1239_v32 = vld [vmem:[%s16501_s1 + $0x40] sm:$0xff]  ;;  %v1268_v50 = vld [vmem:[%s16501_s1 + $0x128] sm:$0xff] }
  0x4b   : > { %v690_v43 = vsel %vm622_vm1, %v688_v28, %v689_v33  ;;  %v692_v47 = vsel %vm622_vm1, %v689_v33, %v691_v34  ;;  %1597 = vmatprep.subr.mxu1 %v16513_v53  ;;  %1373 = vmatpush1.msra.mxu0 %v1245_v55  ;;  %v1272_v28 = vld [vmem:[%s16501_s1 + $0x148] sm:$0xff]  ;;  %v1271_v33 = vld [vmem:[%s16501_s1 + $0x140] sm:$0xff]  ;;  %v1238_v34 = vld [vmem:[%s16501_s1 + $0x38] sm:$0xff] }
  0x4c   : > { %9236 = vrot.lane.b32.xlu1 %v9235_v36, %s9822_s27  ;;  %v9240_v48 = vpack.i.bf16 %v692_v47, %v690_v43  ;;  %1598 = vmatpush1.msra.mxu1 %v1277_v61  ;;  %v1270_v36 = vld [vmem:[%s16501_s1 + $0x138] sm:$0xff]  ;;  %v1237_v43 = vld [vmem:[%s16501_s1 + $0x30] sm:$0xff]  ;;  %v1235_v52 = vld [vmem:[%s16501_s1 + $0x20] sm:$0xff] }
  0x4d   : > { %1374 = vmatprep.subr.mxu0 %v16513_v53  ;;  %1599 = vmatprep.subr.mxu1 %v16513_v53  ;;  %v1269_v47 = vld [vmem:[%s16501_s1 + $0x130] sm:$0xff]  ;;  %v1267_v55 = vld [vmem:[%s16501_s1 + $0x120] sm:$0xff]  ;;  %v1234_v61 = vld [vmem:[%s16501_s1 + $0x18] sm:$0xff] }
  0x4e   : > { %9241 = vrot.lane.b32.xlu0 %v9240_v48, %s9822_s27  ;;  %1375 = vmatpush1.msra.mxu0 %v1244_v62  ;;  %v1236_v48 = vld [vmem:[%s16501_s1 + $0x28] sm:$0xff]  ;;  %v1266_v62 = vld [vmem:[%s16501_s1 + $0x118] sm:$0xff] }
  0x4f   : > { %1600 = vmatpush1.msra.mxu1 %v1276_v0  ;;  %1376 = vmatprep.subr.mxu0 %v16513_v53  ;;  %v1233_v0 = vld [vmem:[%s16501_s1 + $0x10] sm:$0xff] }
  0x50   : > { %1601 = vmatprep.subr.mxu1 %v16513_v53  ;;  %1377 = vmatpush1.msra.mxu0 %v1243_v1  ;;  %v1265_v1 = vld [vmem:[%s16501_s1 + $0x110] sm:$0xff] }
  0x51   : > { %1602 = vmatpush1.msra.mxu1 %v1275_v5  ;;  %1378 = vmatprep.subr.mxu0 %v16513_v53  ;;  %v1232_v5 = vld [vmem:[%s16501_s1 + $0x8] sm:$0xff] }
  0x52   : > { %1603 = vmatprep.subr.mxu1 %v16513_v53  ;;  %1379 = vmatpush1.msra.mxu0 %v1242_v7  ;;  %v1264_v7 = vld [vmem:[%s16501_s1 + $0x108] sm:$0xff] }
  0x53   : > { %1604 = vmatpush1.msra.mxu1 %v1274_v8  ;;  %1380 = vmatprep.subr.mxu0 %v16513_v53  ;;  %v1231_v8 = vld [vmem:[%s16501_s1] sm:$0xff] }
  0x54   : > { %1605 = vmatprep.subr.mxu1 %v16513_v53  ;;  %1381 = vmatpush1.msra.mxu0 %v1241_v16  ;;  %v1263_v16 = vld [vmem:[%s16501_s1 + $0x100] sm:$0xff] }
  0x55   : > { %1606 = vmatpush1.msra.mxu1 %v1273_v17  ;;  %1382 = vmatprep.subr.mxu0 %v16513_v53  ;;  %v1262_v17 = vld [vmem:[%s16501_s1 + $0xf8] sm:$0xff] }
  0x56   : > { %1607 = vmatprep.subr.mxu1 %v16513_v53  ;;  %1383 = vmatpush1.msra.mxu0 %v1240_v18  ;;  %v1294_v18 = vld [vmem:[%s16501_s1 + $0x1f8] sm:$0xff] }
  0x57   : > { %1608 = vmatpush1.msra.mxu1 %v1272_v28  ;;  %1384 = vmatprep.subr.mxu0 %v16513_v53  ;;  %v1261_v28 = vld [vmem:[%s16501_s1 + $0xf0] sm:$0xff] }
  0x58   : > { %1609 = vmatprep.subr.mxu1 %v16513_v53  ;;  %1385 = vmatpush1.msra.mxu0 %v1239_v32  ;;  %v1293_v32 = vld [vmem:[%s16501_s1 + $0x1f0] sm:$0xff] }
  0x59   : > { %1610 = vmatpush1.msra.mxu1 %v1271_v33  ;;  %1386 = vmatprep.subr.mxu0 %v16513_v53  ;;  %v1260_v33 = vld [vmem:[%s16501_s1 + $0xe8] sm:$0xff] }
  0x5a   : > { %1611 = vmatprep.subr.mxu1 %v16513_v53  ;;  %1387 = vmatpush1.msra.mxu0 %v1238_v34  ;;  %v1292_v34 = vld [vmem:[%s16501_s1 + $0x1e8] sm:$0xff] }
  0x5b   : > { %1612 = vmatpush1.msra.mxu1 %v1270_v36  ;;  %1388 = vmatprep.subr.mxu0 %v16513_v53  ;;  %v1259_v36 = vld [vmem:[%s16501_s1 + $0xe0] sm:$0xff] }
  0x5c   : > { %1613 = vmatprep.subr.mxu1 %v16513_v53  ;;  %1389 = vmatpush1.msra.mxu0 %v1237_v43  ;;  %v1291_v43 = vld [vmem:[%s16501_s1 + $0x1e0] sm:$0xff] }
  0x5d   : > { %1614 = vmatpush1.msra.mxu1 %v1269_v47  ;;  %1390 = vmatprep.subr.mxu0 %v16513_v53  ;;  %v1258_v47 = vld [vmem:[%s16501_s1 + $0xd8] sm:$0xff] }
  0x5e   : > { %1615 = vmatprep.subr.mxu1 %v16513_v53  ;;  %1391 = vmatpush1.msra.mxu0 %v1236_v48  ;;  %v1290_v48 = vld [vmem:[%s16501_s1 + $0x1d8] sm:$0xff] }
  0x5f   : > { %1616 = vmatpush1.msra.mxu1 %v1268_v50  ;;  %1392 = vmatprep.subr.mxu0 %v16513_v53  ;;  %v1257_v50 = vld [vmem:[%s16501_s1 + $0xd0] sm:$0xff] }
  0x60   : > { %1617 = vmatprep.subr.mxu1 %v16513_v53  ;;  %1393 = vmatpush1.msra.mxu0 %v1235_v52  ;;  %v1289_v52 = vld [vmem:[%s16501_s1 + $0x1d0] sm:$0xff] }
  0x61   : > { %1618 = vmatpush1.msra.mxu1 %v1267_v55  ;;  %1394 = vmatprep.subr.mxu0 %v16513_v53  ;;  %v1256_v55 = vld [vmem:[%s16501_s1 + $0xc8] sm:$0xff] }
  0x62   : > { %1619 = vmatprep.subr.mxu1 %v16513_v53  ;;  %1395 = vmatpush1.msra.mxu0 %v1234_v61  ;;  %v1288_v61 = vld [vmem:[%s16501_s1 + $0x1c8] sm:$0xff] }
  0x63   : > { %1620 = vmatpush1.msra.mxu1 %v1266_v62  ;;  %1396 = vmatprep.subr.mxu0 %v16513_v53  ;;  %v1255_v62 = vld [vmem:[%s16501_s1 + $0xc0] sm:$0xff] }
  0x64   : > { %1621 = vmatprep.subr.mxu1 %v16513_v53  ;;  %1397 = vmatpush1.msra.mxu0 %v1233_v0  ;;  %v1254_v0 = vld [vmem:[%s16501_s1 + $0xb8] sm:$0xff] }
  0x65   : > { %1622 = vmatpush1.msra.mxu1 %v1265_v1  ;;  %1398 = vmatprep.subr.mxu0 %v16513_v53  ;;  %v1253_v1 = vld [vmem:[%s16501_s1 + $0xb0] sm:$0xff] }
  0x66   : > { %1623 = vmatprep.subr.mxu1 %v16513_v53  ;;  %1399 = vmatpush1.msra.mxu0 %v1232_v5  ;;  %v1252_v5 = vld [vmem:[%s16501_s1 + $0xa8] sm:$0xff] }
  0x67   : > { %1624 = vmatpush1.msra.mxu1 %v1264_v7  ;;  %1400 = vmatprep.subr.mxu0 %v16513_v53  ;;  %v1287_v7 = vld [vmem:[%s16501_s1 + $0x1c0] sm:$0xff] }
  0x68   : > { %1625 = vmatprep.subr.mxu1 %v16513_v53  ;;  %1401 = vmatpush1.msra.mxu0 %v1231_v8  ;;  %v361_v8 = vld [vmem:[%s9936_s26 + $0xe0] sm:$0xff] }
  0x69   : > { %1626 = vmatpush1.msra.mxu1 %v1263_v16  ;;  %1402 = vmatprep.subr.mxu0 %v16513_v53  ;;  %v362_v16 = vld [vmem:[%s9936_s26 + $0xe8] sm:$0xff] }
  0x6a   : > { %1627 = vmatprep.subr.mxu1 %v16513_v53  ;;  %1403 = vmatpush2.msra.mxu0 %v1262_v17  ;;  %v363_v17 = vld [vmem:[%s9936_s26 + $0xf0] sm:$0xff] }
  0x6b   : > { %1628 = vmatpush2.msra.mxu1 %v1294_v18  ;;  %1404 = vmatprep.subr.mxu0 %v16513_v53  ;;  %v1251_v18 = vld [vmem:[%s16501_s1 + $0xa0] sm:$0xff] }
  0x6c   : > { %1629 = vmatprep.subr.mxu1 %v16513_v53  ;;  %1405 = vmatpush2.msra.mxu0 %v1261_v28  ;;  %v364_v28 = vld [vmem:[%s9936_s26 + $0xf8] sm:$0xff]  ;;  %s9764_s26 = sshll.u32 %s9827_s25, 4  ;;  %s9765_s26 = int_to_ptr.vmem [resolvable:$false] %s9764_s26 }
  0x6d   : > { %1630 = vmatpush2.msra.mxu1 %v1293_v32  ;;  %1406 = vmatprep.subr.mxu0 %v16513_v53  ;;  %v1286_v32 = vld [vmem:[%s16501_s1 + $0x1b8] sm:$0xff]  ;;  %s9766_s28 = scalar_lea.vmem %s9765_s26, 512 }
  0x6e   : > { %1631 = vmatprep.subr.mxu1 %v16513_v53  ;;  %1407 = vmatpush2.msra.mxu0 %v1260_v33  ;;  %v1285_v33 = vld [vmem:[%s16501_s1 + $0x1b0] sm:$0xff] }
  0x6f   : > { %1632 = vmatpush2.msra.mxu1 %v1292_v34  ;;  %1408 = vmatprep.subr.mxu0 %v16513_v53  ;;  %v395_v34 = vrot.slane %v361_v8, 1 }
  0x70   : > { %1633 = vmatprep.subr.mxu1 %v16513_v53  ;;  %1409 = vmatpush2.msra.mxu0 %v1259_v36  ;;  %v472_v36 = vrot.slane %v361_v8, 7  ;;  %v541_v8 = vrot.slane %v364_v28, 5 }
  0x71   : > { %1634 = vmatpush2.msra.mxu1 %v1291_v43  ;;  %1410 = vmatprep.subr.mxu0 %v16513_v53  ;;  %v473_v43 = vrot.slane %v362_v16, 7 }
  0x72   : > { %1635 = vmatprep.subr.mxu1 %v16513_v53  ;;  %1411 = vmatpush2.msra.mxu0 %v1258_v47  ;;  %v1250_v47 = vld [vmem:[%s16501_s1 + $0x98] sm:$0xff] }
  0x73   : > { %1636 = vmatpush2.msra.mxu1 %v1290_v48  ;;  %1412 = vmatprep.subr.mxu0 %v16513_v53  ;;  %v540_v48 = vrot.slane %v362_v16, 5  ;;  %v1283_v16 = vld [vmem:[%s16501_s1 + $0x1a0] sm:$0xff] }
  0x74   : > { %1637 = vmatprep.subr.mxu1 %v16513_v53  ;;  %1413 = vmatpush2.msra.mxu0 %v1257_v50  ;;  %v475_v50 = vrot.slane %v363_v17, 7 }
  0x75   : > { %1638 = vmatpush2.msra.mxu1 %v1289_v52  ;;  %1414 = vmatprep.subr.mxu0 %v16513_v53  ;;  %v476_v52 = vrot.slane %v364_v28, 7 }
  0x76   : > { %1639 = vmatprep.subr.mxu1 %v16513_v53  ;;  %1415 = vmatpush2.msra.mxu0 %v1256_v55  ;;  %v396_v55 = vrot.slane %v363_v17, 1 }
  0x77   : > { %1640 = vmatpush2.msra.mxu1 %v1288_v61  ;;  %1416 = vmatprep.subr.mxu0 %v16513_v53  ;;  %v1249_v61 = vld [vmem:[%s16501_s1 + $0x90] sm:$0xff]  ;;  %v10425_v17 = vsel %vm429_vm0, %v475_v50, %v476_v52 }
  0x78   : > { %1641 = vmatprep.subr.mxu1 %v16513_v53  ;;  %1417 = vmatpush2.msra.mxu0 %v1255_v62  ;;  %v10406_v62 = vsel %vm429_vm0, %v472_v36, %v473_v43  ;;  %16709 = vst [vmem:[#allocation6_spill] sm:$0xff] %v10425_v17 }
  0x79   : > { %1418 = vmatprep.subr.mxu0 %v16513_v53  ;;  %1642 = vmatpush2.msra.mxu1 %v1287_v7  ;;  %v10419_v7 = vsel %vm429_vm0, %v473_v43, %v540_v48  ;;  %v1282_v43 = vld [vmem:[%s16501_s1 + $0x198] sm:$0xff]  ;;  %v10448_v48 = vsel %vm429_vm0, %v476_v52, %v541_v8 }
  0x7a   : > { %1419 = vmatpush2.msra.mxu0 %v1254_v0  ;;  %1643 = vmatprep.subr.mxu1 %v16513_v53  ;;  %v10409_v0 = vsel %vm429_vm0, %v395_v34, %v472_v36  ;;  %v696_v36 = vrot.slane %v10419_v7, 1  ;;  %16711 = vst [vmem:[#allocation8_spill] sm:$0xff] %v10448_v48 }
  0x7b   : > { %1420 = vmatprep.subr.mxu0 %v16513_v53  ;;  %1644 = vmatpush2.msra.mxu1 %v1286_v32  ;;  %v1247_v32 = vld [vmem:[%s16501_s1 + $0x80] sm:$0xff]  ;;  %v693_v28 = vrot.slane %v10409_v0, 1 }
  0x7c   : > { %1421 = vmatpush2.msra.mxu0 %v1253_v1  ;;  %1645 = vmatprep.subr.mxu1 %v16513_v53  ;;  %v1248_v1 = vld [vmem:[%s16501_s1 + $0x88] sm:$0xff] }
  0x7d   : > { %1422 = vmatprep.subr.mxu0 %v16513_v53  ;;  %1646 = vmatpush2.msra.mxu1 %v1285_v33  ;;  %v694_v33 = vrot.slane %v10406_v62, 1 }
  0x7e   : > { %1423 = vmatpush2.msra.mxu0 %v1252_v5  ;;  %1647 = vmatprep.subr.mxu1 %v16513_v53  ;;  %v1284_v5 = vld [vmem:[%s16501_s1 + $0x1a8] sm:$0xff] }
  0x7f   : > { %1424 = vmatprep.subr.mxu0 %v16513_v53  ;;  %1648 = vmatpush2.msra.mxu1 %v1284_v5  ;;  %v697_v8 = vsel %vm622_vm1, %v694_v33, %v696_v36 }
  0x80   : > { %1425 = vmatpush2.msra.mxu0 %v1251_v18  ;;  %v10428_v18 = vsel %vm429_vm0, %v396_v55, %v475_v50  ;;  %1649 = vmatprep.subr.mxu1 %v16513_v53  ;;  %v699_v50 = vrot.slane %v10425_v17, 1 }
  0x81   : > { %1426 = vmatprep.subr.mxu0 %v16513_v53  ;;  %1650 = vmatpush2.msra.mxu1 %v1283_v16  ;;  %v698_v55 = vrot.slane %v10428_v18, 1  ;;  %v701_v16 = vrot.slane %v10448_v48, 1 }
  0x82   : > { %1427 = vmatpush2.msra.mxu0 %v1250_v47  ;;  %1651 = vmatprep.subr.mxu1 %v16513_v53 }
  0x83   : > { %1428 = vmatprep.subr.mxu0 %v16513_v53  ;;  %1652 = vmatpush2.msra.mxu1 %v1282_v43  ;;  %v1280_v43 = vld [vmem:[%s16501_s1 + $0x188] sm:$0xff] }
  0x84   : > { %1429 = vmatpush2.msra.mxu0 %v1249_v61  ;;  %1653 = vmatprep.subr.mxu1 %v16513_v53  ;;  %v1281_v61 = vld [vmem:[%s16501_s1 + $0x190] sm:$0xff] }
  0x85   : > { %1430 = vmatprep.subr.mxu0 %v16513_v53  ;;  %1654 = vmatpush2.msra.mxu1 %v1281_v61  ;;  %v10480_v61 = vld [vmem:[%s16501_s1 + $0x238] sm:$0xff] }
  0x86   : > { %1431 = vmatpush2.msra.mxu0 %v1248_v1  ;;  %v695_v1 = vsel %vm622_vm1, %v693_v28, %v694_v33  ;;  %1655 = vmatprep.subr.mxu1 %v16513_v53  ;;  %v700_v33 = vsel %vm622_vm1, %v698_v55, %v699_v50 }
  0x87   : > { %1432 = vmatprep.subr.mxu0 %v16513_v53  ;;  %1656 = vmatpush2.msra.mxu1 %v1280_v43 }
  0x88   : > { %1433 = vmatpush2.msra.mxu0 %v1247_v32  ;;  %v805_v32 = vrot.slane %v9947_v15, 2  ;;  %1657 = vmatprep.subr.mxu1 %v16513_v53 }
  0x89   : > { %8886 = vmatprep.subr.mxu0 %v10480_v61 }
  0x95   : > { %v708_v34 = vpop.permute.xlu0 %707 }
  0x96   : > { %v10445_v47 = vsel %vm910_vm2, %v9947_v15, %v708_v34  ;;  %v806_v34 = vrot.slane %v9944_v14, 2  ;;  %v1279_v15 = vld [vmem:[%s16501_s1 + $0x180] sm:$0xff] }
  0x97   : > { %16710 = vst [vmem:[#allocation7_spill] sm:$0xff] %v10445_v47  ;;  %975 = vrot.lane.b32.xlu1 %v10445_v47, %s9822_s27  ;;  %1658 = vmatpush2.msra.mxu1 %v1279_v15 }
  0x98   : > { %v10500_v15 = vsel %vm799_vm3, %v805_v32, %v806_v34 }
  0x99   : > { %v9182_v52 = vpop.permute.xlu1 %9181  ;;  %v710_v5 = vpop.permute.xlu0 %709 }
  0x9a   : > { %v9184_v47 = vunpack.i.h.bf16 %v9182_v52  ;;  %v9183_v17 = vunpack.i.l.bf16 %v9182_v52  ;;  %v10469_v28 = vsel %vm910_vm2, %v9944_v14, %v710_v5  ;;  %v800_v14 = vrot.slane %v9955_v21, 2 }
  0x9b   : > { %16712 = vst [vmem:[#allocation9_spill] sm:$0xff] %v10469_v28  ;;  %v9245_v36 = vpack.i.bf16 %v10469_v28, %v695_v1  ;;  %v801_v52 = vrot.slane %v9952_v20, 2  ;;  %v808_v5 = vrot.slane %v9968_v29, 2  ;;  %v16713_v28 = vmov 0.0  }
  0x9c   : > { %v10485_v55 = vsel %vm910_vm2, %v9955_v21, %v9183_v17  ;;  %v10489_v1 = vsel %vm910_vm2, %v9952_v20, %v9184_v47  ;;  %v702_v47 = vsel %vm622_vm1, %v699_v50, %v701_v16  ;;  %3078 = vmatprep.subr.mxu1 %v16713_v28  ;;  %v803_v20 = vrot.slane %v9959_v23, 2 }
  0x9d   : > { %v9187_v43 = vpop.permute.xlu1 %9186  ;;  %v9250_v53 = vpack.i.bf16 %v10485_v55, %v697_v8  ;;  %9246 = vrot.lane.b32.xlu0 %v9245_v36, %s9822_s27  ;;  %1659 = vmatprep.mubr.f32.mxu1 %v10485_v55  ;;  %v9255_v21 = vpack.i.bf16 %v10489_v1, %v700_v33  ;;  %v811_v23 = vrot.slane %v9979_v39, 2 }
  0x9e   : > { %v9189_v17 = vunpack.i.h.bf16 %v9187_v43  ;;  %v9188_v48 = vunpack.i.l.bf16 %v9187_v43  ;;  %v10523_v43 = vsel %vm799_vm3, %v800_v14, %v801_v52 }
  0x9f   : > { %9251 = vrot.lane.b32.xlu1 %v9250_v53, %s9822_s27  ;;  %v810_v53 = vrot.slane %v9974_v35, 2 }
  0xa0   : > { %v10507_v29 = vsel %vm910_vm2, %v9974_v35, %v9188_v48  ;;  %v10511_v8 = vsel %vm910_vm2, %v9979_v39, %v9189_v17  ;;  %v9192_v33 = vpop.permute.xlu0 %9191  ;;  %v10520_v48 = vsel %vm799_vm3, %v806_v34, %v808_v5  ;;  %v813_v17 = vrot.slane %v9982_v40, 2 }
  0xa1   : > { %v9260_v50 = vpack.i.bf16 %v10507_v29, %v702_v47  ;;  %9256 = vrot.lane.b32.xlu0 %v9255_v21, %s9822_s27  ;;  %v9265_v16 = vpack.i.bf16 %v10511_v8, %v10500_v15  ;;  %v9194_v32 = vunpack.i.h.bf16 %v9192_v33  ;;  %v9193_v36 = vunpack.i.l.bf16 %v9192_v33 }
  0xa2   : > { %v10541_v5 = vsel %vm799_vm3, %v801_v52, %v803_v20  ;;  %v10544_v40 = vsel %vm799_vm3, %v810_v53, %v811_v23 }
  0xa3   : > { %9261 = vrot.lane.b32.xlu1 %v9260_v50, %s9822_s27  ;;  %v10529_v21 = vsel %vm910_vm2, %v9998_v58, %v9193_v36  ;;  %v10533_v35 = vsel %vm910_vm2, %v9995_v57, %v9194_v32  ;;  %v815_v50 = vrot.slane %v9998_v58, 2  ;;  %v816_v32 = vrot.slane %v9995_v57, 2 }
  0xa4   : > { %16714 = vst [vmem:[#allocation10_spill] sm:$0xff] %v10529_v21  ;;  %16715 = vst [vmem:[#allocation11_spill] sm:$0xff] %v10533_v35  ;;  %v9197_v39 = vpop.permute.xlu1 %9196  ;;  %v9270_v34 = vpack.i.bf16 %v10529_v21, %v10520_v48  ;;  %v9275_v14 = vpack.i.bf16 %v10533_v35, %v10523_v43  ;;  %v10550_v36 = vsel %vm799_vm3, %v811_v23, %v813_v17  ;;  %v818_v35 = vrot.slane %v10001_v59, 2 }
  0xa5   : > { %9266 = vrot.lane.b32.xlu0 %v9265_v16, %s9822_s27  ;;  %v9199_v47 = vunpack.i.h.bf16 %v9197_v39  ;;  %v9198_v33 = vunpack.i.l.bf16 %v9197_v39  ;;  %v820_v59 = vrot.slane %v10012_v2, 2  ;;  %v10572_v17 = vsel %vm799_vm3, %v815_v50, %v816_v32 }
  0xa6   : > { %v9202_v16 = vpop.permute.xlu0 %9201  ;;  %v823_v50 = vrot.slane %v10020_v11, 2  ;;  %v826_v11 = vrot.slane %v10031_v25, 2 }
  0xa7   : > { %9271 = vrot.lane.b32.xlu1 %v9270_v34, %s9822_s27  ;;  %v9204_v21 = vunpack.i.h.bf16 %v9202_v16  ;;  %v9203_v52 = vunpack.i.l.bf16 %v9202_v16  ;;  %v10555_v20 = vsel %vm910_vm2, %v10012_v2, %v9198_v33  ;;  %v10559_v53 = vsel %vm910_vm2, %v10007_v63, %v9199_v47 }
  0xa8   : > { %v9280_v57 = vpack.i.bf16 %v10555_v20, %v10541_v5  ;;  %v9285_v58 = vpack.i.bf16 %v10559_v53, %v10544_v40  ;;  %v821_v34 = vrot.slane %v10007_v63, 2  ;;  %v10583_v16 = vsel %vm799_vm3, %v816_v32, %v818_v35 }
  0xa9   : > { %9276 = vrot.lane.b32.xlu0 %v9275_v14, %s9822_s27  ;;  %v10569_v23 = vsel %vm910_vm2, %v10026_v19, %v9203_v52  ;;  %v10576_v39 = vsel %vm910_vm2, %v10031_v25, %v9204_v21  ;;  %v825_v63 = vrot.slane %v10026_v19, 2 }
  0xaa   : > { %16716 = vst [vmem:[#allocation12_spill] sm:$0xff] %v10569_v23  ;;  %v9290_v14 = vpack.i.bf16 %v10569_v23, %v10550_v36  ;;  %v9207_v47 = vpop.permute.xlu1 %9206  ;;  %v9295_v21 = vpack.i.bf16 %v10576_v39, %v10572_v17  ;;  %v10595_v23 = vsel %vm799_vm3, %v820_v59, %v821_v34 }
  0xab   : > { %9281 = vrot.lane.b32.xlu1 %v9280_v57, %s9822_s27  ;;  %v9209_v2 = vunpack.i.h.bf16 %v9207_v47  ;;  %v9208_v33 = vunpack.i.l.bf16 %v9207_v47  ;;  %v10606_v47 = vsel %vm799_vm3, %v821_v34, %v823_v50  ;;  %v830_v34 = vrot.slane %v10041_v37, 2 }
  0xad   : > { %9286 = vrot.lane.b32.xlu0 %v9285_v58, %s9822_s27  ;;  %v10592_v52 = vsel %vm910_vm2, %v10041_v37, %v9208_v33  ;;  %v9212_v57 = vpop.permute.xlu0 %9211  ;;  %v10599_v35 = vsel %vm910_vm2, %v10048_v45, %v9209_v2  ;;  %v828_v33 = vrot.slane %v10034_v26, 2  ;;  %v10617_v2 = vsel %vm799_vm3, %v825_v63, %v826_v11 }
  0xae   : > { %16717 = vst [vmem:[#allocation13_spill] sm:$0xff] %v10592_v52  ;;  %16718 = vst [vmem:[#allocation14_spill] sm:$0xff] %v10599_v35  ;;  %v9300_v32 = vpack.i.bf16 %v10592_v52, %v10583_v16  ;;  %v9214_v19 = vunpack.i.h.bf16 %v9212_v57  ;;  %v9213_v58 = vunpack.i.l.bf16 %v9212_v57  ;;  %v9305_v59 = vpack.i.bf16 %v10599_v35, %v10595_v23 }
  0xaf   : > { %9291 = vrot.lane.b32.xlu1 %v9290_v14, %s9822_s27  ;;  %v831_v26 = vrot.slane %v10048_v45, 2  ;;  %v10629_v35 = vsel %vm799_vm3, %v826_v11, %v828_v33  ;;  %v833_v52 = vrot.slane %v10054_v49, 2  ;;  %v836_v49 = vrot.slane %v10066_v3, 2 }
  0xb0   : > { %v10614_v25 = vsel %vm910_vm2, %v10061_v60, %v9213_v58  ;;  %v10621_v57 = vsel %vm910_vm2, %v10066_v3, %v9214_v19  ;;  %v835_v19 = vrot.slane %v10061_v60, 2 }
  0xb1   : > { %9296 = vrot.lane.b32.xlu0 %v9295_v21, %s9822_s27  ;;  %16719 = vst [vmem:[#allocation15_spill] sm:$0xff] %v10614_v25  ;;  %v9217_v14 = vpop.permute.xlu1 %9216  ;;  %v9310_v50 = vpack.i.bf16 %v10614_v25, %v10606_v47  ;;  %v9315_v37 = vpack.i.bf16 %v10621_v57, %v10617_v2 }
  0xb2   : > { %v9219_v21 = vunpack.i.h.bf16 %v9217_v14  ;;  %v9218_v58 = vunpack.i.l.bf16 %v9217_v14  ;;  %v10641_v14 = vsel %vm799_vm3, %v830_v34, %v831_v26 }
  0xb3   : > { %9301 = vrot.lane.b32.xlu1 %v9300_v32, %s9822_s27  ;;  %v9222_v63 = vpop.permute.xlu0 %9221 }
  0xb4   : > { %v10637_v45 = vsel %vm910_vm2, %v10079_v13, %v9218_v58  ;;  %v9223_v32 = vunpack.i.l.bf16 %v9222_v63  ;;  %v9224_v25 = vunpack.i.h.bf16 %v9222_v63  ;;  %v10645_v11 = vsel %vm910_vm2, %v10075_v9, %v9219_v21 }
  0xb5   : > { %9306 = vrot.lane.b32.xlu0 %v9305_v59, %s9822_s27  ;;  %16720 = vst [vmem:[#allocation16_spill] sm:$0xff] %v10637_v45  ;;  %v9320_v33 = vpack.i.bf16 %v10637_v45, %v10629_v35  ;;  %v10652_v59 = vsel %vm799_vm3, %v831_v26, %v833_v52  ;;  %v838_v58 = vrot.slane %v10069_v4, 2  ;;  %v9325_v3 = vpack.i.bf16 %v10645_v11, %v10641_v14 }
  0xb6   : > { %v10656_v60 = vsel %vm910_vm2, %v10094_v41, %v9223_v32  ;;  %v10664_v45 = vsel %vm799_vm3, %v835_v19, %v836_v49  ;;  %v10668_v52 = vsel %vm910_vm2, %v10099_v44, %v9224_v25  ;;  %v841_v26 = vrot.slane %v10075_v9, 2 }
  0xb7   : > { %9311 = vrot.lane.b32.xlu1 %v9310_v50, %s9822_s27  ;;  %16721 = vst [vmem:[#allocation17_spill] sm:$0xff] %v10656_v60  ;;  %v9227_v34 = vpop.permute.xlu1 %9226  ;;  %v840_v50 = vrot.slane %v10079_v13, 2  ;;  %16722 = vst [vmem:[#allocation18_spill] sm:$0xff] %v10668_v52  ;;  %v9330_v4 = vpack.i.bf16 %v10656_v60, %v10652_v59  ;;  %v10675_v32 = vsel %vm799_vm3, %v836_v49, %v838_v58  ;;  %v845_v25 = vrot.slane %v10094_v41, 2 }
  0xb8   : > { %v9228_v21 = vunpack.i.l.bf16 %v9227_v34  ;;  %v9229_v63 = vunpack.i.h.bf16 %v9227_v34  ;;  %v843_v34 = vrot.slane %v10088_v31, 2  ;;  %v9335_v9 = vpack.i.bf16 %v10668_v52, %v10664_v45 }
  0xb9   : > { %9316 = vrot.lane.b32.xlu0 %v9315_v37, %s9822_s27  ;;  %v10687_v60 = vsel %vm799_vm3, %v840_v50, %v841_v26  ;;  %v846_v58 = vrot.slane %v10099_v44, 2 }
  0xba   : > { %v9232_v37 = vpop.permute.xlu0 %9231  ;;  %v10679_v13 = vsel %vm910_vm2, %v10109_v56, %v9228_v21  ;;  %v10691_v49 = vsel %vm910_vm2, %v10116_v6, %v9229_v63  ;;  %v10698_v21 = vsel %vm799_vm3, %v841_v26, %v843_v34 }
  0xbb   : > { %9321 = vrot.lane.b32.xlu1 %v9320_v33, %s9822_s27  ;;  %16723 = vst [vmem:[#allocation19_spill] sm:$0xff] %v10679_v13  ;;  %v9233_v19 = vunpack.i.l.bf16 %v9232_v37  ;;  %v9234_v33 = vunpack.i.h.bf16 %v9232_v37  ;;  %v9340_v31 = vpack.i.bf16 %v10679_v13, %v10675_v32  ;;  %v848_v37 = vrot.slane %v10102_v46, 2 }
  0xbc   : > { %v9345_v44 = vpack.i.bf16 %v10691_v49, %v10687_v60  ;;  %v10710_v52 = vsel %vm799_vm3, %v845_v25, %v846_v58  ;;  %v853_v25 = vrot.slane %v10122_v12, 2 }
  0xbd   : > { %9326 = vrot.lane.b32.xlu0 %v9325_v3, %s9822_s27  ;;  %v10702_v41 = vsel %vm910_vm2, %v10129_v30, %v9233_v19  ;;  %v10714_v26 = vsel %vm910_vm2, %v10134_v38, %v9234_v33  ;;  %v851_v19 = vrot.slane %v10116_v6, 2  ;;  %v10721_v34 = vsel %vm799_vm3, %v846_v58, %v848_v37 }
  0xbe   : > { %v9237_v3 = vpop.permute.xlu1 %9236  ;;  %16724 = vst [vmem:[#allocation20_spill] sm:$0xff] %v10714_v26  ;;  %v9350_v46 = vpack.i.bf16 %v10702_v41, %v10698_v21  ;;  %v9355_v6 = vpack.i.bf16 %v10714_v26, %v10710_v52  ;;  %v855_v33 = vrot.slane %v10129_v30, 2 }
  0xbf   : > { %9331 = vrot.lane.b32.xlu1 %v9330_v4, %s9822_s27  ;;  %v9238_v50 = vunpack.i.l.bf16 %v9237_v3  ;;  %v850_v4 = vrot.slane %v10109_v56, 2  ;;  %v9239_v13 = vunpack.i.h.bf16 %v9237_v3  ;;  %v10744_v37 = vsel %vm799_vm3, %v851_v19, %v853_v25 }
  0xc0   : > { %v9242_v63 = vpop.permute.xlu0 %9241  ;;  %v861_v25 = vrot.slane %v10143_v51, 2 }
  0xc1   : > { %9336 = vrot.lane.b32.xlu0 %v9335_v9, %s9822_s27  ;;  %v10725_v56 = vsel %vm910_vm2, %v10147_v54, %v9238_v50  ;;  %v9243_v9 = vunpack.i.l.bf16 %v9242_v63  ;;  %v10733_v3 = vsel %vm799_vm3, %v850_v4, %v851_v19  ;;  %v10737_v58 = vsel %vm910_vm2, %v10143_v51, %v9239_v13 }
  0xc2   : > { %16725 = vst [vmem:[#allocation21_spill] sm:$0xff] %v10725_v56  ;;  %16726 = vst [vmem:[#allocation22_spill] sm:$0xff] %v10737_v58  ;;  %v856_v50 = vrot.slane %v10134_v38, 2  ;;  %v9360_v12 = vpack.i.bf16 %v10725_v56, %v10721_v34  ;;  %v9365_v13 = vpack.i.bf16 %v10737_v58, %v10733_v3  ;;  %v875_v58 = vrot.slane %v10428_v18, 2  ;;  %v16731_v56 = vld [vmem:[#allocation6_spill] sm:$0xff] }
  0xc3   : > { %9341 = vrot.lane.b32.xlu1 %v9340_v31, %s9822_s27  ;;  %v9244_v31 = vunpack.i.h.bf16 %v9242_v63  ;;  %v10748_v30 = vsel %vm910_vm2, %v10160_v22, %v9243_v9  ;;  %v860_v9 = vrot.slane %v10147_v54, 2 }
  0xc4   : > { %16727 = vst [vmem:[#allocation23_spill] sm:$0xff] %v10748_v30  ;;  %v9370_v63 = vpack.i.bf16 %v10748_v30, %v10744_v37 }
  0xc5   : > { %9346 = vrot.lane.b32.xlu0 %v9345_v44, %s9822_s27  ;;  %v10754_v44 = vsel %vm799_vm3, %v855_v33, %v856_v50  ;;  %v10758_v38 = vsel %vm910_vm2, %v10164_v24, %v9244_v31  ;;  %v858_v33 = vrot.slane %v10137_v42, 2  ;;  %v1300_v31 = vld [vmem:[%s16501_s1 + $0x228] sm:$0xff]  ;;  %v10788_v51 = vsel %vm799_vm3, %v860_v9, %v861_v25  ;;  %v1299_v42 = vld [vmem:[%s16501_s1 + $0x220] sm:$0xff] }
  0xc6   : > { %16728 = vst [vmem:[#allocation24_spill] sm:$0xff] %v10758_v38  ;;  %v9375_v4 = vpack.i.bf16 %v10758_v38, %v10754_v44  ;;  %v866_v9 = vrot.slane %v10164_v24, 2  ;;  %v870_v38 = vrot.slane %v10409_v0, 2 }
  0xc7   : > { %9351 = vrot.lane.b32.xlu1 %v9350_v46, %s9822_s27 }
  0xc9   : > { %9356 = vrot.lane.b32.xlu0 %v9355_v6, %s9822_s27  ;;  %v1301_v6 = vld [vmem:[%s16501_s1 + $0x230] sm:$0xff] }
  0xcb   : > { %9361 = vrot.lane.b32.xlu1 %v9360_v12, %s9822_s27  ;;  %v873_v12 = vrot.slane %v10419_v7, 2  ;;  %v865_v7 = vrot.slane %v10160_v22, 2 }
  0xcd   : > { %9366 = vrot.lane.b32.xlu0 %v9365_v13, %s9822_s27  ;;  %v863_v13 = vrot.slane %v10155_v10, 2  ;;  %v871_v10 = vrot.slane %v10406_v62, 2 }
  0xcf   : > { %9371 = vrot.lane.b32.xlu1 %v9370_v63, %s9822_s27 }
  0xd1   : > { %9376 = vrot.lane.b32.xlu0 %v9375_v4, %s9822_s27  ;;  %v10797_v4 = vsel %vm799_vm3, %v856_v50, %v858_v33  ;;  %v10824_v50 = vsel %vm799_vm3, %v861_v25, %v863_v13  ;;  %v1297_v13 = vld [vmem:[%s16501_s1 + $0x210] sm:$0xff] }
 0x109   : > { %v10768_v19 = vpop.permute.xlu1 %975 }
 0x10a   : > { %v1199_v46 = vsel %vm910_vm2, %v10523_v43, %v10768_v19 }
 0x10b   : > { %1434 = vmatprep.mubr.f32.mxu0 %v1199_v46 }
 0x10c   : > { %1435 = vmatmul.mubr.f32.vlgmr.msra.gmra.mxu0 %v10485_v55 }
 0x10d   : > { %8887 = vmatpush3.msra.mxu0 %v10480_v61  ;;  %v1298_v61 = vld [vmem:[%s16501_s1 + $0x218] sm:$0xff] }
 0x10e   : > { %8888 = vmatprep.subr.mxu0 %v1301_v6 }
 0x10f   : > { %v10785_v54 = vpop.permute.xlu0 %9246  ;;  %8889 = vmatpush3.msra.mxu0 %v1301_v6  ;;  %v868_v6 = vrot.slane %v10167_v27, 2 }
 0x110   : > { %v9248_v63 = vunpack.i.l.bf16 %v10785_v54  ;;  %8890 = vmatprep.subr.mxu0 %v1300_v31  ;;  %v16729_v33 = vunpack.i.h.bf16 %v10785_v54 }
 0x111   : > { %v10800_v46 = vpop.permute.xlu1 %9251  ;;  %8891 = vmatpush3.msra.mxu0 %v1300_v31 }
 0x112   : > { %v9253_v22 = vunpack.i.l.bf16 %v10800_v46  ;;  %v1200_v24 = vsel %vm910_vm2, %v10541_v5, %v16729_v33  ;;  %v10817_v30 = vsel %vm910_vm2, %v10409_v0, %v9248_v63  ;;  %8892 = vmatprep.subr.mxu0 %v1299_v42 }
 0x113   : > { %16730 = vst [vmem:[#allocation25_spill] sm:$0xff] %v10817_v30  ;;  %v10819_v27 = vpop.permute.xlu0 %9256  ;;  %1439 = vmatprep.mubr.f32.mxu0 %v1200_v24  ;;  %v9380_v31 = vpack.i.bf16 %v10817_v30, %v10797_v4  ;;  %8893 = vmatpush3.msra.mxu0 %v1299_v42  ;;  %v16732_v24 = vunpack.i.h.bf16 %v10800_v46  ;;  %v10860_v30 = vsel %vm799_vm3, %v870_v38, %v871_v10 }
 0x114   : > { %v9258_v0 = vunpack.i.l.bf16 %v10819_v27  ;;  %1440 = vmatmul.mubr.f32.gmra.mxu0 %v10489_v1  ;;  %v10833_v63 = vsel %vm910_vm2, %v10406_v62, %v9253_v22  ;;  %8894 = vmatprep.subr.mxu0 %v1298_v61  ;;  %v10848_v62 = vsel %vm799_vm3, %v865_v7, %v866_v9  ;;  %v10851_v22 = vsel %vm799_vm3, %v866_v9, %v868_v6 }
 0x115   : > { %v1201_v25 = vsel %vm910_vm2, %v10500_v15, %v16732_v24  ;;  %v10842_v42 = vpop.permute.xlu1 %9261  ;;  %v9385_v26 = vpack.i.bf16 %v10833_v63, %v10788_v51  ;;  %9381 = vrot.lane.b32.xlu1 %v9380_v31, %s9822_s27  ;;  %8895 = vmatpush3.msra.mxu0 %v1298_v61  ;;  %v10868_v9 = vsel %vm799_vm3, %v871_v10, %v873_v12  ;;  %v16735_v61 = vrot.slane %v16731_v56, 2 }
 0x116   : > { %1444 = vmatprep.mubr.f32.mxu0 %v1201_v25  ;;  %v16549_v15 = vunpack.i.h.bf16 %v10842_v42  ;;  %v9263_v24 = vunpack.i.l.bf16 %v10842_v42  ;;  %v10857_v33 = vsel %vm910_vm2, %v10428_v18, %v9258_v0  ;;  %8896 = vmatprep.subr.mxu0 %v1297_v13  ;;  %v16733_v25 = vld [vmem:[#allocation7_spill] sm:$0xff]  ;;  %v16734_v18 = vunpack.i.h.bf16 %v10819_v27 }
 0x117   : > { %9386 = vrot.lane.b32.xlu0 %v9385_v26, %s9822_s27  ;;  %v10863_v31 = vpop.permute.xlu0 %9266  ;;  %v9390_v7 = vpack.i.bf16 %v10857_v33, %v10824_v50  ;;  %v10883_v0 = vsel %vm799_vm3, %v875_v58, %v16735_v61  ;;  %8897 = vmatpush3.msra.mxu0 %v1297_v13 }
 0x118   : > { %v9268_v6 = vunpack.i.l.bf16 %v10863_v31  ;;  %1445 = vmatmul.mubr.f32.gmra.mxu0 %v16733_v25  ;;  %v1202_v38 = vsel %vm910_vm2, %v10520_v48, %v16734_v18  ;;  %v10878_v26 = vsel %vm910_vm2, %v16731_v56, %v9263_v24  ;;  %v9400_v48 = vpack.i.bf16 %v10860_v30, %v10851_v22 }
 0x119   : > { %v10885_v12 = vpop.permute.xlu1 %9271  ;;  %1449 = vmatprep.mubr.f32.mxu0 %v1202_v38  ;;  %v9395_v10 = vpack.i.bf16 %v10878_v26, %v10848_v62  ;;  %9391 = vrot.lane.b32.xlu1 %v9390_v7, %s9822_s27  ;;  %v1203_v58 = vsel %vm910_vm2, %v10523_v43, %v16549_v15  ;;  %v9405_v7 = vpack.i.bf16 %v10883_v0, %v10868_v9  ;;  %v1296_v38 = vld [vmem:[%s16501_s1 + $0x208] sm:$0xff] }
 0x11a   : > { %v9273_v25 = vunpack.i.l.bf16 %v10885_v12  ;;  %v1103_v24 = vsel %vm910_vm2, %v10768_v19, %v9268_v6  ;;  %v9269_v19 = vunpack.i.h.bf16 %v10863_v31  ;;  %v16736_v6 = vld [vmem:[#allocation9_spill] sm:$0xff]  ;;  %v9274_v13 = vunpack.i.h.bf16 %v10885_v12  ;;  %8898 = vmatprep.subr.mxu0 %v1296_v38 }
 0x11b   : > { %9396 = vrot.lane.b32.xlu0 %v9395_v10, %s9822_s27  ;;  %1660 = vmatmul.mubr.f32.vlgmr.msra.gmra.mxu1 %v1103_v24  ;;  %v10900_v18 = vpop.permute.xlu0 %9276  ;;  %v16737_v10 = vunpack.i.h.bf16 %v10785_v54  ;;  %v1295_v31 = vld [vmem:[%s16501_s1 + $0x200] sm:$0xff] }
 0x11c   : > { %1450 = vmatmul.mubr.f32.gmra.mxu0 %v16736_v6  ;;  %1664 = vmatprep.mubr.f32.mxu1 %v10489_v1  ;;  %v9278_v61 = vunpack.i.l.bf16 %v10900_v18  ;;  %v1204_v12 = vsel %vm910_vm2, %v10541_v5, %v9269_v19  ;;  %v9279_v54 = vunpack.i.h.bf16 %v10900_v18 }
 0x11d   : > { %9401 = vrot.lane.b32.xlu1 %v9400_v48, %s9822_s27  ;;  %1454 = vmatprep.mubr.f32.mxu0 %v1203_v58  ;;  %v1104_v24 = vsel %vm910_vm2, %v16737_v10, %v9273_v25  ;;  %v10916_v15 = vpop.permute.xlu1 %9281  ;;  %v16738_v25 = vunpack.i.h.bf16 %v10800_v46 }
 0x11e   : > { %8899 = vmatpush3.msra.mxu0 %v1296_v38  ;;  %v9283_v48 = vunpack.i.l.bf16 %v10916_v15  ;;  %v9284_v18 = vunpack.i.h.bf16 %v10916_v15  ;;  %v16739_v38 = vunpack.i.h.bf16 %v10819_v27 }
 0x11f   : > { %9406 = vrot.lane.b32.xlu0 %v9405_v7, %s9822_s27  ;;  %1665 = vmatmul.mubr.f32.gmra.mxu1 %v1104_v24  ;;  %v1105_v58 = vsel %vm910_vm2, %v16738_v25, %v9278_v61  ;;  %v1205_v7 = vsel %vm910_vm2, %v10544_v40, %v9274_v13  ;;  %v1206_v61 = vsel %vm910_vm2, %v10550_v36, %v9279_v54  ;;  %v16742_v25 = vld [vmem:[#allocation11_spill] sm:$0xff] }
 0x120   : > { %1455 = vmatmul.mubr.f32.gmra.mxu0 %v10485_v55  ;;  %1669 = vmatprep.mubr.f32.mxu1 %v10507_v29  ;;  %v10933_v55 = vpop.permute.xlu0 %9286  ;;  %v1106_v6 = vsel %vm910_vm2, %v16739_v38, %v9283_v48  ;;  %v1207_v48 = vsel %vm910_vm2, %v10572_v17, %v9284_v18 }
 0x121   : > { %1459 = vmatprep.mubr.f32.mxu0 %v1204_v12  ;;  %8900 = vmatprep.subr.mxu0 %v1295_v31  ;;  %v9288_v46 = vunpack.i.l.bf16 %v10933_v55  ;;  %v9292_v10 = vpop.permute.xlu1 %9291  ;;  %v9289_v15 = vunpack.i.h.bf16 %v10933_v55  ;;  %v16741_v12 = vunpack.i.h.bf16 %v10842_v42 }
 0x122   : > { %8901 = vmatpush3.msra.mxu0 %v1295_v31  ;;  %v9293_v31 = vunpack.i.l.bf16 %v9292_v10 }
 0x123   : > { %1670 = vmatmul.mubr.f32.gmra.mxu1 %v1105_v58  ;;  %3303 = vmatprep.subr.mxu0 %v16713_v28  ;;  %v1107_v27 = vsel %vm910_vm2, %v16741_v12, %v9288_v46  ;;  %v9294_v58 = vunpack.i.h.bf16 %v9292_v10  ;;  %v1208_v55 = vsel %vm910_vm2, %v10583_v16, %v9289_v15 }
 0x124   : > { %1460 = vmatmul.mubr.f32.gmra.mxu0 %v10489_v1  ;;  %1674 = vmatprep.mubr.f32.mxu1 %v10511_v8  ;;  %v16740_v1 = vld [vmem:[#allocation10_spill] sm:$0xff]  ;;  %v10947_v24 = vpop.permute.xlu0 %9296 }
 0x125   : > { %1464 = vmatprep.mubr.f32.mxu0 %v1205_v7  ;;  %v1108_v7 = vsel %vm910_vm2, %v9269_v19, %v9293_v31  ;;  %v9302_v42 = vpop.permute.xlu1 %9301  ;;  %v9299_v38 = vunpack.i.h.bf16 %v10947_v24  ;;  %v1209_v19 = vsel %vm910_vm2, %v10595_v23, %v9294_v58 }
 0x126   : > { %v9304_v10 = vunpack.i.h.bf16 %v9302_v42 }
 0x127   : > { %1675 = vmatmul.mubr.f32.gmra.mxu1 %v1106_v6  ;;  %v9303_v6 = vunpack.i.l.bf16 %v9302_v42  ;;  %v16744_v42 = vld [vmem:[#allocation13_spill] sm:$0xff] }
 0x128   : > { %1465 = vmatmul.mubr.f32.gmra.mxu0 %v10507_v29  ;;  %1679 = vmatprep.mubr.f32.mxu1 %v16740_v1  ;;  %v9298_v29 = vunpack.i.l.bf16 %v10947_v24  ;;  %v16743_v24 = vld [vmem:[#allocation12_spill] sm:$0xff] }
 0x129   : > { %1469 = vmatprep.mubr.f32.mxu0 %v1206_v61  ;;  %v9312_v31 = vpop.permute.xlu1 %9311 }
 0x12a   : > { %v1109_v46 = vsel %vm910_vm2, %v9274_v13, %v9298_v29  ;;  %v1110_v13 = vsel %vm910_vm2, %v9279_v54, %v9303_v6  ;;  %v1211_v54 = vsel %vm910_vm2, %v10617_v2, %v9304_v10  ;;  %v9314_v29 = vunpack.i.h.bf16 %v9312_v31 }
 0x12b   : > { %1680 = vmatmul.mubr.f32.gmra.mxu1 %v1107_v27 }
 0x12c   : > { %1470 = vmatmul.mubr.f32.gmra.mxu0 %v10511_v8  ;;  %1684 = vmatprep.mubr.f32.mxu1 %v16742_v25  ;;  %v10964_v8 = vpop.permute.xlu0 %9306 }
 0x12d   : > { %1474 = vmatprep.mubr.f32.mxu0 %v1207_v48  ;;  %v9308_v61 = vunpack.i.l.bf16 %v10964_v8  ;;  %v9309_v48 = vunpack.i.h.bf16 %v10964_v8 }
 0x12f   : > { %1685 = vmatmul.mubr.f32.gmra.mxu1 %v1108_v7  ;;  %v1111_v12 = vsel %vm910_vm2, %v9284_v18, %v9308_v61  ;;  %v1212_v7 = vsel %vm910_vm2, %v10629_v35, %v9309_v48 }
 0x130   : > { %1475 = vmatmul.mubr.f32.gmra.mxu0 %v16740_v1  ;;  %1689 = vmatprep.mubr.f32.mxu1 %v10555_v20  ;;  %v1210_v1 = vsel %vm910_vm2, %v10606_v47, %v9299_v38  ;;  %v10978_v27 = vpop.permute.xlu0 %9316 }
 0x131   : > { %1479 = vmatprep.mubr.f32.mxu0 %v1208_v55  ;;  %v9322_v55 = vpop.permute.xlu1 %9321  ;;  %v9319_v8 = vunpack.i.h.bf16 %v10978_v27 }
 0x132   : > { %v9323_v6 = vunpack.i.l.bf16 %v9322_v55 }
 0x133   : > { %1690 = vmatmul.mubr.f32.gmra.mxu1 %v1109_v46 }
 0x134   : > { %1480 = vmatmul.mubr.f32.gmra.mxu0 %v16742_v25  ;;  %1694 = vmatprep.mubr.f32.mxu1 %v10559_v53  ;;  %v9313_v25 = vunpack.i.l.bf16 %v9312_v31 }
 0x135   : > { %1484 = vmatprep.mubr.f32.mxu0 %v1209_v19  ;;  %v16745_v19 = vld [vmem:[#allocation14_spill] sm:$0xff]  ;;  %v9332_v31 = vpop.permute.xlu1 %9331 }
 0x136   : > { %v1112_v18 = vsel %vm910_vm2, %v9289_v15, %v9313_v25  ;;  %v1213_v15 = vsel %vm910_vm2, %v10641_v14, %v9314_v29  ;;  %v9333_v25 = vunpack.i.l.bf16 %v9332_v31 }
 0x137   : > { %1695 = vmatmul.mubr.f32.gmra.mxu1 %v1110_v13  ;;  %v9324_v13 = vunpack.i.h.bf16 %v9322_v55  ;;  %v16747_v55 = vld [vmem:[#allocation16_spill] sm:$0xff] }
 0x138   : > { %1485 = vmatmul.mubr.f32.gmra.mxu0 %v10555_v20  ;;  %1699 = vmatprep.mubr.f32.mxu1 %v16743_v24  ;;  %v9318_v20 = vunpack.i.l.bf16 %v10978_v27 }
 0x139   : > { %1489 = vmatprep.mubr.f32.mxu0 %v1210_v1  ;;  %v1214_v1 = vsel %vm910_vm2, %v10652_v59, %v9319_v8 }
 0x13a   : > { %v1113_v46 = vsel %vm910_vm2, %v9294_v58, %v9318_v20  ;;  %v1114_v58 = vsel %vm910_vm2, %v9299_v38, %v9323_v6  ;;  %v1215_v38 = vsel %vm910_vm2, %v10664_v45, %v9324_v13  ;;  %v9334_v20 = vunpack.i.h.bf16 %v9332_v31 }
 0x13b   : > { %1700 = vmatmul.mubr.f32.gmra.mxu1 %v1111_v12 }
 0x13c   : > { %1490 = vmatmul.mubr.f32.gmra.mxu0 %v10559_v53  ;;  %1704 = vmatprep.mubr.f32.mxu1 %v10576_v39  ;;  %v10992_v53 = vpop.permute.xlu0 %9326 }
 0x13d   : > { %1494 = vmatprep.mubr.f32.mxu0 %v1211_v54  ;;  %v9328_v61 = vunpack.i.l.bf16 %v10992_v53  ;;  %v9329_v27 = vunpack.i.h.bf16 %v10992_v53 }
 0x13f   : > { %1705 = vmatmul.mubr.f32.gmra.mxu1 %v1112_v18  ;;  %v1115_v12 = vsel %vm910_vm2, %v9304_v10, %v9328_v61  ;;  %v1116_v10 = vsel %vm910_vm2, %v9309_v48, %v9333_v25  ;;  %v1216_v18 = vsel %vm910_vm2, %v10675_v32, %v9329_v27  ;;  %v1217_v48 = vsel %vm910_vm2, %v10687_v60, %v9334_v20 }
 0x140   : > { %1495 = vmatmul.mubr.f32.gmra.mxu0 %v16743_v24  ;;  %1709 = vmatprep.mubr.f32.mxu1 %v16744_v42  ;;  %v16746_v24 = vld [vmem:[#allocation15_spill] sm:$0xff] }
 0x141   : > { %1499 = vmatprep.mubr.f32.mxu0 %v1212_v7  ;;  %v9342_v7 = vpop.permute.xlu1 %9341 }
 0x142   : > { %v9343_v6 = vunpack.i.l.bf16 %v9342_v7 }
 0x143   : > { %1710 = vmatmul.mubr.f32.gmra.mxu1 %v1113_v46 }
 0x144   : > { %1500 = vmatmul.mubr.f32.gmra.mxu0 %v10576_v39  ;;  %1714 = vmatprep.mubr.f32.mxu1 %v16745_v19  ;;  %v11006_v39 = vpop.permute.xlu0 %9336 }
 0x145   : > { %1504 = vmatprep.mubr.f32.mxu0 %v1213_v15  ;;  %v9338_v54 = vunpack.i.l.bf16 %v11006_v39  ;;  %v9339_v53 = vunpack.i.h.bf16 %v11006_v39  ;;  %v16749_v39 = vld [vmem:[#allocation18_spill] sm:$0xff] }
 0x147   : > { %1715 = vmatmul.mubr.f32.gmra.mxu1 %v1114_v58  ;;  %v1218_v61 = vsel %vm910_vm2, %v10698_v21, %v9339_v53  ;;  %v9352_v58 = vpop.permute.xlu1 %9351 }
 0x148   : > { %1505 = vmatmul.mubr.f32.gmra.mxu0 %v16744_v42  ;;  %1719 = vmatprep.mubr.f32.mxu1 %v16746_v24  ;;  %v1117_v42 = vsel %vm910_vm2, %v9314_v29, %v9338_v54  ;;  %v11020_v46 = vpop.permute.xlu0 %9346  ;;  %v1118_v29 = vsel %vm910_vm2, %v9319_v8, %v9343_v6 }
 0x149   : > { %1509 = vmatprep.mubr.f32.mxu0 %v1214_v1  ;;  %v9348_v15 = vunpack.i.l.bf16 %v11020_v46  ;;  %v16748_v1 = vld [vmem:[#allocation17_spill] sm:$0xff] }
 0x14b   : > { %1720 = vmatmul.mubr.f32.gmra.mxu1 %v1115_v12  ;;  %v1119_v31 = vsel %vm910_vm2, %v9324_v13, %v9348_v15  ;;  %v9353_v12 = vunpack.i.l.bf16 %v9352_v58 }
 0x14c   : > { %1510 = vmatmul.mubr.f32.gmra.mxu0 %v16745_v19  ;;  %1724 = vmatprep.mubr.f32.mxu1 %v10621_v57  ;;  %v9344_v19 = vunpack.i.h.bf16 %v9342_v7 }
 0x14d   : > { %1514 = vmatprep.mubr.f32.mxu0 %v1215_v38  ;;  %v9354_v38 = vunpack.i.h.bf16 %v9352_v58  ;;  %v1120_v13 = vsel %vm910_vm2, %v9329_v27, %v9353_v12 }
 0x14e   : > { %v1219_v8 = vsel %vm910_vm2, %v10710_v52, %v9344_v19 }
 0x14f   : > { %1725 = vmatmul.mubr.f32.gmra.mxu1 %v1116_v10  ;;  %v11045_v10 = vpop.permute.xlu1 %9361  ;;  %v1221_v27 = vsel %vm910_vm2, %v10733_v3, %v9354_v38 }
 0x150   : > { %1515 = vmatmul.mubr.f32.gmra.mxu0 %v16746_v24  ;;  %1729 = vmatprep.mubr.f32.mxu1 %v16747_v55  ;;  %v9349_v24 = vunpack.i.h.bf16 %v11020_v46 }
 0x151   : > { %1519 = vmatprep.mubr.f32.mxu0 %v1216_v18  ;;  %v16750_v18 = vld [vmem:[#allocation19_spill] sm:$0xff] }
 0x152   : > { %v1220_v54 = vsel %vm910_vm2, %v10721_v34, %v9349_v24 }
 0x153   : > { %1730 = vmatmul.mubr.f32.gmra.mxu1 %v1117_v42  ;;  %v9363_v42 = vunpack.i.l.bf16 %v11045_v10  ;;  %v11063_v15 = vpop.permute.xlu1 %9371 }
 0x154   : > { %1520 = vmatmul.mubr.f32.gmra.mxu0 %v10621_v57  ;;  %1734 = vmatprep.mubr.f32.mxu1 %v10645_v11  ;;  %v11034_v57 = vpop.permute.xlu0 %9356 }
 0x155   : > { %1524 = vmatprep.mubr.f32.mxu0 %v1217_v48  ;;  %v9358_v25 = vunpack.i.l.bf16 %v11034_v57  ;;  %v1122_v6 = vsel %vm910_vm2, %v9339_v53, %v9363_v42 }
 0x157   : > { %1735 = vmatmul.mubr.f32.gmra.mxu1 %v1118_v29 }
 0x158   : > { %1525 = vmatmul.mubr.f32.gmra.mxu0 %v16747_v55  ;;  %1739 = vmatprep.mubr.f32.mxu1 %v16748_v1  ;;  %v11050_v7 = vpop.permute.xlu0 %9366  ;;  %v9359_v55 = vunpack.i.h.bf16 %v11034_v57 }
 0x159   : > { %1529 = vmatprep.mubr.f32.mxu0 %v1218_v61  ;;  %v9368_v46 = vunpack.i.l.bf16 %v11050_v7  ;;  %v9369_v58 = vunpack.i.h.bf16 %v11050_v7 }
 0x15a   : > { %v1222_v48 = vsel %vm910_vm2, %v10744_v37, %v9359_v55 }
 0x15b   : > { %1740 = vmatmul.mubr.f32.gmra.mxu1 %v1119_v31  ;;  %v1123_v29 = vsel %vm910_vm2, %v9344_v19, %v9368_v46  ;;  %v16751_v31 = vld [vmem:[#allocation20_spill] sm:$0xff]  ;;  %v9374_v19 = vunpack.i.h.bf16 %v11063_v15 }
 0x15c   : > { %1530 = vmatmul.mubr.f32.gmra.mxu0 %v10645_v11  ;;  %1744 = vmatprep.mubr.f32.mxu1 %v16749_v39  ;;  %v1121_v11 = vsel %vm910_vm2, %v9334_v20, %v9358_v25  ;;  %v9364_v20 = vunpack.i.h.bf16 %v11045_v10  ;;  %v11068_v61 = vpop.permute.xlu0 %9376 }
 0x15d   : > { %1534 = vmatprep.mubr.f32.mxu0 %v1219_v8  ;;  %v9378_v57 = vunpack.i.l.bf16 %v11068_v61  ;;  %v1224_v8 = vsel %vm910_vm2, %v10797_v4, %v9369_v58 }
 0x15e   : > { %v1223_v53 = vsel %vm910_vm2, %v10754_v44, %v9364_v20 }
 0x15f   : > { %1745 = vmatmul.mubr.f32.gmra.mxu1 %v1120_v13  ;;  %v1125_v25 = vsel %vm910_vm2, %v9354_v38, %v9378_v57  ;;  %v1225_v13 = vsel %vm910_vm2, %v10788_v51, %v9374_v19 }
 0x160   : > { %1535 = vmatmul.mubr.f32.gmra.mxu0 %v16748_v1  ;;  %1749 = vmatprep.mubr.f32.mxu1 %v16750_v18  ;;  %v9373_v1 = vunpack.i.l.bf16 %v11063_v15 }
 0x161   : > { %1539 = vmatprep.mubr.f32.mxu0 %v1220_v54 }
 0x162   : > { %v1124_v12 = vsel %vm910_vm2, %v9349_v24, %v9373_v1  ;;  %v16753_v24 = vld [vmem:[#allocation22_spill] sm:$0xff] }
 0x163   : > { %1750 = vmatmul.mubr.f32.gmra.mxu1 %v1121_v11 }
 0x164   : > { %1540 = vmatmul.mubr.f32.gmra.mxu0 %v16749_v39  ;;  %1754 = vmatprep.mubr.f32.mxu1 %v10691_v49  ;;  %v16752_v39 = vld [vmem:[#allocation21_spill] sm:$0xff] }
 0x165   : > { %1544 = vmatprep.mubr.f32.mxu0 %v1221_v27 }
 0x167   : > { %1755 = vmatmul.mubr.f32.gmra.mxu1 %v1122_v6 }
 0x168   : > { %1545 = vmatmul.mubr.f32.gmra.mxu0 %v16750_v18  ;;  %1759 = vmatprep.mubr.f32.mxu1 %v10702_v41 }
 0x169   : > { %1549 = vmatprep.mubr.f32.mxu0 %v1222_v48  ;;  %v16754_v48 = vld [vmem:[#allocation23_spill] sm:$0xff] }
 0x16b   : > { %1760 = vmatmul.mubr.f32.gmra.mxu1 %v1123_v29 }
 0x16c   : > { %1550 = vmatmul.mubr.f32.gmra.mxu0 %v10691_v49  ;;  %1764 = vmatprep.mubr.f32.mxu1 %v16751_v31  ;;  %v9379_v49 = vunpack.i.h.bf16 %v11068_v61 }
 0x16d   : > { %1554 = vmatprep.mubr.f32.mxu0 %v1223_v53 }
 0x16e   : > { %v1226_v54 = vsel %vm910_vm2, %v10824_v50, %v9379_v49 }
 0x16f   : > { %1765 = vmatmul.mubr.f32.gmra.mxu1 %v1124_v12 }
 0x170   : > { %1555 = vmatmul.mubr.f32.gmra.mxu0 %v10702_v41  ;;  %1769 = vmatprep.mubr.f32.mxu1 %v16752_v39 }
 0x171   : > { %1559 = vmatprep.mubr.f32.mxu0 %v1224_v8 }
 0x173   : > { %1770 = vmatmul.mubr.f32.gmra.mxu1 %v1125_v25 }
 0x174   : > { %1560 = vmatmul.mubr.f32.gmra.mxu0 %v16751_v31  ;;  %1774 = vmatprep.mubr.f32.mxu1 %v16753_v24 }
 0x175   : > { %1564 = vmatprep.mubr.f32.mxu0 %v1225_v13 }
 0x178   : > { %1565 = vmatmul.mubr.f32.gmra.mxu0 %v16752_v39 }
 0x179   : > { %1569 = vmatprep.mubr.f32.mxu0 %v1226_v54 }
 0x17c   : > { %1570 = vmatmul.mubr.f32.gmra.mxu0 %v16753_v24 }
 0x187   : > { %v9382_v41 = vpop.permute.xlu1 %9381 }
 0x188   : > { %v9384_v38 = vunpack.i.h.bf16 %v9382_v41  ;;  %v9383_v10 = vunpack.i.l.bf16 %v9382_v41 }
 0x189   : > { %v9387_v18 = vpop.permute.xlu0 %9386 }
 0x18a   : > { %v9389_v11 = vunpack.i.h.bf16 %v9387_v18  ;;  %v9388_v7 = vunpack.i.l.bf16 %v9387_v18  ;;  %v1227_v42 = vsel %vm910_vm2, %v10848_v62, %v9384_v38  ;;  %v1126_v27 = vsel %vm910_vm2, %v9359_v55, %v9383_v10  ;;  %v16755_v55 = vld [vmem:[#allocation24_spill] sm:$0xff] }
 0x18b   : > { %v9392_v46 = vpop.permute.xlu1 %9391  ;;  %1574 = vmatprep.mubr.f32.mxu0 %v1227_v42  ;;  %1775 = vmatmul.mubr.f32.gmra.mxu1 %v1126_v27 }
 0x18c   : > { %v9394_v6 = vunpack.i.h.bf16 %v9392_v46  ;;  %1575 = vmatmul.mubr.f32.gmra.mxu0 %v16754_v48  ;;  %1779 = vmatprep.mubr.f32.mxu1 %v16754_v48  ;;  %v1228_v15 = vsel %vm910_vm2, %v10851_v22, %v9389_v11  ;;  %v9393_v1 = vunpack.i.l.bf16 %v9392_v46  ;;  %v1127_v53 = vsel %vm910_vm2, %v9364_v20, %v9388_v7  ;;  %v16756_v20 = vld [vmem:[#allocation25_spill] sm:$0xff] }
 0x18d   : > { %v11100_v29 = vpop.permute.xlu0 %9396  ;;  %1579 = vmatprep.mubr.f32.mxu0 %v1228_v15 }
 0x18e   : > { %v16550_v61 = vunpack.i.h.bf16 %v11100_v29  ;;  %v1229_v31 = vsel %vm910_vm2, %v10860_v30, %v9394_v6  ;;  %v9398_v57 = vunpack.i.l.bf16 %v11100_v29  ;;  %v1128_v12 = vsel %vm910_vm2, %v9369_v58, %v9393_v1 }
 0x18f   : > { %1780 = vmatmul.mubr.f32.gmra.mxu1 %v1127_v53  ;;  %v9402_v39 = vpop.permute.xlu1 %9401 }
 0x190   : > { %1580 = vmatmul.mubr.f32.gmra.mxu0 %v16755_v55  ;;  %1784 = vmatprep.mubr.f32.mxu1 %v16755_v55  ;;  %v1230_v8 = vsel %vm910_vm2, %v10868_v9, %v16550_v61  ;;  %v9403_v25 = vunpack.i.l.bf16 %v9402_v39  ;;  %v1129_v13 = vsel %vm910_vm2, %v9374_v19, %v9398_v57  ;;  %v9404_v58 = vunpack.i.h.bf16 %v9402_v39 }
 0x191   : > { %1584 = vmatprep.mubr.f32.mxu0 %v1229_v31  ;;  %v9407_v54 = vpop.permute.xlu0 %9406 }
 0x192   : > { %v1130_v24 = vsel %vm910_vm2, %v9379_v49, %v9403_v25  ;;  %v9408_v19 = vunpack.i.l.bf16 %v9407_v54  ;;  %v1131_v41 = vsel %vm910_vm2, %v9384_v38, %v9404_v58 }
 0x193   : > { %1785 = vmatmul.mubr.f32.gmra.mxu1 %v1128_v12 }
 0x194   : > { %1585 = vmatmul.mubr.f32.gmra.mxu0 %v16756_v20  ;;  %1789 = vmatprep.mubr.f32.mxu1 %v16756_v20 }
 0x195   : > { %1589 = vmatprep.mubr.f32.mxu0 %v1230_v8 }
 0x197   : > { %1790 = vmatmul.mubr.f32.gmra.mxu1 %v1129_v13 }
 0x198   : > { %1590 = vmatmul.mubr.f32.gmra.mxu0 %v10833_v63  ;;  %1794 = vmatprep.mubr.f32.mxu1 %v10833_v63 }
 0x199   : > { %8902 = vmatprep.mubr.msk.f32.mxu0 %vm910_vm2, %v10523_v43  ;;  %v9409_v43 = vunpack.i.h.bf16 %v9407_v54 }
 0x19b   : > { %1795 = vmatmul.mubr.f32.gmra.mxu1 %v1130_v24 }
 0x19c   : > { %1799 = vmatprep.mubr.f32.mxu1 %v10857_v33  ;;  %8903 = vmatmul.mubr.msk.f32.vlgmr.msra.gmra.mxu0 %vm910_vm2, %v10541_v5  ;;  %v1132_v33 = vsel %vm910_vm2, %v9389_v11, %v9408_v19  ;;  %v1133_v5 = vsel %vm910_vm2, %v9394_v6, %v9409_v43 }
 0x19d   : > { %8905 = vmatprep.mubr.msk.f32.mxu0 %vm910_vm2, %v10544_v40 }
 0x19f   : > { %1800 = vmatmul.mubr.f32.gmra.mxu1 %v1131_v41 }
 0x1a0   : > { %1804 = vmatprep.mubr.f32.mxu1 %v10878_v26  ;;  %8906 = vmatmul.mubr.msk.f32.gmra.mxu0 %vm910_vm2, %v10550_v36  ;;  %v16757_v36 = vld [vmem:[#allocation8_spill] sm:$0xff] }
 0x1a1   : > { %8908 = vmatprep.mubr.msk.f32.mxu0 %vm910_vm2, %v10572_v17 }
 0x1a3   : > { %1805 = vmatmul.mubr.f32.gmra.mxu1 %v1132_v33 }
 0x1a4   : > { %1809 = vmatprep.mubr.f32.mxu1 %v16756_v20  ;;  %8909 = vmatmul.mubr.msk.f32.gmra.mxu0 %vm910_vm2, %v10583_v16  ;;  %v16758_v16 = vrot.slane %v16731_v56, 2 }
 0x1a5   : > { %8911 = vmatprep.mubr.msk.f32.mxu0 %vm910_vm2, %v10595_v23  ;;  %v878_v23 = vrot.slane %v16757_v36, 2 }
 0x1a7   : > { %1810 = vmatmul.mubr.f32.gmra.mxu1 %v1133_v5 }
 0x1a8   : > { %1814 = vmatprep.mubr.f32.mxu1 %v10833_v63  ;;  %8912 = vmatmul.mubr.msk.f32.gmra.mxu0 %vm910_vm2, %v10606_v47 }
 0x1a9   : > { %8914 = vmatprep.mubr.msk.f32.mxu0 %vm910_vm2, %v10617_v2 }
 0x1ac   : > { %8915 = vmatmul.mubr.msk.f32.gmra.mxu0 %vm910_vm2, %v10629_v35  ;;  %v11189_v35 = vsel %vm799_vm3, %v16758_v16, %v878_v23 }
 0x1ad   : > { %8917 = vmatprep.mubr.msk.f32.mxu0 %vm910_vm2, %v10641_v14 }
 0x1b0   : > { %8918 = vmatmul.mubr.msk.f32.gmra.mxu0 %vm910_vm2, %v10652_v59 }
 0x1b1   : > { %8920 = vmatprep.mubr.msk.f32.mxu0 %vm910_vm2, %v10664_v45  ;;  %v11198_v45 = vld [vmem:[%s16502_s2] ss:$0 sm:$0xff] }
 0x1b4   : > { %8921 = vmatmul.mubr.msk.f32.gmra.mxu0 %vm910_vm2, %v10675_v32 }
 0x1b5   : > { %8923 = vmatprep.mubr.msk.f32.mxu0 %vm910_vm2, %v10687_v60 }
 0x1b8   : > { %8924 = vmatmul.mubr.msk.f32.gmra.mxu0 %vm910_vm2, %v10698_v21 }
 0x1b9   : > { %8926 = vmatprep.mubr.msk.f32.mxu0 %vm910_vm2, %v10710_v52 }
 0x1bc   : > { %8927 = vmatmul.mubr.msk.f32.gmra.mxu0 %vm910_vm2, %v10721_v34 }
 0x1bd   : > { %8929 = vmatprep.mubr.msk.f32.mxu0 %vm910_vm2, %v10733_v3 }
 0x1c0   : > { %8930 = vmatmul.mubr.msk.f32.gmra.mxu0 %vm910_vm2, %v10744_v37 }
 0x1c1   : > { %8932 = vmatprep.mubr.msk.f32.mxu0 %vm910_vm2, %v10754_v44 }
 0x1c4   : > { %8933 = vmatmul.mubr.msk.f32.gmra.mxu0 %vm910_vm2, %v10797_v4 }
 0x1c5   : > { %8935 = vmatprep.mubr.msk.f32.mxu0 %vm910_vm2, %v10788_v51 }
 0x1c8   : > { %8936 = vmatmul.mubr.msk.f32.gmra.mxu0 %vm910_vm2, %v10824_v50 }
 0x1c9   : > { %8938 = vmatprep.mubr.msk.f32.mxu0 %vm910_vm2, %v10848_v62  ;;  %v9824_v62 = vmov 0  }
 0x1ca   : > { %9415 = vset.pattern.permute.xlu0 %v9824_v62  ;;  %9741 = vset.pattern.permute.xlu1 %v9824_v62 }
 0x1cc   : > { %v1436_v40 = vpop.f32.mrf.mxu0  ;;  %8939 = vmatmul.mubr.msk.f32.gmra.mxu0 %vm910_vm2, %v10851_v22  ;;  %v8761_v22 = vld [vmem:[#allocation2] ss:$0 sm:$0xff] }
 0x1cd   : > { %8941 = vmatprep.mubr.msk.f32.mxu0 %vm910_vm2, %v10860_v30  ;;  %v1437_v59 = vadd.f32 %v11198_v45, %v1436_v40  ;;  %5559 = vperm.xlu0 %9415, %v8761_v22  }
 0x1ce   : > { %v1438_v17 = vpop.f32.mrf.mxu0 }
 0x1d0   : > { %8942 = vmatmul.mubr.msk.f32.gmra.mxu0 %vm910_vm2, %v10868_v9 }
 0x1d1   : > { %8944 = vmatprep.mubr.msk.f32.mxu0 %vm910_vm2, %v10883_v0 }
 0x1d4   : > { %v1441_v47 = vpop.f32.mrf.mxu0  ;;  %8945 = vmatmul.mubr.msk.f32.gmra.mxu0 %vm910_vm2, %v11189_v35 }
 0x1d5   : > { %8947 = vmatprep.mubr.msk.f32.mxu0 %vm910_vm2, %v10860_v30  ;;  %v1442_v56 = vadd.f32 %v11198_v45, %v1441_v47 }
 0x1d6   : > { %v1443_v2 = vpop.f32.mrf.mxu0 }
 0x1d8   : > { %v1446_v14 = vpop.f32.mrf.mxu0  ;;  %8948 = vmatmul.mubr.msk.f32.gmra.mxu0 %vm910_vm2, %v10868_v9 }
 0x1d9   : > { %v1447_v4 = vadd.f32 %v11198_v45, %v1446_v14 }
 0x1da   : > { %v1448_v60 = vpop.f32.mrf.mxu0 }
 0x1db   : > { %v1661_v52 = vpop.f32.mrf.mxu1 }
 0x1dc   : > { %v11203_v32 = vadd.f32 %v1661_v52, %v1437_v59  ;;  %v1451_v21 = vpop.f32.mrf.mxu0 }
 0x1dd   : > { %v1663_v34 = vpop.f32.mrf.mxu1  ;;  %v1452_v49 = vadd.f32 %v11198_v45, %v1451_v21 }
 0x1de   : > { %v1453_v3 = vpop.f32.mrf.mxu0 }
 0x1df   : > { %v1666_v37 = vpop.f32.mrf.mxu1 }
 0x1e0   : > { %v11206_v30 = vadd.f32 %v1666_v37, %v1442_v56  ;;  %v1456_v44 = vpop.f32.mrf.mxu0 }
 0x1e1   : > { %v1668_v51 = vpop.f32.mrf.mxu1  ;;  %v1457_v42 = vadd.f32 %v11198_v45, %v1456_v44 }
 0x1e2   : > { %v1458_v50 = vpop.f32.mrf.mxu0 }
 0x1e3   : > { %v1671_v63 = vpop.f32.mrf.mxu1 }
 0x1e4   : > { %v11209_v9 = vadd.f32 %v1671_v63, %v1447_v4  ;;  %v1461_v26 = vpop.f32.mrf.mxu0 }
 0x1e5   : > { %v1673_v0 = vpop.f32.mrf.mxu1  ;;  %v1462_v1 = vadd.f32 %v11198_v45, %v1461_v26 }
 0x1e6   : > { %v1463_v38 = vpop.f32.mrf.mxu0 }
 0x1e7   : > { %v1676_v10 = vpop.f32.mrf.mxu1 }
 0x1e8   : > { %v11212_v18 = vadd.f32 %v1676_v10, %v1452_v49  ;;  %v1466_v11 = vpop.f32.mrf.mxu0 }
 0x1e9   : > { %v1678_v7 = vpop.f32.mrf.mxu1  ;;  %v1467_v8 = vadd.f32 %v11198_v45, %v1466_v11 }
 0x1ea   : > { %v1468_v27 = vpop.f32.mrf.mxu0 }
 0x1eb   : > { %v1681_v46 = vpop.f32.mrf.mxu1 }
 0x1ec   : > { %v11215_v6 = vadd.f32 %v1681_v46, %v1457_v42  ;;  %v1471_v48 = vpop.f32.mrf.mxu0 }
 0x1ed   : > { %v1683_v15 = vpop.f32.mrf.mxu1  ;;  %v1472_v24 = vadd.f32 %v11198_v45, %v1471_v48 }
 0x1ee   : > { %v1473_v53 = vpop.f32.mrf.mxu0 }
 0x1ef   : > { %v1686_v55 = vpop.f32.mrf.mxu1 }
 0x1f0   : > { %v11218_v31 = vadd.f32 %v1686_v55, %v1462_v1  ;;  %v1476_v57 = vpop.f32.mrf.mxu0 }
 0x1f1   : > { %v1688_v12 = vpop.f32.mrf.mxu1  ;;  %v1477_v5 = vadd.f32 %v11198_v45, %v1476_v57 }
 0x1f2   : > { %v1478_v39 = vpop.f32.mrf.mxu0 }
 0x1f3   : > { %v1691_v20 = vpop.f32.mrf.mxu1 }
 0x1f4   : > { %v11221_v25 = vadd.f32 %v1691_v20, %v1467_v8  ;;  %v1481_v13 = vpop.f32.mrf.mxu0 }
 0x1f5   : > { %v1693_v58 = vpop.f32.mrf.mxu1  ;;  %v1482_v47 = vadd.f32 %v11198_v45, %v1481_v13 }
 0x1f6   : > { %v1483_v54 = vpop.f32.mrf.mxu0 }
 0x1f7   : > { %v1696_v19 = vpop.f32.mrf.mxu1 }
 0x1f8   : > { %v11224_v41 = vadd.f32 %v1696_v19, %v1472_v24  ;;  %v1486_v43 = vpop.f32.mrf.mxu0 }
 0x1f9   : > { %v1698_v33 = vpop.f32.mrf.mxu1  ;;  %v1487_v21 = vadd.f32 %v11198_v45, %v1486_v43 }
 0x1fa   : > { %v1488_v40 = vpop.f32.mrf.mxu0 }
 0x1fb   : > { %v1701_v36 = vpop.f32.mrf.mxu1 }
 0x1fc   : > { %v11227_v23 = vadd.f32 %v1701_v36, %v1477_v5  ;;  %v1491_v17 = vpop.f32.mrf.mxu0 }
 0x1fd   : > { %v1703_v16 = vpop.f32.mrf.mxu1  ;;  %v1492_v51 = vadd.f32 %v11198_v45, %v1491_v17 }
 0x1fe   : > { %v1493_v2 = vpop.f32.mrf.mxu0 }
 0x1ff   : > { %v1706_v14 = vpop.f32.mrf.mxu1 }
 0x200   : > { %v11230_v59 = vadd.f32 %v1706_v14, %v1482_v47  ;;  %v1496_v60 = vpop.f32.mrf.mxu0 }
 0x201   : > { %v1708_v52 = vpop.f32.mrf.mxu1  ;;  %v1497_v26 = vadd.f32 %v11198_v45, %v1496_v60 }
 0x202   : > { %v1498_v34 = vpop.f32.mrf.mxu0 }
 0x203   : > { %v1711_v56 = vpop.f32.mrf.mxu1 }
 0x204   : > { %v11233_v3 = vadd.f32 %v1711_v56, %v1487_v21  ;;  %v1501_v37 = vpop.f32.mrf.mxu0 }
 0x205   : > { %v1713_v44 = vpop.f32.mrf.mxu1  ;;  %v1502_v7 = vadd.f32 %v11198_v45, %v1501_v37 }
 0x206   : > { %v1503_v4 = vpop.f32.mrf.mxu0 }
 0x207   : > { %v1716_v50 = vpop.f32.mrf.mxu1 }
 0x208   : > { %v11236_v63 = vadd.f32 %v1716_v50, %v1492_v51  ;;  %v1506_v62 = vpop.f32.mrf.mxu0 }
 0x209   : > { %v1718_v22 = vpop.f32.mrf.mxu1  ;;  %v1507_v1 = vadd.f32 %v11198_v45, %v1506_v62 }
 0x20a   : > { %v1508_v0 = vpop.f32.mrf.mxu0 }
 0x20b   : > { %v1721_v49 = vpop.f32.mrf.mxu1 }
 0x20c   : > { %v11239_v38 = vadd.f32 %v1721_v49, %v1497_v26  ;;  %v1511_v10 = vpop.f32.mrf.mxu0 }
 0x20d   : > { %v1723_v11 = vpop.f32.mrf.mxu1  ;;  %v1512_v39 = vadd.f32 %v11198_v45, %v1511_v10 }
 0x20e   : > { %v1513_v42 = vpop.f32.mrf.mxu0 }
 0x20f   : > { %v1726_v27 = vpop.f32.mrf.mxu1 }
 0x210   : > { %v11242_v46 = vadd.f32 %v1726_v27, %v1502_v7  ;;  %v1516_v48 = vpop.f32.mrf.mxu0 }
 0x211   : > { %v1728_v15 = vpop.f32.mrf.mxu1  ;;  %v1517_v19 = vadd.f32 %v11198_v45, %v1516_v48 }
 0x212   : > { %v1518_v53 = vpop.f32.mrf.mxu0 }
 0x213   : > { %v1731_v55 = vpop.f32.mrf.mxu1 }
 0x214   : > { %v11245_v57 = vadd.f32 %v1731_v55, %v1507_v1  ;;  %v1521_v12 = vpop.f32.mrf.mxu0 }
 0x215   : > { %v1733_v8 = vpop.f32.mrf.mxu1  ;;  %v1522_v17 = vadd.f32 %v11198_v45, %v1521_v12 }
 0x216   : > { %v1523_v20 = vpop.f32.mrf.mxu0 }
 0x217   : > { %v1736_v13 = vpop.f32.mrf.mxu1 }
 0x218   : > { %v11248_v58 = vadd.f32 %v1736_v13, %v1512_v39  ;;  %v1526_v24 = vpop.f32.mrf.mxu0 }
 0x219   : > { %v1738_v54 = vpop.f32.mrf.mxu1  ;;  %v1527_v52 = vadd.f32 %v11198_v45, %v1526_v24 }
 0x21a   : > { %v1528_v43 = vpop.f32.mrf.mxu0 }
 0x21b   : > { %v1741_v33 = vpop.f32.mrf.mxu1 }
 0x21c   : > { %v11251_v5 = vadd.f32 %v1741_v33, %v1517_v19  ;;  %v1531_v40 = vpop.f32.mrf.mxu0 }
 0x21d   : > { %v1743_v36 = vpop.f32.mrf.mxu1  ;;  %v1532_v51 = vadd.f32 %v11198_v45, %v1531_v40 }
 0x21e   : > { %v1533_v16 = vpop.f32.mrf.mxu0 }
 0x21f   : > { %v1746_v47 = vpop.f32.mrf.mxu1 }
 0x220   : > { %v11254_v2 = vadd.f32 %v1746_v47, %v1522_v17  ;;  %v1536_v14 = vpop.f32.mrf.mxu0 }
 0x221   : > { %v1748_v60 = vpop.f32.mrf.mxu1  ;;  %v1537_v0 = vadd.f32 %v11198_v45, %v1536_v14 }
 0x222   : > { %v1538_v21 = vpop.f32.mrf.mxu0 }
 0x223   : > { %v1751_v34 = vpop.f32.mrf.mxu1 }
 0x224   : > { %v11257_v56 = vadd.f32 %v1751_v34, %v1527_v52  ;;  %v1541_v37 = vpop.f32.mrf.mxu0 }
 0x225   : > { %v1753_v44 = vpop.f32.mrf.mxu1  ;;  %v1542_v27 = vadd.f32 %v11198_v45, %v1541_v37 }
 0x226   : > { %v1543_v4 = vpop.f32.mrf.mxu0 }
 0x227   : > { %v1756_v50 = vpop.f32.mrf.mxu1 }
 0x228   : > { %v11260_v62 = vadd.f32 %v1756_v50, %v1532_v51  ;;  %v1546_v22 = vpop.f32.mrf.mxu0 }
 0x229   : > { %v1758_v26 = vpop.f32.mrf.mxu1  ;;  %v1547_v12 = vadd.f32 %v11198_v45, %v1546_v22 }
 0x22a   : > { %v1548_v49 = vpop.f32.mrf.mxu0 }
 0x22b   : > { %v1761_v10 = vpop.f32.mrf.mxu1 }
 0x22c   : > { %v11263_v11 = vadd.f32 %v1761_v10, %v1537_v0  ;;  %v1551_v7 = vpop.f32.mrf.mxu0 }
 0x22d   : > { %v1763_v42 = vpop.f32.mrf.mxu1  ;;  %v1552_v36 = vadd.f32 %v11198_v45, %v1551_v7 }
 0x22e   : > { %v1553_v48 = vpop.f32.mrf.mxu0 }
 0x22f   : > { %v1766_v15 = vpop.f32.mrf.mxu1 }
 0x230   : > { %v11266_v1 = vadd.f32 %v1766_v15, %v1542_v27  ;;  %v1556_v53 = vpop.f32.mrf.mxu0 }
 0x231   : > { %v1768_v55 = vpop.f32.mrf.mxu1  ;;  %v1557_v60 = vadd.f32 %v11198_v45, %v1556_v53 }
 0x232   : > { %v1558_v8 = vpop.f32.mrf.mxu0 }
 0x233   : > { %v1771_v39 = vpop.f32.mrf.mxu1 }
 0x234   : > { %v11269_v20 = vadd.f32 %v1771_v39, %v1547_v12  ;;  %v1561_v13 = vpop.f32.mrf.mxu0 }
 0x235   : > { %v1773_v24 = vpop.f32.mrf.mxu1  ;;  %v1562_v51 = vadd.f32 %v11198_v45, %v1561_v13 }
 0x236   : > { %v1563_v54 = vpop.f32.mrf.mxu0 }
 0x238   : > { %v1566_v19 = vpop.f32.mrf.mxu0 }
 0x239   : > { %v1567_v49 = vadd.f32 %v11198_v45, %v1566_v19 }
 0x23a   : > { %v1568_v43 = vpop.f32.mrf.mxu0 }
 0x23c   : > { %v11271_v33 = vpop.f32.mrf.mxu0 }
 0x23e   : > { %v1573_v40 = vpop.f32.mrf.mxu0 }
 0x24b   : > { %v1776_v17 = vpop.f32.mrf.mxu1 }
 0x24c   : > { %v11274_v16 = vadd.f32 %v1776_v17, %v1552_v36  ;;  %v11276_v47 = vpop.f32.mrf.mxu0 }
 0x24d   : > { %v1778_v14 = vpop.f32.mrf.mxu1 }
 0x24e   : > { %v1578_v52 = vpop.f32.mrf.mxu0 }
 0x24f   : > { %v1781_v21 = vpop.f32.mrf.mxu1 }
 0x250   : > { %v11279_v34 = vadd.f32 %v1781_v21, %v1557_v60  ;;  %v11281_v37 = vpop.f32.mrf.mxu0 }
 0x251   : > { %v1783_v44 = vpop.f32.mrf.mxu1 }
 0x252   : > { %v1583_v4 = vpop.f32.mrf.mxu0 }
 0x253   : > { %v1786_v50 = vpop.f32.mrf.mxu1 }
 0x254   : > { %v11284_v22 = vadd.f32 %v1786_v50, %v1562_v51  ;;  %v1586_v26 = vpop.f32.mrf.mxu0 }
 0x255   : > { %v1788_v0 = vpop.f32.mrf.mxu1  ;;  %v1587_v4 = vadd.f32 %v11198_v45, %v1586_v26 }
 0x256   : > { %v1588_v10 = vpop.f32.mrf.mxu0 }
 0x257   : > { %v1791_v7 = vpop.f32.mrf.mxu1 }
 0x258   : > { %v11287_v42 = vadd.f32 %v1791_v7, %v1567_v49  ;;  %v11289_v27 = vpop.f32.mrf.mxu0 }
 0x259   : > { %v1793_v48 = vpop.f32.mrf.mxu1 }
 0x25a   : > { %v1593_v15 = vpop.f32.mrf.mxu0 }
 0x25b   : > { %v11291_v53 = vpop.f32.mrf.mxu1 }
 0x25c   : > { %v8904_v55 = vpop.f32.mrf.mxu0 }
 0x25d   : > { %v1892_v12 = vadd.f32 %v8904_v55, %v11206_v30  ;;  %v1798_v8 = vpop.f32.mrf.mxu1 }
 0x25e   : > { %v1886_v39 = vpop.f32.mrf.mxu0 }
 0x25f   : > { %v2046_v13 = vmax.f32 %v1892_v12, 0.0  ;;  %v1887_v24 = vadd.f32 %v1886_v39, %v11203_v32  ;;  %v11295_v54 = vpop.f32.mrf.mxu1 }
 0x260   : > { %v8907_v19 = vpop.f32.mrf.mxu0 }
 0x261   : > { %v2045_v43 = vmax.f32 %v1887_v24, 0.0  ;;  %v1902_v40 = vadd.f32 %v8907_v19, %v11212_v18  ;;  %v1803_v36 = vpop.f32.mrf.mxu1  ;;  %v2145_v14 = vrot.slane %v2046_v13, 7  ;;  %v2238_v50 = vrot.slane %v2046_v13, 5 }
 0x262   : > { %v1896_v17 = vpop.f32.mrf.mxu0 }
 0x263   : > { %v2144_v60 = vrot.slane %v2045_v43, 7  ;;  %v2048_v52 = vmax.f32 %v1902_v40, 0.0  ;;  %v11298_v21 = vpop.f32.mrf.mxu1  ;;  %v1897_v30 = vadd.f32 %v1896_v17, %v11209_v9  ;;  %v2094_v10 = vrot.slane %v2045_v43, 1 }
 0x264   : > { %v8910_v44 = vpop.f32.mrf.mxu0 }
 0x265   : > { %v11302_v51 = vsel %vm429_vm0, %v2144_v60, %v2145_v14  ;;  %v1808_v32 = vpop.f32.mrf.mxu1  ;;  %v2047_v0 = vmax.f32 %v1897_v30, 0.0  ;;  %v1912_v18 = vadd.f32 %v8910_v44, %v11218_v31  ;;  %v2142_v7 = vrot.slane %v2048_v52, 7 }
 0x266   : > { %v1906_v49 = vpop.f32.mrf.mxu0  ;;  %v2237_v48 = vrot.slane %v2048_v52, 5  ;;  %v11320_v36 = vsel %vm429_vm0, %v2094_v10, %v2144_v60 }
 0x267   : > { %v1907_v15 = vadd.f32 %v1906_v49, %v11215_v6  ;;  %v1811_v55 = vpop.f32.mrf.mxu1  ;;  %v2093_v12 = vrot.slane %v2047_v0, 1  ;;  %v2141_v9 = vrot.slane %v2047_v0, 7  ;;  %v2050_v39 = vmax.f32 %v1912_v18, 0.0 }
 0x268   : > { %v8913_v8 = vpop.f32.mrf.mxu0  ;;  %v11307_v19 = vadd.f32 %v1811_v55, %v1587_v4  ;;  %v11317_v6 = vsel %vm429_vm0, %v2145_v14, %v2238_v50  ;;  %v11323_v17 = vsel %vm429_vm0, %v2142_v7, %v2237_v48  ;;  %v2339_v48 = vrot.slane %v11302_v51, 1 }
 0x269   : > { %v2049_v24 = vmax.f32 %v1907_v15, 0.0  ;;  %v1922_v26 = vadd.f32 %v8913_v8, %v11224_v41  ;;  %v1813_v13 = vpop.f32.mrf.mxu1  ;;  %v11311_v40 = vsel %vm429_vm0, %v2141_v9, %v2142_v7  ;;  %v11314_v31 = vsel %vm429_vm0, %v2093_v12, %v2141_v9 }
 0x26a   : > { %v1916_v43 = vpop.f32.mrf.mxu0  ;;  %v2148_v52 = vrot.slane %v2050_v39, 7  ;;  %v2239_v30 = vrot.slane %v2050_v39, 5  ;;  %v2333_v49 = vrot.slane %v11314_v31, 1  ;;  %v2334_v14 = vrot.slane %v11311_v40, 1 }
 0x26b   : > { %v2095_v41 = vrot.slane %v2049_v24, 1  ;;  %v2147_v44 = vrot.slane %v2049_v24, 7  ;;  %v1917_v32 = vadd.f32 %v1916_v43, %v11221_v25  ;;  %v2052_v0 = vmax.f32 %v1922_v26, 0.0 }
 0x26c   : > { %v8916_v4 = vpop.f32.mrf.mxu0  ;;  %v2336_v60 = vrot.slane %v11323_v17, 1  ;;  %v2338_v7 = vrot.slane %v11320_v36, 1  ;;  %v2341_v25 = vrot.slane %v11317_v6, 1  ;;  %v2335_v9 = vsel %vm622_vm1, %v2333_v49, %v2334_v14 }
 0x26d   : > { %v1932_v18 = vadd.f32 %v8916_v4, %v11230_v59  ;;  %v11331_v50 = vsel %vm429_vm0, %v2147_v44, %v2148_v52  ;;  %v11337_v15 = vsel %vm429_vm0, %v2095_v41, %v2147_v44  ;;  %v2051_v59 = vmax.f32 %v1917_v32, 0.0 }
 0x26e   : > { %16759 = vst [vmem:[#allocation6_spill] sm:$0xff] %v11331_v50  ;;  %v1926_v10 = vpop.f32.mrf.mxu0  ;;  %v2337_v8 = vsel %vm622_vm1, %v2334_v14, %v2336_v60  ;;  %v11343_v24 = vsel %vm429_vm0, %v2148_v52, %v2239_v30  ;;  %v2151_v26 = vrot.slane %v2052_v0, 7  ;;  %v2240_v13 = vrot.slane %v2052_v0, 5 }
 0x26f   : > { %v2054_v55 = vmax.f32 %v1932_v18, 0.0  ;;  %v1927_v12 = vadd.f32 %v1926_v10, %v11227_v23  ;;  %16760 = vst [vmem:[#allocation7_spill] sm:$0xff] %v11343_v24  ;;  %v2150_v43 = vrot.slane %v2051_v59, 7  ;;  %v2096_v4 = vrot.slane %v2051_v59, 1 }
 0x270   : > { %v8919_v39 = vpop.f32.mrf.mxu0  ;;  %v2340_v41 = vsel %vm622_vm1, %v2338_v7, %v2339_v48  ;;  %v2342_v32 = vsel %vm622_vm1, %v2339_v48, %v2341_v25  ;;  %v9410_v18 = vpack.i.bf16 %v2335_v9, %v11189_v35  ;;  %v2343_v14 = vrot.slane %v11337_v15, 1 }
 0x271   : > { %v2053_v61 = vmax.f32 %v1927_v12, 0.0  ;;  %v11348_v23 = vsel %vm429_vm0, %v2150_v43, %v2151_v26  ;;  %v9416_v49 = vpack.i.bf16 %v2340_v41, %v2337_v8  ;;  %v2346_v52 = vrot.slane %v11343_v24, 1 }
 0x272   : > { %v1936_v44 = vpop.f32.mrf.mxu0  ;;  %v2154_v30 = vrot.slane %v2054_v55, 7  ;;  %v1942_v60 = vadd.f32 %v8919_v39, %v11236_v63  ;;  %v11355_v7 = vsel %vm429_vm0, %v2151_v26, %v2240_v13  ;;  %v2241_v59 = vrot.slane %v2054_v55, 5  ;;  %9411 = vrot.lane.b32.xlu1 %v9410_v18, %s9822_s27 }
 0x273   : > { %v2153_v0 = vrot.slane %v2053_v61, 7  ;;  %9417 = vrot.lane.b32.xlu0 %v9416_v49, %s9822_s27  ;;  %v1937_v35 = vadd.f32 %v1936_v44, %v11233_v3  ;;  %v2344_v48 = vrot.slane %v11331_v50, 1  ;;  %v11362_v25 = vsel %vm429_vm0, %v2096_v4, %v2150_v43 }
 0x274   : > { %v8922_v10 = vpop.f32.mrf.mxu0  ;;  %v2056_v63 = vmax.f32 %v1942_v60, 0.0  ;;  %v2097_v39 = vrot.slane %v2053_v61, 1  ;;  %v2348_v50 = vrot.slane %v11362_v25, 1  ;;  %v2351_v60 = vrot.slane %v11355_v7, 1 }
 0x275   : > { %v11365_v12 = vsel %vm429_vm0, %v2153_v0, %v2154_v30  ;;  %v1952_v9 = vadd.f32 %v8922_v10, %v11242_v46  ;;  %v2055_v55 = vmax.f32 %v1937_v35, 0.0  ;;  %v2345_v26 = vsel %vm622_vm1, %v2343_v14, %v2344_v48 }
 0x276   : > { %16761 = vst [vmem:[#allocation9_spill] sm:$0xff] %v11365_v12  ;;  %v1946_v8 = vpop.f32.mrf.mxu0  ;;  %v2157_v41 = vrot.slane %v2056_v63, 7  ;;  %v2242_v3 = vrot.slane %v2056_v63, 5  ;;  %v9421_v44 = vpack.i.bf16 %v2345_v26, %v2342_v32  ;;  %v2349_v61 = vrot.slane %v11348_v23, 1 }
 0x277   : > { %v1947_v13 = vadd.f32 %v1946_v8, %v11239_v38  ;;  %v2058_v18 = vmax.f32 %v1952_v9, 0.0  ;;  %v2098_v43 = vrot.slane %v2055_v55, 1  ;;  %v2156_v4 = vrot.slane %v2055_v55, 7 }
 0x278   : > { %v8925_v49 = vpop.f32.mrf.mxu0  ;;  %9422 = vrot.lane.b32.xlu1 %v9421_v44, %s9822_s27  ;;  %v11375_v14 = vsel %vm429_vm0, %v2154_v30, %v2241_v59  ;;  %v11378_v38 = vsel %vm429_vm0, %v2097_v39, %v2153_v0  ;;  %v2347_v10 = vsel %vm622_vm1, %v2344_v48, %v2346_v52  ;;  %v11385_v35 = vsel %vm429_vm0, %v2157_v41, %v2242_v3 }
 0x279   : > { %v2057_v24 = vmax.f32 %v1947_v13, 0.0  ;;  %v11381_v32 = vsel %vm429_vm0, %v2156_v4, %v2157_v41  ;;  %16762 = vst [vmem:[#allocation10_spill] sm:$0xff] %v11385_v35  ;;  %v2160_v63 = vrot.slane %v2058_v18, 7  ;;  %v2350_v8 = vsel %vm622_vm1, %v2348_v50, %v2349_v61 }
 0x27a   : > { %v1956_v46 = vpop.f32.mrf.mxu0  ;;  %v11389_v26 = vsel %vm429_vm0, %v2098_v43, %v2156_v4  ;;  %v2243_v30 = vrot.slane %v2058_v18, 5  ;;  %v9426_v59 = vpack.i.bf16 %v2350_v8, %v2347_v10  ;;  %v1962_v0 = vadd.f32 %v8925_v49, %v11248_v58 }
 0x27b   : > { %v2159_v9 = vrot.slane %v2057_v24, 7  ;;  %v2099_v39 = vrot.slane %v2057_v24, 1  ;;  %v1957_v52 = vadd.f32 %v1956_v46, %v11245_v57  ;;  %v2352_v48 = vsel %vm622_vm1, %v2349_v61, %v2351_v60 }
 0x27c   : > { %v8928_v55 = vpop.f32.mrf.mxu0  ;;  %9427 = vrot.lane.b32.xlu0 %v9426_v59, %s9822_s27  ;;  %v2060_v50 = vmax.f32 %v1962_v0, 0.0  ;;  %v2353_v3 = vrot.slane %v11378_v38, 1  ;;  %v2354_v44 = vrot.slane %v11365_v12, 1  ;;  %v2358_v24 = vrot.slane %v11389_v26, 1 }
 0x27d   : > { %v11393_v13 = vsel %vm429_vm0, %v2159_v9, %v2160_v63  ;;  %v1972_v18 = vadd.f32 %v8928_v55, %v11254_v2  ;;  %v2059_v43 = vmax.f32 %v1957_v52, 0.0  ;;  %v2359_v49 = vrot.slane %v11381_v32, 1 }
 0x27e   : > { %16763 = vst [vmem:[#allocation11_spill] sm:$0xff] %v11393_v13  ;;  %v1966_v41 = vpop.f32.mrf.mxu0  ;;  %v2163_v4 = vrot.slane %v2060_v50, 7  ;;  %v2244_v60 = vrot.slane %v2060_v50, 5  ;;  %v2355_v61 = vsel %vm622_vm1, %v2353_v3, %v2354_v44  ;;  %v11407_v2 = vadd.f32 %v11198_v45, %v11271_v33 }
 0x27f   : > { %v1967_v58 = vadd.f32 %v1966_v41, %v11251_v5  ;;  %v2062_v46 = vmax.f32 %v1972_v18, 0.0  ;;  %v2100_v10 = vrot.slane %v2059_v43, 1  ;;  %v2162_v8 = vrot.slane %v2059_v43, 7 }
 0x280   : > { %v8931_v57 = vpop.f32.mrf.mxu0  ;;  %v9431_v59 = vpack.i.bf16 %v2355_v61, %v2352_v48  ;;  %v2356_v5 = vrot.slane %v11375_v14, 1  ;;  %v2361_v55 = vrot.slane %v11385_v35, 1  ;;  %v11412_v52 = vsel %vm429_vm0, %v2160_v63, %v2243_v30 }
 0x281   : > { %v2061_v0 = vmax.f32 %v1967_v58, 0.0  ;;  %v11415_v41 = vsel %vm429_vm0, %v2099_v39, %v2159_v9  ;;  %v11418_v50 = vsel %vm429_vm0, %v2163_v4, %v2244_v60  ;;  %v11421_v48 = vsel %vm429_vm0, %v2162_v8, %v2163_v4 }
 0x282   : > { %v1976_v12 = vpop.f32.mrf.mxu0  ;;  %16764 = vst [vmem:[#allocation12_spill] sm:$0xff] %v11421_v48  ;;  %9432 = vrot.lane.b32.xlu1 %v9431_v59, %s9822_s27  ;;  %v2166_v3 = vrot.slane %v2062_v46, 7  ;;  %v2357_v43 = vsel %vm622_vm1, %v2354_v44, %v2356_v5  ;;  %v2360_v58 = vsel %vm622_vm1, %v2358_v24, %v2359_v49  ;;  %v11427_v63 = vsel %vm429_vm0, %v2100_v10, %v2162_v8 }
 0x283   : > { %v2165_v18 = vrot.slane %v2061_v0, 7  ;;  %v2245_v9 = vrot.slane %v2062_v46, 5  ;;  %v9436_v30 = vpack.i.bf16 %v2360_v58, %v2357_v43  ;;  %v1982_v39 = vadd.f32 %v8931_v57, %v11260_v62 }
 0x284   : > { %v8934_v33 = vpop.f32.mrf.mxu0  ;;  %v2101_v61 = vrot.slane %v2061_v0, 1  ;;  %v1977_v59 = vadd.f32 %v1976_v12, %v11257_v56  ;;  %v2362_v35 = vsel %vm622_vm1, %v2359_v49, %v2361_v55  ;;  %v2363_v24 = vrot.slane %v11415_v41, 1 }
 0x285   : > { %v11431_v4 = vsel %vm429_vm0, %v2165_v18, %v2166_v3  ;;  %9437 = vrot.lane.b32.xlu0 %v9436_v30, %s9822_s27  ;;  %v2064_v44 = vmax.f32 %v1982_v39, 0.0  ;;  %v2364_v10 = vrot.slane %v11393_v13, 1  ;;  %v1992_v46 = vadd.f32 %v8934_v33, %v11266_v1 }
 0x286   : > { %v1986_v60 = vpop.f32.mrf.mxu0  ;;  %16765 = vst [vmem:[#allocation13_spill] sm:$0xff] %v11431_v4  ;;  %v2063_v62 = vmax.f32 %v1977_v59, 0.0  ;;  %v2368_v0 = vrot.slane %v11427_v63, 1  ;;  %v2369_v5 = vrot.slane %v11421_v48, 1  ;;  %v1577_v1 = vadd.f32 %v11198_v45, %v11276_v47 }
 0x287   : > { %v1987_v57 = vadd.f32 %v1986_v60, %v11263_v11  ;;  %v2169_v56 = vrot.slane %v2064_v44, 7  ;;  %v2246_v12 = vrot.slane %v2064_v44, 5  ;;  %v2365_v49 = vsel %vm622_vm1, %v2363_v24, %v2364_v10 }
 0x288   : > { %v8937_v8 = vpop.f32.mrf.mxu0  ;;  %v2066_v55 = vmax.f32 %v1992_v46, 0.0  ;;  %v2102_v58 = vrot.slane %v2063_v62, 1  ;;  %v2168_v30 = vrot.slane %v2063_v62, 7  ;;  %v9441_v39 = vpack.i.bf16 %v2365_v49, %v2362_v35 }
 0x289   : > { %v2065_v13 = vmax.f32 %v1987_v57, 0.0  ;;  %v2366_v33 = vrot.slane %v11412_v52, 1  ;;  %v1582_v48 = vadd.f32 %v11198_v45, %v11281_v37  ;;  %v2371_v44 = vrot.slane %v11418_v50, 1 }
 0x28a   : > { %v1996_v43 = vpop.f32.mrf.mxu0  ;;  %v2172_v11 = vrot.slane %v2066_v55, 7  ;;  %v2247_v60 = vrot.slane %v2066_v55, 5  ;;  %v11450_v24 = vsel %vm429_vm0, %v2166_v3, %v2245_v9  ;;  %v11453_v46 = vsel %vm429_vm0, %v2168_v30, %v2169_v56  ;;  %9442 = vrot.lane.b32.xlu1 %v9441_v39, %s9822_s27 }
 0x28b   : > { %v11457_v47 = vsel %vm429_vm0, %v2101_v61, %v2165_v18  ;;  %v2171_v35 = vrot.slane %v2065_v13, 7  ;;  %v2367_v62 = vsel %vm622_vm1, %v2364_v10, %v2366_v33  ;;  %v2370_v57 = vsel %vm622_vm1, %v2368_v0, %v2369_v5 }
 0x28c   : > { %v8940_v59 = vpop.f32.mrf.mxu0  ;;  %v11462_v45 = vsel %vm429_vm0, %v2169_v56, %v2246_v12  ;;  %v11465_v37 = vsel %vm429_vm0, %v2102_v58, %v2168_v30  ;;  %v9446_v3 = vpack.i.bf16 %v2370_v57, %v2367_v62  ;;  %v2002_v9 = vadd.f32 %v8937_v8, %v11274_v16 }
 0x28d   : > { %v11469_v55 = vsel %vm429_vm0, %v2172_v11, %v2247_v60  ;;  %v2103_v18 = vrot.slane %v2065_v13, 1  ;;  %v11472_v61 = vsel %vm429_vm0, %v2171_v35, %v2172_v11  ;;  %v1997_v10 = vadd.f32 %v1996_v43, %v11269_v20 }
 0x28e   : > { %v2006_v49 = vpop.f32.mrf.mxu0  ;;  %9447 = vrot.lane.b32.xlu0 %v9446_v3, %s9822_s27  ;;  %v2068_v56 = vmax.f32 %v2002_v9, 0.0  ;;  %v2373_v12 = vrot.slane %v11457_v47, 1  ;;  %v2374_v58 = vrot.slane %v11431_v4, 1  ;;  %v2012_v30 = vadd.f32 %v8940_v59, %v11284_v22 }
 0x28f   : > { %v2067_v16 = vmax.f32 %v1997_v10, 0.0  ;;  %v2372_v8 = vsel %vm622_vm1, %v2369_v5, %v2371_v44  ;;  %v2007_v13 = vadd.f32 %v2006_v49, %v11279_v34  ;;  %v2378_v39 = vrot.slane %v11465_v37, 1 }
 0x290   : > { %v8943_v0 = vpop.f32.mrf.mxu0  ;;  %v2175_v11 = vrot.slane %v2068_v56, 7  ;;  %v2375_v20 = vsel %vm622_vm1, %v2373_v12, %v2374_v58  ;;  %v2070_v43 = vmax.f32 %v2012_v30, 0.0  ;;  %v2379_v60 = vrot.slane %v11453_v46, 1 }
 0x291   : > { %v2104_v62 = vrot.slane %v2067_v16, 1  ;;  %v2174_v57 = vrot.slane %v2067_v16, 7  ;;  %v9451_v3 = vpack.i.bf16 %v2375_v20, %v2372_v8  ;;  %v2069_v9 = vmax.f32 %v2007_v13, 0.0 }
 0x292   : > { %v2016_v33 = vpop.f32.mrf.mxu0  ;;  %v1797_v22 = vadd.f32 %v11291_v53, %v11407_v2  ;;  %v1802_v5 = vadd.f32 %v11295_v54, %v1577_v1  ;;  %v1807_v34 = vadd.f32 %v11298_v21, %v1582_v48  ;;  %v2376_v59 = vrot.slane %v11450_v24, 1 }
 0x293   : > { %v2381_v44 = vrot.slane %v11462_v45, 1  ;;  %v2386_v49 = vrot.slane %v11469_v55, 1  ;;  %v11492_v10 = vsel %vm429_vm0, %v2103_v18, %v2171_v35  ;;  %v11495_v12 = vsel %vm429_vm0, %v2174_v57, %v2175_v11  ;;  %9452 = vrot.lane.b32.xlu1 %v9451_v3, %s9822_s27 }
 0x294   : > { %v8946_v4 = vpop.f32.mrf.mxu0  ;;  %v2178_v30 = vrot.slane %v2070_v43, 7  ;;  %v2177_v53 = vrot.slane %v2069_v9, 7  ;;  %v2377_v54 = vsel %vm622_vm1, %v2374_v58, %v2376_v59  ;;  %v2380_v21 = vsel %vm622_vm1, %v2378_v39, %v2379_v60 }
 0x295   : > { %v2248_v2 = vrot.slane %v2068_v56, 5  ;;  %v11501_v48 = vsel %vm429_vm0, %v2104_v62, %v2174_v57  ;;  %v9456_v1 = vpack.i.bf16 %v2380_v21, %v2377_v54  ;;  %v2022_v16 = vadd.f32 %v8943_v0, %v1797_v22 }
 0x296   : > { %v2026_v8 = vpop.f32.mrf.mxu0  ;;  %v2249_v35 = vrot.slane %v2070_v43, 5  ;;  %v2105_v18 = vrot.slane %v2069_v9, 1  ;;  %v11504_v13 = vsel %vm429_vm0, %v2177_v53, %v2178_v30  ;;  %v2017_v20 = vadd.f32 %v2016_v33, %v11287_v42 }
 0x297   : > { %9457 = vrot.lane.b32.xlu0 %v9456_v1, %s9822_s27  ;;  %v2072_v3 = vmax.f32 %v2022_v16, 0.0  ;;  %v2383_v58 = vrot.slane %v11492_v10, 1  ;;  %v2384_v56 = vrot.slane %v11472_v61, 1  ;;  %v2032_v39 = vadd.f32 %v8946_v4, %v1807_v34 }
 0x298   : > { %v2071_v62 = vmax.f32 %v2017_v20, 0.0  ;;  %v2382_v57 = vsel %vm622_vm1, %v2379_v60, %v2381_v44  ;;  %v2027_v0 = vadd.f32 %v2026_v8, %v1802_v5  ;;  %v2388_v43 = vrot.slane %v11501_v48, 1 }
 0x299   : > { %v2181_v9 = vrot.slane %v2072_v3, 7  ;;  %v2385_v22 = vsel %vm622_vm1, %v2383_v58, %v2384_v56  ;;  %v2074_v59 = vmax.f32 %v2032_v39, 0.0  ;;  %v2389_v42 = vrot.slane %v11495_v12, 1 }
 0x29a   : > { %v2106_v33 = vrot.slane %v2071_v62, 1  ;;  %v2180_v54 = vrot.slane %v2071_v62, 7  ;;  %v9461_v21 = vpack.i.bf16 %v2385_v22, %v2382_v57  ;;  %v2073_v1 = vmax.f32 %v2027_v0, 0.0 }
 0x29b   : > { %v11515_v16 = vsel %vm429_vm0, %v2175_v11, %v2248_v2  ;;  %v2250_v4 = vrot.slane %v2072_v3, 5  ;;  %v2184_v34 = vrot.slane %v2074_v59, 7  ;;  %v2251_v20 = vrot.slane %v2074_v59, 5 }
 0x29c   : > { %v11518_v60 = vsel %vm429_vm0, %v2178_v30, %v2249_v35  ;;  %v11521_v5 = vsel %vm429_vm0, %v2105_v18, %v2177_v53  ;;  %v11524_v44 = vsel %vm429_vm0, %v2180_v54, %v2181_v9  ;;  %9462 = vrot.lane.b32.xlu1 %v9461_v21, %s9822_s27  ;;  %v2387_v8 = vsel %vm622_vm1, %v2384_v56, %v2386_v49 }
 0x29d   : > { %v11529_v58 = vsel %vm429_vm0, %v2184_v34, %v2251_v20  ;;  %v2107_v11 = vrot.slane %v2073_v1, 1  ;;  %v2183_v2 = vrot.slane %v2073_v1, 7  ;;  %v2390_v3 = vsel %vm622_vm1, %v2388_v43, %v2389_v42 }
 0x29e   : > { %v11533_v30 = vsel %vm429_vm0, %v2106_v33, %v2180_v54  ;;  %v9466_v35 = vpack.i.bf16 %v2390_v3, %v2387_v8  ;;  %v11536_v53 = vsel %vm429_vm0, %v2181_v9, %v2250_v4  ;;  %v2393_v49 = vrot.slane %v11521_v5, 1 }
 0x29f   : > { %v11539_v18 = vsel %vm429_vm0, %v2183_v2, %v2184_v34  ;;  %v11542_v39 = vsel %vm429_vm0, %v2107_v11, %v2183_v2  ;;  %v2391_v56 = vrot.slane %v11515_v16, 1  ;;  %v2396_v62 = vrot.slane %v11518_v60, 1 }
 0x2a0   : > { %9467 = vrot.lane.b32.xlu0 %v9466_v35, %s9822_s27  ;;  %v2394_v57 = vrot.slane %v11504_v13, 1  ;;  %v2398_v0 = vrot.slane %v11533_v30, 1  ;;  %v2399_v43 = vrot.slane %v11524_v44, 1  ;;  %v2403_v9 = vrot.slane %v11542_v39, 1 }
 0x2a1   : > { %v2404_v22 = vrot.slane %v11539_v18, 1  ;;  %v2401_v59 = vrot.slane %v11536_v53, 1  ;;  %v2406_v33 = vrot.slane %v11529_v58, 1  ;;  %v2392_v54 = vsel %vm622_vm1, %v2389_v42, %v2391_v56 }
 0x2a2   : > { %v2395_v21 = vsel %vm622_vm1, %v2393_v49, %v2394_v57  ;;  %v2397_v4 = vsel %vm622_vm1, %v2394_v57, %v2396_v62  ;;  %v2400_v34 = vsel %vm622_vm1, %v2398_v0, %v2399_v43  ;;  %v16766_v56 = vunpack.i.h.bf16 %v11100_v29  ;;  %v2954_v0 = vld [vmem:[%s16503_s3 + $0x78] sm:$0xff]  ;;  %v2953_v29 = vld [vmem:[%s16503_s3 + $0x70] sm:$0xff] }
 0x2a3   : > { %v9471_v1 = vpack.i.bf16 %v2395_v21, %v2392_v54  ;;  %v2405_v20 = vsel %vm622_vm1, %v2403_v9, %v2404_v22  ;;  %v9476_v8 = vpack.i.bf16 %v2400_v34, %v2397_v4  ;;  %v2402_v11 = vsel %vm622_vm1, %v2399_v43, %v2401_v59  ;;  %3079 = vmatpush1.msra.mxu1 %v2954_v0  ;;  %v2952_v43 = vld [vmem:[%s16503_s3 + $0x68] sm:$0xff]  ;;  %v2951_v9 = vld [vmem:[%s16503_s3 + $0x60] sm:$0xff]  ;;  %v2949_v59 = vld [vmem:[%s16503_s3 + $0x50] sm:$0xff] }
 0x2a4   : > { %v11562_v2 = vsel %vm622_vm1, %v2404_v22, %v2406_v33  ;;  %v9481_v3 = vpack.i.bf16 %v2405_v20, %v2402_v11  ;;  %3080 = vmatprep.subr.mxu1 %v16713_v28  ;;  %v2950_v22 = vld [vmem:[%s16503_s3 + $0x58] sm:$0xff]  ;;  %v2948_v33 = vld [vmem:[%s16503_s3 + $0x48] sm:$0xff]  ;;  %v2947_v54 = vld [vmem:[%s16503_s3 + $0x40] sm:$0xff] }
 0x2a5   : > { %9472 = vrot.lane.b32.xlu1 %v9471_v1, %s9822_s27  ;;  %9477 = vrot.lane.b32.xlu0 %v9476_v8, %s9822_s27  ;;  %v2946_v21 = vld [vmem:[%s16503_s3 + $0x38] sm:$0xff]  ;;  %v2945_v1 = vld [vmem:[%s16503_s3 + $0x30] sm:$0xff] }
 0x2a6   : > { %3081 = vmatpush1.msra.mxu1 %v2953_v29  ;;  %v2944_v4 = vld [vmem:[%s16503_s3 + $0x28] sm:$0xff]  ;;  %v2943_v34 = vld [vmem:[%s16503_s3 + $0x20] sm:$0xff]  ;;  %v2942_v20 = vld [vmem:[%s16503_s3 + $0x18] sm:$0xff] }
 0x2a7   : > { %3082 = vmatprep.subr.mxu1 %v16713_v28  ;;  %v2941_v8 = vld [vmem:[%s16503_s3 + $0x10] sm:$0xff]  ;;  %v2940_v11 = vld [vmem:[%s16503_s3 + $0x8] sm:$0xff]  ;;  %v11671_v29 = vld [vmem:[%s16503_s3 + $0x160] sm:$0xff] }
 0x2a8   : > { %3083 = vmatpush1.msra.mxu1 %v2952_v43  ;;  %v2968_v0 = vld [vmem:[%s16503_s3 + $0xe8] sm:$0xff]  ;;  %16767 = vst [vmem:[#allocation14_spill] sm:$0xff] %v11671_v29  ;;  %v2967_v43 = vld [vmem:[%s16503_s3 + $0xe0] sm:$0xff] }
 0x2a9   : > { %9482 = vrot.lane.b32.xlu1 %v9481_v3, %s9822_s27  ;;  %3084 = vmatprep.subr.mxu1 %v16713_v28  ;;  %v2939_v3 = vld [vmem:[%s16503_s3] sm:$0xff] }
 0x2aa   : > { %3085 = vmatpush1.msra.mxu1 %v2951_v9  ;;  %v11682_v9 = vld [vmem:[%s16503_s3 + $0x158] sm:$0xff] }
 0x2ab   : > { %3086 = vmatprep.subr.mxu1 %v16713_v28  ;;  %16768 = vst [vmem:[#allocation15_spill] sm:$0xff] %v11682_v9 }
 0x2ac   : > { %3087 = vmatpush1.msra.mxu1 %v2950_v22  ;;  %v2966_v22 = vld [vmem:[%s16503_s3 + $0xd8] sm:$0xff] }
 0x2ad   : > { %3088 = vmatprep.subr.mxu1 %v16713_v28 }
 0x2ae   : > { %3089 = vmatpush1.msra.mxu1 %v2949_v59  ;;  %v11693_v59 = vld [vmem:[%s16503_s3 + $0x150] sm:$0xff] }
 0x2af   : > { %3090 = vmatprep.subr.mxu1 %v16713_v28  ;;  %16769 = vst [vmem:[#allocation16_spill] sm:$0xff] %v11693_v59 }
 0x2b0   : > { %3091 = vmatpush1.msra.mxu1 %v2948_v33  ;;  %v2965_v33 = vld [vmem:[%s16503_s3 + $0xd0] sm:$0xff] }
 0x2b1   : > { %3092 = vmatprep.subr.mxu1 %v16713_v28 }
 0x2b2   : > { %3093 = vmatpush1.msra.mxu1 %v2947_v54  ;;  %v11704_v54 = vld [vmem:[%s16503_s3 + $0x148] sm:$0xff] }
 0x2b3   : > { %3094 = vmatprep.subr.mxu1 %v16713_v28  ;;  %16770 = vst [vmem:[#allocation17_spill] sm:$0xff] %v11704_v54 }
 0x2b4   : > { %3095 = vmatpush1.msra.mxu1 %v2946_v21  ;;  %v2964_v21 = vld [vmem:[%s16503_s3 + $0xc8] sm:$0xff] }
 0x2b5   : > { %3096 = vmatprep.subr.mxu1 %v16713_v28 }
 0x2b6   : > { %3097 = vmatpush1.msra.mxu1 %v2945_v1  ;;  %v11715_v1 = vld [vmem:[%s16503_s3 + $0x140] sm:$0xff] }
 0x2b7   : > { %3098 = vmatprep.subr.mxu1 %v16713_v28  ;;  %16771 = vst [vmem:[#allocation18_spill] sm:$0xff] %v11715_v1 }
 0x2b8   : > { %3099 = vmatpush1.msra.mxu1 %v2944_v4  ;;  %v2963_v4 = vld [vmem:[%s16503_s3 + $0xc0] sm:$0xff] }
 0x2b9   : > { %3100 = vmatprep.subr.mxu1 %v16713_v28 }
 0x2ba   : > { %3101 = vmatpush1.msra.mxu1 %v2943_v34  ;;  %v11726_v34 = vld [vmem:[%s16503_s3 + $0x138] sm:$0xff] }
 0x2bb   : > { %3102 = vmatprep.subr.mxu1 %v16713_v28  ;;  %16772 = vst [vmem:[#allocation19_spill] sm:$0xff] %v11726_v34 }
 0x2bc   : > { %3103 = vmatpush1.msra.mxu1 %v2942_v20  ;;  %v2962_v20 = vld [vmem:[%s16503_s3 + $0xb8] sm:$0xff] }
 0x2bd   : > { %3104 = vmatprep.subr.mxu1 %v16713_v28 }
 0x2be   : > { %3105 = vmatpush1.msra.mxu1 %v2941_v8  ;;  %v11737_v8 = vld [vmem:[%s16503_s3 + $0x130] sm:$0xff] }
 0x2bf   : > { %3106 = vmatprep.subr.mxu1 %v16713_v28  ;;  %16773 = vst [vmem:[#allocation20_spill] sm:$0xff] %v11737_v8 }
 0x2c0   : > { %3107 = vmatpush1.msra.mxu1 %v2940_v11  ;;  %v2961_v11 = vld [vmem:[%s16503_s3 + $0xb0] sm:$0xff] }
 0x2c1   : > { %3108 = vmatprep.subr.mxu1 %v16713_v28 }
 0x2c2   : > { %3109 = vmatpush1.msra.mxu1 %v2939_v3  ;;  %v11748_v3 = vld [vmem:[%s16503_s3 + $0x128] sm:$0xff] }
 0x2c3   : > { %3110 = vmatprep.subr.mxu1 %v16713_v28  ;;  %16774 = vst [vmem:[#allocation21_spill] sm:$0xff] %v11748_v3 }
 0x2e4   : > { %v9412_v42 = vpop.permute.xlu1 %9411 }
 0x2e5   : > { %v9414_v35 = vunpack.i.h.bf16 %v9412_v42  ;;  %v9413_v49 = vunpack.i.l.bf16 %v9412_v42  ;;  %v2970_v42 = vld [vmem:[%s16503_s3 + $0xf8] sm:$0xff] }
 0x2e6   : > { %3111 = vmatpush2.msra.mxu1 %v2970_v42  ;;  %v2960_v42 = vld [vmem:[%s16503_s3 + $0xa8] sm:$0xff] }
 0x2e7   : > { %v1134_v62 = vsel %vm910_vm2, %v16766_v56, %v9413_v49  ;;  %v11572_v57 = vsel %vm910_vm2, %v11314_v31, %v9414_v35  ;;  %v11645_v35 = vld [vmem:[%s16503_s3 + $0x178] sm:$0xff]  ;;  %v11650_v49 = vld [vmem:[%s16503_s3 + $0x170] sm:$0xff]  ;;  %3112 = vmatprep.subr.mxu1 %v16713_v28 }
 0x2e8   : > { %1815 = vmatmul.mubr.f32.gmra.mxu1 %v1134_v62  ;;  %3367 = vmatprep.mubr.f32.mxu0 %v11572_v57  ;;  %v2969_v56 = vld [vmem:[%s16503_s3 + $0xf0] sm:$0xff]  ;;  %v11661_v62 = vld [vmem:[%s16503_s3 + $0x168] sm:$0xff] }
 0x2e9   : > { %3304 = vmatpush1.msra.mxu0 %v11645_v35  ;;  %3113 = vmatpush2.msra.mxu1 %v2969_v56  ;;  %v11759_v56 = vld [vmem:[%s16503_s3 + $0x120] sm:$0xff] }
 0x2ea   : > { %3305 = vmatprep.subr.mxu0 %v16713_v28  ;;  %3114 = vmatprep.subr.mxu1 %v16713_v28  ;;  %16775 = vst [vmem:[#allocation22_spill] sm:$0xff] %v11759_v56 }
 0x2eb   : > { %3306 = vmatpush1.msra.mxu0 %v11650_v49  ;;  %3115 = vmatpush2.msra.mxu1 %v2968_v0  ;;  %v2959_v0 = vld [vmem:[%s16503_s3 + $0xa0] sm:$0xff] }
 0x2ec   : > { %3307 = vmatprep.subr.mxu0 %v16713_v28  ;;  %3116 = vmatprep.subr.mxu1 %v16713_v28 }
 0x2ed   : > { %3308 = vmatpush1.msra.mxu0 %v11661_v62  ;;  %3117 = vmatpush2.msra.mxu1 %v2967_v43  ;;  %v11770_v43 = vld [vmem:[%s16503_s3 + $0x118] sm:$0xff] }
 0x2ee   : > { %3309 = vmatprep.subr.mxu0 %v16713_v28  ;;  %3118 = vmatprep.subr.mxu1 %v16713_v28  ;;  %16776 = vst [vmem:[#allocation23_spill] sm:$0xff] %v11770_v43 }
 0x2ef   : > { %3310 = vmatpush1.msra.mxu0 %v11671_v29  ;;  %3119 = vmatpush2.msra.mxu1 %v2966_v22  ;;  %v2958_v22 = vld [vmem:[%s16503_s3 + $0x98] sm:$0xff] }
 0x2f0   : > { %3311 = vmatprep.subr.mxu0 %v16713_v28  ;;  %3120 = vmatprep.subr.mxu1 %v16713_v28 }
 0x2f1   : > { %3312 = vmatpush1.msra.mxu0 %v11682_v9  ;;  %3121 = vmatpush2.msra.mxu1 %v2965_v33  ;;  %v11781_v33 = vld [vmem:[%s16503_s3 + $0x110] sm:$0xff] }
 0x2f2   : > { %3313 = vmatprep.subr.mxu0 %v16713_v28  ;;  %3122 = vmatprep.subr.mxu1 %v16713_v28  ;;  %16777 = vst [vmem:[#allocation24_spill] sm:$0xff] %v11781_v33 }
 0x2f3   : > { %3314 = vmatpush1.msra.mxu0 %v11693_v59  ;;  %3123 = vmatpush2.msra.mxu1 %v2964_v21  ;;  %v2957_v21 = vld [vmem:[%s16503_s3 + $0x90] sm:$0xff]  ;;  %v2514_v59 = vrot.slane %v11320_v36, 2 }
 0x2f4   : > { %3315 = vmatprep.subr.mxu0 %v16713_v28  ;;  %3124 = vmatprep.subr.mxu1 %v16713_v28 }
 0x2f5   : > { %3316 = vmatpush1.msra.mxu0 %v11704_v54  ;;  %3125 = vmatpush2.msra.mxu1 %v2963_v4  ;;  %v11792_v4 = vld [vmem:[%s16503_s3 + $0x108] sm:$0xff] }
 0x2f6   : > { %3317 = vmatprep.subr.mxu0 %v16713_v28  ;;  %3126 = vmatprep.subr.mxu1 %v16713_v28  ;;  %16778 = vst [vmem:[#allocation25_spill] sm:$0xff] %v11792_v4 }
 0x2f7   : > { %3318 = vmatpush1.msra.mxu0 %v11715_v1  ;;  %3127 = vmatpush2.msra.mxu1 %v2962_v20  ;;  %v11800_v20 = vld [vmem:[%s16503_s3 + $0x100] sm:$0xff] }
 0x2f8   : > { %3319 = vmatprep.subr.mxu0 %v16713_v28  ;;  %3128 = vmatprep.subr.mxu1 %v16713_v28  ;;  %16779 = vst [vmem:[#allocation8_spill] sm:$0xff] %v11800_v20 }
 0x2f9   : > { %3320 = vmatpush1.msra.mxu0 %v11726_v34  ;;  %3129 = vmatpush2.msra.mxu1 %v2961_v11  ;;  %v11808_v11 = vld [vmem:[%s16503_s3 + $0x1f8] sm:$0xff] }
 0x2fa   : > { %3321 = vmatprep.subr.mxu0 %v16713_v28  ;;  %3130 = vmatprep.subr.mxu1 %v16713_v28  ;;  %16780 = vst [vmem:[#allocation26_spill] sm:$0xff] %v11808_v11 }
 0x2fb   : > { %3322 = vmatpush1.msra.mxu0 %v11737_v8  ;;  %3131 = vmatpush2.msra.mxu1 %v2960_v42  ;;  %v11815_v42 = vld [vmem:[%s16503_s3 + $0x1f0] sm:$0xff] }
 0x2fc   : > { %3323 = vmatprep.subr.mxu0 %v16713_v28  ;;  %3132 = vmatprep.subr.mxu1 %v16713_v28  ;;  %16781 = vst [vmem:[#allocation27_spill] sm:$0xff] %v11815_v42 }
 0x2fd   : > { %3324 = vmatpush1.msra.mxu0 %v11748_v3  ;;  %3133 = vmatpush2.msra.mxu1 %v2959_v0  ;;  %v3000_v0 = vld [vmem:[%s16503_s3 + $0x1e8] sm:$0xff] }
 0x2fe   : > { %3325 = vmatprep.subr.mxu0 %v16713_v28  ;;  %3134 = vmatprep.subr.mxu1 %v16713_v28 }
 0x2ff   : > { %3326 = vmatpush1.msra.mxu0 %v11759_v56  ;;  %3135 = vmatpush2.msra.mxu1 %v2958_v22  ;;  %v2999_v22 = vld [vmem:[%s16503_s3 + $0x1e0] sm:$0xff] }
 0x300   : > { %3327 = vmatprep.subr.mxu0 %v16713_v28  ;;  %3136 = vmatprep.subr.mxu1 %v16713_v28 }
 0x301   : > { %3328 = vmatpush1.msra.mxu0 %v11770_v43  ;;  %3137 = vmatpush2.msra.mxu1 %v2957_v21  ;;  %v2998_v21 = vld [vmem:[%s16503_s3 + $0x1d8] sm:$0xff] }
 0x302   : > { %3329 = vmatprep.subr.mxu0 %v16713_v28  ;;  %3138 = vmatprep.subr.mxu1 %v16713_v28 }
 0x303   : > { %3330 = vmatpush1.msra.mxu0 %v11781_v33 }
 0x304   : > { %3331 = vmatprep.subr.mxu0 %v16713_v28 }
 0x305   : > { %3332 = vmatpush1.msra.mxu0 %v11792_v4 }
 0x306   : > { %3333 = vmatprep.subr.mxu0 %v16713_v28 }
 0x307   : > { %3334 = vmatpush1.msra.mxu0 %v11800_v20 }
 0x308   : > { %3335 = vmatprep.subr.mxu0 %v16713_v28 }
 0x309   : > { %3336 = vmatpush2.msra.mxu0 %v11808_v11  ;;  %v8949_v11 = vpop.f32.mrf.mxu0 }
 0x30a   : > { %3337 = vmatprep.subr.mxu0 %v16713_v28 }
 0x30b   : > { %3338 = vmatpush2.msra.mxu0 %v11815_v42  ;;  %v2997_v42 = vld [vmem:[%s16503_s3 + $0x1d0] sm:$0xff]  ;;  %v2036_v20 = vpop.f32.mrf.mxu0 }
 0x30c   : > { %3339 = vmatprep.subr.mxu0 %v16713_v28  ;;  %v2037_v4 = vadd.f32 %v2036_v20, %v11307_v19  ;;  %v9742_v19 = vld [vmem:[%s16502_s2] ss:$0 sm:$0xff] }
 0x30d   : > { %3340 = vmatpush2.msra.mxu0 %v3000_v0  ;;  %v2996_v0 = vld [vmem:[%s16503_s3 + $0x1c8] sm:$0xff]  ;;  %v1592_v20 = vadd.f32 %v9742_v19, %v11289_v27  ;;  %v2990_v19 = vld [vmem:[%s16503_s3 + $0x198] sm:$0xff] }
 0x30e   : > { %3341 = vmatprep.subr.mxu0 %v16713_v28  ;;  %v2075_v33 = vmax.f32 %v2037_v4, 0.0  ;;  %v2956_v27 = vld [vmem:[%s16503_s3 + $0x88] sm:$0xff] }
 0x30f   : > { %3342 = vmatpush2.msra.mxu0 %v2999_v22  ;;  %v2995_v22 = vld [vmem:[%s16503_s3 + $0x1c0] sm:$0xff]  ;;  %3139 = vmatpush2.msra.mxu1 %v2956_v27 }
 0x310   : > { %3343 = vmatprep.subr.mxu0 %v16713_v28  ;;  %v2108_v4 = vrot.slane %v2075_v33, 1  ;;  %3140 = vmatprep.subr.mxu1 %v16713_v28 }
 0x311   : > { %3344 = vmatpush2.msra.mxu0 %v2998_v21  ;;  %v2994_v21 = vld [vmem:[%s16503_s3 + $0x1b8] sm:$0xff] }
 0x312   : > { %3345 = vmatprep.subr.mxu0 %v16713_v28 }
 0x313   : > { %3346 = vmatpush2.msra.mxu0 %v2997_v42  ;;  %v2993_v42 = vld [vmem:[%s16503_s3 + $0x1b0] sm:$0xff] }
 0x314   : > { %3347 = vmatprep.subr.mxu0 %v16713_v28 }
 0x315   : > { %3348 = vmatpush2.msra.mxu0 %v2996_v0  ;;  %v2992_v0 = vld [vmem:[%s16503_s3 + $0x1a8] sm:$0xff] }
 0x316   : > { %3349 = vmatprep.subr.mxu0 %v16713_v28 }
 0x317   : > { %3350 = vmatpush2.msra.mxu0 %v2995_v22  ;;  %v2991_v22 = vld [vmem:[%s16503_s3 + $0x1a0] sm:$0xff] }
 0x318   : > { %3351 = vmatprep.subr.mxu0 %v16713_v28 }
 0x319   : > { %3352 = vmatpush2.msra.mxu0 %v2994_v21  ;;  %v11865_v21 = vpop.permute.xlu0 %5559 }
 0x31a   : > { %3353 = vmatprep.subr.mxu0 %v16713_v28  ;;  %16782 = vst [vmem:[#allocation28_spill] sm:$0xff] %v11865_v21 }
 0x31b   : > { %3354 = vmatpush2.msra.mxu0 %v2993_v42  ;;  %v2186_v42 = vrot.slane %v2075_v33, 7 }
 0x31c   : > { %3355 = vmatprep.subr.mxu0 %v16713_v28 }
 0x31d   : > { %3356 = vmatpush2.msra.mxu0 %v2992_v0 }
 0x31e   : > { %3357 = vmatprep.subr.mxu0 %v16713_v28 }
 0x31f   : > { %3358 = vmatpush2.msra.mxu0 %v2991_v22  ;;  %v9423_v22 = vpop.permute.xlu1 %9422 }
 0x320   : > { %3359 = vmatprep.subr.mxu0 %v16713_v28  ;;  %v9424_v8 = vunpack.i.l.bf16 %v9423_v22 }
 0x321   : > { %3360 = vmatpush2.msra.mxu0 %v2990_v19 }
 0x322   : > { %3361 = vmatprep.subr.mxu0 %v16713_v28 }
 0x3a8   : > { %v1816_v43 = vpop.f32.mrf.mxu1 }
 0x3a9   : > { %v1817_v56 = vadd.f32 %v1816_v43, %v1592_v20  ;;  %v11877_v43 = vsel %vm429_vm0, %v2108_v4, %v2186_v42  ;;  %v9418_v20 = vpop.permute.xlu0 %9417  ;;  %v2987_v4 = vld [vmem:[%s16503_s3 + $0x180] sm:$0xff] }
 0x3aa   : > { %v1818_v0 = vpop.f32.mrf.mxu1  ;;  %v9420_v21 = vunpack.i.h.bf16 %v9418_v20 }
 0x3ab   : > { %v2042_v3 = vadd.f32 %v8949_v11, %v1817_v56  ;;  %v2989_v0 = vld [vmem:[%s16503_s3 + $0x190] sm:$0xff]  ;;  %v2955_v56 = vld [vmem:[%s16503_s3 + $0x80] sm:$0xff]  ;;  %v2988_v11 = vld [vmem:[%s16503_s3 + $0x188] sm:$0xff] }
 0x3ac   : > { %3362 = vmatpush2.msra.mxu0 %v2989_v0  ;;  %3141 = vmatpush2.msra.mxu1 %v2955_v56 }
 0x3ad   : > { %v2076_v33 = vmax.f32 %v2042_v3, 0.0  ;;  %v2408_v3 = vrot.slane %v11877_v43, 1  ;;  %3363 = vmatprep.subr.mxu0 %v16713_v28  ;;  %9070 = vmatprep.subr.mxu1 %v16713_v28 }
 0x3ae   : > { %3364 = vmatpush2.msra.mxu0 %v2988_v11 }
 0x3af   : > { %v2187_v27 = vrot.slane %v2076_v33, 7  ;;  %v2252_v19 = vrot.slane %v2076_v33, 5  ;;  %3365 = vmatprep.subr.mxu0 %v16713_v28 }
 0x3b0   : > { %3366 = vmatpush2.msra.mxu0 %v2987_v4  ;;  %v11916_v4 = vsel %vm910_vm2, %v11320_v36, %v9420_v21  ;;  %v2512_v21 = vrot.slane %v11323_v17, 2 }
 0x3b1   : > { %v11895_v34 = vsel %vm429_vm0, %v2186_v42, %v2187_v27  ;;  %v2300_v1 = vsel %vm429_vm0, %v2187_v27, %v2252_v19  ;;  %v2515_v27 = vrot.slane %v11302_v51, 2  ;;  %4844 = vmatprep.subr.mxu0 %v16713_v28  ;;  %v9419_v19 = vunpack.i.l.bf16 %v9418_v20 }
 0x3b2   : > { %v2411_v33 = vrot.slane %v2300_v1, 1  ;;  %v16578_v0 = vrot.slane %v11895_v34, 2  ;;  %v2587_v56 = vrot.slane %v2300_v1, 2  ;;  %v2409_v54 = vrot.slane %v11895_v34, 1 }
 0x3b3   : > { %v9425_v20 = vunpack.i.h.bf16 %v9423_v22 }
 0x3b4   : > { %v11905_v9 = vsel %vm799_vm3, %v16578_v0, %v2587_v56  ;;  %v2410_v42 = vsel %vm622_vm1, %v2408_v3, %v2409_v54  ;;  %v2412_v11 = vsel %vm622_vm1, %v2409_v54, %v2411_v33  ;;  %v11920_v56 = vsel %vm910_vm2, %v11302_v51, %v9424_v8  ;;  %v9428_v33 = vpop.permute.xlu0 %9427 }
 0x3b5   : > { %16783 = vst [vmem:[#allocation29_spill] sm:$0xff] %v11905_v9  ;;  %2809 = vrot.lane.b32.xlu1 %v11905_v9, %s9822_s27  ;;  %v9486_v1 = vpack.i.bf16 %v2410_v42, %v11562_v2  ;;  %v2509_v54 = vrot.slane %v11314_v31, 2  ;;  %v2510_v3 = vrot.slane %v11311_v40, 2  ;;  %v9491_v0 = vpack.i.bf16 %v11916_v4, %v2412_v11 }
 0x3b6   : > { %v2517_v2 = vrot.slane %v11317_v6, 2  ;;  %v11928_v42 = vsel %vm799_vm3, %v2514_v59, %v2515_v27  ;;  %v9429_v36 = vunpack.i.l.bf16 %v9428_v33  ;;  %v11938_v8 = vsel %vm910_vm2, %v11311_v40, %v9419_v19  ;;  %v9433_v6 = vpop.permute.xlu1 %9432  ;;  %v16784_v40 = vld [vmem:[#allocation6_spill] sm:$0xff] }
 0x3b7   : > { %9487 = vrot.lane.b32.xlu0 %v9486_v1, %s9822_s27  ;;  %v9496_v51 = vpack.i.bf16 %v11920_v56, %v11928_v42  ;;  %v11945_v22 = vsel %vm799_vm3, %v2509_v54, %v2510_v3  ;;  %v11949_v11 = vsel %vm910_vm2, %v11337_v15, %v9425_v20  ;;  %v2520_v1 = vrot.slane %v16784_v40, 2 }
 0x3b8   : > { %v11934_v31 = vsel %vm799_vm3, %v2515_v27, %v2517_v2  ;;  %v2519_v27 = vrot.slane %v11337_v15, 2  ;;  %v9506_v17 = vpack.i.bf16 %v11938_v8, %v11945_v22  ;;  %v9434_v19 = vunpack.i.l.bf16 %v9433_v6 }
 0x3b9   : > { %9492 = vrot.lane.b32.xlu1 %v9491_v0, %s9822_s27  ;;  %v9501_v59 = vpack.i.bf16 %v11572_v57, %v11934_v31  ;;  %v9430_v0 = vunpack.i.h.bf16 %v9428_v33  ;;  %v11957_v2 = vsel %vm799_vm3, %v2510_v3, %v2512_v21  ;;  %v11961_v54 = vsel %vm910_vm2, %v16784_v40, %v9429_v36  ;;  %v16785_v33 = vld [vmem:[#allocation7_spill] sm:$0xff] }
 0x3ba   : > { %v2522_v20 = vrot.slane %v16785_v33, 2  ;;  %v9511_v15 = vpack.i.bf16 %v11949_v11, %v11957_v2  ;;  %v9435_v9 = vunpack.i.h.bf16 %v9433_v6  ;;  %v11969_v29 = vsel %vm799_vm3, %v2519_v27, %v2520_v1  ;;  %v9443_v33 = vpop.permute.xlu1 %9442 }
 0x3bb   : > { %9497 = vrot.lane.b32.xlu0 %v9496_v51, %s9822_s27  ;;  %v9438_v51 = vpop.permute.xlu0 %9437  ;;  %16786 = vst [vmem:[#allocation6_spill] sm:$0xff] %v11969_v29  ;;  %v11973_v3 = vsel %vm910_vm2, %v11362_v25, %v9430_v0  ;;  %v2525_v36 = vrot.slane %v11348_v23, 2  ;;  %v9516_v21 = vpack.i.bf16 %v11961_v54, %v11969_v29  ;;  %v11984_v6 = vsel %vm910_vm2, %v11348_v23, %v9434_v19  ;;  %v16789_v23 = vld [vmem:[#allocation9_spill] sm:$0xff] }
 0x3bc   : > { %v9439_v40 = vunpack.i.l.bf16 %v9438_v51  ;;  %v2527_v27 = vrot.slane %v11355_v7, 2  ;;  %v2529_v0 = vrot.slane %v11378_v38, 2  ;;  %v2530_v19 = vrot.slane %v16789_v23, 2 }
 0x3bd   : > { %9502 = vrot.lane.b32.xlu1 %v9501_v59, %s9822_s27  ;;  %v2524_v59 = vrot.slane %v11362_v25, 2 }
 0x3bf   : > { %9507 = vrot.lane.b32.xlu0 %v9506_v17, %s9822_s27  ;;  %v11980_v17 = vsel %vm799_vm3, %v2520_v1, %v2522_v20  ;;  %v11992_v29 = vsel %vm799_vm3, %v2524_v59, %v2525_v36  ;;  %v11996_v1 = vsel %vm910_vm2, %v11378_v38, %v9435_v9  ;;  %v9444_v20 = vunpack.i.l.bf16 %v9443_v33  ;;  %v9448_v59 = vpop.permute.xlu0 %9447 }
 0x3c0   : > { %16787 = vst [vmem:[#allocation7_spill] sm:$0xff] %v11980_v17  ;;  %v9521_v25 = vpack.i.bf16 %v11973_v3, %v11980_v17  ;;  %16788 = vst [vmem:[#allocation30_spill] sm:$0xff] %v11992_v29  ;;  %v9526_v7 = vpack.i.bf16 %v11984_v6, %v11992_v29  ;;  %v2534_v9 = vrot.slane %v11389_v26, 2  ;;  %v2532_v29 = vrot.slane %v11375_v14, 2 }
 0x3c1   : > { %9512 = vrot.lane.b32.xlu1 %v9511_v15, %s9822_s27  ;;  %v9440_v15 = vunpack.i.h.bf16 %v9438_v51  ;;  %v12007_v51 = vsel %vm910_vm2, %v16789_v23, %v9439_v40  ;;  %v9445_v17 = vunpack.i.h.bf16 %v9443_v33  ;;  %v9449_v23 = vunpack.i.l.bf16 %v9448_v59  ;;  %v16793_v33 = vld [vmem:[#allocation10_spill] sm:$0xff] }
 0x3c2   : > { %v12030_v14 = vsel %vm910_vm2, %v11381_v32, %v9444_v20 }
 0x3c3   : > { %9517 = vrot.lane.b32.xlu0 %v9516_v21, %s9822_s27  ;;  %v12003_v21 = vsel %vm799_vm3, %v2525_v36, %v2527_v27  ;;  %v12016_v36 = vsel %vm799_vm3, %v2529_v0, %v2530_v19  ;;  %v12020_v40 = vsel %vm910_vm2, %v11389_v26, %v9440_v15  ;;  %v2537_v0 = vrot.slane %v16793_v33, 2 }
 0x3c4   : > { %16790 = vst [vmem:[#allocation9_spill] sm:$0xff] %v12003_v21  ;;  %v9531_v38 = vpack.i.bf16 %v11996_v1, %v12003_v21  ;;  %16791 = vst [vmem:[#allocation31_spill] sm:$0xff] %v12016_v36  ;;  %v9536_v27 = vpack.i.bf16 %v12007_v51, %v12016_v36  ;;  %v9453_v21 = vpop.permute.xlu1 %9452 }
 0x3c5   : > { %9522 = vrot.lane.b32.xlu1 %v9521_v25, %s9822_s27  ;;  %v2535_v25 = vrot.slane %v11381_v32, 2  ;;  %v16795_v32 = vld [vmem:[#allocation11_spill] sm:$0xff]  ;;  %v9454_v33 = vunpack.i.l.bf16 %v9453_v21  ;;  %v9455_v36 = vunpack.i.h.bf16 %v9453_v21 }
 0x3c6   : > { %v2540_v20 = vrot.slane %v16795_v32, 2 }
 0x3c7   : > { %9527 = vrot.lane.b32.xlu0 %v9526_v7, %s9822_s27  ;;  %v12026_v7 = vsel %vm799_vm3, %v2530_v19, %v2532_v29  ;;  %v12037_v15 = vsel %vm799_vm3, %v2534_v9, %v2535_v25  ;;  %v12041_v29 = vsel %vm910_vm2, %v11415_v41, %v9445_v17  ;;  %v2539_v19 = vrot.slane %v11415_v41, 2  ;;  %v9458_v9 = vpop.permute.xlu0 %9457 }
 0x3c8   : > { %16792 = vst [vmem:[#allocation32_spill] sm:$0xff] %v12026_v7  ;;  %v9541_v26 = vpack.i.bf16 %v12020_v40, %v12026_v7  ;;  %16794 = vst [vmem:[#allocation10_spill] sm:$0xff] %v12037_v15  ;;  %v12049_v7 = vsel %vm799_vm3, %v2535_v25, %v2537_v0  ;;  %v2542_v17 = vrot.slane %v11412_v52, 2 }
 0x3c9   : > { %9532 = vrot.lane.b32.xlu1 %v9531_v38, %s9822_s27  ;;  %v9450_v38 = vunpack.i.h.bf16 %v9448_v59  ;;  %16796 = vst [vmem:[#allocation11_spill] sm:$0xff] %v12049_v7  ;;  %v12053_v59 = vsel %vm910_vm2, %v16795_v32, %v9449_v23  ;;  %v9551_v41 = vpack.i.bf16 %v12041_v29, %v12049_v7  ;;  %v16798_v23 = vld [vmem:[#allocation12_spill] sm:$0xff]  ;;  %v9459_v32 = vunpack.i.l.bf16 %v9458_v9  ;;  %v9463_v7 = vpop.permute.xlu1 %9462 }
 0x3ca   : > { %v2545_v0 = vrot.slane %v16798_v23, 2  ;;  %v12076_v21 = vsel %vm910_vm2, %v16798_v23, %v9454_v33  ;;  %v16801_v33 = vld [vmem:[#allocation13_spill] sm:$0xff]  ;;  %v9464_v23 = vunpack.i.l.bf16 %v9463_v7 }
 0x3cb   : > { %9537 = vrot.lane.b32.xlu0 %v9536_v27, %s9822_s27  ;;  %v9546_v27 = vpack.i.bf16 %v12030_v14, %v12037_v15  ;;  %v12061_v15 = vsel %vm799_vm3, %v2539_v19, %v2540_v20  ;;  %v12065_v25 = vsel %vm910_vm2, %v11427_v63, %v9450_v38  ;;  %v2547_v19 = vrot.slane %v11418_v50, 2 }
 0x3cc   : > { %16797 = vst [vmem:[#allocation33_spill] sm:$0xff] %v12061_v15  ;;  %v9556_v52 = vpack.i.bf16 %v12053_v59, %v12061_v15  ;;  %v2549_v38 = vrot.slane %v11457_v47, 2 }
 0x3cd   : > { %9542 = vrot.lane.b32.xlu1 %v9541_v26, %s9822_s27  ;;  %v2544_v26 = vrot.slane %v11427_v63, 2 }
 0x3cf   : > { %9547 = vrot.lane.b32.xlu0 %v9546_v27, %s9822_s27  ;;  %v12072_v27 = vsel %vm799_vm3, %v2540_v20, %v2542_v17  ;;  %v12084_v15 = vsel %vm799_vm3, %v2544_v26, %v2545_v0  ;;  %v12088_v20 = vsel %vm910_vm2, %v11457_v47, %v9455_v36  ;;  %v2550_v17 = vrot.slane %v16801_v33, 2  ;;  %v9468_v26 = vpop.permute.xlu0 %9467 }
 0x3d0   : > { %16799 = vst [vmem:[#allocation12_spill] sm:$0xff] %v12072_v27  ;;  %v9561_v63 = vpack.i.bf16 %v12065_v25, %v12072_v27  ;;  %16800 = vst [vmem:[#allocation34_spill] sm:$0xff] %v12084_v15  ;;  %v9566_v50 = vpack.i.bf16 %v12076_v21, %v12084_v15  ;;  %v2554_v36 = vrot.slane %v11465_v37, 2  ;;  %v2552_v15 = vrot.slane %v11450_v24, 2 }
 0x3d1   : > { %9552 = vrot.lane.b32.xlu1 %v9551_v41, %s9822_s27  ;;  %v9460_v41 = vunpack.i.h.bf16 %v9458_v9  ;;  %v12099_v9 = vsel %vm910_vm2, %v16801_v33, %v9459_v32  ;;  %v9465_v27 = vunpack.i.h.bf16 %v9463_v7  ;;  %v9469_v33 = vunpack.i.l.bf16 %v9468_v26 }
 0x3d2   : > { %v12122_v24 = vsel %vm910_vm2, %v11453_v46, %v9464_v23  ;;  %v2557_v7 = vrot.slane %v11462_v45, 2 }
 0x3d3   : > { %9557 = vrot.lane.b32.xlu0 %v9556_v52, %s9822_s27  ;;  %v12095_v52 = vsel %vm799_vm3, %v2545_v0, %v2547_v19  ;;  %v12108_v0 = vsel %vm799_vm3, %v2549_v38, %v2550_v17  ;;  %v12112_v32 = vsel %vm910_vm2, %v11465_v37, %v9460_v41  ;;  %v9473_v38 = vpop.permute.xlu1 %9472 }
 0x3d4   : > { %v9571_v47 = vpack.i.bf16 %v12088_v20, %v12095_v52  ;;  %v9576_v19 = vpack.i.bf16 %v12099_v9, %v12108_v0  ;;  %v9474_v23 = vunpack.i.l.bf16 %v9473_v38 }
 0x3d5   : > { %9562 = vrot.lane.b32.xlu1 %v9561_v63, %s9822_s27  ;;  %v2555_v63 = vrot.slane %v11453_v46, 2  ;;  %v2560_v46 = vrot.slane %v11472_v61, 2 }
 0x3d7   : > { %9567 = vrot.lane.b32.xlu0 %v9566_v50, %s9822_s27  ;;  %v12118_v50 = vsel %vm799_vm3, %v2550_v17, %v2552_v15  ;;  %v12129_v41 = vsel %vm799_vm3, %v2554_v36, %v2555_v63  ;;  %v12133_v15 = vsel %vm910_vm2, %v11492_v10, %v9465_v27  ;;  %v2559_v17 = vrot.slane %v11492_v10, 2  ;;  %v9478_v36 = vpop.permute.xlu0 %9477 }
 0x3d8   : > { %16802 = vst [vmem:[#allocation13_spill] sm:$0xff] %v12118_v50  ;;  %v9581_v37 = vpack.i.bf16 %v12112_v32, %v12118_v50  ;;  %16803 = vst [vmem:[#allocation35_spill] sm:$0xff] %v12129_v41  ;;  %v9586_v45 = vpack.i.bf16 %v12122_v24, %v12129_v41  ;;  %v2562_v27 = vrot.slane %v11469_v55, 2  ;;  %v9475_v50 = vunpack.i.h.bf16 %v9473_v38 }
 0x3d9   : > { %9572 = vrot.lane.b32.xlu1 %v9571_v47, %s9822_s27  ;;  %v9470_v47 = vunpack.i.h.bf16 %v9468_v26  ;;  %v12145_v26 = vsel %vm910_vm2, %v11472_v61, %v9469_v33  ;;  %v12153_v41 = vsel %vm799_vm3, %v2559_v17, %v2560_v46  ;;  %v2565_v61 = vrot.slane %v11495_v12, 2 }
 0x3da   : > { %16804 = vst [vmem:[#allocation36_spill] sm:$0xff] %v12153_v41  ;;  %v9596_v55 = vpack.i.bf16 %v12145_v26, %v12153_v41  ;;  %v9479_v33 = vunpack.i.l.bf16 %v9478_v36  ;;  %v12168_v38 = vsel %vm910_vm2, %v11495_v12, %v9474_v23  ;;  %v2567_v17 = vrot.slane %v11515_v16, 2 }
 0x3db   : > { %9577 = vrot.lane.b32.xlu0 %v9576_v19, %s9822_s27  ;;  %v12141_v19 = vsel %vm799_vm3, %v2555_v63, %v2557_v7  ;;  %v12157_v63 = vsel %vm910_vm2, %v11501_v48, %v9470_v47  ;;  %v12164_v7 = vsel %vm799_vm3, %v2560_v46, %v2562_v27  ;;  %v2569_v47 = vrot.slane %v11521_v5, 2 }
 0x3dc   : > { %v9591_v10 = vpack.i.bf16 %v12133_v15, %v12141_v19  ;;  %v12180_v46 = vsel %vm910_vm2, %v11521_v5, %v9475_v50  ;;  %v2570_v12 = vrot.slane %v11504_v13, 2  ;;  %v12187_v27 = vsel %vm799_vm3, %v2565_v61, %v2567_v17 }
 0x3dd   : > { %9582 = vrot.lane.b32.xlu1 %v9581_v37, %s9822_s27  ;;  %v2564_v37 = vrot.slane %v11501_v48, 2  ;;  %v9601_v48 = vpack.i.bf16 %v12157_v63, %v12164_v7  ;;  %v9611_v5 = vpack.i.bf16 %v12180_v46, %v12187_v27  ;;  %v2574_v50 = vrot.slane %v11533_v30, 2 }
 0x3df   : > { %9587 = vrot.lane.b32.xlu0 %v9586_v45, %s9822_s27  ;;  %v9483_v45 = vpop.permute.xlu1 %9482  ;;  %v12176_v41 = vsel %vm799_vm3, %v2564_v37, %v2565_v61  ;;  %v2572_v37 = vrot.slane %v11518_v60, 2 }
 0x3e0   : > { %v9606_v16 = vpack.i.bf16 %v12168_v38, %v12176_v41  ;;  %v9484_v23 = vunpack.i.l.bf16 %v9483_v45 }
 0x3e1   : > { %9592 = vrot.lane.b32.xlu1 %v9591_v10, %s9822_s27  ;;  %v9480_v10 = vunpack.i.h.bf16 %v9478_v36  ;;  %v12191_v36 = vsel %vm910_vm2, %v11504_v13, %v9479_v33  ;;  %v2575_v13 = vrot.slane %v11524_v44, 2  ;;  %v12210_v33 = vsel %vm799_vm3, %v2570_v12, %v2572_v37 }
 0x3e2   : > { %v12214_v17 = vsel %vm910_vm2, %v11524_v44, %v9484_v23  ;;  %v2580_v23 = vrot.slane %v11539_v18, 2 }
 0x3e3   : > { %9597 = vrot.lane.b32.xlu0 %v9596_v55, %s9822_s27  ;;  %v9485_v55 = vunpack.i.h.bf16 %v9483_v45  ;;  %v12203_v61 = vsel %vm910_vm2, %v11533_v30, %v9480_v10  ;;  %v2577_v45 = vrot.slane %v11536_v53, 2 }
 0x3e4   : > { %v9621_v30 = vpack.i.bf16 %v12203_v61, %v12210_v33 }
 0x3e5   : > { %9602 = vrot.lane.b32.xlu1 %v9601_v48, %s9822_s27  ;;  %v12199_v48 = vsel %vm799_vm3, %v2569_v47, %v2570_v12  ;;  %v12221_v47 = vsel %vm799_vm3, %v2574_v50, %v2575_v13  ;;  %v12225_v10 = vsel %vm910_vm2, %v11542_v39, %v9485_v55  ;;  %v12231_v12 = vsel %vm799_vm3, %v2575_v13, %v2577_v45 }
 0x3e6   : > { %v9616_v60 = vpack.i.bf16 %v12191_v36, %v12199_v48  ;;  %16805 = vst [vmem:[#allocation37_spill] sm:$0xff] %v12225_v10  ;;  %v9626_v44 = vpack.i.bf16 %v12214_v17, %v12221_v47  ;;  %v9631_v53 = vpack.i.bf16 %v12225_v10, %v12231_v12 }
 0x3e7   : > { %9607 = vrot.lane.b32.xlu0 %v9606_v16, %s9822_s27  ;;  %v2579_v16 = vrot.slane %v11542_v39, 2 }
 0x3e9   : > { %9612 = vrot.lane.b32.xlu1 %v9611_v5, %s9822_s27  ;;  %v2582_v5 = vrot.slane %v11529_v58, 2  ;;  %v12246_v45 = vsel %vm799_vm3, %v2579_v16, %v2580_v23 }
 0x3eb   : > { %9617 = vrot.lane.b32.xlu0 %v9616_v60, %s9822_s27 }
 0x3ed   : > { %9622 = vrot.lane.b32.xlu1 %v9621_v30, %s9822_s27  ;;  %v12243_v30 = vsel %vm799_vm3, %v2580_v23, %v2582_v5 }
 0x3ef   : > { %9627 = vrot.lane.b32.xlu0 %v9626_v44, %s9822_s27 }
 0x3f1   : > { %9632 = vrot.lane.b32.xlu1 %v9631_v53, %s9822_s27 }
 0x427   : > { %v12239_v37 = vpop.permute.xlu1 %2809 }
 0x428   : > { %16806 = vst [vmem:[#allocation38_spill] sm:$0xff] %v12239_v37 }
 0x429   : > { %v9488_v50 = vpop.permute.xlu0 %9487 }
 0x42a   : > { %v9490_v55 = vunpack.i.h.bf16 %v9488_v50  ;;  %v9489_v60 = vunpack.i.l.bf16 %v9488_v50 }
 0x42b   : > { %v9493_v13 = vpop.permute.xlu1 %9492 }
 0x42c   : > { %v9495_v44 = vunpack.i.h.bf16 %v9493_v13  ;;  %v9494_v53 = vunpack.i.l.bf16 %v9493_v13  ;;  %v12250_v39 = vsel %vm910_vm2, %v11877_v43, %v9490_v55  ;;  %v12254_v37 = vsel %vm910_vm2, %v11539_v18, %v9489_v60 }
 0x42d   : > { %16807 = vst [vmem:[#allocation39_spill] sm:$0xff] %v12250_v39  ;;  %16808 = vst [vmem:[#allocation40_spill] sm:$0xff] %v12254_v37  ;;  %v9498_v58 = vpop.permute.xlu0 %9497  ;;  %v9641_v50 = vpack.i.bf16 %v12250_v39, %v12243_v30  ;;  %v9636_v5 = vpack.i.bf16 %v12254_v37, %v12246_v45  ;;  %v2584_v13 = vrot.slane %v11877_v43, 2 }
 0x42e   : > { %v9500_v10 = vunpack.i.h.bf16 %v9498_v58  ;;  %v9499_v16 = vunpack.i.l.bf16 %v9498_v58  ;;  %v2907_v23 = vsel %vm910_vm2, %v11945_v22, %v9495_v44  ;;  %v12265_v55 = vsel %vm910_vm2, %v11895_v34, %v9494_v53 }
 0x42f   : > { %9642 = vrot.lane.b32.xlu1 %v9641_v50, %s9822_s27  ;;  %v9503_v18 = vpop.permute.xlu1 %9502  ;;  %3142 = vmatprep.mubr.f32.mxu1 %v2907_v23  ;;  %v16809_v53 = vrot.slane %v11895_v34, 2 }
 0x430   : > { %v9505_v60 = vunpack.i.h.bf16 %v9503_v18  ;;  %v9504_v39 = vunpack.i.l.bf16 %v9503_v18  ;;  %9637 = vrot.lane.b32.xlu0 %v9636_v5, %s9822_s27  ;;  %3143 = vmatmul.mubr.f32.vlgmr.msra.gmra.mxu1 %v11572_v57  ;;  %v2908_v58 = vsel %vm910_vm2, %v11957_v2, %v9500_v10  ;;  %v2811_v37 = vsel %vm910_vm2, %v9495_v44, %v9499_v16 }
 0x431   : > { %3147 = vmatprep.mubr.f32.mxu1 %v2908_v58  ;;  %3368 = vmatmul.mubr.f32.vlgmr.msra.gmra.mxu0 %v2811_v37  ;;  %v9508_v43 = vpop.permute.xlu0 %9507  ;;  %v12276_v50 = vsel %vm799_vm3, %v2584_v13, %v16809_v53 }
 0x432   : > { %9102 = vmatpush1.msra.mxu1 %v11645_v35  ;;  %3372 = vmatprep.mubr.f32.mxu0 %v11938_v8  ;;  %v9646_v5 = vpack.i.bf16 %v12265_v55, %v12276_v50  ;;  %v9510_v23 = vunpack.i.h.bf16 %v9508_v43  ;;  %v9509_v18 = vunpack.i.l.bf16 %v9508_v43  ;;  %v2909_v34 = vsel %vm910_vm2, %v11928_v42, %v9505_v60 }
 0x433   : > { %9071 = vmatprep.subr.mxu1 %v16713_v28  ;;  %v2812_v37 = vsel %vm910_vm2, %v9500_v10, %v9504_v39  ;;  %v9513_v44 = vpop.permute.xlu1 %9512 }
 0x434   : > { %9647 = vrot.lane.b32.xlu0 %v9646_v5, %s9822_s27  ;;  %3148 = vmatmul.mubr.f32.gmra.mxu1 %v11938_v8  ;;  %v9515_v35 = vunpack.i.h.bf16 %v9513_v44  ;;  %v9514_v16 = vunpack.i.l.bf16 %v9513_v44  ;;  %v2910_v13 = vsel %vm910_vm2, %v11934_v31, %v9510_v23  ;;  %v2813_v42 = vsel %vm910_vm2, %v9505_v60, %v9509_v18  ;;  %v16810_v60 = vld [vmem:[#allocation14_spill] sm:$0xff] }
 0x435   : > { %3152 = vmatprep.mubr.f32.mxu1 %v2909_v34  ;;  %3373 = vmatmul.mubr.f32.gmra.mxu0 %v2812_v37  ;;  %v9518_v58 = vpop.permute.xlu0 %9517  ;;  %v16812_v37 = vld [vmem:[#allocation6_spill] sm:$0xff] }
 0x436   : > { %9103 = vmatpush1.msra.mxu1 %v11650_v49  ;;  %3377 = vmatprep.mubr.f32.mxu0 %v11949_v11  ;;  %v9520_v49 = vunpack.i.h.bf16 %v9518_v58  ;;  %v9519_v10 = vunpack.i.l.bf16 %v9518_v58  ;;  %v2814_v31 = vsel %vm910_vm2, %v9510_v23, %v9514_v16  ;;  %v16811_v23 = vld [vmem:[#allocation15_spill] sm:$0xff] }
 0x437   : > { %9072 = vmatprep.subr.mxu1 %v16713_v28  ;;  %v9523_v39 = vpop.permute.xlu1 %9522  ;;  %v16814_v58 = vld [vmem:[#allocation7_spill] sm:$0xff] }
 0x438   : > { %3153 = vmatmul.mubr.f32.gmra.mxu1 %v11916_v4  ;;  %v2911_v4 = vsel %vm910_vm2, %v11945_v22, %v9515_v35  ;;  %v9524_v43 = vunpack.i.l.bf16 %v9523_v39  ;;  %v2815_v53 = vsel %vm910_vm2, %v9515_v35, %v9519_v10  ;;  %v16813_v35 = vld [vmem:[#allocation16_spill] sm:$0xff] }
 0x439   : > { %3157 = vmatprep.mubr.f32.mxu1 %v2910_v13  ;;  %3378 = vmatmul.mubr.f32.gmra.mxu0 %v2813_v42  ;;  %v9528_v5 = vpop.permute.xlu0 %9527 }
 0x43a   : > { %9104 = vmatpush1.msra.mxu1 %v11661_v62  ;;  %3382 = vmatprep.mubr.f32.mxu0 %v11961_v54  ;;  %v9525_v62 = vunpack.i.h.bf16 %v9523_v39  ;;  %v9530_v18 = vunpack.i.h.bf16 %v9528_v5  ;;  %v9529_v34 = vunpack.i.l.bf16 %v9528_v5  ;;  %v2816_v44 = vsel %vm910_vm2, %v9520_v49, %v9524_v43 }
 0x43b   : > { %9073 = vmatprep.subr.mxu1 %v16713_v28  ;;  %v9533_v16 = vpop.permute.xlu1 %9532 }
 0x43c   : > { %3158 = vmatmul.mubr.f32.gmra.mxu1 %v11920_v56  ;;  %v2912_v56 = vsel %vm910_vm2, %v11957_v2, %v9520_v49  ;;  %v9535_v13 = vunpack.i.h.bf16 %v9533_v16  ;;  %v9534_v42 = vunpack.i.l.bf16 %v9533_v16  ;;  %v2817_v10 = vsel %vm910_vm2, %v9525_v62, %v9529_v34  ;;  %v16815_v49 = vld [vmem:[#allocation17_spill] sm:$0xff] }
 0x43d   : > { %3162 = vmatprep.mubr.f32.mxu1 %v2911_v4  ;;  %3383 = vmatmul.mubr.f32.gmra.mxu0 %v2814_v31  ;;  %v9538_v4 = vpop.permute.xlu0 %9537 }
 0x43e   : > { %9105 = vmatpush1.msra.mxu1 %v16810_v60  ;;  %3387 = vmatprep.mubr.f32.mxu0 %v11973_v3  ;;  %v9540_v31 = vunpack.i.h.bf16 %v9538_v4  ;;  %v9539_v39 = vunpack.i.l.bf16 %v9538_v4  ;;  %v16816_v60 = vld [vmem:[#allocation30_spill] sm:$0xff]  ;;  %v2818_v43 = vsel %vm910_vm2, %v9530_v18, %v9534_v42 }
 0x43f   : > { %9074 = vmatprep.subr.mxu1 %v16713_v28 }
 0x440   : > { %3163 = vmatmul.mubr.f32.gmra.mxu1 %v11572_v57  ;;  %v2913_v57 = vsel %vm910_vm2, %v16812_v37, %v9525_v62  ;;  %v16817_v62 = vld [vmem:[#allocation18_spill] sm:$0xff]  ;;  %v2819_v34 = vsel %vm910_vm2, %v9535_v13, %v9539_v39 }
 0x441   : > { %3167 = vmatprep.mubr.f32.mxu1 %v2912_v56  ;;  %3388 = vmatmul.mubr.f32.gmra.mxu0 %v2815_v53  ;;  %v9543_v56 = vpop.permute.xlu1 %9542 }
 0x442   : > { %9106 = vmatpush1.msra.mxu1 %v16811_v23  ;;  %3392 = vmatprep.mubr.f32.mxu0 %v11984_v6  ;;  %v9545_v53 = vunpack.i.h.bf16 %v9543_v56  ;;  %v9544_v5 = vunpack.i.l.bf16 %v9543_v56  ;;  %v16818_v23 = vld [vmem:[#allocation9_spill] sm:$0xff] }
 0x443   : > { %9075 = vmatprep.subr.mxu1 %v16713_v28 }
 0x444   : > { %3168 = vmatmul.mubr.f32.gmra.mxu1 %v11938_v8  ;;  %v2914_v8 = vsel %vm910_vm2, %v16814_v58, %v9530_v18  ;;  %v16819_v18 = vld [vmem:[#allocation19_spill] sm:$0xff]  ;;  %v2820_v42 = vsel %vm910_vm2, %v9540_v31, %v9544_v5 }
 0x445   : > { %3172 = vmatprep.mubr.f32.mxu1 %v2913_v57  ;;  %3393 = vmatmul.mubr.f32.gmra.mxu0 %v2816_v44  ;;  %v9548_v57 = vpop.permute.xlu0 %9547 }
 0x446   : > { %9107 = vmatpush1.msra.mxu1 %v16813_v35  ;;  %3397 = vmatprep.mubr.f32.mxu0 %v11996_v1  ;;  %v9550_v44 = vunpack.i.h.bf16 %v9548_v57  ;;  %v9549_v16 = vunpack.i.l.bf16 %v9548_v57  ;;  %v16820_v35 = vld [vmem:[#allocation31_spill] sm:$0xff] }
 0x447   : > { %9076 = vmatprep.subr.mxu1 %v16713_v28 }
 0x448   : > { %3173 = vmatmul.mubr.f32.gmra.mxu1 %v11949_v11  ;;  %v2915_v11 = vsel %vm910_vm2, %v16816_v60, %v9535_v13  ;;  %v16821_v13 = vld [vmem:[#allocation20_spill] sm:$0xff]  ;;  %v2821_v39 = vsel %vm910_vm2, %v9545_v53, %v9549_v16 }
 0x449   : > { %3177 = vmatprep.mubr.f32.mxu1 %v2914_v8  ;;  %3398 = vmatmul.mubr.f32.gmra.mxu0 %v2817_v10  ;;  %v9553_v8 = vpop.permute.xlu1 %9552 }
 0x44a   : > { %9108 = vmatpush1.msra.mxu1 %v16815_v49  ;;  %3402 = vmatprep.mubr.f32.mxu0 %v12007_v51  ;;  %v9555_v10 = vunpack.i.h.bf16 %v9553_v8  ;;  %v9554_v4 = vunpack.i.l.bf16 %v9553_v8  ;;  %v16822_v49 = vld [vmem:[#allocation32_spill] sm:$0xff] }
 0x44b   : > { %9077 = vmatprep.subr.mxu1 %v16713_v28 }
 0x44c   : > { %3178 = vmatmul.mubr.f32.gmra.mxu1 %v11961_v54  ;;  %v2916_v54 = vsel %vm910_vm2, %v16818_v23, %v9540_v31  ;;  %v16823_v31 = vld [vmem:[#allocation21_spill] sm:$0xff]  ;;  %v2822_v5 = vsel %vm910_vm2, %v9550_v44, %v9554_v4 }
 0x44d   : > { %3182 = vmatprep.mubr.f32.mxu1 %v2915_v11  ;;  %3403 = vmatmul.mubr.f32.gmra.mxu0 %v2818_v43  ;;  %v9558_v11 = vpop.permute.xlu0 %9557 }
 0x44e   : > { %9109 = vmatpush1.msra.mxu1 %v16817_v62  ;;  %3407 = vmatprep.mubr.f32.mxu0 %v12020_v40  ;;  %v9560_v43 = vunpack.i.h.bf16 %v9558_v11  ;;  %v9559_v56 = vunpack.i.l.bf16 %v9558_v11  ;;  %v16824_v62 = vld [vmem:[#allocation10_spill] sm:$0xff] }
 0x44f   : > { %9078 = vmatprep.subr.mxu1 %v16713_v28 }
 0x450   : > { %3183 = vmatmul.mubr.f32.gmra.mxu1 %v11973_v3  ;;  %v2917_v3 = vsel %vm910_vm2, %v16820_v35, %v9545_v53  ;;  %v16825_v53 = vld [vmem:[#allocation22_spill] sm:$0xff]  ;;  %v2823_v16 = vsel %vm910_vm2, %v9555_v10, %v9559_v56 }
 0x451   : > { %3187 = vmatprep.mubr.f32.mxu1 %v2916_v54  ;;  %3408 = vmatmul.mubr.f32.gmra.mxu0 %v2819_v34  ;;  %v9563_v54 = vpop.permute.xlu1 %9562 }
 0x452   : > { %9110 = vmatpush1.msra.mxu1 %v16819_v18  ;;  %3412 = vmatprep.mubr.f32.mxu0 %v12030_v14  ;;  %v9565_v34 = vunpack.i.h.bf16 %v9563_v54  ;;  %v9564_v57 = vunpack.i.l.bf16 %v9563_v54  ;;  %v16826_v18 = vld [vmem:[#allocation11_spill] sm:$0xff] }
 0x453   : > { %9079 = vmatprep.subr.mxu1 %v16713_v28 }
 0x454   : > { %3188 = vmatmul.mubr.f32.gmra.mxu1 %v11984_v6  ;;  %v2918_v6 = vsel %vm910_vm2, %v16822_v49, %v9550_v44  ;;  %v16827_v44 = vld [vmem:[#allocation23_spill] sm:$0xff]  ;;  %v2824_v4 = vsel %vm910_vm2, %v9560_v43, %v9564_v57 }
 0x455   : > { %3192 = vmatprep.mubr.f32.mxu1 %v2917_v3  ;;  %3413 = vmatmul.mubr.f32.gmra.mxu0 %v2820_v42  ;;  %v9568_v3 = vpop.permute.xlu0 %9567 }
 0x456   : > { %9111 = vmatpush1.msra.mxu1 %v16821_v13  ;;  %3417 = vmatprep.mubr.f32.mxu0 %v12041_v29  ;;  %v9570_v42 = vunpack.i.h.bf16 %v9568_v3  ;;  %v9569_v8 = vunpack.i.l.bf16 %v9568_v3  ;;  %v16828_v13 = vld [vmem:[#allocation33_spill] sm:$0xff] }
 0x457   : > { %9080 = vmatprep.subr.mxu1 %v16713_v28 }
 0x458   : > { %3193 = vmatmul.mubr.f32.gmra.mxu1 %v11996_v1  ;;  %v2919_v1 = vsel %vm910_vm2, %v16824_v62, %v9555_v10  ;;  %v16829_v10 = vld [vmem:[#allocation24_spill] sm:$0xff]  ;;  %v2825_v56 = vsel %vm910_vm2, %v9565_v34, %v9569_v8 }
 0x459   : > { %3197 = vmatprep.mubr.f32.mxu1 %v2918_v6  ;;  %3418 = vmatmul.mubr.f32.gmra.mxu0 %v2821_v39  ;;  %v9573_v6 = vpop.permute.xlu1 %9572 }
 0x45a   : > { %9112 = vmatpush1.msra.mxu1 %v16823_v31  ;;  %3422 = vmatprep.mubr.f32.mxu0 %v12053_v59  ;;  %v9575_v39 = vunpack.i.h.bf16 %v9573_v6  ;;  %v9574_v11 = vunpack.i.l.bf16 %v9573_v6  ;;  %v16830_v31 = vld [vmem:[#allocation12_spill] sm:$0xff] }
 0x45b   : > { %9081 = vmatprep.subr.mxu1 %v16713_v28 }
 0x45c   : > { %3198 = vmatmul.mubr.f32.gmra.mxu1 %v12007_v51  ;;  %v2920_v51 = vsel %vm910_vm2, %v16826_v18, %v9560_v43  ;;  %v16831_v43 = vld [vmem:[#allocation25_spill] sm:$0xff]  ;;  %v2826_v57 = vsel %vm910_vm2, %v9570_v42, %v9574_v11 }
 0x45d   : > { %3202 = vmatprep.mubr.f32.mxu1 %v2919_v1  ;;  %3423 = vmatmul.mubr.f32.gmra.mxu0 %v2822_v5  ;;  %v9578_v1 = vpop.permute.xlu0 %9577 }
 0x45e   : > { %9113 = vmatpush1.msra.mxu1 %v16825_v53  ;;  %3427 = vmatprep.mubr.f32.mxu0 %v12065_v25  ;;  %v9580_v5 = vunpack.i.h.bf16 %v9578_v1  ;;  %v9579_v54 = vunpack.i.l.bf16 %v9578_v1  ;;  %v16832_v53 = vld [vmem:[#allocation34_spill] sm:$0xff] }
 0x45f   : > { %9082 = vmatprep.subr.mxu1 %v16713_v28 }
 0x460   : > { %3203 = vmatmul.mubr.f32.gmra.mxu1 %v12020_v40  ;;  %v2921_v40 = vsel %vm910_vm2, %v16828_v13, %v9565_v34  ;;  %v16833_v34 = vld [vmem:[#allocation8_spill] sm:$0xff] }
 0x461   : > { %3207 = vmatprep.mubr.f32.mxu1 %v2920_v51  ;;  %3428 = vmatmul.mubr.f32.gmra.mxu0 %v2823_v16  ;;  %v9583_v51 = vpop.permute.xlu1 %9582  ;;  %v9588_v8 = vpop.permute.xlu0 %9587 }
 0x462   : > { %9114 = vmatpush1.msra.mxu1 %v16827_v44  ;;  %3432 = vmatprep.mubr.f32.mxu0 %v12076_v21  ;;  %v9585_v16 = vunpack.i.h.bf16 %v9583_v51  ;;  %v9584_v3 = vunpack.i.l.bf16 %v9583_v51  ;;  %v2827_v44 = vsel %vm910_vm2, %v9575_v39, %v9579_v54 }
 0x463   : > { %9083 = vmatprep.subr.mxu1 %v16713_v28 }
 0x464   : > { %3208 = vmatmul.mubr.f32.gmra.mxu1 %v12030_v14  ;;  %v2922_v14 = vsel %vm910_vm2, %v16830_v31, %v9570_v42  ;;  %v16834_v42 = vld [vmem:[#allocation26_spill] sm:$0xff]  ;;  %v2828_v6 = vsel %vm910_vm2, %v9580_v5, %v9584_v3 }
 0x465   : > { %3212 = vmatprep.mubr.f32.mxu1 %v2921_v40  ;;  %3433 = vmatmul.mubr.f32.gmra.mxu0 %v2824_v4  ;;  %v9590_v40 = vunpack.i.h.bf16 %v9588_v8  ;;  %v9589_v4 = vunpack.i.l.bf16 %v9588_v8 }
 0x466   : > { %9115 = vmatpush1.msra.mxu1 %v16829_v10  ;;  %3437 = vmatprep.mubr.f32.mxu0 %v12088_v20  ;;  %v9593_v10 = vpop.permute.xlu1 %9592 }
 0x467   : > { %9084 = vmatprep.subr.mxu1 %v16713_v28  ;;  %v9595_v11 = vunpack.i.h.bf16 %v9593_v10  ;;  %v2829_v1 = vsel %vm910_vm2, %v9585_v16, %v9589_v4 }
 0x468   : > { %3213 = vmatmul.mubr.f32.gmra.mxu1 %v12041_v29  ;;  %v2923_v29 = vsel %vm910_vm2, %v16832_v53, %v9575_v39  ;;  %v16835_v39 = vld [vmem:[#allocation27_spill] sm:$0xff] }
 0x469   : > { %3217 = vmatprep.mubr.f32.mxu1 %v2922_v14  ;;  %3438 = vmatmul.mubr.f32.gmra.mxu0 %v2825_v56  ;;  %v9594_v14 = vunpack.i.l.bf16 %v9593_v10  ;;  %v16836_v56 = vld [vmem:[#allocation13_spill] sm:$0xff] }
 0x46a   : > { %9116 = vmatpush1.msra.mxu1 %v16831_v43  ;;  %3442 = vmatprep.mubr.f32.mxu0 %v12099_v9  ;;  %v9598_v43 = vpop.permute.xlu0 %9597 }
 0x46b   : > { %9085 = vmatprep.subr.mxu1 %v16713_v28  ;;  %v9600_v54 = vunpack.i.h.bf16 %v9598_v43  ;;  %v2830_v51 = vsel %vm910_vm2, %v9590_v40, %v9594_v14 }
 0x46c   : > { %3218 = vmatmul.mubr.f32.gmra.mxu1 %v12053_v59  ;;  %v2924_v59 = vsel %vm910_vm2, %v12095_v52, %v9580_v5  ;;  %v9743_v5 = vld [vmem:[%s16503_s3 + $0x1e8] sm:$0xff] }
 0x46d   : > { %3222 = vmatprep.mubr.f32.mxu1 %v2923_v29  ;;  %3443 = vmatmul.mubr.f32.gmra.mxu0 %v2826_v57  ;;  %v9599_v29 = vunpack.i.l.bf16 %v9598_v43  ;;  %v9747_v43 = vld [vmem:[%s16503_s3 + $0x1c8] sm:$0xff] }
 0x46e   : > { %9117 = vmatpush1.msra.mxu1 %v16833_v34  ;;  %3447 = vmatprep.mubr.f32.mxu0 %v12112_v32  ;;  %v9603_v34 = vpop.permute.xlu1 %9602  ;;  %v9608_v8 = vpop.permute.xlu0 %9607 }
 0x46f   : > { %9086 = vmatprep.subr.mxu1 %v16713_v28  ;;  %v9605_v3 = vunpack.i.h.bf16 %v9603_v34  ;;  %v9609_v4 = vunpack.i.l.bf16 %v9608_v8 }
 0x470   : > { %3223 = vmatmul.mubr.f32.gmra.mxu1 %v12065_v25  ;;  %v2925_v25 = vsel %vm910_vm2, %v12108_v0, %v9585_v16  ;;  %v9744_v16 = vld [vmem:[%s16503_s3 + $0x1e0] sm:$0xff] }
 0x471   : > { %3227 = vmatprep.mubr.f32.mxu1 %v2924_v59  ;;  %3448 = vmatmul.mubr.f32.gmra.mxu0 %v2827_v44  ;;  %v9604_v59 = vunpack.i.l.bf16 %v9603_v34  ;;  %v2831_v44 = vsel %vm910_vm2, %v9595_v11, %v9599_v29 }
 0x472   : > { %9118 = vmatpush2.msra.mxu1 %v16834_v42  ;;  %3452 = vmatprep.mubr.f32.mxu0 %v12122_v24  ;;  %v9745_v42 = vld [vmem:[%s16503_s3 + $0x1d8] sm:$0xff]  ;;  %v12434_v10 = vpop.permute.xlu1 %9612 }
 0x473   : > { %9087 = vmatprep.subr.mxu1 %v16713_v28 }
 0x474   : > { %3228 = vmatmul.mubr.f32.gmra.mxu1 %v12076_v21  ;;  %v2926_v21 = vsel %vm910_vm2, %v16836_v56, %v9590_v40  ;;  %v9610_v40 = vunpack.i.h.bf16 %v9608_v8 }
 0x475   : > { %3232 = vmatprep.mubr.f32.mxu1 %v2925_v25  ;;  %3453 = vmatmul.mubr.f32.gmra.mxu0 %v2828_v6  ;;  %v2832_v6 = vsel %vm910_vm2, %v9600_v54, %v9604_v59 }
 0x476   : > { %9119 = vmatpush2.msra.mxu1 %v16835_v39  ;;  %3457 = vmatprep.mubr.f32.mxu0 %v12133_v15  ;;  %v9746_v39 = vld [vmem:[%s16503_s3 + $0x1d0] sm:$0xff]  ;;  %v2930_v14 = vsel %vm910_vm2, %v12164_v7, %v9610_v40  ;;  %v12461_v29 = vpop.permute.xlu1 %9622 }
 0x477   : > { %9088 = vmatprep.subr.mxu1 %v16713_v28 }
 0x478   : > { %3233 = vmatmul.mubr.f32.gmra.mxu1 %v12088_v20  ;;  %v16837_v20 = vld [vmem:[#allocation35_spill] sm:$0xff] }
 0x479   : > { %3237 = vmatprep.mubr.f32.mxu1 %v2926_v21  ;;  %3458 = vmatmul.mubr.f32.gmra.mxu0 %v2829_v1  ;;  %v2927_v57 = vsel %vm910_vm2, %v16837_v20, %v9595_v11  ;;  %v9614_v11 = vunpack.i.l.bf16 %v12434_v10  ;;  %v2833_v21 = vsel %vm910_vm2, %v9605_v3, %v9609_v4  ;;  %v12447_v1 = vpop.permute.xlu0 %9617  ;;  %v9754_v4 = vld [vmem:[%s16503_s3 + $0x190] sm:$0xff] }
 0x47a   : > { %9120 = vmatpush2.msra.mxu1 %v9743_v5  ;;  %3462 = vmatprep.mubr.f32.mxu0 %v12145_v26 }
 0x47b   : > { %9089 = vmatprep.subr.mxu1 %v16713_v28 }
 0x47c   : > { %3238 = vmatmul.mubr.f32.gmra.mxu1 %v12099_v9  ;;  %v2928_v9 = vsel %vm910_vm2, %v12141_v19, %v9600_v54  ;;  %v2834_v54 = vsel %vm910_vm2, %v9610_v40, %v9614_v11  ;;  %v9753_v40 = vld [vmem:[%s16503_s3 + $0x198] sm:$0xff] }
 0x47d   : > { %3242 = vmatprep.mubr.f32.mxu1 %v2927_v57  ;;  %3463 = vmatmul.mubr.f32.gmra.mxu0 %v2830_v51  ;;  %v9748_v57 = vld [vmem:[%s16503_s3 + $0x1c0] sm:$0xff]  ;;  %v12473_v34 = vpop.permute.xlu0 %9627 }
 0x47e   : > { %9121 = vmatpush2.msra.mxu1 %v9744_v16  ;;  %3467 = vmatprep.mubr.f32.mxu0 %v12157_v63  ;;  %v9749_v16 = vld [vmem:[%s16503_s3 + $0x1b8] sm:$0xff] }
 0x47f   : > { %9090 = vmatprep.subr.mxu1 %v16713_v28 }
 0x480   : > { %3243 = vmatmul.mubr.f32.gmra.mxu1 %v12112_v32  ;;  %v16838_v32 = vld [vmem:[#allocation36_spill] sm:$0xff] }
 0x481   : > { %3247 = vmatprep.mubr.f32.mxu1 %v2928_v9  ;;  %3468 = vmatmul.mubr.f32.gmra.mxu0 %v2831_v44  ;;  %v2929_v25 = vsel %vm910_vm2, %v16838_v32, %v9605_v3  ;;  %v9750_v3 = vld [vmem:[%s16503_s3 + $0x1b0] sm:$0xff]  ;;  %v12489_v9 = vpop.permute.xlu1 %9632  ;;  %v9751_v44 = vld [vmem:[%s16503_s3 + $0x1a8] sm:$0xff] }
 0x482   : > { %9122 = vmatpush2.msra.mxu1 %v9745_v42  ;;  %3472 = vmatprep.mubr.f32.mxu0 %v12168_v38  ;;  %v9635_v8 = vunpack.i.h.bf16 %v12489_v9 }
 0x483   : > { %9091 = vmatprep.subr.mxu1 %v16713_v28 }
 0x484   : > { %3248 = vmatmul.mubr.f32.gmra.mxu1 %v12122_v24  ;;  %v9615_v24 = vunpack.i.h.bf16 %v12434_v10 }
 0x485   : > { %3252 = vmatprep.mubr.f32.mxu1 %v2929_v25  ;;  %3473 = vmatmul.mubr.f32.gmra.mxu0 %v2832_v6  ;;  %v9755_v25 = vld [vmem:[%s16503_s3 + $0x188] sm:$0xff]  ;;  %v3010_v6 = vld [vmem:[%s16503_s3 + $0x238] sm:$0xff] }
 0x486   : > { %9123 = vmatpush2.msra.mxu1 %v9746_v39  ;;  %3477 = vmatprep.mubr.f32.mxu0 %v12180_v46  ;;  %v2931_v5 = vsel %vm910_vm2, %v12176_v41, %v9615_v24 }
 0x487   : > { %9092 = vmatprep.subr.mxu1 %v16713_v28 }
 0x488   : > { %3253 = vmatmul.mubr.f32.gmra.mxu1 %v12133_v15  ;;  %v9620_v15 = vunpack.i.h.bf16 %v12447_v1 }
 0x489   : > { %3257 = vmatprep.mubr.f32.mxu1 %v2930_v14  ;;  %3478 = vmatmul.mubr.f32.gmra.mxu0 %v2833_v21 }
 0x48a   : > { %9124 = vmatpush2.msra.mxu1 %v9747_v43  ;;  %3482 = vmatprep.mubr.f32.mxu0 %v12191_v36  ;;  %v2932_v51 = vsel %vm910_vm2, %v12187_v27, %v9620_v15 }
 0x48b   : > { %9093 = vmatprep.subr.mxu1 %v16713_v28 }
 0x48c   : > { %3258 = vmatmul.mubr.f32.gmra.mxu1 %v12145_v26  ;;  %v9625_v26 = vunpack.i.h.bf16 %v12461_v29 }
 0x48d   : > { %3262 = vmatprep.mubr.f32.mxu1 %v2931_v5  ;;  %3483 = vmatmul.mubr.f32.gmra.mxu0 %v2834_v54 }
 0x48e   : > { %9125 = vmatpush2.msra.mxu1 %v9748_v57  ;;  %v2933_v59 = vsel %vm910_vm2, %v12199_v48, %v9625_v26 }
 0x48f   : > { %9094 = vmatprep.subr.mxu1 %v16713_v28 }
 0x490   : > { %3263 = vmatmul.mubr.f32.gmra.mxu1 %v12157_v63  ;;  %v9630_v63 = vunpack.i.h.bf16 %v12473_v34 }
 0x491   : > { %3267 = vmatprep.mubr.f32.mxu1 %v2932_v51  ;;  %9126 = vmatpush2.msra.mxu1 %v9749_v16  ;;  %v16839_v51 = vld [vmem:[#allocation37_spill] sm:$0xff] }
 0x492   : > { %9095 = vmatprep.subr.mxu1 %v16713_v28  ;;  %v2934_v42 = vsel %vm910_vm2, %v12210_v33, %v9630_v63 }
 0x493   : > { %9127 = vmatpush2.msra.mxu1 %v9750_v3  ;;  %v9619_v3 = vunpack.i.l.bf16 %v12447_v1 }
 0x494   : > { %3268 = vmatmul.mubr.f32.gmra.mxu1 %v12168_v38  ;;  %9096 = vmatprep.subr.mxu1 %v16713_v28  ;;  %v9752_v38 = vld [vmem:[%s16503_s3 + $0x1a0] sm:$0xff] }
 0x495   : > { %3272 = vmatprep.mubr.f32.mxu1 %v2933_v59  ;;  %9128 = vmatpush2.msra.mxu1 %v9751_v44  ;;  %v16840_v59 = vld [vmem:[#allocation40_spill] sm:$0xff]  ;;  %v2835_v44 = vsel %vm910_vm2, %v9615_v24, %v9619_v3  ;;  %v3007_v24 = vld [vmem:[%s16503_s3 + $0x220] sm:$0xff] }
 0x496   : > { %9097 = vmatprep.subr.mxu1 %v16713_v28 }
 0x497   : > { %9129 = vmatpush2.msra.mxu1 %v9752_v38  ;;  %v9624_v38 = vunpack.i.l.bf16 %v12461_v29 }
 0x498   : > { %3273 = vmatmul.mubr.f32.gmra.mxu1 %v12180_v46  ;;  %9098 = vmatprep.subr.mxu1 %v16713_v28  ;;  %v2935_v46 = vsel %vm910_vm2, %v12221_v47, %v9635_v8 }
 0x499   : > { %3277 = vmatprep.mubr.f32.mxu1 %v2934_v42  ;;  %9130 = vmatpush2.msra.mxu1 %v9753_v40  ;;  %v3009_v42 = vld [vmem:[%s16503_s3 + $0x230] sm:$0xff]  ;;  %v3008_v40 = vld [vmem:[%s16503_s3 + $0x228] sm:$0xff]  ;;  %v2836_v10 = vsel %vm910_vm2, %v9620_v15, %v9624_v38 }
 0x49a   : > { %9099 = vmatprep.subr.mxu1 %v16713_v28  ;;  %v3005_v15 = vld [vmem:[%s16503_s3 + $0x210] sm:$0xff] }
 0x49b   : > { %9131 = vmatpush2.msra.mxu1 %v9754_v4  ;;  %v9634_v4 = vunpack.i.l.bf16 %v12489_v9 }
 0x49c   : > { %3278 = vmatmul.mubr.f32.gmra.mxu1 %v12191_v36  ;;  %9100 = vmatprep.subr.mxu1 %v16713_v28  ;;  %v9756_v36 = vld [vmem:[%s16503_s3 + $0x180] sm:$0xff] }
 0x49d   : > { %3282 = vmatprep.mubr.f32.mxu1 %v2935_v46  ;;  %9132 = vmatpush2.msra.mxu1 %v9755_v25  ;;  %v3004_v46 = vld [vmem:[%s16503_s3 + $0x208] sm:$0xff]  ;;  %v2838_v29 = vsel %vm910_vm2, %v9630_v63, %v9634_v4 }
 0x49e   : > { %9101 = vmatprep.subr.mxu1 %v16713_v28 }
 0x49f   : > { %9133 = vmatpush2.msra.mxu1 %v9756_v36 }
 0x4a0   : > { %3283 = vmatmul.mubr.f32.gmra.mxu1 %v12203_v61  ;;  %8950 = vmatprep.subr.mxu1 %v3010_v6 }
 0x4a1   : > { %v12529_v39 = vpop.permute.xlu1 %9642 }
 0x4a2   : > { %v9638_v11 = vpop.permute.xlu0 %9637  ;;  %v9645_v14 = vunpack.i.h.bf16 %v12529_v39  ;;  %v9644_v36 = vunpack.i.l.bf16 %v12529_v39  ;;  %v16842_v39 = vld [vmem:[#allocation38_spill] sm:$0xff] }
 0x4a3   : > { %v9640_v21 = vunpack.i.h.bf16 %v9638_v11  ;;  %v9639_v25 = vunpack.i.l.bf16 %v9638_v11 }
 0x4a4   : > { %v2937_v57 = vsel %vm910_vm2, %v12246_v45, %v9645_v14 }
 0x4a5   : > { %v2936_v43 = vsel %vm910_vm2, %v12231_v12, %v9640_v21  ;;  %v2839_v11 = vsel %vm910_vm2, %v9635_v8, %v9639_v25  ;;  %v2840_v63 = vsel %vm910_vm2, %v9640_v21, %v9644_v36 }
 0x4a6   : > { %v12534_v5 = vpop.permute.xlu0 %9647  ;;  %3287 = vmatprep.mubr.f32.mxu1 %v2936_v43 }
 0x4a7   : > { %v9650_v54 = vunpack.i.h.bf16 %v12534_v5  ;;  %3288 = vmatmul.mubr.f32.gmra.mxu1 %v12214_v17 }
 0x4a8   : > { %3292 = vmatprep.mubr.f32.mxu1 %v2937_v57 }
 0x4a9   : > { %v2938_v16 = vsel %vm910_vm2, %v12243_v30, %v9650_v54  ;;  %v2842_v9 = vsel %vm910_vm2, %v9650_v54, %v16842_v39 }
 0x4ab   : > { %3293 = vmatmul.mubr.f32.gmra.mxu1 %v16839_v51 }
 0x4ac   : > { %3297 = vmatprep.mubr.f32.mxu1 %v2938_v16 }
 0x4af   : > { %3298 = vmatmul.mubr.f32.gmra.mxu1 %v16840_v59 }
 0x4b0   : > { %3487 = vmatprep.mubr.f32.mxu1 %v12203_v61  ;;  %v9629_v61 = vunpack.i.l.bf16 %v12473_v34  ;;  %v9649_v34 = vunpack.i.l.bf16 %v12534_v5 }
 0x4b2   : > { %v2837_v1 = vsel %vm910_vm2, %v9625_v26, %v9629_v61  ;;  %v3003_v26 = vld [vmem:[%s16503_s3 + $0x200] sm:$0xff]  ;;  %v2841_v43 = vsel %vm910_vm2, %v9645_v14, %v9649_v34 }
 0x4b3   : > { %3488 = vmatmul.mubr.f32.vlgmr.msra.gmra.mxu1 %v2835_v44 }
 0x4b4   : > { %8951 = vmatpush3.msra.mxu1 %v3010_v6  ;;  %3492 = vmatprep.mubr.f32.mxu1 %v12214_v17  ;;  %v3006_v17 = vld [vmem:[%s16503_s3 + $0x218] sm:$0xff]  ;;  %v16841_v6 = vld [vmem:[#allocation39_spill] sm:$0xff] }
 0x4b5   : > { %8952 = vmatprep.subr.mxu1 %v3009_v42 }
 0x4b6   : > { %8953 = vmatpush3.msra.mxu1 %v3009_v42 }
 0x4b7   : > { %3493 = vmatmul.mubr.f32.gmra.mxu1 %v2836_v10  ;;  %8954 = vmatprep.subr.mxu1 %v3008_v40  ;;  %v16843_v10 = vld [vmem:[#allocation29_spill] sm:$0xff] }
 0x4b8   : > { %3497 = vmatprep.mubr.f32.mxu1 %v16839_v51  ;;  %8955 = vmatpush3.msra.mxu1 %v3008_v40 }
 0x4b9   : > { %8956 = vmatprep.subr.mxu1 %v3007_v24 }
 0x4ba   : > { %8957 = vmatpush3.msra.mxu1 %v3007_v24 }
 0x4bb   : > { %3498 = vmatmul.mubr.f32.gmra.mxu1 %v2837_v1  ;;  %8958 = vmatprep.subr.mxu1 %v3006_v17 }
 0x4bc   : > { %3502 = vmatprep.mubr.f32.mxu1 %v16840_v59  ;;  %8959 = vmatpush3.msra.mxu1 %v3006_v17 }
 0x4bd   : > { %8960 = vmatprep.subr.mxu1 %v3005_v15 }
 0x4be   : > { %8961 = vmatpush3.msra.mxu1 %v3005_v15 }
 0x4bf   : > { %3503 = vmatmul.mubr.f32.gmra.mxu1 %v2838_v29  ;;  %8962 = vmatprep.subr.mxu1 %v3004_v46 }
 0x4c0   : > { %3507 = vmatprep.mubr.f32.mxu1 %v16841_v6  ;;  %8963 = vmatpush3.msra.mxu1 %v3004_v46 }
 0x4c1   : > { %8964 = vmatprep.subr.mxu1 %v3003_v26 }
 0x4c2   : > { %8965 = vmatpush3.msra.mxu1 %v3003_v26 }
 0x4c3   : > { %3508 = vmatmul.mubr.f32.gmra.mxu1 %v2839_v11 }
 0x4c4   : > { %3512 = vmatprep.mubr.f32.mxu1 %v12265_v55 }
 0x4c7   : > { %3513 = vmatmul.mubr.f32.gmra.mxu1 %v2840_v63 }
 0x4c8   : > { %3517 = vmatprep.mubr.f32.mxu1 %v16839_v51 }
 0x4cb   : > { %3518 = vmatmul.mubr.f32.gmra.mxu1 %v2841_v43 }
 0x4cc   : > { %3522 = vmatprep.mubr.f32.mxu1 %v16840_v59 }
 0x4cf   : > { %3523 = vmatmul.mubr.f32.gmra.mxu1 %v2842_v9 }
 0x4d0   : > { %8966 = vmatprep.mubr.msk.f32.mxu1 %vm910_vm2, %v11945_v22  ;;  %v12631_v22 = vld [vmem:[%s16504_s4] ss:$0 sm:$0xff] }
 0x4d3   : > { %8967 = vmatmul.mubr.msk.f32.vlgmr.msra.gmra.mxu1 %vm910_vm2, %v11957_v2 }
 0x4d4   : > { %8969 = vmatprep.mubr.msk.f32.mxu1 %vm910_vm2, %v16812_v37 }
 0x4d7   : > { %8970 = vmatmul.mubr.msk.f32.gmra.mxu1 %vm910_vm2, %v16814_v58 }
 0x4d8   : > { %8972 = vmatprep.mubr.msk.f32.mxu1 %vm910_vm2, %v16816_v60 }
 0x4db   : > { %8973 = vmatmul.mubr.msk.f32.gmra.mxu1 %vm910_vm2, %v16818_v23 }
 0x4dc   : > { %8975 = vmatprep.mubr.msk.f32.mxu1 %vm910_vm2, %v16820_v35 }
 0x4df   : > { %8976 = vmatmul.mubr.msk.f32.gmra.mxu1 %vm910_vm2, %v16822_v49 }
 0x4e0   : > { %8978 = vmatprep.mubr.msk.f32.mxu1 %vm910_vm2, %v16824_v62 }
 0x4e3   : > { %8979 = vmatmul.mubr.msk.f32.gmra.mxu1 %vm910_vm2, %v16826_v18 }
 0x4e4   : > { %8981 = vmatprep.mubr.msk.f32.mxu1 %vm910_vm2, %v16828_v13 }
 0x4e7   : > { %8982 = vmatmul.mubr.msk.f32.gmra.mxu1 %vm910_vm2, %v16830_v31 }
 0x4e8   : > { %8984 = vmatprep.mubr.msk.f32.mxu1 %vm910_vm2, %v16832_v53 }
 0x4eb   : > { %8985 = vmatmul.mubr.msk.f32.gmra.mxu1 %vm910_vm2, %v12095_v52 }
 0x4ec   : > { %8987 = vmatprep.mubr.msk.f32.mxu1 %vm910_vm2, %v12108_v0 }
 0x4ef   : > { %8988 = vmatmul.mubr.msk.f32.gmra.mxu1 %vm910_vm2, %v16836_v56 }
 0x4f0   : > { %8990 = vmatprep.mubr.msk.f32.mxu1 %vm910_vm2, %v16837_v20  ;;  %v3144_v2 = vpop.f32.mrf.mxu1 }
 0x4f1   : > { %v3145_v55 = vadd.f32 %v12631_v22, %v3144_v2  ;;  %v3369_v37 = vpop.f32.mrf.mxu0 }
 0x4f2   : > { %v3146_v58 = vpop.f32.mrf.mxu1 }
 0x4f3   : > { %v12638_v52 = vadd.f32 %v3369_v37, %v3145_v55  ;;  %8991 = vmatmul.mubr.msk.f32.gmra.mxu1 %vm910_vm2, %v12141_v19  ;;  %v3371_v0 = vpop.f32.mrf.mxu0 }
 0x4f4   : > { %8993 = vmatprep.mubr.msk.f32.mxu1 %vm910_vm2, %v16838_v32  ;;  %v3149_v60 = vpop.f32.mrf.mxu1 }
 0x4f5   : > { %v3150_v23 = vadd.f32 %v12631_v22, %v3149_v60  ;;  %v3374_v35 = vpop.f32.mrf.mxu0 }
 0x4f6   : > { %v3151_v49 = vpop.f32.mrf.mxu1 }
 0x4f7   : > { %v12645_v62 = vadd.f32 %v3374_v35, %v3150_v23  ;;  %8994 = vmatmul.mubr.msk.f32.gmra.mxu1 %vm910_vm2, %v12164_v7  ;;  %v3376_v18 = vpop.f32.mrf.mxu0 }
 0x4f8   : > { %8996 = vmatprep.mubr.msk.f32.mxu1 %vm910_vm2, %v12176_v41  ;;  %v3154_v13 = vpop.f32.mrf.mxu1 }
 0x4f9   : > { %v3155_v19 = vadd.f32 %v12631_v22, %v3154_v13  ;;  %v3379_v31 = vpop.f32.mrf.mxu0 }
 0x4fa   : > { %v3156_v53 = vpop.f32.mrf.mxu1 }
 0x4fb   : > { %v12652_v56 = vadd.f32 %v3379_v31, %v3155_v19  ;;  %8997 = vmatmul.mubr.msk.f32.gmra.mxu1 %vm910_vm2, %v12187_v27  ;;  %v3381_v20 = vpop.f32.mrf.mxu0 }
 0x4fc   : > { %8999 = vmatprep.mubr.msk.f32.mxu1 %vm910_vm2, %v12199_v48  ;;  %v3159_v32 = vpop.f32.mrf.mxu1 }
 0x4fd   : > { %v3160_v7 = vadd.f32 %v12631_v22, %v3159_v32  ;;  %v3384_v8 = vpop.f32.mrf.mxu0 }
 0x4fe   : > { %v3161_v14 = vpop.f32.mrf.mxu1 }
 0x4ff   : > { %v12659_v41 = vadd.f32 %v3384_v8, %v3160_v7  ;;  %9000 = vmatmul.mubr.msk.f32.gmra.mxu1 %vm910_vm2, %v12210_v33  ;;  %v3386_v21 = vpop.f32.mrf.mxu0 }
 0x500   : > { %9002 = vmatprep.mubr.msk.f32.mxu1 %vm910_vm2, %v12221_v47  ;;  %v3164_v5 = vpop.f32.mrf.mxu1 }
 0x501   : > { %v3165_v27 = vadd.f32 %v12631_v22, %v3164_v5  ;;  %v3389_v54 = vpop.f32.mrf.mxu0 }
 0x502   : > { %v3166_v57 = vpop.f32.mrf.mxu1 }
 0x503   : > { %v12666_v48 = vadd.f32 %v3389_v54, %v3165_v27  ;;  %9003 = vmatmul.mubr.msk.f32.gmra.mxu1 %vm910_vm2, %v12231_v12  ;;  %v3391_v51 = vpop.f32.mrf.mxu0 }
 0x504   : > { %9005 = vmatprep.mubr.msk.f32.mxu1 %vm910_vm2, %v12246_v45  ;;  %v3169_v16 = vpop.f32.mrf.mxu1 }
 0x505   : > { %v3170_v33 = vadd.f32 %v12631_v22, %v3169_v16  ;;  %v3394_v3 = vpop.f32.mrf.mxu0 }
 0x506   : > { %v3171_v59 = vpop.f32.mrf.mxu1 }
 0x507   : > { %v12673_v47 = vadd.f32 %v3394_v3, %v3170_v33  ;;  %9006 = vmatmul.mubr.msk.f32.gmra.mxu1 %vm910_vm2, %v12243_v30  ;;  %v3396_v44 = vpop.f32.mrf.mxu0 }
 0x508   : > { %9008 = vmatprep.mubr.msk.f32.mxu1 %vm910_vm2, %v12276_v50  ;;  %v3174_v38 = vpop.f32.mrf.mxu1 }
 0x509   : > { %v3175_v12 = vadd.f32 %v12631_v22, %v3174_v38  ;;  %v3399_v42 = vpop.f32.mrf.mxu0 }
 0x50a   : > { %v3176_v40 = vpop.f32.mrf.mxu1 }
 0x50b   : > { %v12680_v61 = vadd.f32 %v3399_v42, %v3175_v12  ;;  %9009 = vmatmul.mubr.msk.f32.gmra.mxu1 %vm910_vm2, %v16843_v10  ;;  %v3401_v24 = vpop.f32.mrf.mxu0 }
 0x50c   : > { %9011 = vmatprep.mubr.msk.f32.mxu1 %vm910_vm2, %v12246_v45  ;;  %v3179_v17 = vpop.f32.mrf.mxu1 }
 0x50d   : > { %v3180_v4 = vadd.f32 %v12631_v22, %v3179_v17  ;;  %v3404_v1 = vpop.f32.mrf.mxu0 }
 0x50e   : > { %v3181_v15 = vpop.f32.mrf.mxu1 }
 0x50f   : > { %v12687_v50 = vadd.f32 %v3404_v1, %v3180_v4  ;;  %9012 = vmatmul.mubr.msk.f32.gmra.mxu1 %vm910_vm2, %v12243_v30  ;;  %v3406_v46 = vpop.f32.mrf.mxu0 }
 0x510   : > { %v3184_v25 = vpop.f32.mrf.mxu1 }
 0x511   : > { %v3185_v29 = vadd.f32 %v12631_v22, %v3184_v25  ;;  %v3409_v26 = vpop.f32.mrf.mxu0 }
 0x512   : > { %v3186_v6 = vpop.f32.mrf.mxu1 }
 0x513   : > { %v12692_v36 = vadd.f32 %v3409_v26, %v3185_v29  ;;  %v3411_v11 = vpop.f32.mrf.mxu0 }
 0x514   : > { %v3189_v45 = vpop.f32.mrf.mxu1 }
 0x515   : > { %v3190_v34 = vadd.f32 %v12631_v22, %v3189_v45  ;;  %v3414_v63 = vpop.f32.mrf.mxu0 }
 0x516   : > { %v3191_v43 = vpop.f32.mrf.mxu1 }
 0x517   : > { %v12695_v39 = vadd.f32 %v3414_v63, %v3190_v34  ;;  %v3416_v9 = vpop.f32.mrf.mxu0 }
 0x518   : > { %v3194_v2 = vpop.f32.mrf.mxu1 }
 0x519   : > { %v3195_v30 = vadd.f32 %v12631_v22, %v3194_v2  ;;  %v3419_v55 = vpop.f32.mrf.mxu0 }
 0x51a   : > { %v3196_v37 = vpop.f32.mrf.mxu1 }
 0x51b   : > { %v12698_v58 = vadd.f32 %v3419_v55, %v3195_v30  ;;  %v3421_v0 = vpop.f32.mrf.mxu0 }
 0x51c   : > { %v3199_v60 = vpop.f32.mrf.mxu1 }
 0x51d   : > { %v3200_v23 = vadd.f32 %v12631_v22, %v3199_v60  ;;  %v3424_v35 = vpop.f32.mrf.mxu0 }
 0x51e   : > { %v3201_v49 = vpop.f32.mrf.mxu1 }
 0x51f   : > { %v12701_v18 = vadd.f32 %v3424_v35, %v3200_v23  ;;  %v3426_v13 = vpop.f32.mrf.mxu0 }
 0x520   : > { %v3204_v19 = vpop.f32.mrf.mxu1 }
 0x521   : > { %v3205_v31 = vadd.f32 %v12631_v22, %v3204_v19  ;;  %v3429_v53 = vpop.f32.mrf.mxu0 }
 0x522   : > { %v3206_v20 = vpop.f32.mrf.mxu1 }
 0x523   : > { %v12704_v32 = vadd.f32 %v3429_v53, %v3205_v31  ;;  %v3431_v7 = vpop.f32.mrf.mxu0 }
 0x524   : > { %v3209_v8 = vpop.f32.mrf.mxu1 }
 0x525   : > { %v3210_v14 = vadd.f32 %v12631_v22, %v3209_v8  ;;  %v3434_v21 = vpop.f32.mrf.mxu0 }
 0x526   : > { %v3211_v5 = vpop.f32.mrf.mxu1 }
 0x527   : > { %v12707_v27 = vadd.f32 %v3434_v21, %v3210_v14  ;;  %v3436_v54 = vpop.f32.mrf.mxu0 }
 0x528   : > { %v3214_v57 = vpop.f32.mrf.mxu1 }
 0x529   : > { %v3215_v51 = vadd.f32 %v12631_v22, %v3214_v57  ;;  %v3439_v16 = vpop.f32.mrf.mxu0 }
 0x52a   : > { %v3216_v33 = vpop.f32.mrf.mxu1 }
 0x52b   : > { %v12710_v3 = vadd.f32 %v3439_v16, %v3215_v51  ;;  %v3441_v59 = vpop.f32.mrf.mxu0 }
 0x52c   : > { %v3219_v44 = vpop.f32.mrf.mxu1 }
 0x52d   : > { %v3220_v38 = vadd.f32 %v12631_v22, %v3219_v44  ;;  %v3444_v12 = vpop.f32.mrf.mxu0 }
 0x52e   : > { %v3221_v42 = vpop.f32.mrf.mxu1 }
 0x52f   : > { %v12713_v40 = vadd.f32 %v3444_v12, %v3220_v38  ;;  %v3446_v10 = vpop.f32.mrf.mxu0 }
 0x530   : > { %v3224_v24 = vpop.f32.mrf.mxu1 }
 0x531   : > { %v3225_v17 = vadd.f32 %v12631_v22, %v3224_v24  ;;  %v3449_v4 = vpop.f32.mrf.mxu0 }
 0x532   : > { %v3226_v1 = vpop.f32.mrf.mxu1 }
 0x533   : > { %v12716_v15 = vadd.f32 %v3449_v4, %v3225_v17  ;;  %v3451_v46 = vpop.f32.mrf.mxu0 }
 0x534   : > { %v3229_v25 = vpop.f32.mrf.mxu1 }
 0x535   : > { %v3230_v29 = vadd.f32 %v12631_v22, %v3229_v25  ;;  %v3454_v26 = vpop.f32.mrf.mxu0 }
 0x536   : > { %v3231_v6 = vpop.f32.mrf.mxu1 }
 0x537   : > { %v12719_v11 = vadd.f32 %v3454_v26, %v3230_v29  ;;  %v3456_v45 = vpop.f32.mrf.mxu0 }
 0x538   : > { %v3234_v34 = vpop.f32.mrf.mxu1 }
 0x539   : > { %v3235_v63 = vadd.f32 %v12631_v22, %v3234_v34  ;;  %v3459_v43 = vpop.f32.mrf.mxu0 }
 0x53a   : > { %v3236_v9 = vpop.f32.mrf.mxu1 }
 0x53b   : > { %v12722_v2 = vadd.f32 %v3459_v43, %v3235_v63  ;;  %v3461_v30 = vpop.f32.mrf.mxu0 }
 0x53c   : > { %v3239_v55 = vpop.f32.mrf.mxu1 }
 0x53d   : > { %v3240_v37 = vadd.f32 %v12631_v22, %v3239_v55  ;;  %v3464_v0 = vpop.f32.mrf.mxu0 }
 0x53e   : > { %v3241_v60 = vpop.f32.mrf.mxu1 }
 0x53f   : > { %v12725_v23 = vadd.f32 %v3464_v0, %v3240_v37  ;;  %v3466_v35 = vpop.f32.mrf.mxu0 }
 0x540   : > { %v3244_v49 = vpop.f32.mrf.mxu1 }
 0x541   : > { %v3245_v13 = vadd.f32 %v12631_v22, %v3244_v49  ;;  %v3469_v19 = vpop.f32.mrf.mxu0 }
 0x542   : > { %v3246_v31 = vpop.f32.mrf.mxu1 }
 0x543   : > { %v12728_v53 = vadd.f32 %v3469_v19, %v3245_v13  ;;  %v3471_v20 = vpop.f32.mrf.mxu0 }
 0x544   : > { %v3249_v7 = vpop.f32.mrf.mxu1 }
 0x545   : > { %v3250_v8 = vadd.f32 %v12631_v22, %v3249_v7  ;;  %v3474_v14 = vpop.f32.mrf.mxu0 }
 0x546   : > { %v3251_v21 = vpop.f32.mrf.mxu1 }
 0x547   : > { %v12731_v5 = vadd.f32 %v3474_v14, %v3250_v8  ;;  %v3476_v54 = vpop.f32.mrf.mxu0 }
 0x548   : > { %v3254_v57 = vpop.f32.mrf.mxu1 }
 0x549   : > { %v3255_v51 = vadd.f32 %v12631_v22, %v3254_v57  ;;  %v3479_v16 = vpop.f32.mrf.mxu0 }
 0x54a   : > { %v3256_v33 = vpop.f32.mrf.mxu1 }
 0x54b   : > { %v12734_v59 = vadd.f32 %v3479_v16, %v3255_v51  ;;  %v3481_v44 = vpop.f32.mrf.mxu0 }
 0x54c   : > { %v3259_v38 = vpop.f32.mrf.mxu1 }
 0x54d   : > { %v3260_v12 = vadd.f32 %v12631_v22, %v3259_v38  ;;  %v3484_v42 = vpop.f32.mrf.mxu0 }
 0x54e   : > { %v3261_v10 = vpop.f32.mrf.mxu1 }
 0x54f   : > { %v12737_v24 = vadd.f32 %v3484_v42, %v3260_v12  ;;  %v3486_v17 = vpop.f32.mrf.mxu0 }
 0x550   : > { %v3264_v4 = vpop.f32.mrf.mxu1 }
 0x551   : > { %v3265_v60 = vadd.f32 %v12631_v22, %v3264_v4 }
 0x552   : > { %v3266_v1 = vpop.f32.mrf.mxu1 }
 0x554   : > { %v3269_v46 = vpop.f32.mrf.mxu1 }
 0x555   : > { %v3270_v19 = vadd.f32 %v12631_v22, %v3269_v46 }
 0x556   : > { %v3271_v25 = vpop.f32.mrf.mxu1 }
 0x558   : > { %v3274_v29 = vpop.f32.mrf.mxu1 }
 0x559   : > { %v3275_v8 = vadd.f32 %v12631_v22, %v3274_v29 }
 0x55a   : > { %v3276_v26 = vpop.f32.mrf.mxu1 }
 0x55c   : > { %v3279_v6 = vpop.f32.mrf.mxu1 }
 0x55d   : > { %v3280_v57 = vadd.f32 %v12631_v22, %v3279_v6 }
 0x55e   : > { %v3281_v45 = vpop.f32.mrf.mxu1 }
 0x560   : > { %v3284_v34 = vpop.f32.mrf.mxu1 }
 0x561   : > { %v3285_v44 = vadd.f32 %v12631_v22, %v3284_v34 }
 0x562   : > { %v3286_v63 = vpop.f32.mrf.mxu1 }
 0x567   : > { %v3289_v43 = vpop.f32.mrf.mxu1 }
 0x568   : > { %v3290_v10 = vadd.f32 %v12631_v22, %v3289_v43 }
 0x569   : > { %v3291_v9 = vpop.f32.mrf.mxu1 }
 0x56b   : > { %v3294_v30 = vpop.f32.mrf.mxu1 }
 0x56c   : > { %v3295_v46 = vadd.f32 %v12631_v22, %v3294_v30 }
 0x56d   : > { %v3296_v55 = vpop.f32.mrf.mxu1 }
 0x56f   : > { %v3299_v37 = vpop.f32.mrf.mxu1 }
 0x570   : > { %v3300_v6 = vadd.f32 %v12631_v22, %v3299_v37 }
 0x571   : > { %v3301_v0 = vpop.f32.mrf.mxu1 }
 0x573   : > { %v3489_v35 = vpop.f32.mrf.mxu1 }
 0x574   : > { %v12740_v49 = vadd.f32 %v3489_v35, %v3265_v60 }
 0x575   : > { %v3491_v13 = vpop.f32.mrf.mxu1 }
 0x577   : > { %v3494_v31 = vpop.f32.mrf.mxu1 }
 0x578   : > { %v12743_v20 = vadd.f32 %v3494_v31, %v3270_v19 }
 0x579   : > { %v3496_v7 = vpop.f32.mrf.mxu1 }
 0x57b   : > { %v3499_v14 = vpop.f32.mrf.mxu1 }
 0x57c   : > { %v12746_v21 = vadd.f32 %v3499_v14, %v3275_v8 }
 0x57d   : > { %v3501_v54 = vpop.f32.mrf.mxu1 }
 0x57f   : > { %v3504_v51 = vpop.f32.mrf.mxu1 }
 0x580   : > { %v12749_v16 = vadd.f32 %v3504_v51, %v3280_v57 }
 0x581   : > { %v3506_v33 = vpop.f32.mrf.mxu1 }
 0x583   : > { %v3509_v38 = vpop.f32.mrf.mxu1 }
 0x584   : > { %v12752_v12 = vadd.f32 %v3509_v38, %v3285_v44 }
 0x585   : > { %v3511_v42 = vpop.f32.mrf.mxu1 }
 0x587   : > { %v3514_v17 = vpop.f32.mrf.mxu1 }
 0x588   : > { %v12755_v4 = vadd.f32 %v3514_v17, %v3290_v10 }
 0x589   : > { %v3516_v1 = vpop.f32.mrf.mxu1 }
 0x58b   : > { %v3519_v25 = vpop.f32.mrf.mxu1 }
 0x58c   : > { %v12758_v29 = vadd.f32 %v3519_v25, %v3295_v46 }
 0x58d   : > { %v3521_v26 = vpop.f32.mrf.mxu1 }
 0x58f   : > { %v3524_v45 = vpop.f32.mrf.mxu1 }
 0x590   : > { %v12761_v34 = vadd.f32 %v3524_v45, %v3300_v6 }
 0x591   : > { %v3526_v63 = vpop.f32.mrf.mxu1 }
 0x593   : > { %v8968_v9 = vpop.f32.mrf.mxu1 }
 0x594   : > { %v3600_v55 = vadd.f32 %v8968_v9, %v12645_v62 }
 0x595   : > { %v3594_v43 = vpop.f32.mrf.mxu1 }
 0x596   : > { %v3754_v0 = vmax.f32 %v3600_v55, 0.0  ;;  %v3595_v60 = vadd.f32 %v3594_v43, %v12638_v52 }
 0x597   : > { %v8971_v35 = vpop.f32.mrf.mxu1 }
 0x598   : > { %v3853_v13 = vrot.slane %v3754_v0, 7  ;;  %v3946_v30 = vrot.slane %v3754_v0, 5  ;;  %v3753_v19 = vmax.f32 %v3595_v60, 0.0  ;;  %v3610_v31 = vadd.f32 %v8971_v35, %v12659_v41 }
 0x599   : > { %v3604_v7 = vpop.f32.mrf.mxu1 }
 0x59a   : > { %v3994_v22 = vsel %vm429_vm0, %v3853_v13, %v3946_v30  ;;  %v3802_v37 = vrot.slane %v3753_v19, 1  ;;  %v3852_v8 = vrot.slane %v3753_v19, 7  ;;  %v3756_v14 = vmax.f32 %v3610_v31, 0.0 }
 0x59b   : > { %v4049_v54 = vrot.slane %v3994_v22, 1  ;;  %v4225_v57 = vrot.slane %v3994_v22, 2  ;;  %v3605_v62 = vadd.f32 %v3604_v7, %v12652_v56  ;;  %v8974_v51 = vpop.f32.mrf.mxu1 }
 0x59c   : > { %v12769_v33 = vsel %vm429_vm0, %v3852_v8, %v3853_v13  ;;  %v12772_v52 = vsel %vm429_vm0, %v3802_v37, %v3852_v8  ;;  %v3850_v44 = vrot.slane %v3756_v14, 7  ;;  %v3945_v38 = vrot.slane %v3756_v14, 5 }
 0x59d   : > { %v4046_v41 = vrot.slane %v12772_v52, 1  ;;  %v4047_v42 = vrot.slane %v12769_v33, 1  ;;  %v4222_v10 = vrot.slane %v12772_v52, 2  ;;  %v4223_v17 = vrot.slane %v12769_v33, 2  ;;  %v3614_v1 = vpop.f32.mrf.mxu1 }
 0x59e   : > { %v12779_v56 = vsel %vm429_vm0, %v3850_v44, %v3945_v38  ;;  %v3755_v46 = vmax.f32 %v3605_v62, 0.0  ;;  %v3620_v25 = vadd.f32 %v8974_v51, %v12673_v47  ;;  %v3615_v26 = vadd.f32 %v3614_v1, %v12666_v48 }
 0x59f   : > { %v8977_v6 = vpop.f32.mrf.mxu1  ;;  %v4224_v45 = vsel %vm799_vm3, %v4222_v10, %v4223_v17  ;;  %v4226_v63 = vsel %vm799_vm3, %v4223_v17, %v4225_v57  ;;  %v4048_v9 = vsel %vm622_vm1, %v4046_v41, %v4047_v42  ;;  %v4050_v55 = vsel %vm622_vm1, %v4047_v42, %v4049_v54 }
 0x5a0   : > { %v3801_v43 = vrot.slane %v3755_v46, 1  ;;  %v3849_v0 = vrot.slane %v3755_v46, 7  ;;  %v3758_v60 = vmax.f32 %v3620_v25, 0.0  ;;  %v3757_v35 = vmax.f32 %v3615_v26, 0.0 }
 0x5a1   : > { %v3630_v13 = vadd.f32 %v8977_v6, %v12687_v50  ;;  %v3624_v30 = vpop.f32.mrf.mxu1  ;;  %v9656_v19 = vpack.i.bf16 %v4226_v63, %v4224_v45  ;;  %v9651_v47 = vpack.i.bf16 %v4050_v55, %v4048_v9  ;;  %v4044_v7 = vrot.slane %v12779_v56, 1 }
 0x5a2   : > { %v12789_v48 = vsel %vm429_vm0, %v3849_v0, %v3850_v44  ;;  %v12792_v31 = vsel %vm429_vm0, %v3801_v43, %v3849_v0  ;;  %v3856_v22 = vrot.slane %v3758_v60, 7  ;;  %v3947_v37 = vrot.slane %v3758_v60, 5 }
 0x5a3   : > { %v3855_v8 = vrot.slane %v3757_v35, 7  ;;  %v3625_v14 = vadd.f32 %v3624_v30, %v12680_v61  ;;  %9657 = vrot.lane.b32.xlu1 %v9656_v19, %s9822_s27  ;;  %9652 = vrot.lane.b32.xlu0 %v9651_v47, %s9825_s22  ;;  %v8980_v50 = vpop.f32.mrf.mxu1  ;;  %v3760_v54 = vmax.f32 %v3630_v13, 0.0  ;;  %v4042_v62 = vrot.slane %v12789_v48, 1 }
 0x5a4   : > { %v12799_v57 = vadd.f32 %v8980_v50, %v12695_v39  ;;  %v4041_v51 = vrot.slane %v12792_v31, 1  ;;  %v3803_v44 = vrot.slane %v3757_v35, 1  ;;  %v4217_v46 = vrot.slane %v12792_v31, 2 }
 0x5a5   : > { %v12804_v38 = vsel %vm429_vm0, %v3855_v8, %v3856_v22  ;;  %v3634_v41 = vpop.f32.mrf.mxu1  ;;  %v3759_v61 = vmax.f32 %v3625_v14, 0.0  ;;  %v4045_v10 = vsel %vm622_vm1, %v4042_v62, %v4044_v7  ;;  %v4218_v25 = vrot.slane %v12789_v48, 2 }
 0x5a6   : > { %v3635_v42 = vadd.f32 %v3634_v41, %v12692_v36  ;;  %v3762_v17 = vmax.f32 %v12799_v57, 0.0  ;;  %v4043_v39 = vsel %vm622_vm1, %v4041_v51, %v4042_v62  ;;  %v3995_v26 = vsel %vm429_vm0, %v3856_v22, %v3947_v37 }
 0x5a7   : > { %4123 = vrot.lane.b32.xlu1 %v4045_v10, %s9825_s22  ;;  %v8983_v1 = vpop.f32.mrf.mxu1  ;;  %v3859_v6 = vrot.slane %v3760_v54, 7  ;;  %v3858_v45 = vrot.slane %v3759_v61, 7  ;;  %4121 = vrot.lane.b32.xlu0 %v4043_v39, %s9825_s22  ;;  %v12816_v36 = vsel %vm429_vm0, %v3803_v44, %v3855_v8  ;;  %v4220_v43 = vrot.slane %v12779_v56, 2 }
 0x5a8   : > { %v3761_v63 = vmax.f32 %v3635_v42, 0.0  ;;  %v12819_v9 = vadd.f32 %v8983_v1, %v12701_v18  ;;  %v3804_v0 = vrot.slane %v3759_v61, 1  ;;  %v4219_v13 = vsel %vm799_vm3, %v4217_v46, %v4218_v25 }
 0x5a9   : > { %v3644_v55 = vpop.f32.mrf.mxu1  ;;  %v12823_v60 = vsel %vm429_vm0, %v3858_v45, %v3859_v6  ;;  %v12831_v30 = vrot.slane %v3762_v17, 7  ;;  %v4221_v56 = vsel %vm799_vm3, %v4218_v25, %v4220_v43  ;;  %v4051_v22 = vrot.slane %v12816_v36, 1 }
 0x5aa   : > { %v12826_v35 = vadd.f32 %v3644_v55, %v12698_v58  ;;  %v3861_v19 = vrot.slane %v3761_v63, 7  ;;  %v3764_v18 = vmax.f32 %v12819_v9, 0.0  ;;  %v4052_v37 = vrot.slane %v12804_v38, 1 }
 0x5ab   : > { %4297 = vrot.lane.b32.xlu1 %v4219_v13, %s9822_s27  ;;  %v8986_v47 = vpop.f32.mrf.mxu1  ;;  %4299 = vrot.lane.b32.xlu0 %v4221_v56, %s9822_s27  ;;  %v3948_v8 = vrot.slane %v3760_v54, 5  ;;  %v4054_v41 = vrot.slane %v3995_v26, 1  ;;  %v4228_v42 = vrot.slane %v12804_v38, 2  ;;  %v12862_v10 = vsel %vm429_vm0, %v3804_v0, %v3858_v45 }
 0x5ac   : > { %v3763_v7 = vmax.f32 %v12826_v35, 0.0  ;;  %v12839_v58 = vadd.f32 %v8986_v47, %v12707_v27  ;;  %v12845_v14 = vsel %vm429_vm0, %v3861_v19, %v12831_v30  ;;  %v12849_v62 = vrot.slane %v3764_v18, 7 }
 0x5ad   : > { %16844 = vst [vmem:[#allocation14_spill] sm:$0xff] %v12845_v14  ;;  %v3654_v50 = vpop.f32.mrf.mxu1  ;;  %v4053_v54 = vsel %vm622_vm1, %v4051_v22, %v4052_v37  ;;  %v4230_v55 = vrot.slane %v3995_v26, 2  ;;  %v3996_v43 = vsel %vm429_vm0, %v3859_v6, %v3948_v8  ;;  %v4227_v13 = vrot.slane %v12816_v36, 2 }
 0x5ae   : > { %v12853_v51 = vrot.slane %v3763_v7, 7  ;;  %v3766_v27 = vmax.f32 %v12839_v58, 0.0  ;;  %v12857_v44 = vadd.f32 %v3654_v50, %v12704_v32  ;;  %v4055_v32 = vsel %vm622_vm1, %v4052_v37, %v4054_v41 }
 0x5af   : > { %v8989_v61 = vpop.f32.mrf.mxu1  ;;  %4129 = vrot.lane.b32.xlu1 %v4053_v54, %s9825_s22  ;;  %4131 = vrot.lane.b32.xlu0 %v4055_v32, %s9825_s22  ;;  %v4231_v26 = vsel %vm799_vm3, %v4228_v42, %v4230_v55  ;;  %v4056_v47 = vrot.slane %v12862_v10, 1  ;;  %v3805_v22 = vrot.slane %v3761_v63, 1  ;;  %v4057_v8 = vrot.slane %v12823_v60, 1 }
 0x5b0   : > { %v12867_v39 = vsel %vm429_vm0, %v12853_v51, %v12849_v62  ;;  %v3765_v1 = vmax.f32 %v12857_v44, 0.0  ;;  %v12873_v46 = vadd.f32 %v8989_v61, %v12713_v40  ;;  %v12878_v45 = vrot.slane %v3766_v27, 7 }
 0x5b1   : > { %16845 = vst [vmem:[#allocation15_spill] sm:$0xff] %v12867_v39  ;;  %v3664_v25 = vpop.f32.mrf.mxu1  ;;  %v3949_v50 = vrot.slane %v3762_v17, 5  ;;  %v4229_v41 = vsel %vm799_vm3, %v4227_v13, %v4228_v42  ;;  %v4058_v32 = vsel %vm622_vm1, %v4056_v47, %v4057_v8  ;;  %v4233_v55 = vrot.slane %v12823_v60, 2 }
 0x5b2   : > { %v12882_v0 = vadd.f32 %v3664_v25, %v12710_v3  ;;  %v12887_v56 = vrot.slane %v3765_v1, 7  ;;  %v16614_v40 = vmax.f32 %v12873_v46, 0.0  ;;  %v4059_v25 = vrot.slane %v3996_v43, 1 }
 0x5b3   : > { %v8992_v6 = vpop.f32.mrf.mxu1  ;;  %4307 = vrot.lane.b32.xlu1 %v4231_v26, %s9822_s27  ;;  %4305 = vrot.lane.b32.xlu0 %v4229_v41, %s9822_s27  ;;  %v12922_v13 = vsel %vm429_vm0, %v3805_v22, %v3861_v19  ;;  %v3997_v19 = vsel %vm429_vm0, %v12831_v30, %v3949_v50 }
 0x5b4   : > { %v16619_v37 = vmax.f32 %v12882_v0, 0.0  ;;  %v12895_v3 = vadd.f32 %v8992_v6, %v12719_v11  ;;  %v12903_v54 = vsel %vm429_vm0, %v12887_v56, %v12878_v45  ;;  %v12908_v61 = vrot.slane %v16614_v40, 7  ;;  %16846 = vst [vmem:[#allocation6_spill] sm:$0xff] %v12922_v13 }
 0x5b5   : > { %v3674_v63 = vpop.f32.mrf.mxu1  ;;  %v4232_v40 = vrot.slane %v12862_v10, 2 }
 0x5b6   : > { %v12912_v11 = vrot.slane %v16619_v37, 7  ;;  %v16615_v57 = vmax.f32 %v12895_v3, 0.0  ;;  %v12917_v17 = vadd.f32 %v3674_v63, %v12716_v15  ;;  %v4060_v15 = vsel %vm622_vm1, %v4057_v8, %v4059_v25 }
 0x5b7   : > { %v8995_v42 = vpop.f32.mrf.mxu1  ;;  %4133 = vrot.lane.b32.xlu1 %v4058_v32, %s9825_s22  ;;  %v4235_v63 = vrot.slane %v3996_v43, 2  ;;  %4135 = vrot.lane.b32.xlu0 %v4060_v15, %s9825_s22  ;;  %v4061_v25 = vrot.slane %v12922_v13, 1  ;;  %v4234_v35 = vsel %vm799_vm3, %v4232_v40, %v4233_v55  ;;  %v4237_v37 = vrot.slane %v12922_v13, 2 }
 0x5b8   : > { %v12927_v26 = vsel %vm429_vm0, %v12912_v11, %v12908_v61  ;;  %v16616_v6 = vmax.f32 %v12917_v17, 0.0  ;;  %v12933_v47 = vadd.f32 %v8995_v42, %v12725_v23  ;;  %v12939_v22 = vrot.slane %v16615_v57, 7  ;;  %v4756_v23 = vld [vmem:[%s16505_s5 + $0x78] sm:$0xff] }
 0x5b9   : > { %v3684_v41 = vpop.f32.mrf.mxu1  ;;  %v4236_v8 = vsel %vm799_vm3, %v4233_v55, %v4235_v63  ;;  %4845 = vmatpush1.msra.mxu0 %v4756_v23  ;;  %v3950_v63 = vrot.slane %v3764_v18, 5  ;;  %v4064_v55 = vrot.slane %v3997_v19, 1 }
 0x5ba   : > { %v12943_v32 = vadd.f32 %v3684_v41, %v12722_v2  ;;  %v12951_v43 = vrot.slane %v16616_v6, 7  ;;  %v16617_v30 = vmax.f32 %v12933_v47, 0.0  ;;  %v3806_v2 = vrot.slane %v3763_v7, 1  ;;  %4846 = vmatprep.subr.mxu0 %v16713_v28 }
 0x5bb   : > { %v8998_v50 = vpop.f32.mrf.mxu1  ;;  %4311 = vrot.lane.b32.xlu1 %v4236_v8, %s9822_s27  ;;  %v4062_v41 = vrot.slane %v12845_v14, 1  ;;  %4309 = vrot.lane.b32.xlu0 %v4234_v35, %s9822_s27  ;;  %v4238_v6 = vrot.slane %v12845_v14, 2  ;;  %v4248_v14 = vrot.slane %v12903_v54, 2 }
 0x5bc   : > { %v16618_v42 = vmax.f32 %v12943_v32, 0.0  ;;  %v12961_v15 = vadd.f32 %v8998_v50, %v12731_v5  ;;  %v12970_v23 = vsel %vm429_vm0, %v12951_v43, %v12939_v22  ;;  %v4755_v5 = vld [vmem:[%s16505_s5 + $0x70] sm:$0xff]  ;;  %v12978_v8 = vrot.slane %v16617_v30, 7 }
 0x5bd   : > { %v3694_v7 = vpop.f32.mrf.mxu1  ;;  %4847 = vmatpush1.msra.mxu0 %v4755_v5  ;;  %v4063_v40 = vsel %vm622_vm1, %v4061_v25, %v4062_v41  ;;  %v12994_v30 = vsel %vm429_vm0, %v3806_v2, %v12853_v51  ;;  %v4065_v25 = vsel %vm622_vm1, %v4062_v41, %v4064_v55  ;;  %v3998_v51 = vsel %vm429_vm0, %v12849_v62, %v3950_v63 }
 0x5be   : > { %v12982_v9 = vrot.slane %v16618_v42, 7  ;;  %v16620_v18 = vmax.f32 %v12961_v15, 0.0  ;;  %v12987_v50 = vadd.f32 %v3694_v7, %v12728_v53  ;;  %4848 = vmatprep.subr.mxu0 %v16713_v28  ;;  %16847 = vst [vmem:[#allocation16_spill] sm:$0xff] %v12994_v30  ;;  %v4240_v42 = vrot.slane %v3997_v19, 2 }
 0x5bf   : > { %v9001_v57 = vpop.f32.mrf.mxu1  ;;  %4137 = vrot.lane.b32.xlu1 %v4063_v40, %s9825_s22  ;;  %4139 = vrot.lane.b32.xlu0 %v4065_v25, %s9825_s22  ;;  %v4066_v63 = vrot.slane %v12994_v30, 1  ;;  %v3807_v55 = vrot.slane %v3765_v1, 1  ;;  %v4239_v44 = vsel %vm799_vm3, %v4237_v37, %v4238_v6 }
 0x5c0   : > { %v12999_v35 = vsel %vm429_vm0, %v12982_v9, %v12978_v8  ;;  %v16623_v53 = vmax.f32 %v12987_v50, 0.0  ;;  %v13005_v7 = vadd.f32 %v9001_v57, %v12737_v24  ;;  %v13011_v2 = vrot.slane %v16620_v18, 7  ;;  %v4754_v24 = vld [vmem:[%s16505_s5 + $0x68] sm:$0xff]  ;;  %v4753_v57 = vld [vmem:[%s16505_s5 + $0x60] sm:$0xff] }
 0x5c1   : > { %v3704_v5 = vpop.f32.mrf.mxu1  ;;  %v4241_v41 = vsel %vm799_vm3, %v4238_v6, %v4240_v42  ;;  %4849 = vmatpush1.msra.mxu0 %v4754_v24  ;;  %v4067_v18 = vrot.slane %v12867_v39, 1  ;;  %v3951_v42 = vrot.slane %v3766_v27, 5 }
 0x5c2   : > { %v13015_v40 = vadd.f32 %v3704_v5, %v12734_v59  ;;  %v13026_v62 = vrot.slane %v16623_v53, 7  ;;  %v16621_v19 = vmax.f32 %v13005_v7, 0.0  ;;  %4850 = vmatprep.subr.mxu0 %v16713_v28  ;;  %v4245_v53 = vrot.slane %v3998_v51, 2 }
 0x5c3   : > { %v9004_v59 = vpop.f32.mrf.mxu1  ;;  %4315 = vrot.lane.b32.xlu1 %v4241_v41, %s9822_s27  ;;  %4851 = vmatpush1.msra.mxu0 %v4753_v57  ;;  %v4068_v6 = vsel %vm622_vm1, %v4066_v63, %v4067_v18  ;;  %v4069_v57 = vrot.slane %v3998_v51, 1 }
 0x5c4   : > { %v16622_v25 = vmax.f32 %v13015_v40, 0.0  ;;  %v13036_v5 = vadd.f32 %v9004_v59, %v12743_v20  ;;  %v13045_v24 = vsel %vm429_vm0, %v13026_v62, %v13011_v2  ;;  %v4752_v20 = vld [vmem:[%s16505_s5 + $0x58] sm:$0xff]  ;;  %v13053_v41 = vrot.slane %v16621_v19, 7  ;;  %4313 = vrot.lane.b32.xlu0 %v4239_v44, %s9822_s27  ;;  %4852 = vmatprep.subr.mxu0 %v16713_v28 }
 0x5c5   : > { %v3714_v1 = vpop.f32.mrf.mxu1  ;;  %v4243_v19 = vrot.slane %v12867_v39, 2  ;;  %4853 = vmatpush1.msra.mxu0 %v4752_v20  ;;  %v4070_v63 = vsel %vm622_vm1, %v4067_v18, %v4069_v57 }
 0x5c6   : > { %v13057_v58 = vrot.slane %v16622_v25, 7  ;;  %v16624_v27 = vmax.f32 %v13036_v5, 0.0  ;;  %v13062_v37 = vadd.f32 %v3714_v1, %v12740_v49  ;;  %v13069_v25 = vsel %vm429_vm0, %v3807_v55, %v12887_v56  ;;  %4854 = vmatprep.subr.mxu0 %v16713_v28 }
 0x5c7   : > { %v9007_v59 = vpop.f32.mrf.mxu1  ;;  %4141 = vrot.lane.b32.xlu1 %v4068_v6, %s9825_s22  ;;  %v3999_v56 = vsel %vm429_vm0, %v12878_v45, %v3951_v42  ;;  %v4242_v49 = vrot.slane %v12994_v30, 2  ;;  %v4246_v42 = vsel %vm799_vm3, %v4243_v19, %v4245_v53 }
 0x5c8   : > { %v13074_v44 = vsel %vm429_vm0, %v13057_v58, %v13053_v41  ;;  %v13081_v1 = vadd.f32 %v9007_v59, %v12749_v16  ;;  %v13087_v55 = vrot.slane %v16624_v27, 7  ;;  %4143 = vrot.lane.b32.xlu0 %v4070_v63, %s9825_s22  ;;  %v4751_v16 = vld [vmem:[%s16505_s5 + $0x50] sm:$0xff]  ;;  %v16848_v18 = vmax.f32 %v13062_v37, 0.0 }
 0x5c9   : > { %v3724_v20 = vpop.f32.mrf.mxu1  ;;  %v4071_v59 = vrot.slane %v13069_v25, 1  ;;  %4855 = vmatpush1.msra.mxu0 %v4751_v16  ;;  %v4244_v16 = vsel %vm799_vm3, %v4242_v49, %v4243_v19  ;;  %v4074_v39 = vrot.slane %v3999_v56, 1 }
 0x5ca   : > { %v13091_v6 = vadd.f32 %v3724_v20, %v12746_v21  ;;  %v13099_v51 = vrot.slane %v16848_v18, 7  ;;  %v16629_v45 = vmax.f32 %v13081_v1, 0.0  ;;  %v16849_v21 = vmax.f32 %v12882_v0, 0.0  ;;  %4856 = vmatprep.subr.mxu0 %v16713_v28 }
 0x5cb   : > { %v9010_v57 = vpop.f32.mrf.mxu1  ;;  %4319 = vrot.lane.b32.xlu1 %v4246_v42, %s9822_s27  ;;  %v4072_v18 = vrot.slane %v12903_v54, 1 }
 0x5cc   : > { %v3808_v63 = vrot.slane %v16849_v21, 1  ;;  %v16630_v20 = vmax.f32 %v13091_v6, 0.0  ;;  %v13109_v27 = vadd.f32 %v9010_v57, %v12755_v4  ;;  %v13116_v53 = vsel %vm429_vm0, %v13099_v51, %v13087_v55  ;;  %v4750_v21 = vld [vmem:[%s16505_s5 + $0x48] sm:$0xff]  ;;  %v4749_v4 = vld [vmem:[%s16505_s5 + $0x40] sm:$0xff]  ;;  %4317 = vrot.lane.b32.xlu0 %v4244_v16, %s9822_s27 }
 0x5cd   : > { %v3734_v0 = vpop.f32.mrf.mxu1  ;;  %v13127_v42 = vrot.slane %v16629_v45, 7  ;;  %4857 = vmatpush1.msra.mxu0 %v4750_v21  ;;  %v4073_v30 = vsel %vm622_vm1, %v4071_v59, %v4072_v18  ;;  %v16850_v45 = vmax.f32 %v12873_v46, 0.0 }
 0x5ce   : > { %v13131_v57 = vrot.slane %v16630_v20, 7  ;;  %v16631_v19 = vmax.f32 %v13109_v27, 0.0  ;;  %v13136_v49 = vadd.f32 %v3734_v0, %v12752_v12  ;;  %4858 = vmatprep.subr.mxu0 %v16713_v28  ;;  %v13145_v16 = vsel %vm429_vm0, %v3808_v63, %v12912_v11 }
 0x5cf   : > { %v9013_v13 = vpop.f32.mrf.mxu1  ;;  %v3952_v20 = vrot.slane %v16850_v45, 5  ;;  %16851 = vst [vmem:[#allocation7_spill] sm:$0xff] %v13145_v16  ;;  %4145 = vrot.lane.b32.xlu1 %v4073_v30, %s9825_s22  ;;  %4859 = vmatpush1.msra.mxu0 %v4749_v4  ;;  %v4075_v0 = vsel %vm622_vm1, %v4072_v18, %v4074_v39  ;;  %v4250_v45 = vrot.slane %v3999_v56, 2  ;;  %v4247_v63 = vrot.slane %v13069_v25, 2 }
 0x5d0   : > { %v13150_v12 = vsel %vm429_vm0, %v13131_v57, %v13127_v42  ;;  %v16632_v59 = vmax.f32 %v13136_v49, 0.0  ;;  %v13156_v21 = vadd.f32 %v9013_v13, %v12761_v34  ;;  %4860 = vmatprep.subr.mxu0 %v16713_v28  ;;  %v13161_v11 = vrot.slane %v16631_v19, 7  ;;  %4147 = vrot.lane.b32.xlu0 %v4075_v0, %s9825_s22  ;;  %v4748_v34 = vld [vmem:[%s16505_s5 + $0x38] sm:$0xff] }
 0x5d1   : > { %v3744_v46 = vpop.f32.mrf.mxu1  ;;  %v4251_v56 = vsel %vm799_vm3, %v4248_v14, %v4250_v45  ;;  %v4076_v18 = vrot.slane %v13145_v16, 1  ;;  %4861 = vmatpush1.msra.mxu0 %v4748_v34  ;;  %v16852_v4 = vmax.f32 %v12917_v17, 0.0  ;;  %v4077_v19 = vrot.slane %v12927_v26, 1 }
 0x5d2   : > { %v13165_v30 = vadd.f32 %v3744_v46, %v12758_v29  ;;  %v13173_v39 = vrot.slane %v16632_v59, 7  ;;  %v16633_v13 = vmax.f32 %v13156_v21, 0.0  ;;  %v4000_v29 = vsel %vm429_vm0, %v12908_v61, %v3952_v20  ;;  %4862 = vmatprep.subr.mxu0 %v16713_v28  ;;  %v4747_v61 = vld [vmem:[%s16505_s5 + $0x30] sm:$0xff] }
 0x5d3   : > { %v3809_v0 = vrot.slane %v16852_v4, 1  ;;  %4323 = vrot.lane.b32.xlu1 %v4251_v56, %s9822_s27  ;;  %v4249_v34 = vsel %vm799_vm3, %v4247_v63, %v4248_v14  ;;  %4863 = vmatpush1.msra.mxu0 %v4747_v61  ;;  %v4078_v56 = vsel %vm622_vm1, %v4076_v18, %v4077_v19  ;;  %v4079_v4 = vrot.slane %v4000_v29, 1 }
 0x5d4   : > { %v16634_v46 = vmax.f32 %v13165_v30, 0.0  ;;  %v13189_v45 = vsel %vm429_vm0, %v13173_v39, %v13161_v11  ;;  %v13197_v17 = vrot.slane %v16633_v13, 7  ;;  %4321 = vrot.lane.b32.xlu0 %v4249_v34, %s9822_s27  ;;  %v4253_v14 = vrot.slane %v12927_v26, 2  ;;  %4864 = vmatprep.subr.mxu0 %v16713_v28 }
 0x5d5   : > { %v16853_v63 = vmax.f32 %v12895_v3, 0.0  ;;  %v13211_v13 = vsel %vm429_vm0, %v3809_v0, %v12951_v43  ;;  %v4080_v18 = vsel %vm622_vm1, %v4077_v19, %v4079_v4  ;;  %v4255_v34 = vrot.slane %v4000_v29, 2  ;;  %v4746_v3 = vld [vmem:[%s16505_s5 + $0x28] sm:$0xff]  ;;  %v4776_v43 = vld [vmem:[%s16505_s5 + $0x118] sm:$0xff]  ;;  %v4745_v0 = vld [vmem:[%s16505_s5 + $0x20] sm:$0xff] }
 0x5d6   : > { %v13201_v20 = vrot.slane %v16634_v46, 7  ;;  %v4252_v61 = vrot.slane %v13145_v16, 2  ;;  %v4081_v19 = vrot.slane %v13211_v13, 1  ;;  %v4082_v29 = vrot.slane %v12970_v23, 1  ;;  %4865 = vmatpush1.msra.mxu0 %v4746_v3  ;;  %9014 = vmatprep.subr.mxu1 %v4776_v43 }
 0x5d7   : > { %v3953_v59 = vrot.slane %v16853_v63, 5  ;;  %4149 = vrot.lane.b32.xlu1 %v4078_v56, %s9825_s22  ;;  %v4256_v56 = vsel %vm799_vm3, %v4253_v14, %v4255_v34  ;;  %v16854_v63 = vmax.f32 %v12943_v32, 0.0  ;;  %4866 = vmatprep.subr.mxu0 %v16713_v28  ;;  %v4744_v34 = vld [vmem:[%s16505_s5 + $0x18] sm:$0xff]  ;;  %v16855_v3 = vmax.f32 %v12933_v47, 0.0  ;;  %v4743_v47 = vld [vmem:[%s16505_s5 + $0x10] sm:$0xff] }
 0x5d8   : > { %v13216_v46 = vsel %vm429_vm0, %v13201_v20, %v13197_v17  ;;  %4151 = vrot.lane.b32.xlu0 %v4080_v18, %s9825_s22  ;;  %v4254_v16 = vsel %vm799_vm3, %v4252_v61, %v4253_v14  ;;  %9015 = vmatpush3.msra.mxu1 %v4776_v43  ;;  %v4257_v43 = vrot.slane %v13211_v13, 2 }
 0x5d9   : > { %v4001_v4 = vsel %vm429_vm0, %v12939_v22, %v3953_v59  ;;  %v3810_v18 = vrot.slane %v16854_v63, 1  ;;  %4867 = vmatpush1.msra.mxu0 %v4745_v0  ;;  %v4083_v22 = vsel %vm622_vm1, %v4081_v19, %v4082_v29  ;;  %v4258_v59 = vrot.slane %v12970_v23, 2 }
 0x5da   : > { %4868 = vmatprep.subr.mxu0 %v16713_v28  ;;  %v4084_v32 = vrot.slane %v4001_v4, 1  ;;  %v4260_v61 = vrot.slane %v4001_v4, 2  ;;  %v4087_v19 = vrot.slane %v12999_v35, 1 }
 0x5db   : > { %4327 = vrot.lane.b32.xlu1 %v4256_v56, %s9822_s27  ;;  %4869 = vmatpush1.msra.mxu0 %v4744_v34  ;;  %v3954_v56 = vrot.slane %v16855_v3, 5  ;;  %v13252_v14 = vsel %vm429_vm0, %v3810_v18, %v12982_v9  ;;  %v4259_v18 = vsel %vm799_vm3, %v4257_v43, %v4258_v59  ;;  %v4742_v34 = vld [vmem:[%s16505_s5 + $0x8] sm:$0xff] }
 0x5dc   : > { %4325 = vrot.lane.b32.xlu0 %v4254_v16, %s9822_s27  ;;  %4870 = vmatprep.subr.mxu0 %v16713_v28  ;;  %v4085_v16 = vsel %vm622_vm1, %v4082_v29, %v4084_v32  ;;  %v4261_v0 = vsel %vm799_vm3, %v4258_v59, %v4260_v61  ;;  %v4086_v9 = vrot.slane %v13252_v14, 1  ;;  %v16856_v29 = vmax.f32 %v12987_v50, 0.0 }
 0x5dd   : > { %4871 = vmatpush1.msra.mxu0 %v4743_v47  ;;  %v4002_v63 = vsel %vm429_vm0, %v12978_v8, %v3954_v56  ;;  %v4263_v32 = vrot.slane %v12999_v35, 2  ;;  %v16857_v59 = vmax.f32 %v12961_v15, 0.0  ;;  %v4262_v43 = vrot.slane %v13252_v14, 2  ;;  %v4775_v15 = vld [vmem:[%s16505_s5 + $0x110] sm:$0xff] }
 0x5de   : > { %v3811_v4 = vrot.slane %v16856_v29, 1  ;;  %4872 = vmatprep.subr.mxu0 %v16713_v28  ;;  %v4088_v8 = vsel %vm622_vm1, %v4086_v9, %v4087_v19  ;;  %v4089_v50 = vrot.slane %v4002_v63, 1  ;;  %v4265_v61 = vrot.slane %v4002_v63, 2  ;;  %9016 = vmatprep.subr.mxu1 %v4775_v15 }
 0x5df   : > { %4153 = vrot.lane.b32.xlu1 %v4083_v22, %s9825_s22  ;;  %v4741_v22 = vld [vmem:[%s16505_s5] sm:$0xff]  ;;  %4873 = vmatpush1.msra.mxu0 %v4742_v34  ;;  %v3955_v3 = vrot.slane %v16857_v59, 5  ;;  %v4092_v9 = vrot.slane %v13045_v24, 1  ;;  %v16858_v63 = vmax.f32 %v13015_v40, 0.0  ;;  %v4268_v40 = vrot.slane %v13045_v24, 2 }
 0x5e0   : > { %4155 = vrot.lane.b32.xlu0 %v4085_v16, %s9825_s22  ;;  %4874 = vmatprep.subr.mxu0 %v16713_v28  ;;  %v13286_v56 = vsel %vm429_vm0, %v3811_v4, %v13026_v62  ;;  %v4090_v16 = vsel %vm622_vm1, %v4087_v19, %v4089_v50  ;;  %v4772_v62 = vld [vmem:[%s16505_s5 + $0xf8] sm:$0xff]  ;;  %v4266_v47 = vsel %vm799_vm3, %v4263_v32, %v4265_v61 }
 0x5e1   : > { %4875 = vmatpush1.msra.mxu0 %v4741_v22  ;;  %v4003_v19 = vsel %vm429_vm0, %v13011_v2, %v3955_v3  ;;  %v3812_v29 = vrot.slane %v16858_v63, 1  ;;  %9017 = vmatpush3.msra.mxu1 %v4775_v15  ;;  %v4264_v4 = vsel %vm799_vm3, %v4262_v43, %v4263_v32  ;;  %v16859_v22 = vmax.f32 %v13005_v7, 0.0  ;;  %v4769_v7 = vld [vmem:[%s16505_s5 + $0xe0] sm:$0xff] }
 0x5e2   : > { %4876 = vmatprep.subr.mxu0 %v16713_v28  ;;  %v4094_v2 = vrot.slane %v4003_v19, 1  ;;  %v4270_v59 = vrot.slane %v4003_v19, 2  ;;  %v4267_v3 = vrot.slane %v13286_v56, 2  ;;  %v4097_v43 = vrot.slane %v13074_v44, 1 }
 0x5e3   : > { %4331 = vrot.lane.b32.xlu1 %v4261_v0, %s9822_s27  ;;  %v4091_v0 = vrot.slane %v13286_v56, 1  ;;  %4877 = vmatpush2.msra.mxu0 %v4772_v62  ;;  %v13320_v50 = vsel %vm429_vm0, %v3812_v29, %v13057_v58  ;;  %v16860_v62 = vmax.f32 %v13062_v37, 0.0  ;;  %v4273_v37 = vrot.slane %v13074_v44, 2 }
 0x5e4   : > { %4329 = vrot.lane.b32.xlu0 %v4259_v18, %s9822_s27  ;;  %4878 = vmatprep.subr.mxu0 %v16713_v28  ;;  %v4771_v18 = vld [vmem:[%s16505_s5 + $0xf0] sm:$0xff]  ;;  %v4095_v32 = vsel %vm622_vm1, %v4092_v9, %v4094_v2  ;;  %v4271_v58 = vsel %vm799_vm3, %v4268_v40, %v4270_v59  ;;  %v4096_v61 = vrot.slane %v13320_v50, 1  ;;  %v16861_v63 = vmax.f32 %v13036_v5, 0.0 }
 0x5e5   : > { %4879 = vmatpush2.msra.mxu0 %v4771_v18  ;;  %v4093_v34 = vsel %vm622_vm1, %v4091_v0, %v4092_v9  ;;  %v4269_v0 = vsel %vm799_vm3, %v4267_v3, %v4268_v40  ;;  %v4768_v9 = vld [vmem:[%s16505_s5 + $0xd8] sm:$0xff]  ;;  %v4272_v2 = vrot.slane %v13320_v50, 2  ;;  %v4767_v5 = vld [vmem:[%s16505_s5 + $0xd0] sm:$0xff]  ;;  %v16862_v59 = vmax.f32 %v13091_v6, 0.0 }
 0x5e6   : > { %4880 = vmatprep.subr.mxu0 %v16713_v28  ;;  %v3957_v29 = vrot.slane %v16861_v63, 5  ;;  %v16864_v63 = vmax.f32 %v13136_v49, 0.0  ;;  %v16865_v49 = vmax.f32 %v13109_v27, 0.0  ;;  %v4773_v27 = vld [vmem:[%s16505_s5 + $0x100] sm:$0xff] }
 0x5e7   : > { %4157 = vrot.lane.b32.xlu1 %v4088_v8, %s9825_s22  ;;  %v3956_v8 = vrot.slane %v16859_v22, 5  ;;  %v3814_v3 = vrot.slane %v16862_v59, 1  ;;  %v4762_v59 = vld [vmem:[%s16505_s5 + $0xa8] sm:$0xff] }
 0x5e8   : > { %4159 = vrot.lane.b32.xlu0 %v4090_v16, %s9825_s22  ;;  %v4770_v16 = vld [vmem:[%s16505_s5 + $0xe8] sm:$0xff] }
 0x5e9   : > { %4881 = vmatpush2.msra.mxu0 %v4770_v16  ;;  %v4004_v15 = vsel %vm429_vm0, %v13053_v41, %v3956_v8  ;;  %v4098_v41 = vsel %vm622_vm1, %v4096_v61, %v4097_v43  ;;  %v4102_v8 = vrot.slane %v13116_v53, 1  ;;  %v4274_v16 = vsel %vm799_vm3, %v4272_v2, %v4273_v37 }
 0x5ea   : > { %4882 = vmatprep.subr.mxu0 %v16713_v28  ;;  %v4099_v19 = vrot.slane %v4004_v15, 1  ;;  %v4278_v61 = vrot.slane %v13116_v53, 2 }
 0x5eb   : > { %4335 = vrot.lane.b32.xlu1 %v4266_v47, %s9822_s27  ;;  %v3813_v47 = vrot.slane %v16860_v62, 1  ;;  %4883 = vmatpush2.msra.mxu0 %v4769_v7  ;;  %v4766_v7 = vld [vmem:[%s16505_s5 + $0xc8] sm:$0xff]  ;;  %v13390_v62 = vsel %vm429_vm0, %v3814_v3, %v13131_v57 }
 0x5ec   : > { %4333 = vrot.lane.b32.xlu0 %v4264_v4, %s9822_s27  ;;  %4884 = vmatprep.subr.mxu0 %v16713_v28  ;;  %v4100_v18 = vsel %vm622_vm1, %v4097_v43, %v4099_v19  ;;  %v16863_v43 = vmax.f32 %v13081_v1, 0.0  ;;  %v4764_v1 = vld [vmem:[%s16505_s5 + $0xb8] sm:$0xff]  ;;  %v4106_v57 = vrot.slane %v13390_v62, 1  ;;  %v4107_v19 = vrot.slane %v13150_v12, 1 }
 0x5ed   : > { %4885 = vmatpush2.msra.mxu0 %v4768_v9  ;;  %v13353_v4 = vsel %vm429_vm0, %v3813_v47, %v13099_v51  ;;  %v4774_v51 = vld [vmem:[%s16505_s5 + $0x108] sm:$0xff] }
 0x5ee   : > { %4886 = vmatprep.subr.mxu0 %v16713_v28  ;;  %v4101_v22 = vrot.slane %v13353_v4, 1  ;;  %9018 = vmatprep.subr.mxu1 %v4774_v51  ;;  %v4277_v9 = vrot.slane %v13353_v4, 2  ;;  %v4108_v2 = vsel %vm622_vm1, %v4106_v57, %v4107_v19 }
 0x5ef   : > { %4161 = vrot.lane.b32.xlu1 %v4093_v34, %s9825_s22  ;;  %v4275_v34 = vrot.slane %v4004_v15, 2  ;;  %4887 = vmatpush2.msra.mxu0 %v4767_v5  ;;  %v3958_v15 = vrot.slane %v16863_v43, 5  ;;  %v4760_v43 = vld [vmem:[%s16505_s5 + $0x98] sm:$0xff] }
 0x5f0   : > { %4163 = vrot.lane.b32.xlu0 %v4095_v32, %s9825_s22  ;;  %v4005_v32 = vsel %vm429_vm0, %v13087_v55, %v3957_v29  ;;  %9019 = vmatpush3.msra.mxu1 %v4774_v51  ;;  %v4103_v55 = vsel %vm622_vm1, %v4101_v22, %v4102_v8  ;;  %v3815_v29 = vrot.slane %v16864_v63, 1  ;;  %v3959_v51 = vrot.slane %v16865_v49, 5 }
 0x5f1   : > { %v4276_v40 = vsel %vm799_vm3, %v4273_v37, %v4275_v34  ;;  %4888 = vmatprep.subr.mxu0 %v16713_v28  ;;  %v4104_v6 = vrot.slane %v4005_v32, 1  ;;  %v4006_v37 = vsel %vm429_vm0, %v13127_v42, %v3958_v15  ;;  %v4763_v34 = vld [vmem:[%s16505_s5 + $0xb0] sm:$0xff]  ;;  %v4283_v42 = vrot.slane %v13150_v12, 2  ;;  %9020 = vmatprep.subr.mxu1 %v4773_v27 }
 0x5f2   : > { %4889 = vmatpush2.msra.mxu0 %v4766_v7  ;;  %v4109_v5 = vrot.slane %v4006_v37, 1  ;;  %v4112_v7 = vrot.slane %v13189_v45, 1  ;;  %9021 = vmatpush3.msra.mxu1 %v4773_v27  ;;  %v4288_v15 = vrot.slane %v13189_v45, 2 }
 0x5f3   : > { %4339 = vrot.lane.b32.xlu1 %v4271_v58, %s9822_s27  ;;  %v4765_v58 = vld [vmem:[%s16505_s5 + $0xc0] sm:$0xff]  ;;  %4890 = vmatprep.subr.mxu0 %v16713_v28  ;;  %v4105_v47 = vsel %vm622_vm1, %v4102_v8, %v4104_v6  ;;  %v4285_v8 = vrot.slane %v4006_v37, 2  ;;  %v4117_v37 = vrot.slane %v13216_v46, 1 }
 0x5f4   : > { %4337 = vrot.lane.b32.xlu0 %v4269_v0, %s9822_s27  ;;  %4891 = vmatpush2.msra.mxu0 %v4765_v58  ;;  %v4280_v0 = vrot.slane %v4005_v32, 2  ;;  %v4110_v22 = vsel %vm622_vm1, %v4107_v19, %v4109_v5  ;;  %v4282_v32 = vrot.slane %v13390_v62, 2  ;;  %v4007_v58 = vsel %vm429_vm0, %v13161_v11, %v3959_v51 }
 0x5f5   : > { %4892 = vmatprep.subr.mxu0 %v16713_v28  ;;  %v4286_v3 = vsel %vm799_vm3, %v4283_v42, %v4285_v8  ;;  %v4293_v51 = vrot.slane %v13216_v46, 2 }
 0x5f6   : > { %4893 = vmatpush2.msra.mxu0 %v4764_v1 }
 0x5f7   : > { %4165 = vrot.lane.b32.xlu1 %v4098_v41, %s9825_s22  ;;  %v4281_v41 = vsel %vm799_vm3, %v4278_v61, %v4280_v0  ;;  %4894 = vmatprep.subr.mxu0 %v16713_v28 }
 0x5f8   : > { %4167 = vrot.lane.b32.xlu0 %v4100_v18, %s9825_s22  ;;  %v4279_v18 = vsel %vm799_vm3, %v4277_v9, %v4278_v61  ;;  %4895 = vmatpush2.msra.mxu0 %v4763_v34  ;;  %v4284_v61 = vsel %vm799_vm3, %v4282_v32, %v4283_v42 }
 0x5f9   : > { %4896 = vmatprep.subr.mxu0 %v16713_v28 }
 0x5fa   : > { %4897 = vmatpush2.msra.mxu0 %v4762_v59 }
 0x5fb   : > { %4343 = vrot.lane.b32.xlu1 %v4276_v40, %s9822_s27  ;;  %v13421_v40 = vsel %vm429_vm0, %v3815_v29, %v13173_v39  ;;  %v4761_v39 = vld [vmem:[%s16505_s5 + $0xa0] sm:$0xff]  ;;  %4898 = vmatprep.subr.mxu0 %v16713_v28 }
 0x5fc   : > { %4341 = vrot.lane.b32.xlu0 %v4274_v16, %s9822_s27  ;;  %v4111_v16 = vrot.slane %v13421_v40, 1  ;;  %4899 = vmatpush2.msra.mxu0 %v4761_v39  ;;  %v4287_v57 = vrot.slane %v13421_v40, 2 }
 0x5fd   : > { %4900 = vmatprep.subr.mxu0 %v16713_v28 }
 0x5fe   : > { %v4113_v11 = vsel %vm622_vm1, %v4111_v16, %v4112_v7  ;;  %4901 = vmatpush2.msra.mxu0 %v4760_v43  ;;  %v4289_v29 = vsel %vm799_vm3, %v4287_v57, %v4288_v15 }
 0x5ff   : > { %4169 = vrot.lane.b32.xlu1 %v4103_v55, %s9825_s22  ;;  %v16866_v55 = vmax.f32 %v13165_v30, 0.0  ;;  %v4114_v30 = vrot.slane %v4007_v58, 1  ;;  %4902 = vmatprep.subr.mxu0 %v16713_v28 }
 0x600   : > { %4171 = vrot.lane.b32.xlu0 %v4105_v47, %s9825_s22  ;;  %v16867_v47 = vmax.f32 %v13156_v21, 0.0  ;;  %v4759_v21 = vld [vmem:[%s16505_s5 + $0x90] sm:$0xff] }
 0x601   : > { %v3816_v6 = vrot.slane %v16866_v55, 1  ;;  %v4115_v1 = vsel %vm622_vm1, %v4112_v7, %v4114_v30  ;;  %4903 = vmatpush2.msra.mxu0 %v4759_v21 }
 0x602   : > { %v3960_v0 = vrot.slane %v16867_v47, 5  ;;  %4904 = vmatprep.subr.mxu0 %v16713_v28 }
 0x603   : > { %4347 = vrot.lane.b32.xlu1 %v4281_v41, %s9822_s27  ;;  %v13457_v9 = vsel %vm429_vm0, %v3816_v6, %v13201_v20  ;;  %v4290_v41 = vrot.slane %v4007_v58, 2 }
 0x604   : > { %4345 = vrot.lane.b32.xlu0 %v4279_v18, %s9822_s27  ;;  %v4116_v20 = vrot.slane %v13457_v9, 1  ;;  %v4008_v63 = vsel %vm429_vm0, %v13197_v17, %v3960_v0  ;;  %v4758_v17 = vld [vmem:[%s16505_s5 + $0x88] sm:$0xff] }
 0x605   : > { %v4291_v19 = vsel %vm799_vm3, %v4288_v15, %v4290_v41  ;;  %v4119_v49 = vrot.slane %v4008_v63, 1  ;;  %v4295_v8 = vrot.slane %v4008_v63, 2  ;;  %4905 = vmatpush2.msra.mxu0 %v4758_v17 }
 0x606   : > { %v4118_v42 = vsel %vm622_vm1, %v4116_v20, %v4117_v37  ;;  %4906 = vmatprep.subr.mxu0 %v16713_v28 }
 0x607   : > { %4173 = vrot.lane.b32.xlu1 %v4108_v2, %s9825_s22  ;;  %v4120_v27 = vsel %vm622_vm1, %v4117_v37, %v4119_v49  ;;  %v4296_v55 = vsel %vm799_vm3, %v4293_v51, %v4295_v8  ;;  %v16869_v8 = vld [vmem:[#allocation6_spill] sm:$0xff] }
 0x608   : > { %4175 = vrot.lane.b32.xlu0 %v4110_v22, %s9825_s22  ;;  %v4757_v22 = vld [vmem:[%s16505_s5 + $0x80] sm:$0xff] }
 0x609   : > { %4907 = vmatpush2.msra.mxu0 %v4757_v22 }
 0x60b   : > { %4351 = vrot.lane.b32.xlu1 %v4286_v3, %s9822_s27  ;;  %v4292_v3 = vrot.slane %v13457_v9, 2 }
 0x60c   : > { %4349 = vrot.lane.b32.xlu0 %v4284_v61, %s9822_s27 }
 0x60d   : > { %v4294_v61 = vsel %vm799_vm3, %v4292_v3, %v4293_v51  ;;  %v16868_v51 = vld [vmem:[#allocation14_spill] sm:$0xff] }
 0x60f   : > { %4177 = vrot.lane.b32.xlu1 %v4113_v11, %s9825_s22 }
 0x610   : > { %4179 = vrot.lane.b32.xlu0 %v4115_v1, %s9825_s22 }
 0x613   : > { %4355 = vrot.lane.b32.xlu1 %v4291_v19, %s9822_s27 }
 0x614   : > { %4353 = vrot.lane.b32.xlu0 %v4289_v29, %s9822_s27 }
 0x615   : > { %v9658_v18 = vpop.permute.xlu1 %9657  ;;  %v9653_v34 = vpop.permute.xlu0 %9652 }
 0x616   : > { %v9655_v2 = vunpack.i.h.bf16 %v9653_v34  ;;  %v9654_v5 = vunpack.i.l.bf16 %v9653_v34  ;;  %v9660_v32 = vunpack.i.h.bf16 %v9658_v18  ;;  %v9659_v59 = vunpack.i.l.bf16 %v9658_v18 }
 0x617   : > { %4181 = vrot.lane.b32.xlu1 %v4118_v42, %s9825_s22 }
 0x618   : > { %v4397_v16 = vsel %vm4393_vm4, %v12769_v33, %v9655_v2  ;;  %v4396_v7 = vsel %vm4393_vm4, %v12772_v52, %v9654_v5  ;;  %4183 = vrot.lane.b32.xlu0 %v4120_v27, %s9825_s22  ;;  %s9826_s22 = smov 96  }
 0x619   : > { %v4124_v39 = vpop.permute.xlu1 %4123  ;;  %v4122_v58 = vpop.permute.xlu0 %4121  ;;  %v13499_v43 = vsel %vm910_vm2, %v4396_v7, %v9659_v59  ;;  %v13502_v33 = vsel %vm910_vm2, %v4397_v16, %v9660_v32  ;;  %v16870_v7 = vld [vmem:[#allocation15_spill] sm:$0xff] }
 0x61a   : > { %v4394_v6 = vsel %vm4393_vm4, %v12792_v31, %v4122_v58  ;;  %v4395_v52 = vsel %vm4393_vm4, %v12789_v48, %v4124_v39  ;;  %v9661_v47 = vpack.i.bf16 %v13502_v33, %v13499_v43 }
 0x61b   : > { %4359 = vrot.lane.b32.xlu1 %v4296_v55, %s9822_s27 }
 0x61c   : > { %4357 = vrot.lane.b32.xlu0 %v4294_v61, %s9822_s27  ;;  %v16871_v61 = vld [vmem:[#allocation16_spill] sm:$0xff] }
 0x61d   : > { %v4298_v28 = vpop.permute.xlu1 %4297  ;;  %v4300_v30 = vpop.permute.xlu0 %4299 }
 0x61e   : > { %v13508_v11 = vsel %vm910_vm2, %v4394_v6, %v4298_v28  ;;  %v13511_v31 = vsel %vm910_vm2, %v4395_v52, %v4300_v30 }
 0x61f   : > { %v9666_v15 = vpack.i.bf16 %v13511_v31, %v13508_v11 }
 0x620   : > { %9662 = vrot.lane.b32.xlu0 %v9661_v47, %s9826_s22 }
 0x621   : > { %v4130_v0 = vpop.permute.xlu1 %4129  ;;  %9667 = vrot.lane.b32.xlu1 %v9666_v15, %s9826_s22  ;;  %v4132_v48 = vpop.permute.xlu0 %4131 }
 0x622   : > { %v4399_v1 = vsel %vm4393_vm4, %v12804_v38, %v4132_v48  ;;  %v4398_v21 = vsel %vm4393_vm4, %v12816_v36, %v4130_v0 }
 0x624   : > { %4586 = vrot.lane.b32.xlu0 %v13508_v11, %s9822_s27 }
 0x625   : > { %v4308_v41 = vpop.permute.xlu1 %4307  ;;  %4588 = vrot.lane.b32.xlu1 %v13511_v31, %s9822_s27  ;;  %v4306_v19 = vpop.permute.xlu0 %4305 }
 0x626   : > { %v13526_v57 = vsel %vm910_vm2, %v4399_v1, %v4308_v41  ;;  %v13531_v20 = vsel %vm910_vm2, %v4398_v21, %v4306_v19 }
 0x627   : > { %v9671_v38 = vpack.i.bf16 %v13526_v57, %v13531_v20 }
 0x629   : > { %v4134_v37 = vpop.permute.xlu1 %4133  ;;  %4592 = vrot.lane.b32.xlu1 %v13526_v57, %s9822_s27  ;;  %v4136_v63 = vpop.permute.xlu0 %4135  ;;  %9672 = vrot.lane.b32.xlu0 %v9671_v38, %s9826_s22 }
 0x62a   : > { %v4401_v29 = vsel %vm4393_vm4, %v12823_v60, %v4136_v63  ;;  %v4400_v34 = vsel %vm4393_vm4, %v12862_v10, %v4134_v37 }
 0x62d   : > { %v4312_v18 = vpop.permute.xlu1 %4311  ;;  %v4310_v2 = vpop.permute.xlu0 %4309  ;;  %4590 = vrot.lane.b32.xlu0 %v13531_v20, %s9822_s27 }
 0x62e   : > { %v13541_v36 = vsel %vm910_vm2, %v4401_v29, %v4312_v18  ;;  %v13548_v5 = vsel %vm910_vm2, %v4400_v34, %v4310_v2  ;;  %v16872_v34 = vld [vmem:[#allocation7_spill] sm:$0xff] }
 0x62f   : > { %v9676_v42 = vpack.i.bf16 %v13541_v36, %v13548_v5 }
 0x631   : > { %v4138_v49 = vpop.permute.xlu1 %4137  ;;  %9677 = vrot.lane.b32.xlu1 %v9676_v42, %s9826_s22  ;;  %v4140_v60 = vpop.permute.xlu0 %4139  ;;  %4594 = vrot.lane.b32.xlu0 %v13548_v5, %s9822_s27 }
 0x632   : > { %v4403_v10 = vsel %vm4393_vm4, %v16868_v51, %v4140_v60  ;;  %v4402_v32 = vsel %vm4393_vm4, %v16869_v8, %v4138_v49 }
 0x635   : > { %v4316_v17 = vpop.permute.xlu1 %4315  ;;  %4596 = vrot.lane.b32.xlu1 %v13541_v36, %s9822_s27 }
 0x636   : > { %v13558_v22 = vsel %vm910_vm2, %v4403_v10, %v4316_v17  ;;  %v4314_v59 = vpop.permute.xlu0 %4313 }
 0x637   : > { %v13565_v27 = vsel %vm910_vm2, %v4402_v32, %v4314_v59 }
 0x638   : > { %v9681_v39 = vpack.i.bf16 %v13558_v22, %v13565_v27 }
 0x639   : > { %v4142_v3 = vpop.permute.xlu1 %4141  ;;  %4600 = vrot.lane.b32.xlu1 %v13558_v22, %s9822_s27 }
 0x63a   : > { %v4144_v16 = vpop.permute.xlu0 %4143  ;;  %9682 = vrot.lane.b32.xlu0 %v9681_v39, %s9826_s22  ;;  %v4404_v28 = vsel %vm4393_vm4, %v16871_v61, %v4142_v3 }
 0x63b   : > { %v4405_v58 = vsel %vm4393_vm4, %v16870_v7, %v4144_v16 }
 0x63d   : > { %v4320_v55 = vpop.permute.xlu1 %4319 }
 0x63e   : > { %v13575_v6 = vsel %vm910_vm2, %v4405_v58, %v4320_v55  ;;  %v4318_v52 = vpop.permute.xlu0 %4317  ;;  %4598 = vrot.lane.b32.xlu0 %v13565_v27, %s9822_s27 }
 0x63f   : > { %v13582_v30 = vsel %vm910_vm2, %v4404_v28, %v4318_v52 }
 0x640   : > { %v9686_v15 = vpack.i.bf16 %v13575_v6, %v13582_v30 }
 0x641   : > { %v4146_v47 = vpop.permute.xlu1 %4145 }
 0x642   : > { %9687 = vrot.lane.b32.xlu1 %v9686_v15, %s9826_s22  ;;  %v4148_v0 = vpop.permute.xlu0 %4147  ;;  %4602 = vrot.lane.b32.xlu0 %v13582_v30, %s9822_s27  ;;  %v4406_v21 = vsel %vm4393_vm4, %v13069_v25, %v4146_v47 }
 0x643   : > { %v4407_v48 = vsel %vm4393_vm4, %v12903_v54, %v4148_v0 }
 0x645   : > { %v4324_v1 = vpop.permute.xlu1 %4323 }
 0x646   : > { %v13592_v41 = vsel %vm910_vm2, %v4407_v48, %v4324_v1  ;;  %4604 = vrot.lane.b32.xlu1 %v13575_v6, %s9822_s27  ;;  %v4322_v19 = vpop.permute.xlu0 %4321 }
 0x647   : > { %v13599_v38 = vsel %vm910_vm2, %v4406_v21, %v4322_v19 }
 0x648   : > { %v9691_v37 = vpack.i.bf16 %v13592_v41, %v13599_v38 }
 0x649   : > { %v4150_v63 = vpop.permute.xlu1 %4149 }
 0x64a   : > { %4608 = vrot.lane.b32.xlu1 %v13592_v41, %s9822_s27  ;;  %v4152_v54 = vpop.permute.xlu0 %4151  ;;  %9692 = vrot.lane.b32.xlu0 %v9691_v37, %s9826_s22  ;;  %v4408_v2 = vsel %vm4393_vm4, %v16872_v34, %v4150_v63 }
 0x64b   : > { %v4409_v25 = vsel %vm4393_vm4, %v12927_v26, %v4152_v54 }
 0x64d   : > { %v4328_v29 = vpop.permute.xlu1 %4327 }
 0x64e   : > { %v13609_v18 = vsel %vm910_vm2, %v4409_v25, %v4328_v29  ;;  %v4326_v42 = vpop.permute.xlu0 %4325  ;;  %4606 = vrot.lane.b32.xlu0 %v13599_v38, %s9822_s27 }
 0x64f   : > { %v13616_v49 = vsel %vm910_vm2, %v4408_v2, %v4326_v42 }
 0x650   : > { %v9696_v60 = vpack.i.bf16 %v13609_v18, %v13616_v49 }
 0x651   : > { %v4154_v51 = vpop.permute.xlu1 %4153 }
 0x652   : > { %9697 = vrot.lane.b32.xlu1 %v9696_v60, %s9826_s22  ;;  %v4156_v26 = vpop.permute.xlu0 %4155  ;;  %4610 = vrot.lane.b32.xlu0 %v13616_v49, %s9822_s27  ;;  %v4410_v32 = vsel %vm4393_vm4, %v13211_v13, %v4154_v51 }
 0x653   : > { %v4411_v10 = vsel %vm4393_vm4, %v12970_v23, %v4156_v26 }
 0x655   : > { %v4332_v17 = vpop.permute.xlu1 %4331 }
 0x656   : > { %v13626_v8 = vsel %vm910_vm2, %v4411_v10, %v4332_v17  ;;  %4612 = vrot.lane.b32.xlu1 %v13609_v18, %s9822_s27  ;;  %v4330_v59 = vpop.permute.xlu0 %4329 }
 0x657   : > { %v13633_v39 = vsel %vm910_vm2, %v4410_v32, %v4330_v59 }
 0x658   : > { %v9701_v3 = vpack.i.bf16 %v13626_v8, %v13633_v39 }
 0x659   : > { %v4158_v16 = vpop.permute.xlu1 %4157 }
 0x65a   : > { %4616 = vrot.lane.b32.xlu1 %v13626_v8, %s9822_s27  ;;  %v4160_v23 = vpop.permute.xlu0 %4159  ;;  %9702 = vrot.lane.b32.xlu0 %v9701_v3, %s9826_s22  ;;  %v4412_v55 = vsel %vm4393_vm4, %v13252_v14, %v4158_v16 }
 0x65b   : > { %v4413_v13 = vsel %vm4393_vm4, %v12999_v35, %v4160_v23 }
 0x65d   : > { %v4336_v7 = vpop.permute.xlu1 %4335 }
 0x65e   : > { %v13643_v58 = vsel %vm910_vm2, %v4413_v13, %v4336_v7  ;;  %v4334_v61 = vpop.permute.xlu0 %4333  ;;  %4614 = vrot.lane.b32.xlu0 %v13633_v39, %s9822_s27 }
 0x65f   : > { %v13650_v28 = vsel %vm910_vm2, %v4412_v55, %v4334_v61 }
 0x660   : > { %v9706_v52 = vpack.i.bf16 %v13643_v58, %v13650_v28 }
 0x661   : > { %v4162_v15 = vpop.permute.xlu1 %4161 }
 0x662   : > { %9707 = vrot.lane.b32.xlu1 %v9706_v52, %s9826_s22  ;;  %v4164_v35 = vpop.permute.xlu0 %4163  ;;  %4618 = vrot.lane.b32.xlu0 %v13650_v28, %s9822_s27  ;;  %v4414_v48 = vsel %vm4393_vm4, %v13286_v56, %v4162_v15 }
 0x663   : > { %v4415_v14 = vsel %vm4393_vm4, %v13045_v24, %v4164_v35 }
 0x665   : > { %v4340_v47 = vpop.permute.xlu1 %4339 }
 0x666   : > { %v13660_v0 = vsel %vm910_vm2, %v4415_v14, %v4340_v47  ;;  %4620 = vrot.lane.b32.xlu1 %v13643_v58, %s9822_s27  ;;  %v4338_v1 = vpop.permute.xlu0 %4337 }
 0x667   : > { %v13667_v21 = vsel %vm910_vm2, %v4414_v48, %v4338_v1 }
 0x668   : > { %v9711_v19 = vpack.i.bf16 %v13660_v0, %v13667_v21 }
 0x669   : > { %v4166_v37 = vpop.permute.xlu1 %4165 }
 0x66a   : > { %4624 = vrot.lane.b32.xlu1 %v13660_v0, %s9822_s27  ;;  %v4168_v24 = vpop.permute.xlu0 %4167  ;;  %9712 = vrot.lane.b32.xlu0 %v9711_v19, %s9826_s22  ;;  %v4416_v25 = vsel %vm4393_vm4, %v13320_v50, %v4166_v37 }
 0x66b   : > { %v4417_v56 = vsel %vm4393_vm4, %v13074_v44, %v4168_v24 }
 0x66d   : > { %v4344_v63 = vpop.permute.xlu1 %4343 }
 0x66e   : > { %v13677_v54 = vsel %vm910_vm2, %v4417_v56, %v4344_v63  ;;  %v4342_v29 = vpop.permute.xlu0 %4341  ;;  %4622 = vrot.lane.b32.xlu0 %v13667_v21, %s9822_s27 }
 0x66f   : > { %v13684_v34 = vsel %vm910_vm2, %v4416_v25, %v4342_v29 }
 0x670   : > { %v9716_v2 = vpack.i.bf16 %v13677_v54, %v13684_v34 }
 0x671   : > { %v4170_v42 = vpop.permute.xlu1 %4169 }
 0x672   : > { %9717 = vrot.lane.b32.xlu1 %v9716_v2, %s9826_s22  ;;  %v4172_v44 = vpop.permute.xlu0 %4171  ;;  %4626 = vrot.lane.b32.xlu0 %v13684_v34, %s9822_s27  ;;  %v4418_v26 = vsel %vm4393_vm4, %v13353_v4, %v4170_v42 }
 0x673   : > { %v4419_v50 = vsel %vm4393_vm4, %v13116_v53, %v4172_v44 }
 0x675   : > { %v4348_v60 = vpop.permute.xlu1 %4347 }
 0x676   : > { %v13694_v51 = vsel %vm910_vm2, %v4419_v50, %v4348_v60  ;;  %4628 = vrot.lane.b32.xlu1 %v13677_v54, %s9822_s27  ;;  %v4346_v10 = vpop.permute.xlu0 %4345 }
 0x677   : > { %v13701_v17 = vsel %vm910_vm2, %v4418_v26, %v4346_v10 }
 0x678   : > { %v9721_v32 = vpack.i.bf16 %v13694_v51, %v13701_v17 }
 0x679   : > { %v4174_v59 = vpop.permute.xlu1 %4173 }
 0x67a   : > { %4632 = vrot.lane.b32.xlu1 %v13694_v51, %s9822_s27  ;;  %v4176_v53 = vpop.permute.xlu0 %4175  ;;  %9722 = vrot.lane.b32.xlu0 %v9721_v32, %s9826_s22  ;;  %v4420_v23 = vsel %vm4393_vm4, %v13390_v62, %v4174_v59 }
 0x67b   : > { %v4421_v4 = vsel %vm4393_vm4, %v13150_v12, %v4176_v53 }
 0x67d   : > { %v4352_v3 = vpop.permute.xlu1 %4351 }
 0x67e   : > { %v13711_v16 = vsel %vm910_vm2, %v4421_v4, %v4352_v3  ;;  %v4350_v13 = vpop.permute.xlu0 %4349  ;;  %4630 = vrot.lane.b32.xlu0 %v13701_v17, %s9822_s27 }
 0x67f   : > { %v13718_v7 = vsel %vm910_vm2, %v4420_v23, %v4350_v13 }
 0x680   : > { %v9726_v55 = vpack.i.bf16 %v13711_v16, %v13718_v7 }
 0x681   : > { %v4178_v61 = vpop.permute.xlu1 %4177 }
 0x682   : > { %9727 = vrot.lane.b32.xlu1 %v9726_v55, %s9826_s22  ;;  %v4180_v12 = vpop.permute.xlu0 %4179  ;;  %4634 = vrot.lane.b32.xlu0 %v13718_v7, %s9822_s27  ;;  %v4422_v35 = vsel %vm4393_vm4, %v13421_v40, %v4178_v61 }
 0x683   : > { %v4423_v62 = vsel %vm4393_vm4, %v13189_v45, %v4180_v12 }
 0x685   : > { %v4356_v52 = vpop.permute.xlu1 %4355 }
 0x686   : > { %v13728_v15 = vsel %vm910_vm2, %v4423_v62, %v4356_v52  ;;  %4636 = vrot.lane.b32.xlu1 %v13711_v16, %s9822_s27  ;;  %v4354_v14 = vpop.permute.xlu0 %4353 }
 0x687   : > { %v13735_v47 = vsel %vm910_vm2, %v4422_v35, %v4354_v14 }
 0x688   : > { %v9731_v48 = vpack.i.bf16 %v13728_v15, %v13735_v47 }
 0x689   : > { %v4182_v1 = vpop.permute.xlu1 %4181 }
 0x68a   : > { %4640 = vrot.lane.b32.xlu1 %v13728_v15, %s9822_s27  ;;  %v4184_v45 = vpop.permute.xlu0 %4183  ;;  %9732 = vrot.lane.b32.xlu0 %v9731_v48, %s9826_s22  ;;  %v4424_v24 = vsel %vm4393_vm4, %v13457_v9, %v4182_v1 }
 0x68b   : > { %v4425_v40 = vsel %vm4393_vm4, %v13216_v46, %v4184_v45 }
 0x68d   : > { %v4360_v19 = vpop.permute.xlu1 %4359 }
 0x68e   : > { %v4457_v37 = vsel %vm910_vm2, %v4425_v40, %v4360_v19  ;;  %v4358_v56 = vpop.permute.xlu0 %4357  ;;  %4638 = vrot.lane.b32.xlu0 %v13735_v47, %s9822_s27 }
 0x68f   : > { %v4456_v63 = vsel %vm910_vm2, %v4424_v24, %v4358_v56 }
 0x690   : > { %v9736_v25 = vpack.i.bf16 %v4457_v37, %v4456_v63 }
 0x692   : > { %9737 = vrot.lane.b32.xlu1 %v9736_v25, %s9826_s22  ;;  %4642 = vrot.lane.b32.xlu0 %v4456_v63, %s9822_s27  ;;  %v9663_v29 = vpop.permute.xlu0 %9662  ;;  %s325_s22 = sand.u32 1, %s9812_s12  }
 0x693   : > { %v9668_v2 = vpop.permute.xlu1 %9667  ;;  %v9664_v46 = vunpack.i.l.bf16 %v9663_v29  ;;  %v9665_v42 = vunpack.i.h.bf16 %v9663_v29  ;;  %s16460_s8 = scalar_lea.sflag [#allocation4], %s325_s22 }
 0x694   : > { %v9669_v59 = vunpack.i.l.bf16 %v9668_v2  ;;  %v9670_v3 = vunpack.i.h.bf16 %v9668_v2 }
 0x695   : > { %v4677_v26 = vsel %vm4676_vm5, %v13508_v11, %v9664_v46  ;;  %v4678_v32 = vsel %vm4676_vm5, %v13511_v31, %v9665_v42 }
 0x696   : > { %4644 = vrot.lane.b32.xlu1 %v4457_v37, %s9822_s27  ;;  %v4587_v44 = vpop.permute.xlu0 %4586  ;;  %v4679_v13 = vsel %vm4676_vm5, %v13499_v43, %v9669_v59  ;;  %v4680_v52 = vsel %vm4676_vm5, %v13502_v33, %v9670_v3  ;;  %s8659_s27 = sshll.u32 %s325_s22, 4 }
 0x697   : > { %v4589_v9 = vpop.permute.xlu1 %4588  ;;  %9022 = vmatprep.mubr.msk.f32.mxu1 %vm4393_vm4, %v4587_v44  ;;  %v4709_v50 = vsel %vm910_vm2, %v9664_v46, %v4587_v44  ;;  %s16412_s30 = scalar_lea.vmem [#allocation3], %s8659_s27 }
 0x698   : > { %v4710_v60 = vsel %vm910_vm2, %v9665_v42, %v4589_v9  ;;  %4908 = vmatprep.mubr.f32.mxu0 %v4709_v50  ;;  %9023 = vmatmul.mubr.msk.f32.vlgmr.msra.gmra.mxu1 %vm4393_vm4, %v4589_v9  ;;  %s8593_s15 = sshll.u32 %s16412_s30, 4  ;;  %s16451_s15 = int_to_ptr.vmem [resolvable:$true] %s8593_s15 }
 0x699   : > { %4909 = vmatmul.mubr.f32.vlgmr.msra.gmra.mxu0 %v4677_v26  ;;  %s9760_s24 = scalar_lea.vmem %s16451_s15, 256  ;;  %p9767_p0 = scmp.lt.s32.totalorder %s16451_s15, %s9765_s26 }
 0x69a   : > { %4913 = vmatprep.mubr.f32.mxu0 %v4710_v60  ;;  %p9761_p11 = scmp.ne.s32.totalorder %s16451_s15, %s9760_s24  ;;  %p9768_p1 = scmp.lt.s32.totalorder %s9766_s28, %s9760_s24 }
 0x69b   : > { %v9673_v10 = vpop.permute.xlu0 %9672  ;;  %v4593_v53 = vpop.permute.xlu1 %4592 }
 0x69c   : > { %v4712_v55 = vsel %vm910_vm2, %v9670_v3, %v4593_v53  ;;  %v9674_v62 = vunpack.i.l.bf16 %v9673_v10  ;;  %v9675_v48 = vunpack.i.h.bf16 %v9673_v10  ;;  %p9762_p12 = pnand %p9761_p11, %p9921_p5  ;;  %p9769_p2 = por %p9768_p1, %p9767_p0 }
 0x69d   : > { %4914 = vmatmul.mubr.f32.gmra.mxu0 %v4678_v32 }
 0x69e   : > { %v4681_v43 = vsel %vm4676_vm5, %v13508_v11, %v9674_v62  ;;  %v4682_v33 = vsel %vm4676_vm5, %v13511_v31, %v9675_v48  ;;  %p9763_p13 = pneg %p9762_p12 }
 0x69f   : > { %v4591_v4 = vpop.permute.xlu0 %4590 }
 0x6a0   : > { %9025 = vmatprep.mubr.msk.f32.mxu1 %vm4393_vm4, %v4591_v4  ;;  %v4711_v23 = vsel %vm910_vm2, %v9669_v59, %v4591_v4  ;;  %p9770_p3 = pnand %p9769_p2, %p9763_p13 }
 0x6a1   : > { %4918 = vmatprep.mubr.f32.mxu0 %v4711_v23  ;;  %9026 = vmatmul.mubr.msk.f32.gmra.mxu1 %vm4393_vm4, %v4593_v53 }
 0x6a2   : > { %4919 = vmatmul.mubr.f32.gmra.mxu0 %v4679_v13 }
 0x6a3   : > { %v9678_v61 = vpop.permute.xlu1 %9677  ;;  %v4595_v12 = vpop.permute.xlu0 %4594  ;;  %4923 = vmatprep.mubr.f32.mxu0 %v4712_v55 }
 0x6a4   : > { %9028 = vmatprep.mubr.msk.f32.mxu1 %vm4393_vm4, %v4595_v12  ;;  %v4713_v35 = vsel %vm910_vm2, %v9674_v62, %v4595_v12  ;;  %v9679_v40 = vunpack.i.l.bf16 %v9678_v61  ;;  %v9680_v24 = vunpack.i.h.bf16 %v9678_v61 }
 0x6a6   : > { %4924 = vmatmul.mubr.f32.gmra.mxu0 %v4680_v52  ;;  %v4683_v11 = vsel %vm4676_vm5, %v13531_v20, %v9679_v40  ;;  %v4684_v2 = vsel %vm4676_vm5, %v13526_v57, %v9680_v24 }
 0x6a7   : > { %v4597_v14 = vpop.permute.xlu1 %4596  ;;  %4928 = vmatprep.mubr.f32.mxu0 %v4713_v35 }
 0x6a8   : > { %9029 = vmatmul.mubr.msk.f32.gmra.mxu1 %vm4393_vm4, %v4597_v14  ;;  %v4714_v1 = vsel %vm910_vm2, %v9675_v48, %v4597_v14 }
 0x6aa   : > { %4929 = vmatmul.mubr.f32.gmra.mxu0 %v4681_v43 }
 0x6ab   : > { %4933 = vmatprep.mubr.f32.mxu0 %v4714_v1  ;;  %v4601_v19 = vpop.permute.xlu1 %4600 }
 0x6ac   : > { %v9683_v45 = vpop.permute.xlu0 %9682  ;;  %v4716_v63 = vsel %vm910_vm2, %v9680_v24, %v4601_v19 }
 0x6ad   : > { %v9684_v31 = vunpack.i.l.bf16 %v9683_v45  ;;  %v9685_v44 = vunpack.i.h.bf16 %v9683_v45 }
 0x6ae   : > { %4934 = vmatmul.mubr.f32.gmra.mxu0 %v4682_v33 }
 0x6af   : > { %v4685_v20 = vsel %vm4676_vm5, %v13548_v5, %v9684_v31  ;;  %v4686_v57 = vsel %vm4676_vm5, %v13541_v36, %v9685_v44 }
 0x6b0   : > { %v4599_v37 = vpop.permute.xlu0 %4598 }
 0x6b1   : > { %9031 = vmatprep.mubr.msk.f32.mxu1 %vm4393_vm4, %v4599_v37  ;;  %v4715_v56 = vsel %vm910_vm2, %v9679_v40, %v4599_v37 }
 0x6b2   : > { %4938 = vmatprep.mubr.f32.mxu0 %v4715_v56  ;;  %9032 = vmatmul.mubr.msk.f32.gmra.mxu1 %vm4393_vm4, %v4601_v19 }
 0x6b3   : > { %4939 = vmatmul.mubr.f32.gmra.mxu0 %v4683_v11 }
 0x6b4   : > { %v9688_v25 = vpop.permute.xlu1 %9687  ;;  %v4603_v29 = vpop.permute.xlu0 %4602  ;;  %4943 = vmatprep.mubr.f32.mxu0 %v4716_v63 }
 0x6b5   : > { %9034 = vmatprep.mubr.msk.f32.mxu1 %vm4393_vm4, %v4603_v29  ;;  %v4717_v46 = vsel %vm910_vm2, %v9684_v31, %v4603_v29  ;;  %v9689_v60 = vunpack.i.l.bf16 %v9688_v25  ;;  %v9690_v32 = vunpack.i.h.bf16 %v9688_v25 }
 0x6b7   : > { %4944 = vmatmul.mubr.f32.gmra.mxu0 %v4684_v2  ;;  %v4687_v5 = vsel %vm4676_vm5, %v13565_v27, %v9689_v60  ;;  %v4688_v23 = vsel %vm4676_vm5, %v13558_v22, %v9690_v32 }
 0x6b8   : > { %v4605_v42 = vpop.permute.xlu1 %4604  ;;  %4948 = vmatprep.mubr.f32.mxu0 %v4717_v46 }
 0x6b9   : > { %9035 = vmatmul.mubr.msk.f32.gmra.mxu1 %vm4393_vm4, %v4605_v42  ;;  %v4718_v9 = vsel %vm910_vm2, %v9685_v44, %v4605_v42 }
 0x6bb   : > { %4949 = vmatmul.mubr.f32.gmra.mxu0 %v4685_v20 }
 0x6bc   : > { %v9693_v50 = vpop.permute.xlu0 %9692  ;;  %4953 = vmatprep.mubr.f32.mxu0 %v4718_v9  ;;  %v4609_v26 = vpop.permute.xlu1 %4608 }
 0x6bd   : > { %v4720_v53 = vsel %vm910_vm2, %v9690_v32, %v4609_v26  ;;  %v9694_v36 = vunpack.i.l.bf16 %v9693_v50  ;;  %v9695_v61 = vunpack.i.h.bf16 %v9693_v50 }
 0x6bf   : > { %4954 = vmatmul.mubr.f32.gmra.mxu0 %v4686_v57  ;;  %v4689_v27 = vsel %vm4676_vm5, %v13582_v30, %v9694_v36  ;;  %v4690_v22 = vsel %vm4676_vm5, %v13575_v6, %v9695_v61 }
 0x6c0   : > { %v4607_v10 = vpop.permute.xlu0 %4606 }
 0x6c1   : > { %9037 = vmatprep.mubr.msk.f32.mxu1 %vm4393_vm4, %v4607_v10  ;;  %v4719_v59 = vsel %vm910_vm2, %v9689_v60, %v4607_v10 }
 0x6c2   : > { %4958 = vmatprep.mubr.f32.mxu0 %v4719_v59  ;;  %9038 = vmatmul.mubr.msk.f32.gmra.mxu1 %vm4393_vm4, %v4609_v26 }
 0x6c3   : > { %4959 = vmatmul.mubr.f32.gmra.mxu0 %v4687_v5 }
 0x6c4   : > { %v9698_v4 = vpop.permute.xlu1 %9697  ;;  %v4611_v3 = vpop.permute.xlu0 %4610  ;;  %4963 = vmatprep.mubr.f32.mxu0 %v4720_v53 }
 0x6c5   : > { %9040 = vmatprep.mubr.msk.f32.mxu1 %vm4393_vm4, %v4611_v3  ;;  %v4721_v13 = vsel %vm910_vm2, %v9694_v36, %v4611_v3  ;;  %v9699_v52 = vunpack.i.l.bf16 %v9698_v4  ;;  %v9700_v48 = vunpack.i.h.bf16 %v9698_v4 }
 0x6c7   : > { %4964 = vmatmul.mubr.f32.gmra.mxu0 %v4688_v23  ;;  %v4691_v30 = vsel %vm4676_vm5, %v13599_v38, %v9699_v52  ;;  %v4692_v33 = vsel %vm4676_vm5, %v13592_v41, %v9700_v48 }
 0x6c8   : > { %v4613_v55 = vpop.permute.xlu1 %4612  ;;  %4968 = vmatprep.mubr.f32.mxu0 %v4721_v13 }
 0x6c9   : > { %9041 = vmatmul.mubr.msk.f32.gmra.mxu1 %vm4393_vm4, %v4613_v55  ;;  %v4722_v12 = vsel %vm910_vm2, %v9695_v61, %v4613_v55 }
 0x6cb   : > { %4969 = vmatmul.mubr.f32.gmra.mxu0 %v4689_v27 }
 0x6cc   : > { %v9703_v62 = vpop.permute.xlu0 %9702  ;;  %4973 = vmatprep.mubr.f32.mxu0 %v4722_v12  ;;  %v4617_v35 = vpop.permute.xlu1 %4616 }
 0x6cd   : > { %v4724_v1 = vsel %vm910_vm2, %v9700_v48, %v4617_v35  ;;  %v9704_v6 = vunpack.i.l.bf16 %v9703_v62  ;;  %v9705_v24 = vunpack.i.h.bf16 %v9703_v62 }
 0x6cf   : > { %4974 = vmatmul.mubr.f32.gmra.mxu0 %v4690_v22  ;;  %v4693_v38 = vsel %vm4676_vm5, %v13616_v49, %v9704_v6  ;;  %v4694_v41 = vsel %vm4676_vm5, %v13609_v18, %v9705_v24 }
 0x6d0   : > { %v4615_v14 = vpop.permute.xlu0 %4614 }
 0x6d1   : > { %9043 = vmatprep.mubr.msk.f32.mxu1 %vm4393_vm4, %v4615_v14  ;;  %v4723_v43 = vsel %vm910_vm2, %v9699_v52, %v4615_v14 }
 0x6d2   : > { %4978 = vmatprep.mubr.f32.mxu0 %v4723_v43  ;;  %9044 = vmatmul.mubr.msk.f32.gmra.mxu1 %vm4393_vm4, %v4617_v35 }
 0x6d3   : > { %4979 = vmatmul.mubr.f32.gmra.mxu0 %v4691_v30 }
 0x6d4   : > { %v9708_v45 = vpop.permute.xlu1 %9707  ;;  %v4619_v40 = vpop.permute.xlu0 %4618  ;;  %4983 = vmatprep.mubr.f32.mxu0 %v4724_v1 }
 0x6d5   : > { %9046 = vmatprep.mubr.msk.f32.mxu1 %vm4393_vm4, %v4619_v40  ;;  %v4725_v19 = vsel %vm910_vm2, %v9704_v6, %v4619_v40  ;;  %v9709_v63 = vunpack.i.l.bf16 %v9708_v45  ;;  %v9710_v31 = vunpack.i.h.bf16 %v9708_v45 }
 0x6d7   : > { %4984 = vmatmul.mubr.f32.gmra.mxu0 %v4692_v33  ;;  %v4695_v49 = vsel %vm4676_vm5, %v13633_v39, %v9709_v63  ;;  %v4696_v20 = vsel %vm4676_vm5, %v13626_v8, %v9710_v31 }
 0x6d8   : > { %v4621_v37 = vpop.permute.xlu1 %4620  ;;  %4988 = vmatprep.mubr.f32.mxu0 %v4725_v19 }
 0x6d9   : > { %9047 = vmatmul.mubr.msk.f32.gmra.mxu1 %vm4393_vm4, %v4621_v37  ;;  %v4726_v56 = vsel %vm910_vm2, %v9705_v24, %v4621_v37 }
 0x6db   : > { %4989 = vmatmul.mubr.f32.gmra.mxu0 %v4693_v38 }
 0x6dc   : > { %v9713_v11 = vpop.permute.xlu0 %9712  ;;  %4993 = vmatprep.mubr.f32.mxu0 %v4726_v56  ;;  %v4625_v25 = vpop.permute.xlu1 %4624 }
 0x6dd   : > { %v4728_v46 = vsel %vm910_vm2, %v9710_v31, %v4625_v25  ;;  %v9714_v18 = vunpack.i.l.bf16 %v9713_v11  ;;  %v9715_v60 = vunpack.i.h.bf16 %v9713_v11  ;;  %v16636_v11 = vlaneseq }
 0x6df   : > { %4994 = vmatmul.mubr.f32.gmra.mxu0 %v4694_v41  ;;  %v4697_v39 = vsel %vm4676_vm5, %v13650_v28, %v9714_v18  ;;  %v4698_v8 = vsel %vm4676_vm5, %v13643_v58, %v9715_v60 }
 0x6e0   : > { %v4623_v29 = vpop.permute.xlu0 %4622 }
 0x6e1   : > { %9049 = vmatprep.mubr.msk.f32.mxu1 %vm4393_vm4, %v4623_v29  ;;  %v4727_v2 = vsel %vm910_vm2, %v9709_v63, %v4623_v29  ;;  %v13887_v63 = vshrl.u32 %v16636_v11, 7 }
 0x6e2   : > { %4998 = vmatprep.mubr.f32.mxu0 %v4727_v2  ;;  %9050 = vmatmul.mubr.msk.f32.gmra.mxu1 %vm4393_vm4, %v4625_v25 }
 0x6e3   : > { %4999 = vmatmul.mubr.f32.gmra.mxu0 %v4695_v49  ;;  %16873 = vst [vmem:[#allocation17_spill] sm:$0xff] %v13887_v63  ;;  %v5720_v2 = vsub.s32 1, %v13887_v63 }
 0x6e4   : > { %v9718_v42 = vpop.permute.xlu1 %9717  ;;  %v4627_v44 = vpop.permute.xlu0 %4626  ;;  %5003 = vmatprep.mubr.f32.mxu0 %v4728_v46  ;;  %v13895_v46 = vld [vmem:[%s16507_s7] sm:$0xff] }
 0x6e5   : > { %9052 = vmatprep.mubr.msk.f32.mxu1 %vm4393_vm4, %v4627_v44  ;;  %v4729_v9 = vsel %vm910_vm2, %v9714_v18, %v4627_v44  ;;  %v9719_v10 = vunpack.i.l.bf16 %v9718_v42  ;;  %v9720_v5 = vunpack.i.h.bf16 %v9718_v42  ;;  %v6086_v44 = vsub.s32 2, %v13887_v63 }
 0x6e7   : > { %5004 = vmatmul.mubr.f32.gmra.mxu0 %v4696_v20  ;;  %v4699_v28 = vsel %vm4676_vm5, %v13667_v21, %v9719_v10  ;;  %v4700_v23 = vsel %vm4676_vm5, %v13660_v0, %v9720_v5 }
 0x6e8   : > { %v4629_v50 = vpop.permute.xlu1 %4628  ;;  %5008 = vmatprep.mubr.f32.mxu0 %v4729_v9 }
 0x6e9   : > { %9053 = vmatmul.mubr.msk.f32.gmra.mxu1 %vm4393_vm4, %v4629_v50  ;;  %v4730_v57 = vsel %vm910_vm2, %v9715_v60, %v4629_v50  ;;  %v13900_v50 = vrot.slane %v13895_v46, %v5720_v2 }
 0x6eb   : > { %5009 = vmatmul.mubr.f32.gmra.mxu0 %v4697_v39 }
 0x6ec   : > { %v9723_v26 = vpop.permute.xlu0 %9722  ;;  %5013 = vmatprep.mubr.f32.mxu0 %v4730_v57  ;;  %v4633_v32 = vpop.permute.xlu1 %4632 }
 0x6ed   : > { %v4732_v4 = vsel %vm910_vm2, %v9720_v5, %v4633_v32  ;;  %v9724_v58 = vunpack.i.l.bf16 %v9723_v26  ;;  %v9725_v61 = vunpack.i.h.bf16 %v9723_v26 }
 0x6ef   : > { %5014 = vmatmul.mubr.f32.gmra.mxu0 %v4698_v8  ;;  %v4701_v21 = vsel %vm4676_vm5, %v13684_v34, %v9724_v58  ;;  %v4702_v0 = vsel %vm4676_vm5, %v13677_v54, %v9725_v61  ;;  %v6452_v8 = vsub.s32 3, %v13887_v63 }
 0x6f0   : > { %v4631_v59 = vpop.permute.xlu0 %4630 }
 0x6f1   : > { %9055 = vmatprep.mubr.msk.f32.mxu1 %vm4393_vm4, %v4631_v59  ;;  %v4731_v53 = vsel %vm910_vm2, %v9719_v10, %v4631_v59  ;;  %v13906_v10 = vrot.slane %v13895_v46, %v6086_v44 }
 0x6f2   : > { %5018 = vmatprep.mubr.f32.mxu0 %v4731_v53  ;;  %9056 = vmatmul.mubr.msk.f32.gmra.mxu1 %vm4393_vm4, %v4633_v32 }
 0x6f3   : > { %5019 = vmatmul.mubr.f32.gmra.mxu0 %v4699_v28 }
 0x6f4   : > { %v9728_v3 = vpop.permute.xlu1 %9727  ;;  %v4635_v36 = vpop.permute.xlu0 %4634  ;;  %5023 = vmatprep.mubr.f32.mxu0 %v4732_v4 }
 0x6f5   : > { %9058 = vmatprep.mubr.msk.f32.mxu1 %vm4393_vm4, %v4635_v36  ;;  %v4733_v13 = vsel %vm910_vm2, %v9724_v58, %v4635_v36  ;;  %v9729_v62 = vunpack.i.l.bf16 %v9728_v3  ;;  %v9730_v35 = vunpack.i.h.bf16 %v9728_v3  ;;  %v6616_v36 = vsub.s32 4, %v13887_v63 }
 0x6f7   : > { %5024 = vmatmul.mubr.f32.gmra.mxu0 %v4700_v23  ;;  %v4703_v34 = vsel %vm4676_vm5, %v13701_v17, %v9729_v62  ;;  %v4704_v1 = vsel %vm4676_vm5, %v13694_v51, %v9730_v35 }
 0x6f8   : > { %v4637_v55 = vpop.permute.xlu1 %4636  ;;  %5028 = vmatprep.mubr.f32.mxu0 %v4733_v13 }
 0x6f9   : > { %9059 = vmatmul.mubr.msk.f32.gmra.mxu1 %vm4393_vm4, %v4637_v55  ;;  %v4734_v27 = vsel %vm910_vm2, %v9725_v61, %v4637_v55  ;;  %v13917_v61 = vrot.slane %v13895_v46, %v6452_v8 }
 0x6fb   : > { %5029 = vmatmul.mubr.f32.gmra.mxu0 %v4701_v21 }
 0x6fc   : > { %v9733_v12 = vpop.permute.xlu0 %9732  ;;  %5033 = vmatprep.mubr.f32.mxu0 %v4734_v27  ;;  %v4641_v52 = vpop.permute.xlu1 %4640 }
 0x6fd   : > { %v4736_v48 = vsel %vm910_vm2, %v9730_v35, %v4641_v52  ;;  %v9734_v54 = vunpack.i.l.bf16 %v9733_v12  ;;  %v9735_v6 = vunpack.i.h.bf16 %v9733_v12 }
 0x6ff   : > { %5034 = vmatmul.mubr.f32.gmra.mxu0 %v4702_v0  ;;  %v4705_v17 = vsel %vm4676_vm5, %v13718_v7, %v9734_v54  ;;  %v4706_v51 = vsel %vm4676_vm5, %v13711_v16, %v9735_v6  ;;  %v13884_v16 = vld [vmem:[%s16506_s6] ss:$0 sm:$0xff] }
 0x700   : > { %v4639_v22 = vpop.permute.xlu0 %4638 }
 0x701   : > { %9061 = vmatprep.mubr.msk.f32.mxu1 %vm4393_vm4, %v4639_v22  ;;  %v4735_v14 = vsel %vm910_vm2, %v9729_v62, %v4639_v22 }
 0x702   : > { %5038 = vmatprep.mubr.f32.mxu0 %v4735_v14  ;;  %9062 = vmatmul.mubr.msk.f32.gmra.mxu1 %vm4393_vm4, %v4641_v52 }
 0x703   : > { %5039 = vmatmul.mubr.f32.gmra.mxu0 %v4703_v34 }
 0x704   : > { %v9738_v43 = vpop.permute.xlu1 %9737  ;;  %v4643_v30 = vpop.permute.xlu0 %4642  ;;  %5043 = vmatprep.mubr.f32.mxu0 %v4736_v48 }
 0x705   : > { %9064 = vmatprep.mubr.msk.f32.mxu1 %vm4393_vm4, %v4643_v30  ;;  %v4737_v45 = vsel %vm910_vm2, %v9734_v54, %v4643_v30  ;;  %v9739_v33 = vunpack.i.l.bf16 %v9738_v43  ;;  %v9740_v37 = vunpack.i.h.bf16 %v9738_v43 }
 0x707   : > { %5044 = vmatmul.mubr.f32.gmra.mxu0 %v4704_v1  ;;  %v4739_v24 = vsel %vm910_vm2, %v9739_v33, %v4639_v22  ;;  %v4707_v38 = vsel %vm4676_vm5, %v13735_v47, %v9739_v33  ;;  %v4740_v7 = vsel %vm910_vm2, %v9740_v37, %v4641_v52  ;;  %v4708_v56 = vsel %vm4676_vm5, %v13728_v15, %v9740_v37 }
 0x708   : > { %v4645_v40 = vpop.permute.xlu1 %4644  ;;  %5048 = vmatprep.mubr.f32.mxu0 %v4737_v45  ;;  %v5565_v15 = vsub.s32 0, %v13887_v63 }
 0x709   : > { %9065 = vmatmul.mubr.msk.f32.gmra.mxu1 %vm4393_vm4, %v4645_v40  ;;  %v4738_v19 = vsel %vm910_vm2, %v9735_v6, %v4645_v40  ;;  %vm8566_vm2 = vcmask 1047559  }
 0x70a   : > { %9067 = vmatprep.mubr.msk.f32.mxu1 %vm4393_vm4, %v4639_v22  ;;  %v13903_v60 = vrot.slane %v13895_v46, %v5565_v15  ;;  %v7004_v22 = vsub.s32 5, %v13887_v63 }
 0x70b   : > { %5049 = vmatmul.mubr.f32.gmra.mxu0 %v4705_v17 }
 0x70c   : > { %5053 = vmatprep.mubr.f32.mxu0 %v4738_v19  ;;  %v13939_v45 = vrot.slane %v13895_v46, %v7004_v22 }
 0x70d   : > { %9068 = vmatmul.mubr.msk.f32.gmra.mxu1 %vm4393_vm4, %v4641_v52  ;;  %v13927_v52 = vrot.slane %v13895_v46, %v6616_v36 }
 0x70f   : > { %5054 = vmatmul.mubr.f32.gmra.mxu0 %v4706_v51 }
 0x710   : > { %5058 = vmatprep.mubr.f32.mxu0 %v4739_v24 }
 0x713   : > { %5059 = vmatmul.mubr.f32.gmra.mxu0 %v4707_v38 }
 0x714   : > { %5063 = vmatprep.mubr.f32.mxu0 %v4740_v7 }
 0x717   : > { %5064 = vmatmul.mubr.f32.gmra.mxu0 %v4708_v56 }
 0x758   : > { %v9024_v41 = vpop.f32.mrf.mxu1 }
 0x759   : > { %v4910_v25 = vpop.f32.mrf.mxu0 }
 0x75a   : > { %v4911_v47 = vadd.f32 %v13884_v16, %v4910_v25  ;;  %v5135_v29 = vpop.f32.mrf.mxu1 }
 0x75b   : > { %v4912_v31 = vpop.f32.mrf.mxu0 }
 0x75c   : > { %v5136_v49 = vadd.f32 %v5135_v29, %v4911_v47 }
 0x75d   : > { %v4915_v42 = vpop.f32.mrf.mxu0 }
 0x75e   : > { %v5294_v18 = vmax.f32 %v5136_v49, 0.0  ;;  %v4916_v20 = vadd.f32 %v13884_v16, %v4915_v42 }
 0x75f   : > { %v4917_v9 = vpop.f32.mrf.mxu0 }
 0x760   : > { %v5343_v39 = vrot.slane %v5294_v18, 1  ;;  %v5393_v57 = vrot.slane %v5294_v18, 7  ;;  %v5141_v26 = vadd.f32 %v9024_v41, %v4916_v20 }
 0x761   : > { %v13920_v27 = vpop.f32.mrf.mxu1 }
 0x762   : > { %v5519_v32 = vsel %vm429_vm0, %v5343_v39, %v5393_v57  ;;  %v5295_v59 = vmax.f32 %v5141_v26, 0.0  ;;  %v4920_v5 = vpop.f32.mrf.mxu0 }
 0x763   : > { %v5725_v53 = vmul.f32 %v13900_v50, %v5519_v32  ;;  %v5569_v28 = vmul.f32 %v13903_v60, %v5519_v32  ;;  %v6091_v55 = vmul.f32 %v13906_v10, %v5519_v32  ;;  %v6454_v43 = vmul.f32 %v13917_v61, %v5519_v32  ;;  %v5145_v54 = vpop.f32.mrf.mxu1 }
 0x764   : > { %v5394_v4 = vrot.slane %v5295_v59, 7  ;;  %v5487_v3 = vrot.slane %v5295_v59, 5  ;;  %v4922_v58 = vpop.f32.mrf.mxu0  ;;  %v4921_v30 = vadd.f32 %v13884_v16, %v4920_v5  ;;  %v6618_v51 = vmul.f32 %v13927_v52, %v5519_v32 }
 0x765   : > { %v5778_v23 = vsel %vm5767_vm6, %v5725_v53, 0.0  ;;  %v5604_v13 = vsel %vm5597_vm7, %v5569_v28, 0.0  ;;  %v6144_v34 = vsel %vm6133_vm8, %v6091_v55, 0.0  ;;  %v6486_v33 = vsel %vm5597_vm7, %v6454_v43, 0.0 }
 0x766   : > { %v5395_v21 = vsel %vm429_vm0, %v5393_v57, %v5394_v4  ;;  %5779 = vadd.xlane.f32.xlu0 %v5778_v23  ;;  %5605 = vadd.xlane.f32.xlu1 %v5604_v13  ;;  %v13923_v12 = vsel %vm429_vm0, %v5394_v4, %v5487_v3  ;;  %v4925_v62 = vpop.f32.mrf.mxu0  ;;  %v5146_v37 = vadd.f32 %v5145_v54, %v4921_v30  ;;  %v6666_v41 = vsel %vm5767_vm6, %v6618_v51, 0.0 }
 0x767   : > { %v5570_v0 = vmul.f32 %v13903_v60, %v5395_v21  ;;  %v5727_v48 = vmul.f32 %v13900_v50, %v13923_v12  ;;  %v6092_v19 = vmul.f32 %v13906_v10, %v5395_v21  ;;  %v6455_v25 = vmul.f32 %v13917_v61, %v5395_v21 }
 0x768   : > { %v4927_v35 = vpop.f32.mrf.mxu0  ;;  %v13941_v40 = vpop.f32.mrf.mxu1  ;;  %v7006_v47 = vmul.f32 %v13939_v45, %v5519_v32  ;;  %v5296_v29 = vmax.f32 %v5146_v37, 0.0  ;;  %v6619_v20 = vmul.f32 %v13927_v52, %v5395_v21  ;;  %v5726_v9 = vmul.f32 %v13900_v50, %v5395_v21 }
 0x769   : > { %v5607_v14 = vsel %vm5597_vm7, %v5570_v0, 0.0  ;;  %v5784_v17 = vsel %vm5774_vm9, %v5727_v48, 0.0  ;;  %v6147_v56 = vsel %vm5597_vm7, %v6092_v19, 0.0  ;;  %v6489_v44 = vsel %vm5597_vm7, %v6455_v25, 0.0 }
 0x76a   : > { %5608 = vadd.xlane.f32.xlu0 %v5607_v14  ;;  %6145 = vadd.xlane.f32.xlu1 %v6144_v34  ;;  %v13936_v1 = vpop.f32.mrf.mxu0  ;;  %v13949_v38 = vpop.f32.mrf.mxu1  ;;  %v7054_v18 = vsel %vm6133_vm8, %v7006_v47, 0.0  ;;  %v5342_v39 = vrot.slane %v5296_v29, 1  ;;  %v13960_v57 = vrot.slane %v5296_v29, 7  ;;  %v6669_v53 = vsel %vm5597_vm7, %v6619_v20, 0.0 }
 0x76b   : > { %v5781_v28 = vsel %vm5597_vm7, %v5726_v9, 0.0  ;;  %v7007_v4 = vmul.f32 %v13939_v45, %v5395_v21  ;;  %v6093_v3 = vmul.f32 %v13906_v10, %v13923_v12  ;;  %v4926_v58 = vadd.f32 %v13884_v16, %v4925_v62 }
 0x76c   : > { %v4932_v6 = vpop.f32.mrf.mxu0  ;;  %v13972_v36 = vsel %vm429_vm0, %v5342_v39, %v13960_v57  ;;  %v6620_v62 = vmul.f32 %v13927_v52, %v13923_v12 }
 0x76d   : > { %v7057_v14 = vsel %vm5597_vm7, %v7007_v4, 0.0  ;;  %v6150_v34 = vsel %vm6140_vm10, %v6093_v3, 0.0  ;;  %v6088_v48 = vmul.f32 %v13906_v10, %v13972_v36  ;;  %v5151_v43 = vadd.f32 %v13920_v27, %v4926_v58 }
 0x76e   : > { %5785 = vadd.xlane.f32.xlu0 %v5784_v17  ;;  %6487 = vadd.xlane.f32.xlu1 %v6486_v33  ;;  %v13947_v24 = vpop.f32.mrf.mxu0  ;;  %v6672_v51 = vsel %vm5774_vm9, %v6620_v62, 0.0  ;;  %v5567_v20 = vmul.f32 %v13903_v60, %v13972_v36  ;;  %v7392_v4 = vsub.s32 6, %v13887_v63 }
 0x76f   : > { %v6134_v37 = vsel %vm6133_vm8, %v6088_v48, 0.0 }
 0x770   : > { %v4937_v7 = vpop.f32.mrf.mxu0 }
 0x771   : > { %v7008_v7 = vmul.f32 %v13939_v45, %v13923_v12 }
 0x772   : > { %v9033_v31 = vpop.f32.mrf.mxu1  ;;  %6148 = vadd.xlane.f32.xlu0 %v6147_v56  ;;  %6667 = vadd.xlane.f32.xlu1 %v6666_v41  ;;  %v6621_v56 = vmul.f32 %v13927_v52, %v13972_v36  ;;  %v5297_v41 = vmax.f32 %v5151_v43, 0.0 }
 0x773   : > { %v4940_v2 = vpop.f32.mrf.mxu0  ;;  %v7060_v12 = vsel %vm6140_vm10, %v7008_v7, 0.0 }
 0x774   : > { %v4941_v15 = vadd.f32 %v13884_v16, %v4940_v2  ;;  %v5165_v49 = vpop.f32.mrf.mxu1  ;;  %v5391_v9 = vrot.slane %v5297_v41, 7 }
 0x775   : > { %v4942_v42 = vpop.f32.mrf.mxu0 }
 0x776   : > { %v13962_v26 = vadd.f32 %v5165_v49, %v4941_v15  ;;  %6490 = vadd.xlane.f32.xlu0 %v6489_v44  ;;  %7055 = vadd.xlane.f32.xlu1 %v7054_v18  ;;  %v6675_v44 = vsel %vm5767_vm6, %v6621_v56, 0.0  ;;  %v7009_v18 = vmul.f32 %v13939_v45, %v13972_v36 }
 0x777   : > { %v4945_v8 = vpop.f32.mrf.mxu0 }
 0x778   : > { %v4946_v32 = vadd.f32 %v13884_v16, %v4945_v8  ;;  %v16648_v23 = vmax.f32 %v13962_v26, 0.0 }
 0x779   : > { %v4947_v59 = vpop.f32.mrf.mxu0  ;;  %v9036_v5 = vpop.f32.mrf.mxu1 }
 0x77a   : > { %v13976_v13 = vadd.f32 %v9033_v31, %v4946_v32  ;;  %6670 = vadd.xlane.f32.xlu0 %v6669_v53  ;;  %5782 = vadd.xlane.f32.xlu1 %v5781_v28  ;;  %v13989_v30 = vrot.slane %v16648_v23, 7  ;;  %v14033_v59 = vld [vmem:[%s16507_s7 + $0x8] ss:$0 sm:$0xff] }
 0x77b   : > { %v4950_v55 = vpop.f32.mrf.mxu0  ;;  %v5175_v22 = vpop.f32.mrf.mxu1 }
 0x77c   : > { %v16647_v0 = vmax.f32 %v13976_v13, 0.0  ;;  %v4951_v21 = vadd.f32 %v13884_v16, %v4950_v55  ;;  %v7063_v55 = vsel %vm6133_vm8, %v7009_v18, 0.0 }
 0x77d   : > { %v4952_v35 = vpop.f32.mrf.mxu0 }
 0x77e   : > { %v13993_v54 = vrot.slane %v16647_v0, 7  ;;  %v13995_v6 = vadd.f32 %v5175_v22, %v4951_v21  ;;  %7058 = vadd.xlane.f32.xlu0 %v7057_v14  ;;  %6151 = vadd.xlane.f32.xlu1 %v6150_v34  ;;  %v5598_v21 = vsel %vm5597_vm7, %v5567_v20, 0.0  ;;  %v7916_v22 = vmul.f32 %v14033_v59, %v13972_v36 }
 0x77f   : > { %v4955_v17 = vpop.f32.mrf.mxu0  ;;  %v5722_v35 = vmul.f32 %v13900_v50, %v13972_v36  ;;  %v14050_v14 = vsel %vm429_vm0, %v13960_v57, %v5391_v9 }
 0x780   : > { %v14000_v33 = vsel %vm429_vm0, %v13989_v30, %v13993_v54  ;;  %v4956_v27 = vadd.f32 %v13884_v16, %v4955_v17  ;;  %v16645_v25 = vmax.f32 %v13995_v6, 0.0  ;;  %v7961_v57 = vsel %vm6133_vm8, %v7916_v22, 0.0 }
 0x781   : > { %v4957_v19 = vpop.f32.mrf.mxu0  ;;  %v5768_v7 = vsel %vm5767_vm6, %v5722_v35, 0.0  ;;  %v5568_v56 = vmul.f32 %v13903_v60, %v14050_v14 }
 0x782   : > { %v14010_v47 = vadd.f32 %v9036_v5, %v4956_v27  ;;  %v9039_v29 = vpop.f32.mrf.mxu1  ;;  %6673 = vadd.xlane.f32.xlu1 %v6672_v51  ;;  %6135 = vadd.xlane.f32.xlu0 %v6134_v37  ;;  %v14022_v39 = vrot.slane %v16645_v25, 7  ;;  %v14058_v27 = vrot.slane %v13895_v46, %v7392_v4  ;;  %v7548_v19 = vsub.s32 7, %v13887_v63 }
 0x783   : > { %v4960_v31 = vpop.f32.mrf.mxu0  ;;  %v5723_v4 = vmul.f32 %v13900_v50, %v14050_v14 }
 0x784   : > { %v16644_v2 = vmax.f32 %v14010_v47, 0.0  ;;  %v4961_v15 = vadd.f32 %v13884_v16, %v4960_v31  ;;  %v5185_v49 = vpop.f32.mrf.mxu1  ;;  %v5486_v31 = vrot.slane %v5297_v41, 5  ;;  %v14084_v18 = vrot.slane %v13895_v46, %v7548_v19 }
 0x785   : > { %v4962_v42 = vpop.f32.mrf.mxu0 }
 0x786   : > { %v14026_v8 = vrot.slane %v16644_v2, 7  ;;  %v14028_v32 = vadd.f32 %v5185_v49, %v4961_v15  ;;  %7061 = vadd.xlane.f32.xlu1 %v7060_v12  ;;  %6676 = vadd.xlane.f32.xlu0 %v6675_v44 }
 0x787   : > { %v4965_v5 = vpop.f32.mrf.mxu0 }
 0x788   : > { %v14038_v53 = vsel %vm429_vm0, %v14022_v39, %v14026_v8  ;;  %v4966_v28 = vadd.f32 %v13884_v16, %v4965_v5  ;;  %v16642_v34 = vmax.f32 %v14028_v32, 0.0  ;;  %v5601_v5 = vsel %vm5597_vm7, %v5568_v56, 0.0 }
 0x789   : > { %v4967_v3 = vpop.f32.mrf.mxu0  ;;  %v9042_v58 = vpop.f32.mrf.mxu1 }
 0x78a   : > { %v14053_v62 = vadd.f32 %v9039_v29, %v4966_v28  ;;  %7064 = vadd.xlane.f32.xlu0 %v7063_v55  ;;  %5599 = vadd.xlane.f32.xlu1 %v5598_v21  ;;  %v6456_v29 = vmul.f32 %v13917_v61, %v13972_v36  ;;  %v14069_v15 = vrot.slane %v16642_v34, 7  ;;  %v7394_v3 = vmul.f32 %v14058_v27, %v13972_v36 }
 0x78b   : > { %v4970_v48 = vpop.f32.mrf.mxu0  ;;  %v5195_v51 = vpop.f32.mrf.mxu1  ;;  %v14093_v55 = vsel %vm429_vm0, %v5391_v9, %v5486_v31  ;;  %v7395_v34 = vmul.f32 %v14058_v27, %v14050_v14 }
 0x78c   : > { %v16641_v43 = vmax.f32 %v14053_v62, 0.0  ;;  %v4971_v17 = vadd.f32 %v13884_v16, %v4970_v48  ;;  %v6492_v28 = vsel %vm5597_vm7, %v6456_v29, 0.0  ;;  %v6090_v9 = vmul.f32 %v13906_v10, %v14093_v55 }
 0x78d   : > { %v4972_v37 = vpop.f32.mrf.mxu0  ;;  %v7427_v25 = vsel %vm5597_vm7, %v7395_v34, 0.0 }
 0x78e   : > { %v14073_v49 = vrot.slane %v16641_v43, 7  ;;  %v14075_v42 = vadd.f32 %v5195_v51, %v4971_v17  ;;  %7962 = vadd.xlane.f32.xlu0 %v7961_v57  ;;  %5769 = vadd.xlane.f32.xlu1 %v5768_v7  ;;  %v5771_v37 = vsel %vm5597_vm7, %v5723_v4, 0.0  ;;  %v7424_v57 = vsel %vm5597_vm7, %v7394_v3, 0.0 }
 0x78f   : > { %v4975_v12 = vpop.f32.mrf.mxu0  ;;  %v6457_v4 = vmul.f32 %v13917_v61, %v14050_v14  ;;  %v5724_v3 = vmul.f32 %v13900_v50, %v14093_v55 }
 0x790   : > { %v14080_v44 = vsel %vm429_vm0, %v14069_v15, %v14073_v49  ;;  %v4976_v41 = vadd.f32 %v13884_v16, %v4975_v12  ;;  %v16640_v21 = vmax.f32 %v14075_v42, 0.0 }
 0x791   : > { %v4977_v20 = vpop.f32.mrf.mxu0 }
 0x792   : > { %v14096_v22 = vadd.f32 %v9042_v58, %v4976_v41  ;;  %v9045_v46 = vpop.f32.mrf.mxu1  ;;  %5602 = vadd.xlane.f32.xlu0 %v5601_v5  ;;  %6493 = vadd.xlane.f32.xlu1 %v6492_v28  ;;  %v7550_v58 = vmul.f32 %v14084_v18, %v13972_v36  ;;  %v14108_v7 = vrot.slane %v16640_v21, 7  ;;  %v6141_v5 = vsel %vm6140_vm10, %v6090_v9, 0.0 }
 0x793   : > { %v4980_v35 = vpop.f32.mrf.mxu0 }
 0x794   : > { %v16639_v48 = vmax.f32 %v14096_v22, 0.0  ;;  %v4981_v17 = vadd.f32 %v13884_v16, %v4980_v35  ;;  %v5205_v19 = vpop.f32.mrf.mxu1  ;;  %v7595_v28 = vsel %vm5767_vm6, %v7550_v58, 0.0 }
 0x795   : > { %v4982_v51 = vpop.f32.mrf.mxu0 }
 0x796   : > { %v14112_v56 = vrot.slane %v16639_v48, 7  ;;  %v14114_v29 = vadd.f32 %v5205_v19, %v4981_v17  ;;  %5772 = vadd.xlane.f32.xlu0 %v5771_v37  ;;  %7425 = vadd.xlane.f32.xlu1 %v7424_v57  ;;  %v4931_v51 = vadd.f32 %v13884_v16, %v13936_v1 }
 0x797   : > { %v4985_v31 = vpop.f32.mrf.mxu0 }
 0x798   : > { %v14119_v12 = vsel %vm429_vm0, %v14108_v7, %v14112_v56  ;;  %v4986_v36 = vadd.f32 %v13884_v16, %v4985_v31  ;;  %v16637_v35 = vmax.f32 %v14114_v29, 0.0  ;;  %v6495_v31 = vsel %vm5597_vm7, %v6457_v4, 0.0 }
 0x799   : > { %v4987_v41 = vpop.f32.mrf.mxu0  ;;  %v9048_v20 = vpop.f32.mrf.mxu1 }
 0x79a   : > { %v14129_v17 = vadd.f32 %v9045_v46, %v4986_v36  ;;  %6142 = vadd.xlane.f32.xlu0 %v6141_v5  ;;  %7596 = vadd.xlane.f32.xlu1 %v7595_v28  ;;  %v5775_v41 = vsel %vm5774_vm9, %v5724_v3, 0.0  ;;  %v6623_v46 = vmul.f32 %v13927_v52, %v14093_v55  ;;  %v6089_v36 = vmul.f32 %v13906_v10, %v14050_v14 }
 0x79b   : > { %v4990_v19 = vpop.f32.mrf.mxu0  ;;  %v5215_v9 = vpop.f32.mrf.mxu1  ;;  %v14143_v5 = vrot.slane %v16637_v35, 7  ;;  %v5156_v3 = vadd.f32 %v13949_v38, %v4931_v51 }
 0x79c   : > { %v16638_v37 = vmax.f32 %v14129_v17, 0.0  ;;  %v4991_v57 = vadd.f32 %v13884_v16, %v4990_v19  ;;  %v6681_v35 = vsel %vm5774_vm9, %v6623_v46, 0.0 }
 0x79d   : > { %v4992_v58 = vpop.f32.mrf.mxu0 }
 0x79e   : > { %v14147_v1 = vrot.slane %v16638_v37, 7  ;;  %v14149_v28 = vadd.f32 %v5215_v9, %v4991_v57  ;;  %6496 = vadd.xlane.f32.xlu0 %v6495_v31  ;;  %5776 = vadd.xlane.f32.xlu1 %v5775_v41  ;;  %v6137_v37 = vsel %vm5597_vm7, %v6089_v36, 0.0  ;;  %v7011_v57 = vmul.f32 %v13939_v45, %v14093_v55 }
 0x79f   : > { %v4995_v4 = vpop.f32.mrf.mxu0  ;;  %v6622_v9 = vmul.f32 %v13927_v52, %v14050_v14 }
 0x7a0   : > { %v14155_v19 = vsel %vm429_vm0, %v14143_v5, %v14147_v1  ;;  %v4996_v58 = vadd.f32 %v13884_v16, %v4995_v4  ;;  %v16643_v38 = vmax.f32 %v14149_v28, 0.0  ;;  %v5298_v4 = vmax.f32 %v5156_v3, 0.0 }
 0x7a1   : > { %v4997_v11 = vpop.f32.mrf.mxu0  ;;  %v7069_v21 = vsel %vm6140_vm10, %v7011_v57, 0.0  ;;  %v6678_v43 = vsel %vm5597_vm7, %v6622_v9, 0.0 }
 0x7a2   : > { %v14165_v51 = vadd.f32 %v9048_v20, %v4996_v58  ;;  %v9051_v31 = vpop.f32.mrf.mxu1  ;;  %6682 = vadd.xlane.f32.xlu0 %v6681_v35  ;;  %6138 = vadd.xlane.f32.xlu1 %v6137_v37  ;;  %v7010_v20 = vmul.f32 %v13939_v45, %v14050_v14  ;;  %v4936_v35 = vadd.f32 %v13884_v16, %v13947_v24  ;;  %v14179_v37 = vrot.slane %v16643_v38, 7 }
 0x7a3   : > { %v5000_v41 = vpop.f32.mrf.mxu0  ;;  %v5344_v57 = vrot.slane %v5298_v4, 1  ;;  %v5396_v9 = vrot.slane %v5298_v4, 7 }
 0x7a4   : > { %16874 = vst [vmem:[#allocation30_spill] sm:$0xff] %v14165_v51  ;;  %v16646_v11 = vmax.f32 %v14165_v51, 0.0  ;;  %v5001_v46 = vadd.f32 %v13884_v16, %v5000_v41  ;;  %v5225_v36 = vpop.f32.mrf.mxu1  ;;  %v5161_v4 = vadd.f32 %v13941_v40, %v4936_v35 }
 0x7a5   : > { %v5002_v48 = vpop.f32.mrf.mxu0 }
 0x7a6   : > { %v14183_v48 = vrot.slane %v16646_v11, 7  ;;  %v14185_v3 = vadd.f32 %v5225_v36, %v5001_v46  ;;  %7070 = vadd.xlane.f32.xlu0 %v7069_v21  ;;  %6679 = vadd.xlane.f32.xlu1 %v6678_v43  ;;  %v7066_v11 = vsel %vm5597_vm7, %v7010_v20, 0.0  ;;  %v7551_v21 = vmul.f32 %v14084_v18, %v14050_v14 }
 0x7a7   : > { %v5005_v58 = vpop.f32.mrf.mxu0  ;;  %v7552_v43 = vmul.f32 %v14084_v18, %v14093_v55 }
 0x7a8   : > { %16875 = vst [vmem:[#allocation18_spill] sm:$0xff] %v14183_v48  ;;  %16876 = vst [vmem:[#allocation9_spill] sm:$0xff] %v14185_v3  ;;  %v14190_v41 = vsel %vm429_vm0, %v14179_v37, %v14183_v48  ;;  %v5006_v24 = vadd.f32 %v13884_v16, %v5005_v58  ;;  %v16652_v46 = vmax.f32 %v14185_v3, 0.0  ;;  %v14204_v58 = vsel %vm429_vm0, %v5344_v57, %v5396_v9 }
 0x7a9   : > { %v5007_v38 = vpop.f32.mrf.mxu0  ;;  %v9054_v2 = vpop.f32.mrf.mxu1  ;;  %v7598_v63 = vsel %vm5597_vm7, %v7551_v21, 0.0  ;;  %v7601_v40 = vsel %vm5774_vm9, %v7552_v43, 0.0 }
 0x7aa   : > { %v14201_v36 = vadd.f32 %v9051_v31, %v5006_v24  ;;  %7428 = vadd.xlane.f32.xlu0 %v7427_v25  ;;  %7067 = vadd.xlane.f32.xlu1 %v7066_v11  ;;  %v7918_v31 = vmul.f32 %v14033_v59, %v14093_v55  ;;  %v7917_v25 = vmul.f32 %v14033_v59, %v14050_v14  ;;  %v5299_v11 = vmax.f32 %v5161_v4, 0.0 }
 0x7ab   : > { %v5010_v38 = vpop.f32.mrf.mxu0  ;;  %v5235_v0 = vpop.f32.mrf.mxu1  ;;  %v14216_v35 = vrot.slane %v16652_v46, 7 }
 0x7ac   : > { %16877 = vst [vmem:[#allocation19_spill] sm:$0xff] %v14201_v36  ;;  %v16651_v34 = vmax.f32 %v14201_v36, 0.0  ;;  %v5011_v20 = vadd.f32 %v13884_v16, %v5010_v38  ;;  %v7967_v43 = vsel %vm6140_vm10, %v7918_v31, 0.0  ;;  %v7964_v4 = vsel %vm5597_vm7, %v7917_v25, 0.0 }
 0x7ad   : > { %v5012_v23 = vpop.f32.mrf.mxu0  ;;  %16878 = vst [vmem:[#allocation31_spill] sm:$0xff] %v14216_v35  ;;  %v6094_v38 = vmul.f32 %v13906_v10, %v14204_v58  ;;  %v7553_v36 = vmul.f32 %v14084_v18, %v14204_v58 }
 0x7ae   : > { %v14220_v57 = vrot.slane %v16651_v34, 7  ;;  %v14222_v23 = vadd.f32 %v5235_v0, %v5011_v20  ;;  %7599 = vadd.xlane.f32.xlu0 %v7598_v63  ;;  %7602 = vadd.xlane.f32.xlu1 %v7601_v40  ;;  %v5571_v63 = vmul.f32 %v13903_v60, %v14204_v58  ;;  %v5397_v0 = vrot.slane %v5299_v11, 7 }
 0x7af   : > { %v5015_v24 = vpop.f32.mrf.mxu0 }
 0x7b0   : > { %16879 = vst [vmem:[#allocation20_spill] sm:$0xff] %v14220_v57  ;;  %16880 = vst [vmem:[#allocation32_spill] sm:$0xff] %v14222_v23  ;;  %v14227_v55 = vsel %vm429_vm0, %v14216_v35, %v14220_v57  ;;  %v5016_v14 = vadd.f32 %v13884_v16, %v5015_v24  ;;  %v16657_v20 = vmax.f32 %v14222_v23, 0.0  ;;  %v6153_v57 = vsel %vm6133_vm8, %v6094_v38, 0.0 }
 0x7b1   : > { %16881 = vst [vmem:[#allocation21_spill] sm:$0xff] %v14227_v55  ;;  %v5017_v21 = vpop.f32.mrf.mxu0  ;;  %v5610_v55 = vsel %vm5597_vm7, %v5571_v63, 0.0 }
 0x7b2   : > { %v14237_v40 = vadd.f32 %v9054_v2, %v5016_v14  ;;  %v9057_v34 = vpop.f32.mrf.mxu1  ;;  %7968 = vadd.xlane.f32.xlu0 %v7967_v43  ;;  %7965 = vadd.xlane.f32.xlu1 %v7964_v4  ;;  %v5728_v2 = vmul.f32 %v13900_v50, %v14204_v58  ;;  %v14248_v14 = vsel %vm429_vm0, %v5396_v9, %v5397_v0  ;;  %v14252_v43 = vrot.slane %v16657_v20, 7 }
 0x7b3   : > { %v5020_v24 = vpop.f32.mrf.mxu0  ;;  %v7604_v20 = vsel %vm5767_vm6, %v7553_v36, 0.0 }
 0x7b4   : > { %16882 = vst [vmem:[#allocation10_spill] sm:$0xff] %v14237_v40  ;;  %v16659_v21 = vmax.f32 %v14237_v40, 0.0  ;;  %v5021_v31 = vadd.f32 %v13884_v16, %v5020_v24  ;;  %v5245_v25 = vpop.f32.mrf.mxu1  ;;  %16883 = vst [vmem:[#allocation22_spill] sm:$0xff] %v14252_v43  ;;  %v5787_v40 = vsel %vm5767_vm6, %v5728_v2, 0.0 }
 0x7b5   : > { %v5022_v46 = vpop.f32.mrf.mxu0 }
 0x7b6   : > { %v14256_v46 = vrot.slane %v16659_v21, 7  ;;  %v14258_v4 = vadd.f32 %v5245_v25, %v5021_v31  ;;  %6154 = vadd.xlane.f32.xlu0 %v6153_v57  ;;  %5611 = vadd.xlane.f32.xlu1 %v5610_v55  ;;  %v5572_v31 = vmul.f32 %v13903_v60, %v14248_v14  ;;  %v6458_v57 = vmul.f32 %v13917_v61, %v14204_v58 }
 0x7b7   : > { %v5025_v38 = vpop.f32.mrf.mxu0  ;;  %v5488_v55 = vrot.slane %v5299_v11, 5  ;;  %v5729_v11 = vmul.f32 %v13900_v50, %v14248_v14 }
 0x7b8   : > { %16884 = vst [vmem:[#allocation11_spill] sm:$0xff] %v14256_v46  ;;  %16885 = vst [vmem:[#allocation23_spill] sm:$0xff] %v14258_v4  ;;  %v14263_v63 = vsel %vm429_vm0, %v14252_v43, %v14256_v46  ;;  %v5026_v9 = vadd.f32 %v13884_v16, %v5025_v38  ;;  %v16663_v25 = vmax.f32 %v14258_v4, 0.0  ;;  %v6498_v43 = vsel %vm5597_vm7, %v6458_v57, 0.0  ;;  %v16913_v4 = vld [vmem:[#allocation28_spill] sm:$0xff] }
 0x7b9   : > { %16886 = vst [vmem:[#allocation33_spill] sm:$0xff] %v14263_v63  ;;  %v5027_v24 = vpop.f32.mrf.mxu0  ;;  %v9060_v23 = vpop.f32.mrf.mxu1  ;;  %v5613_v63 = vsel %vm5597_vm7, %v5572_v31, 0.0 }
 0x7ba   : > { %v14273_v21 = vadd.f32 %v9057_v34, %v5026_v9  ;;  %7605 = vadd.xlane.f32.xlu0 %v7604_v20  ;;  %5788 = vadd.xlane.f32.xlu1 %v5787_v40  ;;  %v6624_v34 = vmul.f32 %v13927_v52, %v14204_v58  ;;  %v14284_v20 = vsel %vm429_vm0, %v5397_v0, %v5488_v55  ;;  %v14288_v40 = vrot.slane %v16663_v25, 7 }
 0x7bb   : > { %v5030_v38 = vpop.f32.mrf.mxu0  ;;  %v5255_v46 = vpop.f32.mrf.mxu1 }
 0x7bc   : > { %16887 = vst [vmem:[#allocation24_spill] sm:$0xff] %v14273_v21  ;;  %v16664_v24 = vmax.f32 %v14273_v21, 0.0  ;;  %v5031_v36 = vadd.f32 %v13884_v16, %v5030_v38  ;;  %16888 = vst [vmem:[#allocation12_spill] sm:$0xff] %v14288_v40  ;;  %v6684_v25 = vsel %vm5767_vm6, %v6624_v34, 0.0 }
 0x7bd   : > { %v5032_v2 = vpop.f32.mrf.mxu0 }
 0x7be   : > { %v14292_v9 = vrot.slane %v16664_v24, 7  ;;  %v14294_v31 = vadd.f32 %v5255_v46, %v5031_v36  ;;  %5614 = vadd.xlane.f32.xlu0 %v5613_v63  ;;  %6499 = vadd.xlane.f32.xlu1 %v6498_v43  ;;  %v5790_v2 = vsel %vm5597_vm7, %v5729_v11, 0.0  ;;  %v6096_v24 = vmul.f32 %v13906_v10, %v14284_v20 }
 0x7bf   : > { %v5035_v57 = vpop.f32.mrf.mxu0  ;;  %v7012_v46 = vmul.f32 %v13939_v45, %v14204_v58 }
 0x7c0   : > { %16889 = vst [vmem:[#allocation25_spill] sm:$0xff] %v14292_v9  ;;  %16890 = vst [vmem:[#allocation34_spill] sm:$0xff] %v14294_v31  ;;  %v14299_v38 = vsel %vm429_vm0, %v14288_v40, %v14292_v9  ;;  %v5036_v0 = vadd.f32 %v13884_v16, %v5035_v57  ;;  %v16670_v43 = vmax.f32 %v14294_v31, 0.0  ;;  %v6459_v40 = vmul.f32 %v13917_v61, %v14248_v14 }
 0x7c1   : > { %16891 = vst [vmem:[#allocation8_spill] sm:$0xff] %v14299_v38  ;;  %v5037_v55 = vpop.f32.mrf.mxu0  ;;  %v6159_v38 = vsel %vm6140_vm10, %v6096_v24, 0.0  ;;  %v7072_v21 = vsel %vm6133_vm8, %v7012_v46, 0.0 }
 0x7c2   : > { %v14309_v63 = vadd.f32 %v9060_v23, %v5036_v0  ;;  %v9063_v36 = vpop.f32.mrf.mxu1  ;;  %5791 = vadd.xlane.f32.xlu0 %v5790_v2  ;;  %6685 = vadd.xlane.f32.xlu1 %v6684_v25  ;;  %v7396_v23 = vmul.f32 %v14058_v27, %v14204_v58  ;;  %v14321_v25 = vrot.slane %v16670_v43, 7  ;;  %v6501_v43 = vsel %vm5597_vm7, %v6459_v40, 0.0 }
 0x7c3   : > { %v5040_v9 = vpop.f32.mrf.mxu0 }
 0x7c4   : > { %16892 = vst [vmem:[#allocation26_spill] sm:$0xff] %v14309_v63  ;;  %v16672_v57 = vmax.f32 %v14309_v63, 0.0  ;;  %v5041_v11 = vadd.f32 %v13884_v16, %v5040_v9  ;;  %v5265_v55 = vpop.f32.mrf.mxu1  ;;  %16893 = vst [vmem:[#allocation27_spill] sm:$0xff] %v14321_v25  ;;  %v7430_v63 = vsel %vm5597_vm7, %v7396_v23, 0.0 }
 0x7c5   : > { %v5042_v34 = vpop.f32.mrf.mxu0 }
 0x7c6   : > { %v14325_v0 = vrot.slane %v16672_v57, 7  ;;  %v14327_v9 = vadd.f32 %v5265_v55, %v5041_v11  ;;  %6160 = vadd.xlane.f32.xlu0 %v6159_v38  ;;  %7073 = vadd.xlane.f32.xlu1 %v7072_v21  ;;  %v6625_v11 = vmul.f32 %v13927_v52, %v14248_v14  ;;  %v7919_v21 = vmul.f32 %v14033_v59, %v14204_v58 }
 0x7c7   : > { %v5045_v24 = vpop.f32.mrf.mxu0  ;;  %v7013_v58 = vmul.f32 %v13939_v45, %v14248_v14 }
 0x7c8   : > { %16894 = vst [vmem:[#allocation13_spill] sm:$0xff] %v14325_v0  ;;  %16895 = vst [vmem:[#allocation35_spill] sm:$0xff] %v14327_v9  ;;  %v14332_v2 = vsel %vm429_vm0, %v14321_v25, %v14325_v0  ;;  %v5046_v46 = vadd.f32 %v13884_v16, %v5045_v24  ;;  %v16676_v38 = vmax.f32 %v14327_v9, 0.0  ;;  %v6687_v23 = vsel %vm5597_vm7, %v6625_v11, 0.0 }
 0x7c9   : > { %16896 = vst [vmem:[#allocation36_spill] sm:$0xff] %v14332_v2  ;;  %v5047_v34 = vpop.f32.mrf.mxu0  ;;  %v9066_v31 = vpop.f32.mrf.mxu1  ;;  %v7970_v2 = vsel %vm6133_vm8, %v7919_v21, 0.0 }
 0x7ca   : > { %v14342_v55 = vadd.f32 %v9063_v36, %v5046_v46  ;;  %6502 = vadd.xlane.f32.xlu0 %v6501_v43  ;;  %7431 = vadd.xlane.f32.xlu1 %v7430_v63  ;;  %v5730_v36 = vmul.f32 %v13900_v50, %v14284_v20  ;;  %v14354_v43 = vrot.slane %v16676_v38, 7  ;;  %v7075_v38 = vsel %vm5597_vm7, %v7013_v58, 0.0 }
 0x7cb   : > { %v5050_v57 = vpop.f32.mrf.mxu0  ;;  %v5275_v40 = vpop.f32.mrf.mxu1 }
 0x7cc   : > { %16897 = vst [vmem:[#allocation37_spill] sm:$0xff] %v14342_v55  ;;  %v16678_v24 = vmax.f32 %v14342_v55, 0.0  ;;  %v5051_v34 = vadd.f32 %v13884_v16, %v5050_v57  ;;  %16898 = vst [vmem:[#allocation40_spill] sm:$0xff] %v14354_v43  ;;  %v5793_v55 = vsel %vm5774_vm9, %v5730_v36, 0.0 }
 0x7cd   : > { %v5052_v0 = vpop.f32.mrf.mxu0  ;;  %v9069_v21 = vpop.f32.mrf.mxu1 }
 0x7ce   : > { %v14358_v63 = vrot.slane %v16678_v24, 7  ;;  %v14360_v57 = vadd.f32 %v5275_v40, %v5051_v34  ;;  %6688 = vadd.xlane.f32.xlu0 %v6687_v23  ;;  %7971 = vadd.xlane.f32.xlu1 %v7970_v2  ;;  %v7397_v34 = vmul.f32 %v14058_v27, %v14248_v14  ;;  %v6095_v2 = vmul.f32 %v13906_v10, %v14248_v14 }
 0x7cf   : > { %v5055_v0 = vpop.f32.mrf.mxu0  ;;  %v5285_v58 = vpop.f32.mrf.mxu1 }
 0x7d0   : > { %16899 = vst [vmem:[#allocation39_spill] sm:$0xff] %v14358_v63  ;;  %16900 = vst [vmem:[#allocation38_spill] sm:$0xff] %v14360_v57  ;;  %v14365_v46 = vsel %vm429_vm0, %v14354_v43, %v14358_v63  ;;  %v5056_v11 = vadd.f32 %v13884_v16, %v5055_v0  ;;  %v16682_v40 = vmax.f32 %v14360_v57, 0.0  ;;  %v7433_v36 = vsel %vm5597_vm7, %v7397_v34, 0.0 }
 0x7d1   : > { %16901 = vst [vmem:[#allocation29_spill] sm:$0xff] %v14365_v46  ;;  %v5057_v9 = vpop.f32.mrf.mxu0  ;;  %v6156_v46 = vsel %vm5597_vm7, %v6095_v2, 0.0  ;;  %v7555_v43 = vmul.f32 %v14084_v18, %v14284_v20 }
 0x7d2   : > { %v14375_v23 = vadd.f32 %v9066_v31, %v5056_v11  ;;  %7076 = vadd.xlane.f32.xlu0 %v7075_v38  ;;  %5794 = vadd.xlane.f32.xlu1 %v5793_v55  ;;  %v6626_v31 = vmul.f32 %v13927_v52, %v14284_v20  ;;  %v16903_v38 = vmax.f32 %v13962_v26, 0.0  ;;  %v14389_v11 = vrot.slane %v16682_v40, 7 }
 0x7d3   : > { %v5060_v24 = vpop.f32.mrf.mxu0  ;;  %v7610_v40 = vsel %vm5774_vm9, %v7555_v43, 0.0 }
 0x7d4   : > { %16902 = vst [vmem:[#allocation14_spill] sm:$0xff] %v14375_v23  ;;  %v16684_v0 = vmax.f32 %v14375_v23, 0.0  ;;  %v5061_v9 = vadd.f32 %v13884_v16, %v5060_v24  ;;  %v5345_v55 = vrot.slane %v16903_v38, 1  ;;  %16904 = vst [vmem:[#allocation6_spill] sm:$0xff] %v14389_v11  ;;  %v6690_v57 = vsel %vm5774_vm9, %v6626_v31, 0.0 }
 0x7d5   : > { %v5062_v63 = vpop.f32.mrf.mxu0 }
 0x7d6   : > { %v14393_v24 = vrot.slane %v16684_v0, 7  ;;  %v14395_v63 = vadd.f32 %v5285_v58, %v5061_v9  ;;  %7434 = vadd.xlane.f32.xlu0 %v7433_v36  ;;  %6157 = vadd.xlane.f32.xlu1 %v6156_v46  ;;  %v7920_v0 = vmul.f32 %v14033_v59, %v14248_v14  ;;  %v7014_v9 = vmul.f32 %v13939_v45, %v14284_v20 }
 0x7d7   : > { %v5065_v34 = vpop.f32.mrf.mxu0  ;;  %v5521_v46 = vsel %vm429_vm0, %v5345_v55, %v13989_v30  ;;  %v7921_v55 = vmul.f32 %v14033_v59, %v14284_v20 }
 0x7d8   : > { %16905 = vst [vmem:[#allocation15_spill] sm:$0xff] %v14393_v24  ;;  %16906 = vst [vmem:[#allocation16_spill] sm:$0xff] %v14395_v63  ;;  %v14400_v2 = vsel %vm429_vm0, %v14389_v11, %v14393_v24  ;;  %v5066_v26 = vadd.f32 %v13884_v16, %v5065_v34  ;;  %v16686_v58 = vmax.f32 %v14395_v63, 0.0  ;;  %v7973_v43 = vsel %vm5597_vm7, %v7920_v0, 0.0 }
 0x7d9   : > { %16907 = vst [vmem:[#allocation7_spill] sm:$0xff] %v14400_v2  ;;  %v5067_v38 = vpop.f32.mrf.mxu0  ;;  %v7078_v31 = vsel %vm6140_vm10, %v7014_v9, 0.0  ;;  %v5731_v34 = vmul.f32 %v13900_v50, %v5521_v46  ;;  %v7976_v9 = vsel %vm6140_vm10, %v7921_v55, 0.0  ;;  %v6097_v20 = vmul.f32 %v13906_v10, %v5521_v46 }
 0x7da   : > { %v14412_v36 = vadd.f32 %v9069_v21, %v5066_v26  ;;  %7611 = vadd.xlane.f32.xlu0 %v7610_v40  ;;  %6691 = vadd.xlane.f32.xlu1 %v6690_v57  ;;  %v7554_v38 = vmul.f32 %v14084_v18, %v14248_v14  ;;  %v14422_v30 = vrot.slane %v16686_v58, 7  ;;  %v6627_v14 = vmul.f32 %v13927_v52, %v5521_v46 }
 0x7db   : > { %v5796_v40 = vsel %vm5767_vm6, %v5731_v34, 0.0  ;;  %v6162_v55 = vsel %vm6133_vm8, %v6097_v20, 0.0  ;;  %v7398_v20 = vmul.f32 %v14058_v27, %v5521_v46 }
 0x7dc   : > { %16908 = vst [vmem:[#allocation41_spill] sm:$0xff] %v14412_v36  ;;  %v16685_v16 = vmax.f32 %v14412_v36, 0.0  ;;  %16909 = vst [vmem:[#allocation42_spill] sm:$0xff] %v14422_v30  ;;  %v7607_v0 = vsel %vm5597_vm7, %v7554_v38, 0.0  ;;  %v6693_v26 = vsel %vm5767_vm6, %v6627_v14, 0.0 }
 0x7de   : > { %v14426_v21 = vrot.slane %v16685_v16, 7  ;;  %7974 = vadd.xlane.f32.xlu0 %v7973_v43  ;;  %7079 = vadd.xlane.f32.xlu1 %v7078_v31  ;;  %v7015_v43 = vmul.f32 %v13939_v45, %v5521_v46  ;;  %v5573_v31 = vmul.f32 %v13903_v60, %v5521_v46  ;;  %v7922_v16 = vmul.f32 %v14033_v59, %v5521_v46 }
 0x7e0   : > { %16910 = vst [vmem:[#allocation43_spill] sm:$0xff] %v14426_v21  ;;  %v14431_v57 = vsel %vm429_vm0, %v14422_v30, %v14426_v21  ;;  %v7081_v34 = vsel %vm6133_vm8, %v7015_v43, 0.0  ;;  %v5616_v38 = vsel %vm5597_vm7, %v5573_v31, 0.0  ;;  %v7979_v14 = vsel %vm6133_vm8, %v7922_v16, 0.0 }
 0x7e1   : > { %16911 = vst [vmem:[#allocation44_spill] sm:$0xff] %v14431_v57 }
 0x7e2   : > { %5797 = vadd.xlane.f32.xlu0 %v5796_v40  ;;  %7608 = vadd.xlane.f32.xlu1 %v7607_v0  ;;  %v16912_v40 = vmax.f32 %v13976_v13, 0.0 }
 0x7e4   : > { %v5489_v0 = vrot.slane %v16912_v40, 5 }
 0x7e6   : > { %6694 = vadd.xlane.f32.xlu0 %v6693_v26  ;;  %7977 = vadd.xlane.f32.xlu1 %v7976_v9  ;;  %v5574_v26 = vmul.f32 %v13903_v60, %v14000_v33  ;;  %v6460_v9 = vmul.f32 %v13917_v61, %v5521_v46  ;;  %v14455_v43 = vsel %vm429_vm0, %v13993_v54, %v5489_v0  ;;  %v7436_v0 = vsel %vm5597_vm7, %v7398_v20, 0.0 }
 0x7e7   : > { %v5733_v16 = vmul.f32 %v13900_v50, %v14455_v43 }
 0x7e9   : > { %v5802_v54 = vsel %vm5774_vm9, %v5733_v16, 0.0  ;;  %v5732_v16 = vmul.f32 %v13900_v50, %v14000_v33 }
 0x7ea   : > { %7082 = vadd.xlane.f32.xlu0 %v7081_v34  ;;  %5617 = vadd.xlane.f32.xlu1 %v5616_v38  ;;  %v5619_v34 = vsel %vm5597_vm7, %v5574_v26, 0.0  ;;  %v6504_v38 = vsel %vm5597_vm7, %v6460_v9, 0.0 }
 0x7eb   : > { %v5799_v36 = vsel %vm5597_vm7, %v5732_v16, 0.0 }
 0x7ee   : > { %7980 = vadd.xlane.f32.xlu0 %v7979_v14  ;;  %6163 = vadd.xlane.f32.xlu1 %v6162_v55  ;;  %v6098_v14 = vmul.f32 %v13906_v10, %v14000_v33  ;;  %v7556_v55 = vmul.f32 %v14084_v18, %v5521_v46 }
 0x7ef   : > { %v5780_v31 = vpop.xlane.xlu0 %5779  ;;  %v5606_v13 = vpop.xlane.xlu1 %5605 }
 0x7f0   : > { %v6165_v21 = vsel %vm5597_vm7, %v6098_v14, 0.0  ;;  %v6629_v14 = vmul.f32 %v13927_v52, %v14455_v43  ;;  %v5954_v63 = vrot.slane %v5780_v31, 1  ;;  %v5690_v35 = vadd.f32 %v5606_v13, %v16913_v4 }
 0x7f1   : > { %v7016_v31 = vmul.f32 %v13939_v45, %v14000_v33 }
 0x7f2   : > { %5620 = vadd.xlane.f32.xlu0 %v5619_v34  ;;  %6505 = vadd.xlane.f32.xlu1 %v6504_v38  ;;  %v7613_v34 = vsel %vm5767_vm6, %v7556_v55, 0.0  ;;  %v6461_v38 = vmul.f32 %v13917_v61, %v14000_v33  ;;  %v6099_v55 = vmul.f32 %v13906_v10, %v14455_v43  ;;  %v6699_v16 = vsel %vm5774_vm9, %v6629_v14, 0.0 }
 0x7f3   : > { %v5609_v40 = vpop.xlane.xlu0 %5608  ;;  %v6146_v58 = vpop.xlane.xlu1 %6145  ;;  %v7399_v14 = vmul.f32 %v14058_v27, %v14000_v33 }
 0x7f4   : > { %v6320_v46 = vrot.slane %v6146_v58, 2  ;;  %v7017_v58 = vmul.f32 %v13939_v45, %v14455_v43  ;;  %v5691_v3 = vadd.f32 %v5609_v40, %v16913_v4 }
 0x7f5   : > { %v7439_v48 = vsel %vm5597_vm7, %v7399_v14, 0.0 }
 0x7f6   : > { %5803 = vadd.xlane.f32.xlu0 %v5802_v54  ;;  %7437 = vadd.xlane.f32.xlu1 %v7436_v0  ;;  %v6507_v0 = vsel %vm5597_vm7, %v6461_v38, 0.0  ;;  %v6628_v38 = vmul.f32 %v13927_v52, %v14000_v33 }
 0x7f7   : > { %v5786_v26 = vpop.xlane.xlu0 %5785  ;;  %v14467_v9 = vpop.xlane.xlu1 %6487 }
 0x7f8   : > { %v6696_v24 = vsel %vm5597_vm7, %v6628_v38, 0.0  ;;  %v5957_v23 = vrot.slane %v5786_v26, 1 }
 0x7fa   : > { %6166 = vadd.xlane.f32.xlu0 %v6165_v21  ;;  %7614 = vadd.xlane.f32.xlu1 %v7613_v34 }
 0x7fb   : > { %v6149_v20 = vpop.xlane.xlu0 %6148  ;;  %v6668_v57 = vpop.xlane.xlu1 %6667 }
 0x7fc   : > { %v6321_v54 = vrot.slane %v6149_v20, 2  ;;  %v6168_v20 = vsel %vm6140_vm10, %v6099_v55, 0.0  ;;  %v6858_v2 = vrot.slane %v6668_v57, 1 }
 0x7fe   : > { %6508 = vadd.xlane.f32.xlu0 %v6507_v0  ;;  %5800 = vadd.xlane.f32.xlu1 %v5799_v36  ;;  %v6322_v30 = vsel %vm799_vm3, %v6320_v46, %v6321_v54  ;;  %v7087_v46 = vsel %vm6140_vm10, %v7017_v58, 0.0 }
 0x7ff   : > { %v14482_v21 = vpop.xlane.xlu0 %6490  ;;  %v7056_v34 = vpop.xlane.xlu1 %7055 }
 0x800   : > { %v7246_v40 = vrot.slane %v7056_v34, 2 }
 0x802   : > { %6700 = vadd.xlane.f32.xlu0 %v6699_v16  ;;  %6169 = vadd.xlane.f32.xlu1 %v6168_v20 }
 0x803   : > { %v6671_v0 = vpop.xlane.xlu0 %6670  ;;  %v5783_v36 = vpop.xlane.xlu1 %5782 }
 0x804   : > { %v6859_v11 = vrot.slane %v6671_v0, 1  ;;  %v5955_v25 = vrot.slane %v5783_v36, 1  ;;  %v7557_v36 = vmul.f32 %v14084_v18, %v14000_v33 }
 0x806   : > { %v14499_v55 = vsel %vm622_vm1, %v6858_v2, %v6859_v11  ;;  %v5956_v58 = vsel %vm622_vm1, %v5954_v63, %v5955_v25  ;;  %v5958_v26 = vsel %vm622_vm1, %v5955_v25, %v5957_v23  ;;  %7088 = vadd.xlane.f32.xlu0 %v7087_v46  ;;  %6697 = vadd.xlane.f32.xlu1 %v6696_v24  ;;  %v7084_v2 = vsel %vm5597_vm7, %v7016_v31, 0.0 }
 0x807   : > { %v7059_v57 = vpop.xlane.xlu0 %7058  ;;  %v6152_v38 = vpop.xlane.xlu1 %6151  ;;  %v6056_v13 = vadd.f32 %v5956_v58, %v5690_v35  ;;  %v6057_v16 = vadd.f32 %v5958_v26, %v5691_v3  ;;  %v7558_v63 = vmul.f32 %v14084_v18, %v14455_v43  ;;  %v16914_v23 = vmax.f32 %v13995_v6, 0.0 }
 0x808   : > { %v7247_v20 = vrot.slane %v7059_v57, 2  ;;  %v6323_v0 = vrot.slane %v6152_v38, 2  ;;  %v7616_v58 = vsel %vm5597_vm7, %v7557_v36, 0.0  ;;  %v7924_v6 = vmul.f32 %v14033_v59, %v14455_v43 }
 0x809   : > { %v6422_v25 = vadd.f32 %v6322_v30, %v6056_v13  ;;  %v5346_v24 = vrot.slane %v16914_v23, 1  ;;  %v7619_v30 = vsel %vm5774_vm9, %v7558_v63, 0.0  ;;  %v7923_v26 = vmul.f32 %v14033_v59, %v14000_v33 }
 0x80a   : > { %v14512_v35 = vsel %vm799_vm3, %v7246_v40, %v7247_v20  ;;  %7440 = vadd.xlane.f32.xlu0 %v7439_v48  ;;  %7085 = vadd.xlane.f32.xlu1 %v7084_v2  ;;  %v6324_v3 = vsel %vm799_vm3, %v6321_v54, %v6323_v0 }
 0x80b   : > { %v6674_v34 = vpop.xlane.xlu1 %6673  ;;  %v14515_v46 = vpop.xlane.xlu0 %6135  ;;  %v14517_v14 = vadd.f32 %v6324_v3, %v6057_v16  ;;  %v14527_v48 = vsel %vm429_vm0, %v5346_v24, %v14022_v39  ;;  %v7985_v16 = vsel %vm6140_vm10, %v7924_v6, 0.0  ;;  %v7982_v43 = vsel %vm5597_vm7, %v7923_v26, 0.0 }
 0x80c   : > { %v6861_v31 = vrot.slane %v6674_v34, 1  ;;  %v6100_v33 = vmul.f32 %v13906_v10, %v14527_v48  ;;  %v5575_v39 = vmul.f32 %v13903_v60, %v14527_v48  ;;  %v7559_v63 = vmul.f32 %v14084_v18, %v14527_v48 }
 0x80d   : > { %v5734_v23 = vmul.f32 %v13900_v50, %v14527_v48 }
 0x80e   : > { %v14530_v54 = vsel %vm622_vm1, %v6859_v11, %v6861_v31  ;;  %7617 = vadd.xlane.f32.xlu0 %v7616_v58  ;;  %7620 = vadd.xlane.f32.xlu1 %v7619_v30  ;;  %v6171_v36 = vsel %vm6133_vm8, %v6100_v33, 0.0  ;;  %v5622_v2 = vsel %vm5597_vm7, %v5575_v39, 0.0  ;;  %v5576_v31 = vmul.f32 %v13903_v60, %v14038_v53 }
 0x80f   : > { %v7062_v57 = vpop.xlane.xlu1 %7061  ;;  %v14532_v38 = vpop.xlane.xlu0 %6676  ;;  %v5805_v34 = vsel %vm5767_vm6, %v5734_v23, 0.0  ;;  %v6462_v58 = vmul.f32 %v13917_v61, %v14527_v48  ;;  %v16915_v30 = vmax.f32 %v14010_v47, 0.0  ;;  %v6630_v39 = vmul.f32 %v13927_v52, %v14527_v48 }
 0x810   : > { %v7249_v13 = vrot.slane %v7062_v57, 2 }
 0x811   : > { %v5490_v6 = vrot.slane %v16915_v30, 5  ;;  %v6510_v33 = vsel %vm5597_vm7, %v6462_v58, 0.0 }
 0x812   : > { %7986 = vadd.xlane.f32.xlu0 %v7985_v16  ;;  %7983 = vadd.xlane.f32.xlu1 %v7982_v43  ;;  %v14541_v11 = vsel %vm799_vm3, %v7247_v20, %v7249_v13  ;;  %v7622_v20 = vsel %vm5767_vm6, %v7559_v63, 0.0  ;;  %v5735_v16 = vmul.f32 %v13900_v50, %v14038_v53  ;;  %v5625_v43 = vsel %vm5597_vm7, %v5576_v31, 0.0 }
 0x813   : > { %v14543_v40 = vpop.xlane.xlu0 %7064  ;;  %v5600_v0 = vpop.xlane.xlu1 %5599  ;;  %v14571_v47 = vsel %vm429_vm0, %v14026_v8, %v5490_v6  ;;  %v7018_v8 = vmul.f32 %v13939_v45, %v14527_v48 }
 0x814   : > { %v5808_v23 = vsel %vm5597_vm7, %v5735_v16, 0.0  ;;  %v6102_v31 = vmul.f32 %v13906_v10, %v14571_v47  ;;  %v6463_v16 = vmul.f32 %v13917_v61, %v14038_v53 }
 0x816   : > { %6172 = vadd.xlane.f32.xlu0 %v6171_v36  ;;  %5623 = vadd.xlane.f32.xlu1 %v5622_v2 }
 0x817   : > { %v14551_v24 = vpop.xlane.xlu0 %7962  ;;  %v5770_v3 = vpop.xlane.xlu1 %5769 }
 0x81a   : > { %7623 = vadd.xlane.f32.xlu0 %v7622_v20  ;;  %5806 = vadd.xlane.f32.xlu1 %v5805_v34  ;;  %v5688_v20 = vadd.f32 %v5600_v0, %v16913_v4  ;;  %v6702_v34 = vsel %vm5767_vm6, %v6630_v39, 0.0  ;;  %v7090_v0 = vsel %vm6133_vm8, %v7018_v8, 0.0  ;;  %v7925_v8 = vmul.f32 %v14033_v59, %v14527_v48 }
 0x81b   : > { %v5603_v26 = vpop.xlane.xlu0 %5602  ;;  %v6494_v57 = vpop.xlane.xlu1 %6493  ;;  %v5736_v59 = vmul.f32 %v13900_v50, %v14571_v47 }
 0x81c   : > { %v14561_v13 = vadd.f32 %v6494_v57, %v6422_v25  ;;  %v5949_v25 = vrot.slane %v5770_v3, 1  ;;  %v6177_v57 = vsel %vm6140_vm10, %v6102_v31, 0.0 }
 0x81e   : > { %5626 = vadd.xlane.f32.xlu0 %v5625_v43  ;;  %6511 = vadd.xlane.f32.xlu1 %v6510_v33  ;;  %v7400_v43 = vmul.f32 %v14058_v27, %v14527_v48 }
 0x81f   : > { %v5773_v36 = vpop.xlane.xlu0 %5772  ;;  %v14573_v2 = vpop.xlane.xlu1 %7425 }
 0x820   : > { %v5950_v63 = vrot.slane %v5773_v36, 1  ;;  %v7442_v31 = vsel %vm5597_vm7, %v7400_v43, 0.0  ;;  %v7988_v43 = vsel %vm6133_vm8, %v7925_v8, 0.0 }
 0x822   : > { %v5951_v58 = vsel %vm622_vm1, %v5949_v25, %v5950_v63  ;;  %5809 = vadd.xlane.f32.xlu0 %v5808_v23  ;;  %6703 = vadd.xlane.f32.xlu1 %v6702_v34  ;;  %v6631_v23 = vmul.f32 %v13927_v52, %v14038_v53  ;;  %v6513_v34 = vsel %vm5597_vm7, %v6463_v16, 0.0 }
 0x823   : > { %v6143_v30 = vpop.xlane.xlu0 %6142  ;;  %v14583_v6 = vpop.xlane.xlu1 %7596  ;;  %v6054_v3 = vadd.f32 %v5951_v58, %v5688_v20  ;;  %v5689_v20 = vadd.f32 %v5603_v26, %v16913_v4  ;;  %v7019_v26 = vmul.f32 %v13939_v45, %v14038_v53 }
 0x824   : > { %v6705_v16 = vsel %vm5597_vm7, %v6631_v23, 0.0  ;;  %v6863_v23 = vrot.slane %v14532_v38, 1 }
 0x826   : > { %6178 = vadd.xlane.f32.xlu0 %v6177_v57  ;;  %7091 = vadd.xlane.f32.xlu1 %v7090_v0 }
 0x827   : > { %v6497_v33 = vpop.xlane.xlu0 %6496  ;;  %v5777_v39 = vpop.xlane.xlu1 %5776 }
 0x828   : > { %v6585_v36 = vadd.f32 %v6497_v33, %v14517_v14  ;;  %v5952_v25 = vrot.slane %v5777_v39, 1  ;;  %v6315_v33 = vrot.slane %v14515_v46, 2  ;;  %v6318_v39 = vrot.slane %v6143_v30, 2 }
 0x82a   : > { %v5953_v58 = vsel %vm622_vm1, %v5950_v63, %v5952_v25  ;;  %6514 = vadd.xlane.f32.xlu0 %v6513_v34  ;;  %7443 = vadd.xlane.f32.xlu1 %v7442_v31  ;;  %v7401_v63 = vmul.f32 %v14058_v27, %v14038_v53 }
 0x82b   : > { %v6055_v57 = vadd.f32 %v5953_v58, %v5689_v20  ;;  %v6683_v0 = vpop.xlane.xlu0 %6682  ;;  %v6139_v14 = vpop.xlane.xlu1 %6138  ;;  %v7093_v58 = vsel %vm5597_vm7, %v7019_v26, 0.0 }
 0x82c   : > { %v6316_v51 = vrot.slane %v6139_v14, 2  ;;  %v6866_v31 = vrot.slane %v6683_v0, 1  ;;  %v5811_v14 = vsel %vm5774_vm9, %v5736_v59, 0.0  ;;  %v7445_v38 = vsel %vm5597_vm7, %v7401_v63, 0.0 }
 0x82e   : > { %v6319_v48 = vsel %vm799_vm3, %v6316_v51, %v6318_v39  ;;  %6706 = vadd.xlane.f32.xlu0 %v6705_v16  ;;  %7989 = vadd.xlane.f32.xlu1 %v7988_v43  ;;  %v6317_v46 = vsel %vm799_vm3, %v6315_v33, %v6316_v51  ;;  %v6101_v51 = vmul.f32 %v13906_v10, %v14038_v53 }
 0x82f   : > { %v14611_v30 = vadd.f32 %v6319_v48, %v6055_v57  ;;  %v7071_v25 = vpop.xlane.xlu0 %7070  ;;  %v6680_v20 = vpop.xlane.xlu1 %6679  ;;  %v14613_v34 = vadd.f32 %v6317_v46, %v6054_v3  ;;  %v7251_v48 = vrot.slane %v14543_v40, 2 }
 0x830   : > { %v6864_v8 = vrot.slane %v6680_v20, 1  ;;  %v7561_v20 = vmul.f32 %v14084_v18, %v14571_v47  ;;  %v6174_v63 = vsel %vm5597_vm7, %v6101_v51, 0.0 }
 0x831   : > { %v6583_v39 = vadd.f32 %v14482_v21, %v14611_v30  ;;  %v6582_v57 = vadd.f32 %v14467_v9, %v14613_v34  ;;  %v7254_v9 = vrot.slane %v7071_v25, 2 }
 0x832   : > { %v6865_v3 = vsel %vm622_vm1, %v6863_v23, %v6864_v8  ;;  %v6867_v33 = vsel %vm622_vm1, %v6864_v8, %v6866_v31  ;;  %7094 = vadd.xlane.f32.xlu0 %v7093_v58  ;;  %5812 = vadd.xlane.f32.xlu1 %v5811_v14 }
 0x833   : > { %v7429_v0 = vpop.xlane.xlu0 %7428  ;;  %v6971_v26 = vadd.f32 %v14530_v54, %v6583_v39  ;;  %v7068_v16 = vpop.xlane.xlu1 %7067  ;;  %v6970_v21 = vadd.f32 %v14499_v55, %v6582_v57  ;;  %v6972_v43 = vadd.f32 %v6865_v3, %v14561_v13  ;;  %v6973_v59 = vadd.f32 %v6867_v33, %v6585_v36  ;;  %v14654_v3 = vld [vmem:[%s16507_s7 + $0x8] ss:$0 sm:$0xff] }
 0x834   : > { %v7252_v46 = vrot.slane %v7068_v16, 2  ;;  %v6632_v54 = vmul.f32 %v13927_v52, %v14571_v47  ;;  %v16916_v55 = vmax.f32 %v14028_v32, 0.0  ;;  %v7775_v39 = vrot.slane %v14583_v6, 1 }
 0x835   : > { %v7359_v23 = vadd.f32 %v14541_v11, %v6971_v26  ;;  %v14638_v31 = vadd.f32 %v14512_v35, %v6970_v21  ;;  %v7628_v32 = vsel %vm5774_vm9, %v7561_v20, 0.0  ;;  %v7926_v33 = vmul.f32 %v14654_v3, %v14038_v53 }
 0x836   : > { %v5347_v13 = vrot.slane %v16916_v55, 1  ;;  %7446 = vadd.xlane.f32.xlu0 %v7445_v38  ;;  %6175 = vadd.xlane.f32.xlu1 %v6174_v63  ;;  %v7253_v40 = vsel %vm799_vm3, %v7251_v48, %v7252_v46  ;;  %v7255_v36 = vsel %vm799_vm3, %v7252_v46, %v7254_v9  ;;  %v6708_v57 = vsel %vm5774_vm9, %v6632_v54, 0.0 }
 0x837   : > { %v7515_v25 = vadd.f32 %v7429_v0, %v7359_v23  ;;  %v7600_v8 = vpop.xlane.xlu0 %7599  ;;  %v7603_v11 = vpop.xlane.xlu1 %7602  ;;  %v14644_v58 = vadd.f32 %v7253_v40, %v6972_v43  ;;  %v14646_v14 = vadd.f32 %v7255_v36, %v6973_v59  ;;  %v7020_v38 = vmul.f32 %v13939_v45, %v14571_v47 }
 0x838   : > { %v7776_v35 = vrot.slane %v7600_v8, 1  ;;  %v7778_v51 = vrot.slane %v7603_v11, 1  ;;  %v14662_v6 = vsel %vm429_vm0, %v5347_v13, %v14069_v15  ;;  %v8141_v59 = vrot.slane %v14551_v24, 2 }
 0x839   : > { %v7991_v46 = vsel %vm5597_vm7, %v7926_v33, 0.0  ;;  %v7096_v20 = vsel %vm6140_vm10, %v7020_v38, 0.0  ;;  %v5737_v15 = vmul.f32 %v13900_v50, %v14662_v6  ;;  %v7560_v23 = vmul.f32 %v14084_v18, %v14038_v53 }
 0x83a   : > { %v14665_v0 = vsel %vm622_vm1, %v7775_v39, %v7776_v35  ;;  %v7779_v26 = vsel %vm622_vm1, %v7776_v35, %v7778_v51  ;;  %7629 = vadd.xlane.f32.xlu0 %v7628_v32  ;;  %6709 = vadd.xlane.f32.xlu1 %v6708_v57  ;;  %v7927_v53 = vmul.f32 %v14654_v3, %v14571_v47 }
 0x83b   : > { %v7881_v16 = vadd.f32 %v7779_v26, %v7515_v25  ;;  %v7969_v21 = vpop.xlane.xlu0 %7968  ;;  %v7966_v43 = vpop.xlane.xlu1 %7965  ;;  %v5814_v40 = vsel %vm5767_vm6, %v5737_v15, 0.0  ;;  %v7625_v36 = vsel %vm5597_vm7, %v7560_v23, 0.0  ;;  %v6633_v25 = vmul.f32 %v13927_v52, %v14662_v6 }
 0x83c   : > { %v8144_v48 = vrot.slane %v7969_v21, 2  ;;  %v8142_v9 = vrot.slane %v7966_v43, 2  ;;  %v7994_v35 = vsel %vm6140_vm10, %v7927_v53, 0.0  ;;  %v7021_v51 = vmul.f32 %v13939_v45, %v14662_v6 }
 0x83d   : > { %v6711_v39 = vsel %vm5767_vm6, %v6633_v25, 0.0  ;;  %v5577_v32 = vmul.f32 %v13903_v60, %v14662_v6  ;;  %v6103_v21 = vmul.f32 %v13906_v10, %v14662_v6  ;;  %v16917_v43 = vmax.f32 %v14053_v62, 0.0 }
 0x83e   : > { %v14676_v63 = vsel %vm799_vm3, %v8141_v59, %v8142_v9  ;;  %v8145_v54 = vsel %vm799_vm3, %v8142_v9, %v8144_v48  ;;  %7992 = vadd.xlane.f32.xlu0 %v7991_v46  ;;  %7097 = vadd.xlane.f32.xlu1 %v7096_v20  ;;  %v7099_v38 = vsel %vm6133_vm8, %v7021_v51, 0.0  ;;  %v7402_v51 = vmul.f32 %v14058_v27, %v14662_v6 }
 0x83f   : > { %v14679_v24 = vadd.f32 %v8145_v54, %v7881_v16  ;;  %v14681_v55 = vpop.xlane.xlu0 %6154  ;;  %v5612_v13 = vpop.xlane.xlu1 %5611  ;;  %v5628_v26 = vsel %vm5597_vm7, %v5577_v32, 0.0  ;;  %v7928_v16 = vmul.f32 %v14654_v3, %v14662_v6  ;;  %v5491_v59 = vrot.slane %v16917_v43, 5 }
 0x840   : > { %v5692_v15 = vadd.f32 %v5612_v13, %v16913_v4  ;;  %v6180_v54 = vsel %vm6133_vm8, %v6103_v21, 0.0  ;;  %v6104_v21 = vmul.f32 %v13906_v10, %v14080_v44  ;;  %v7562_v43 = vmul.f32 %v14084_v18, %v14662_v6 }
 0x841   : > { %v7997_v23 = vsel %vm6133_vm8, %v7928_v16, 0.0  ;;  %v14715_v62 = vsel %vm429_vm0, %v14073_v49, %v5491_v59  ;;  %v7448_v16 = vsel %vm5597_vm7, %v7402_v51, 0.0 }
 0x842   : > { %5815 = vadd.xlane.f32.xlu0 %v5814_v40  ;;  %7626 = vadd.xlane.f32.xlu1 %v7625_v36  ;;  %v6464_v40 = vmul.f32 %v13917_v61, %v14662_v6 }
 0x843   : > { %v14689_v8 = vpop.xlane.xlu0 %7605  ;;  %v5789_v11 = vpop.xlane.xlu1 %5788 }
 0x844   : > { %v5959_v46 = vrot.slane %v5789_v11, 1 }
 0x846   : > { %6712 = vadd.xlane.f32.xlu0 %v6711_v39  ;;  %7995 = vadd.xlane.f32.xlu1 %v7994_v35  ;;  %v6516_v39 = vsel %vm5597_vm7, %v6464_v40, 0.0  ;;  %v5739_v35 = vmul.f32 %v13900_v50, %v14715_v62 }
 0x847   : > { %v5615_v57 = vpop.xlane.xlu0 %5614  ;;  %v6500_v33 = vpop.xlane.xlu1 %6499 }
 0x848   : > { %v6586_v47 = vadd.f32 %v6500_v33, %v14613_v34  ;;  %v5578_v34 = vmul.f32 %v13903_v60, %v14080_v44  ;;  %v5693_v51 = vadd.f32 %v5615_v57, %v16913_v4  ;;  %v6325_v57 = vrot.slane %v14681_v55, 2 }
 0x84a   : > { %7100 = vadd.xlane.f32.xlu0 %v7099_v38  ;;  %5629 = vadd.xlane.f32.xlu1 %v5628_v26  ;;  %v5631_v13 = vsel %vm5597_vm7, %v5578_v34, 0.0  ;;  %v5820_v26 = vsel %vm5774_vm9, %v5739_v35, 0.0  ;;  %v7631_v34 = vsel %vm5767_vm6, %v7562_v43, 0.0  ;;  %v6635_v35 = vmul.f32 %v13927_v52, %v14715_v62 }
 0x84b   : > { %v5792_v48 = vpop.xlane.xlu0 %5791  ;;  %v6686_v9 = vpop.xlane.xlu1 %6685 }
 0x84c   : > { %v5960_v20 = vrot.slane %v5792_v48, 1 }
 0x84e   : > { %v5961_v36 = vsel %vm622_vm1, %v5959_v46, %v5960_v20  ;;  %7998 = vadd.xlane.f32.xlu0 %v7997_v23  ;;  %6181 = vadd.xlane.f32.xlu1 %v6180_v54  ;;  %v5738_v23 = vmul.f32 %v13900_v50, %v14080_v44 }
 0x84f   : > { %v6161_v25 = vpop.xlane.xlu0 %6160  ;;  %v7074_v53 = vpop.xlane.xlu1 %7073  ;;  %v6058_v11 = vadd.f32 %v5961_v36, %v5692_v15  ;;  %v6465_v15 = vmul.f32 %v13917_v61, %v14080_v44 }
 0x852   : > { %5632 = vadd.xlane.f32.xlu0 %v5631_v13  ;;  %6517 = vadd.xlane.f32.xlu1 %v6516_v39  ;;  %v7256_v13 = vrot.slane %v7074_v53, 2 }
 0x853   : > { %v6503_v49 = vpop.xlane.xlu0 %6502  ;;  %v7432_v32 = vpop.xlane.xlu1 %7431 }
 0x854   : > { %v14725_v33 = vadd.f32 %v6503_v49, %v14611_v30  ;;  %v14728_v38 = vadd.f32 %v7432_v32, %v14644_v58  ;;  %v6868_v30 = vrot.slane %v6686_v9, 1  ;;  %v6183_v58 = vsel %vm5597_vm7, %v6104_v21, 0.0 }
 0x855   : > { %v6519_v49 = vsel %vm5597_vm7, %v6465_v15, 0.0  ;;  %v5817_v32 = vsel %vm5597_vm7, %v5738_v23, 0.0  ;;  %v6717_v15 = vsel %vm5774_vm9, %v6635_v35, 0.0 }
 0x856   : > { %5821 = vadd.xlane.f32.xlu0 %v5820_v26  ;;  %7449 = vadd.xlane.f32.xlu1 %v7448_v16  ;;  %v6105_v26 = vmul.f32 %v13906_v10, %v14715_v62 }
 0x857   : > { %v6689_v59 = vpop.xlane.xlu0 %6688  ;;  %v14736_v48 = vpop.xlane.xlu1 %7971 }
 0x858   : > { %v6869_v46 = vrot.slane %v6689_v59, 1  ;;  %v6186_v23 = vsel %vm6140_vm10, %v6105_v26, 0.0 }
 0x85a   : > { %v6870_v54 = vsel %vm622_vm1, %v6868_v30, %v6869_v46  ;;  %6184 = vadd.xlane.f32.xlu0 %v6183_v58  ;;  %7632 = vadd.xlane.f32.xlu1 %v7631_v34  ;;  %v6328_v30 = vrot.slane %v6161_v25, 2 }
 0x85b   : > { %v7077_v6 = vpop.xlane.xlu0 %7076  ;;  %v5795_v40 = vpop.xlane.xlu1 %5794  ;;  %v6974_v36 = vadd.f32 %v6870_v54, %v6586_v47  ;;  %v6634_v54 = vmul.f32 %v13927_v52, %v14080_v44 }
 0x85c   : > { %v7257_v9 = vrot.slane %v7077_v6, 2  ;;  %v5962_v39 = vrot.slane %v5795_v40, 1 }
 0x85d   : > { %v6714_v35 = vsel %vm5597_vm7, %v6634_v54, 0.0 }
 0x85e   : > { %v5963_v16 = vsel %vm622_vm1, %v5960_v20, %v5962_v39  ;;  %6520 = vadd.xlane.f32.xlu0 %v6519_v49  ;;  %5818 = vadd.xlane.f32.xlu1 %v5817_v32  ;;  %v7258_v47 = vsel %vm799_vm3, %v7256_v13, %v7257_v9  ;;  %v7023_v20 = vmul.f32 %v13939_v45, %v14715_v62 }
 0x85f   : > { %v7435_v53 = vpop.xlane.xlu0 %7434  ;;  %v6158_v21 = vpop.xlane.xlu1 %6157  ;;  %v14754_v43 = vadd.f32 %v7258_v47, %v6974_v36  ;;  %v6059_v59 = vadd.f32 %v5963_v16, %v5693_v51  ;;  %v7403_v51 = vmul.f32 %v14058_v27, %v14080_v44  ;;  %v7022_v49 = vmul.f32 %v13939_v45, %v14080_v44 }
 0x860   : > { %v7517_v58 = vadd.f32 %v7435_v53, %v14646_v14  ;;  %v6326_v34 = vrot.slane %v6158_v21, 2  ;;  %v7105_v39 = vsel %vm6140_vm10, %v7023_v20, 0.0  ;;  %v16918_v47 = vmax.f32 %v14075_v42, 0.0 }
 0x861   : > { %v8146_v21 = vrot.slane %v14736_v48, 2 }
 0x862   : > { %6718 = vadd.xlane.f32.xlu0 %v6717_v15  ;;  %6187 = vadd.xlane.f32.xlu1 %v6186_v23  ;;  %v6327_v6 = vsel %vm799_vm3, %v6325_v57, %v6326_v34  ;;  %v6329_v55 = vsel %vm799_vm3, %v6326_v34, %v6328_v30  ;;  %v5348_v53 = vrot.slane %v16918_v47, 1  ;;  %v7451_v30 = vsel %vm5597_vm7, %v7403_v51, 0.0 }
 0x863   : > { %v7612_v25 = vpop.xlane.xlu0 %7611  ;;  %v6692_v40 = vpop.xlane.xlu1 %6691  ;;  %v14766_v14 = vadd.f32 %v6327_v6, %v6058_v11  ;;  %v14768_v36 = vadd.f32 %v6329_v55, %v6059_v59  ;;  %v7102_v34 = vsel %vm5597_vm7, %v7022_v49, 0.0  ;;  %v7564_v15 = vmul.f32 %v14084_v18, %v14715_v62 }
 0x864   : > { %v6871_v13 = vrot.slane %v6692_v40, 1  ;;  %v14797_v54 = vsel %vm429_vm0, %v5348_v53, %v14108_v7  ;;  %v7780_v6 = vrot.slane %v14689_v8, 1  ;;  %v7783_v55 = vrot.slane %v7612_v25, 1 }
 0x865   : > { %v7514_v47 = vadd.f32 %v14573_v2, %v14638_v31  ;;  %v5740_v2 = vmul.f32 %v13900_v50, %v14797_v54 }
 0x866   : > { %v6872_v32 = vsel %vm622_vm1, %v6869_v46, %v6871_v13  ;;  %7106 = vadd.xlane.f32.xlu0 %v7105_v39  ;;  %6715 = vadd.xlane.f32.xlu1 %v6714_v35  ;;  %v7563_v46 = vmul.f32 %v14084_v18, %v14080_v44  ;;  %v7637_v39 = vsel %vm5774_vm9, %v7564_v15, 0.0  ;;  %v7929_v35 = vmul.f32 %v14654_v3, %v14080_v44 }
 0x867   : > { %v7975_v26 = vpop.xlane.xlu0 %7974  ;;  %v7080_v11 = vpop.xlane.xlu1 %7079  ;;  %v6975_v16 = vadd.f32 %v6872_v32, %v14725_v33 }
 0x868   : > { %v8147_v59 = vrot.slane %v7975_v26, 2  ;;  %v7259_v57 = vrot.slane %v7080_v11, 2  ;;  %v7634_v13 = vsel %vm5597_vm7, %v7563_v46, 0.0  ;;  %v6106_v11 = vmul.f32 %v13906_v10, %v14797_v54 }
 0x869   : > { %v8000_v44 = vsel %vm5597_vm7, %v7929_v35, 0.0 }
 0x86a   : > { %v14788_v23 = vsel %vm799_vm3, %v8146_v21, %v8147_v59  ;;  %7452 = vadd.xlane.f32.xlu0 %v7451_v30  ;;  %7103 = vadd.xlane.f32.xlu1 %v7102_v34  ;;  %v7260_v42 = vsel %vm799_vm3, %v7257_v9, %v7259_v57  ;;  %v7930_v9 = vmul.f32 %v14654_v3, %v14715_v62  ;;  %v6189_v34 = vsel %vm6133_vm8, %v6106_v11, 0.0 }
 0x86b   : > { %v14791_v33 = vpop.xlane.xlu0 %5797  ;;  %v7609_v48 = vpop.xlane.xlu1 %7608  ;;  %v14793_v20 = vadd.f32 %v7260_v42, %v6975_v16  ;;  %v5579_v16 = vmul.f32 %v13903_v60, %v14797_v54  ;;  %v7880_v57 = vadd.f32 %v14665_v0, %v7514_v47  ;;  %v7565_v30 = vmul.f32 %v14084_v18, %v14797_v54 }
 0x86c   : > { %v7781_v40 = vrot.slane %v7609_v48, 1  ;;  %v8003_v62 = vsel %vm6140_vm10, %v7930_v9, 0.0  ;;  %v5823_v42 = vsel %vm5767_vm6, %v5740_v2, 0.0  ;;  %v5580_v48 = vmul.f32 %v13903_v60, %v14119_v12 }
 0x86d   : > { %v5634_v46 = vsel %vm5597_vm7, %v5579_v16, 0.0  ;;  %v14832_v31 = vadd.f32 %v14676_v63, %v7880_v57  ;;  %v7640_v0 = vsel %vm5767_vm6, %v7565_v30, 0.0  ;;  %v7404_v30 = vmul.f32 %v14058_v27, %v14797_v54 }
 0x86e   : > { %v7782_v51 = vsel %vm622_vm1, %v7780_v6, %v7781_v40  ;;  %v7784_v49 = vsel %vm622_vm1, %v7781_v40, %v7783_v55  ;;  %7635 = vadd.xlane.f32.xlu0 %v7634_v13  ;;  %7638 = vadd.xlane.f32.xlu1 %v7637_v39  ;;  %v6466_v6 = vmul.f32 %v13917_v61, %v14797_v54  ;;  %v16919_v55 = vmax.f32 %v14096_v22, 0.0 }
 0x86f   : > { %v7882_v7 = vadd.f32 %v7782_v51, %v14728_v38  ;;  %v7883_v8 = vadd.f32 %v7784_v49, %v7517_v58  ;;  %v14809_v25 = vpop.xlane.xlu0 %6694  ;;  %v7978_v32 = vpop.xlane.xlu1 %7977  ;;  %v5637_v9 = vsel %vm5597_vm7, %v5580_v48, 0.0  ;;  %v5741_v51 = vmul.f32 %v13900_v50, %v14119_v12 }
 0x870   : > { %v8149_v26 = vrot.slane %v7978_v32, 2  ;;  %v5492_v40 = vrot.slane %v16919_v55, 5  ;;  %v6522_v35 = vsel %vm5597_vm7, %v6466_v6, 0.0  ;;  %v6636_v49 = vmul.f32 %v13927_v52, %v14797_v54 }
 0x871   : > { %v5826_v11 = vsel %vm5597_vm7, %v5741_v51, 0.0 }
 0x872   : > { %v8150_v38 = vsel %vm799_vm3, %v8147_v59, %v8149_v26  ;;  %8004 = vadd.xlane.f32.xlu0 %v8003_v62  ;;  %8001 = vadd.xlane.f32.xlu1 %v8000_v44  ;;  %v14855_v22 = vsel %vm429_vm0, %v14112_v56, %v5492_v40  ;;  %v6720_v62 = vsel %vm5767_vm6, %v6636_v49, 0.0  ;;  %v7024_v56 = vmul.f32 %v13939_v45, %v14797_v54 }
 0x873   : > { %v14820_v58 = vadd.f32 %v8150_v38, %v7883_v8  ;;  %v14822_v53 = vpop.xlane.xlu0 %7082  ;;  %v5618_v21 = vpop.xlane.xlu1 %5617  ;;  %v6108_v44 = vmul.f32 %v13906_v10, %v14855_v22 }
 0x874   : > { %v7108_v57 = vsel %vm6133_vm8, %v7024_v56, 0.0  ;;  %v5694_v40 = vadd.f32 %v5618_v21, %v16913_v4 }
 0x875   : > { %v6195_v38 = vsel %vm6140_vm10, %v6108_v44, 0.0 }
 0x876   : > { %6190 = vadd.xlane.f32.xlu0 %v6189_v34  ;;  %5635 = vadd.xlane.f32.xlu1 %v5634_v46 }
 0x877   : > { %v14834_v59 = vpop.xlane.xlu0 %7980  ;;  %v6164_v15 = vpop.xlane.xlu1 %6163 }
 0x87a   : > { %7641 = vadd.xlane.f32.xlu0 %v7640_v0  ;;  %5824 = vadd.xlane.f32.xlu1 %v5823_v42  ;;  %v6637_v42 = vmul.f32 %v13927_v52, %v14119_v12 }
 0x87b   : > { %v5621_v63 = vpop.xlane.xlu0 %5620  ;;  %v6506_v13 = vpop.xlane.xlu1 %6505 }
 0x87c   : > { %v14845_v39 = vadd.f32 %v6506_v13, %v14766_v14  ;;  %v14858_v14 = vadd.f32 %v14788_v23, %v7882_v7  ;;  %v6467_v23 = vmul.f32 %v13917_v61, %v14119_v12  ;;  %v5695_v13 = vadd.f32 %v5621_v63, %v16913_v4 }
 0x87d   : > { %v6723_v21 = vsel %vm5597_vm7, %v6637_v42, 0.0 }
 0x87e   : > { %5638 = vadd.xlane.f32.xlu0 %v5637_v9  ;;  %6523 = vadd.xlane.f32.xlu1 %v6522_v35  ;;  %v6525_v0 = vsel %vm5597_vm7, %v6467_v23, 0.0  ;;  %v7454_v9 = vsel %vm5597_vm7, %v7404_v30, 0.0  ;;  %v7931_v35 = vmul.f32 %v14654_v3, %v14797_v54  ;;  %v5742_v54 = vmul.f32 %v13900_v50, %v14855_v22 }
 0x87f   : > { %v5804_v8 = vpop.xlane.xlu0 %5803  ;;  %v7438_v32 = vpop.xlane.xlu1 %7437 }
 0x880   : > { %v14861_v26 = vadd.f32 %v7438_v32, %v14754_v43  ;;  %v6330_v43 = vrot.slane %v6164_v15, 2  ;;  %v5964_v15 = vrot.slane %v14791_v33, 1  ;;  %v5967_v48 = vrot.slane %v5804_v8, 1 }
 0x881   : > { %v8006_v63 = vsel %vm6133_vm8, %v7931_v35, 0.0 }
 0x882   : > { %5827 = vadd.xlane.f32.xlu0 %v5826_v11  ;;  %6721 = vadd.xlane.f32.xlu1 %v6720_v62  ;;  %v7025_v62 = vmul.f32 %v13939_v45, %v14119_v12 }
 0x883   : > { %v6167_v16 = vpop.xlane.xlu0 %6166  ;;  %v14869_v47 = vpop.xlane.xlu1 %7614 }
 0x884   : > { %v6331_v7 = vrot.slane %v6167_v16, 2 }
 0x886   : > { %6196 = vadd.xlane.f32.xlu0 %v6195_v38  ;;  %7109 = vadd.xlane.f32.xlu1 %v7108_v57  ;;  %v6332_v34 = vsel %vm799_vm3, %v6330_v43, %v6331_v7  ;;  %v6873_v38 = vrot.slane %v14809_v25, 1 }
 0x887   : > { %v6509_v46 = vpop.xlane.xlu0 %6508  ;;  %v5801_v2 = vpop.xlane.xlu1 %5800 }
 0x888   : > { %v6589_v6 = vadd.f32 %v6509_v46, %v14768_v36  ;;  %v5965_v55 = vrot.slane %v5801_v2, 1  ;;  %v7111_v46 = vsel %vm5597_vm7, %v7025_v62, 0.0  ;;  %v5829_v2 = vsel %vm5774_vm9, %v5742_v54, 0.0 }
 0x88a   : > { %v5966_v51 = vsel %vm622_vm1, %v5964_v15, %v5965_v55  ;;  %v5968_v49 = vsel %vm622_vm1, %v5965_v55, %v5967_v48  ;;  %6526 = vadd.xlane.f32.xlu0 %v6525_v0  ;;  %7455 = vadd.xlane.f32.xlu1 %v7454_v9  ;;  %v6107_v0 = vmul.f32 %v13906_v10, %v14119_v12 }
 0x88b   : > { %v6701_v33 = vpop.xlane.xlu0 %6700  ;;  %v6170_v8 = vpop.xlane.xlu1 %6169  ;;  %v6060_v32 = vadd.f32 %v5966_v51, %v5694_v40  ;;  %v6061_v36 = vadd.f32 %v5968_v49, %v5695_v13  ;;  %v7261_v40 = vrot.slane %v14822_v53, 2 }
 0x88c   : > { %v6333_v11 = vrot.slane %v6170_v8, 2  ;;  %v6876_v57 = vrot.slane %v6701_v33, 1  ;;  %v6192_v49 = vsel %vm5597_vm7, %v6107_v0, 0.0  ;;  %v7567_v33 = vmul.f32 %v14084_v18, %v14855_v22 }
 0x88d   : > { %v14896_v44 = vadd.f32 %v6332_v34, %v6060_v32  ;;  %v7405_v34 = vmul.f32 %v14058_v27, %v14119_v12  ;;  %v6638_v8 = vmul.f32 %v13927_v52, %v14855_v22  ;;  %v16920_v32 = vmax.f32 %v14114_v29, 0.0 }
 0x88e   : > { %6724 = vadd.xlane.f32.xlu0 %v6723_v21  ;;  %8007 = vadd.xlane.f32.xlu1 %v8006_v63  ;;  %v6334_v56 = vsel %vm799_vm3, %v6331_v7, %v6333_v11  ;;  %v7785_v63 = vrot.slane %v14869_v47, 1  ;;  %v8151_v0 = vrot.slane %v14834_v59, 2 }
 0x88f   : > { %v7089_v16 = vpop.xlane.xlu0 %7088  ;;  %v6698_v23 = vpop.xlane.xlu1 %6697  ;;  %v14899_v43 = vadd.f32 %v6334_v56, %v6061_v36  ;;  %v7457_v51 = vsel %vm5597_vm7, %v7405_v34, 0.0  ;;  %v7646_v56 = vsel %vm5774_vm9, %v7567_v33, 0.0  ;;  %v6726_v29 = vsel %vm5774_vm9, %v6638_v8, 0.0 }
 0x890   : > { %v6874_v30 = vrot.slane %v6698_v23, 1  ;;  %v7264_v13 = vrot.slane %v7089_v16, 2  ;;  %v7932_v16 = vmul.f32 %v14654_v3, %v14119_v12  ;;  %v7026_v23 = vmul.f32 %v13939_v45, %v14855_v22 }
 0x892   : > { %v6875_v7 = vsel %vm622_vm1, %v6873_v38, %v6874_v30  ;;  %v6877_v42 = vsel %vm622_vm1, %v6874_v30, %v6876_v57  ;;  %7112 = vadd.xlane.f32.xlu0 %v7111_v46  ;;  %5830 = vadd.xlane.f32.xlu1 %v5829_v2 }
 0x893   : > { %v7441_v15 = vpop.xlane.xlu0 %7440  ;;  %v7086_v25 = vpop.xlane.xlu1 %7085  ;;  %v6976_v48 = vadd.f32 %v6875_v7, %v14845_v39  ;;  %v6977_v55 = vadd.f32 %v6877_v42, %v6589_v6  ;;  %v5349_v39 = vrot.slane %v16920_v32, 1 }
 0x894   : > { %v7519_v9 = vadd.f32 %v7441_v15, %v14793_v20  ;;  %v7262_v35 = vrot.slane %v7086_v25, 2  ;;  %v8009_v15 = vsel %vm5597_vm7, %v7932_v16, 0.0 }
 0x895   : > { %v14936_v38 = vsel %vm429_vm0, %v5349_v39, %v14143_v5  ;;  %v7114_v5 = vsel %vm6140_vm10, %v7026_v23, 0.0 }
 0x896   : > { %7458 = vadd.xlane.f32.xlu0 %v7457_v51  ;;  %6193 = vadd.xlane.f32.xlu1 %v6192_v49  ;;  %v7263_v53 = vsel %vm799_vm3, %v7261_v40, %v7262_v35  ;;  %v7265_v20 = vsel %vm799_vm3, %v7262_v35, %v7264_v13  ;;  %v5743_v25 = vmul.f32 %v13900_v50, %v14936_v38 }
 0x897   : > { %v7618_v6 = vpop.xlane.xlu0 %7617  ;;  %v7621_v36 = vpop.xlane.xlu1 %7620  ;;  %v14923_v11 = vadd.f32 %v7263_v53, %v6976_v48  ;;  %v14925_v21 = vadd.f32 %v7265_v20, %v6977_v55  ;;  %v7566_v48 = vmul.f32 %v14084_v18, %v14119_v12  ;;  %v6639_v12 = vmul.f32 %v13927_v52, %v14936_v38 }
 0x898   : > { %v7786_v62 = vrot.slane %v7618_v6, 1  ;;  %v7788_v54 = vrot.slane %v7621_v36, 1  ;;  %v5832_v35 = vsel %vm5767_vm6, %v5743_v25, 0.0  ;;  %v7933_v49 = vmul.f32 %v14654_v3, %v14855_v22 }
 0x899   : > { %v7643_v51 = vsel %vm5597_vm7, %v7566_v48, 0.0  ;;  %v6729_v32 = vsel %vm5767_vm6, %v6639_v12, 0.0  ;;  %v7027_v53 = vmul.f32 %v13939_v45, %v14936_v38  ;;  %v5581_v20 = vmul.f32 %v13903_v60, %v14936_v38 }
 0x89a   : > { %v7787_v57 = vsel %vm622_vm1, %v7785_v63, %v7786_v62  ;;  %v7789_v47 = vsel %vm622_vm1, %v7786_v62, %v7788_v54  ;;  %7647 = vadd.xlane.f32.xlu0 %v7646_v56  ;;  %6727 = vadd.xlane.f32.xlu1 %v6726_v29  ;;  %v8012_v39 = vsel %vm6140_vm10, %v7933_v49, 0.0  ;;  %v7934_v54 = vmul.f32 %v14654_v3, %v14936_v38 }
 0x89b   : > { %v7884_v30 = vadd.f32 %v7787_v57, %v14861_v26  ;;  %v7885_v46 = vadd.f32 %v7789_v47, %v7519_v9  ;;  %v7987_v2 = vpop.xlane.xlu0 %7986  ;;  %v7984_v34 = vpop.xlane.xlu1 %7983  ;;  %v7117_v63 = vsel %vm6133_vm8, %v7027_v53, 0.0  ;;  %v5640_v62 = vsel %vm5597_vm7, %v5581_v20, 0.0 }
 0x89c   : > { %v8154_v7 = vrot.slane %v7987_v2, 2  ;;  %v8152_v42 = vrot.slane %v7984_v34, 2  ;;  %v6109_v56 = vmul.f32 %v13906_v10, %v14936_v38  ;;  %v16921_v29 = vmax.f32 %v14129_v17, 0.0 }
 0x89d   : > { %v8015_v2 = vsel %vm6133_vm8, %v7934_v54, 0.0 }
 0x89e   : > { %v8153_v55 = vsel %vm799_vm3, %v8151_v0, %v8152_v42  ;;  %v8155_v26 = vsel %vm799_vm3, %v8152_v42, %v8154_v7  ;;  %8010 = vadd.xlane.f32.xlu0 %v8009_v15  ;;  %7115 = vadd.xlane.f32.xlu1 %v7114_v5  ;;  %v5493_v16 = vrot.slane %v16921_v29, 5  ;;  %v6198_v34 = vsel %vm6133_vm8, %v6109_v56, 0.0 }
 0x89f   : > { %v14950_v40 = vadd.f32 %v8153_v55, %v7884_v30  ;;  %v14952_v59 = vadd.f32 %v8155_v26, %v7885_v46  ;;  %v14954_v13 = vpop.xlane.xlu0 %6172  ;;  %v5624_v9 = vpop.xlane.xlu1 %5623  ;;  %v6468_v0 = vmul.f32 %v13917_v61, %v14936_v38  ;;  %v7406_v26 = vmul.f32 %v14058_v27, %v14936_v38 }
 0x8a0   : > { %v5696_v46 = vadd.f32 %v5624_v9, %v16913_v4  ;;  %v14988_v17 = vsel %vm429_vm0, %v14147_v1, %v5493_v16 }
 0x8a1   : > { %v6528_v48 = vsel %vm5597_vm7, %v6468_v0, 0.0  ;;  %v5745_v55 = vmul.f32 %v13900_v50, %v14988_v17  ;;  %v7460_v49 = vsel %vm5597_vm7, %v7406_v26, 0.0 }
 0x8a2   : > { %5833 = vadd.xlane.f32.xlu0 %v5832_v35  ;;  %7644 = vadd.xlane.f32.xlu1 %v7643_v51 }
 0x8a3   : > { %v14962_v33 = vpop.xlane.xlu0 %7623  ;;  %v5807_v8 = vpop.xlane.xlu1 %5806  ;;  %v5838_v12 = vsel %vm5774_vm9, %v5745_v55, 0.0 }
 0x8a4   : > { %v5969_v47 = vrot.slane %v5807_v8, 1  ;;  %v6110_v8 = vmul.f32 %v13906_v10, %v14155_v19 }
 0x8a6   : > { %6730 = vadd.xlane.f32.xlu0 %v6729_v32  ;;  %8013 = vadd.xlane.f32.xlu1 %v8012_v39  ;;  %v7568_v32 = vmul.f32 %v14084_v18, %v14936_v38 }
 0x8a7   : > { %v5627_v6 = vpop.xlane.xlu0 %5626  ;;  %v6512_v36 = vpop.xlane.xlu1 %6511 }
 0x8a8   : > { %v6590_v22 = vadd.f32 %v6512_v36, %v14896_v44  ;;  %v5582_v44 = vmul.f32 %v13903_v60, %v14155_v19  ;;  %v7649_v36 = vsel %vm5767_vm6, %v7568_v32, 0.0 }
 0x8aa   : > { %7118 = vadd.xlane.f32.xlu0 %v7117_v63  ;;  %5641 = vadd.xlane.f32.xlu1 %v5640_v62  ;;  %v5643_v25 = vsel %vm5597_vm7, %v5582_v44, 0.0  ;;  %v6469_v63 = vmul.f32 %v13917_v61, %v14155_v19  ;;  %v5744_v62 = vmul.f32 %v13900_v50, %v14155_v19  ;;  %v5697_v44 = vadd.f32 %v5627_v6, %v16913_v4 }
 0x8ab   : > { %v5810_v23 = vpop.xlane.xlu0 %5809  ;;  %v6704_v57 = vpop.xlane.xlu1 %6703  ;;  %v6335_v6 = vrot.slane %v14954_v13, 2 }
 0x8ac   : > { %v5970_v30 = vrot.slane %v5810_v23, 1 }
 0x8ae   : > { %v5971_v7 = vsel %vm622_vm1, %v5969_v47, %v5970_v30  ;;  %8016 = vadd.xlane.f32.xlu0 %v8015_v2  ;;  %6199 = vadd.xlane.f32.xlu1 %v6198_v34  ;;  %v6641_v47 = vmul.f32 %v13927_v52, %v14988_v17  ;;  %v5835_v2 = vsel %vm5597_vm7, %v5744_v62, 0.0  ;;  %v6111_v34 = vmul.f32 %v13906_v10, %v14988_v17 }
 0x8af   : > { %v6179_v42 = vpop.xlane.xlu0 %6178  ;;  %v7092_v15 = vpop.xlane.xlu1 %7091  ;;  %v6062_v5 = vadd.f32 %v5971_v7, %v5696_v46  ;;  %v6531_v46 = vsel %vm5597_vm7, %v6469_v63, 0.0  ;;  %v7407_v63 = vmul.f32 %v14058_v27, %v14155_v19  ;;  %v7028_v62 = vmul.f32 %v13939_v45, %v14155_v19 }
 0x8b0   : > { %v7266_v16 = vrot.slane %v7092_v15, 2  ;;  %v6338_v55 = vrot.slane %v6179_v42, 2 }
 0x8b2   : > { %5644 = vadd.xlane.f32.xlu0 %v5643_v25  ;;  %6529 = vadd.xlane.f32.xlu1 %v6528_v48 }
 0x8b3   : > { %v6515_v1 = vpop.xlane.xlu0 %6514  ;;  %v7444_v9 = vpop.xlane.xlu1 %7443 }
 0x8b4   : > { %v14998_v35 = vadd.f32 %v6515_v1, %v14899_v43  ;;  %v15001_v51 = vadd.f32 %v7444_v9, %v14923_v11  ;;  %v6878_v43 = vrot.slane %v6704_v57, 1  ;;  %v6201_v11 = vsel %vm5597_vm7, %v6110_v8, 0.0 }
 0x8b5   : > { %v6735_v9 = vsel %vm5774_vm9, %v6641_v47, 0.0  ;;  %v7463_v47 = vsel %vm5597_vm7, %v7407_v63, 0.0 }
 0x8b6   : > { %5839 = vadd.xlane.f32.xlu0 %v5838_v12  ;;  %7461 = vadd.xlane.f32.xlu1 %v7460_v49  ;;  %v6204_v12 = vsel %vm6140_vm10, %v6111_v34, 0.0  ;;  %v6640_v49 = vmul.f32 %v13927_v52, %v14155_v19 }
 0x8b7   : > { %v6707_v39 = vpop.xlane.xlu0 %6706  ;;  %v15009_v53 = vpop.xlane.xlu1 %7989 }
 0x8b8   : > { %v6879_v20 = vrot.slane %v6707_v39, 1 }
 0x8ba   : > { %v6880_v54 = vsel %vm622_vm1, %v6878_v43, %v6879_v20  ;;  %6202 = vadd.xlane.f32.xlu0 %v6201_v11  ;;  %7650 = vadd.xlane.f32.xlu1 %v7649_v36  ;;  %v6732_v36 = vsel %vm5597_vm7, %v6640_v49, 0.0 }
 0x8bb   : > { %v7095_v38 = vpop.xlane.xlu0 %7094  ;;  %v5813_v56 = vpop.xlane.xlu1 %5812  ;;  %v6978_v29 = vadd.f32 %v6880_v54, %v6590_v22 }
 0x8bc   : > { %v7267_v23 = vrot.slane %v7095_v38, 2  ;;  %v5972_v57 = vrot.slane %v5813_v56, 1 }
 0x8be   : > { %v5973_v0 = vsel %vm622_vm1, %v5970_v30, %v5972_v57  ;;  %6532 = vadd.xlane.f32.xlu0 %v6531_v46  ;;  %5836 = vadd.xlane.f32.xlu1 %v5835_v2  ;;  %v7268_v22 = vsel %vm799_vm3, %v7266_v16, %v7267_v23  ;;  %v7029_v30 = vmul.f32 %v13939_v45, %v14988_v17  ;;  %v16922_v2 = vmax.f32 %v14149_v28, 0.0 }
 0x8bf   : > { %v7447_v7 = vpop.xlane.xlu0 %7446  ;;  %v6176_v15 = vpop.xlane.xlu1 %6175  ;;  %v15027_v25 = vadd.f32 %v7268_v22, %v6978_v29  ;;  %v6063_v48 = vadd.f32 %v5973_v0, %v5697_v44  ;;  %v8156_v29 = vrot.slane %v15009_v53, 2  ;;  %v7120_v44 = vsel %vm5597_vm7, %v7028_v62, 0.0 }
 0x8c0   : > { %v7521_v26 = vadd.f32 %v7447_v7, %v14925_v21  ;;  %v6336_v1 = vrot.slane %v6176_v15, 2  ;;  %v7123_v11 = vsel %vm6140_vm10, %v7029_v30, 0.0  ;;  %v7569_v46 = vmul.f32 %v14084_v18, %v14155_v19 }
 0x8c1   : > { %v5350_v34 = vrot.slane %v16922_v2, 1  ;;  %v7790_v15 = vrot.slane %v14962_v33, 1 }
 0x8c2   : > { %6736 = vadd.xlane.f32.xlu0 %v6735_v9  ;;  %6205 = vadd.xlane.f32.xlu1 %v6204_v12  ;;  %v6337_v8 = vsel %vm799_vm3, %v6335_v6, %v6336_v1  ;;  %v6339_v13 = vsel %vm799_vm3, %v6336_v1, %v6338_v55  ;;  %v7652_v55 = vsel %vm5597_vm7, %v7569_v46, 0.0  ;;  %v7936_v1 = vmul.f32 %v14654_v3, %v14988_v17 }
 0x8c3   : > { %v7630_v42 = vpop.xlane.xlu0 %7629  ;;  %v6710_v32 = vpop.xlane.xlu1 %6709  ;;  %v15039_v21 = vadd.f32 %v6337_v8, %v6062_v5  ;;  %v15041_v39 = vadd.f32 %v6339_v13, %v6063_v48  ;;  %v7935_v9 = vmul.f32 %v14654_v3, %v14155_v19 }
 0x8c4   : > { %v6881_v43 = vrot.slane %v6710_v32, 1  ;;  %v7793_v48 = vrot.slane %v7630_v42, 1  ;;  %v8021_v42 = vsel %vm6140_vm10, %v7936_v1, 0.0 }
 0x8c5   : > { %v8018_v19 = vsel %vm5597_vm7, %v7935_v9, 0.0 }
 0x8c6   : > { %v6882_v54 = vsel %vm622_vm1, %v6879_v20, %v6881_v43  ;;  %7124 = vadd.xlane.f32.xlu0 %v7123_v11  ;;  %6733 = vadd.xlane.f32.xlu1 %v6732_v36  ;;  %v7570_v20 = vmul.f32 %v14084_v18, %v14988_v17 }
 0x8c7   : > { %v7993_v38 = vpop.xlane.xlu0 %7992  ;;  %v7098_v5 = vpop.xlane.xlu1 %7097  ;;  %v6979_v56 = vadd.f32 %v6882_v54, %v14998_v35 }
 0x8c8   : > { %v8157_v16 = vrot.slane %v7993_v38, 2  ;;  %v7269_v57 = vrot.slane %v7098_v5, 2  ;;  %v7655_v28 = vsel %vm5774_vm9, %v7570_v20, 0.0 }
 0x8ca   : > { %v8158_v0 = vsel %vm799_vm3, %v8156_v29, %v8157_v16  ;;  %7464 = vadd.xlane.f32.xlu0 %v7463_v47  ;;  %7121 = vadd.xlane.f32.xlu1 %v7120_v44  ;;  %v7270_v35 = vsel %vm799_vm3, %v7267_v23, %v7269_v57  ;;  %v15075_v23 = vsel %vm429_vm0, %v5350_v34, %v14179_v37  ;;  %v16923_v57 = vld [vmem:[#allocation30_spill] sm:$0xff] }
 0x8cb   : > { %v15062_v53 = vpop.xlane.xlu0 %5815  ;;  %v7627_v22 = vpop.xlane.xlu1 %7626  ;;  %v15064_v7 = vadd.f32 %v7270_v35, %v6979_v56  ;;  %v6112_v37 = vmul.f32 %v13906_v10, %v15075_v23  ;;  %v5583_v3 = vmul.f32 %v13903_v60, %v15075_v23  ;;  %v7571_v63 = vmul.f32 %v14084_v18, %v15075_v23 }
 0x8cc   : > { %v7791_v6 = vrot.slane %v7627_v22, 1  ;;  %v5746_v62 = vmul.f32 %v13900_v50, %v15075_v23  ;;  %v5584_v29 = vmul.f32 %v13903_v60, %v14190_v41  ;;  %v16924_v47 = vmax.f32 %v16923_v57, 0.0 }
 0x8cd   : > { %v6207_v11 = vsel %vm6133_vm8, %v6112_v37, 0.0  ;;  %v5646_v36 = vsel %vm5597_vm7, %v5583_v3, 0.0  ;;  %v7658_v5 = vsel %vm5767_vm6, %v7571_v63, 0.0  ;;  %v5747_v22 = vmul.f32 %v13900_v50, %v14190_v41  ;;  %v15147_v63 = vld [vmem:[%s16507_s7 + $0x8] ss:$0 sm:$0xff] }
 0x8ce   : > { %v7792_v12 = vsel %vm622_vm1, %v7790_v15, %v7791_v6  ;;  %v7794_v33 = vsel %vm622_vm1, %v7791_v6, %v7793_v48  ;;  %7653 = vadd.xlane.f32.xlu0 %v7652_v55  ;;  %7656 = vadd.xlane.f32.xlu1 %v7655_v28  ;;  %v5841_v56 = vsel %vm5767_vm6, %v5746_v62, 0.0  ;;  %v5494_v44 = vrot.slane %v16924_v47, 5  ;;  %v16925_v48 = vld [vmem:[#allocation18_spill] sm:$0xff] }
 0x8cf   : > { %v7886_v30 = vadd.f32 %v7792_v12, %v15001_v51  ;;  %v7887_v49 = vadd.f32 %v7794_v33, %v7521_v26  ;;  %v15080_v8 = vpop.xlane.xlu0 %6712  ;;  %v7996_v13 = vpop.xlane.xlu1 %7995  ;;  %v5649_v34 = vsel %vm5597_vm7, %v5584_v29, 0.0  ;;  %v6642_v15 = vmul.f32 %v13927_v52, %v15075_v23 }
 0x8d0   : > { %v8159_v17 = vrot.slane %v7996_v13, 2  ;;  %v15120_v6 = vsel %vm429_vm0, %v16925_v48, %v5494_v44  ;;  %v5844_v9 = vsel %vm5597_vm7, %v5747_v22, 0.0  ;;  %v7408_v37 = vmul.f32 %v14058_v27, %v15075_v23 }
 0x8d1   : > { %v6738_v12 = vsel %vm5767_vm6, %v6642_v15, 0.0  ;;  %v6114_v33 = vmul.f32 %v13906_v10, %v15120_v6  ;;  %v7937_v62 = vmul.f32 %v15147_v63, %v15075_v23  ;;  %v5748_v48 = vmul.f32 %v13900_v50, %v15120_v6 }
 0x8d2   : > { %v8160_v32 = vsel %vm799_vm3, %v8157_v16, %v8159_v17  ;;  %8022 = vadd.xlane.f32.xlu0 %v8021_v42  ;;  %8019 = vadd.xlane.f32.xlu1 %v8018_v19  ;;  %v6470_v16 = vmul.f32 %v13917_v61, %v15075_v23  ;;  %v6471_v19 = vmul.f32 %v13917_v61, %v14190_v41  ;;  %v7466_v44 = vsel %vm5597_vm7, %v7408_v37, 0.0 }
 0x8d3   : > { %v15089_v51 = vadd.f32 %v8160_v32, %v7887_v49  ;;  %v15091_v26 = vpop.xlane.xlu0 %7100  ;;  %v5630_v43 = vpop.xlane.xlu1 %5629  ;;  %v7030_v49 = vmul.f32 %v13939_v45, %v15075_v23  ;;  %v8024_v15 = vsel %vm6133_vm8, %v7937_v62, 0.0  ;;  %v6113_v37 = vmul.f32 %v13906_v10, %v14190_v41 }
 0x8d4   : > { %v6534_v35 = vsel %vm5597_vm7, %v6470_v16, 0.0  ;;  %v5698_v16 = vadd.f32 %v5630_v43, %v16913_v4  ;;  %v6537_v47 = vsel %vm5597_vm7, %v6471_v19, 0.0  ;;  %v7031_v43 = vmul.f32 %v13939_v45, %v14190_v41 }
 0x8d5   : > { %v7126_v42 = vsel %vm6133_vm8, %v7030_v49, 0.0  ;;  %v6883_v49 = vrot.slane %v15080_v8, 1  ;;  %v7409_v19 = vmul.f32 %v14058_v27, %v14190_v41  ;;  %v7271_v62 = vrot.slane %v15091_v26, 2 }
 0x8d6   : > { %6208 = vadd.xlane.f32.xlu0 %v6207_v11  ;;  %5647 = vadd.xlane.f32.xlu1 %v5646_v36  ;;  %v6643_v36 = vmul.f32 %v13927_v52, %v14190_v41 }
 0x8d7   : > { %v15099_v54 = vpop.xlane.xlu0 %7998  ;;  %v6182_v38 = vpop.xlane.xlu1 %6181 }
 0x8da   : > { %7659 = vadd.xlane.f32.xlu0 %v7658_v5  ;;  %5842 = vadd.xlane.f32.xlu1 %v5841_v56 }
 0x8db   : > { %v5633_v46 = vpop.xlane.xlu0 %5632  ;;  %v6518_v20 = vpop.xlane.xlu1 %6517 }
 0x8dc   : > { %v15110_v2 = vadd.f32 %v6518_v20, %v15039_v21  ;;  %v15122_v21 = vadd.f32 %v8158_v0, %v7886_v30  ;;  %v6340_v0 = vrot.slane %v6182_v38, 2  ;;  %v5974_v38 = vrot.slane %v15062_v53, 1 }
 0x8dd   : > { %v5699_v57 = vadd.f32 %v5633_v46, %v16913_v4  ;;  %v6741_v46 = vsel %vm5597_vm7, %v6643_v36, 0.0 }
 0x8de   : > { %5650 = vadd.xlane.f32.xlu0 %v5649_v34  ;;  %6535 = vadd.xlane.f32.xlu1 %v6534_v35 }
 0x8df   : > { %v5822_v55 = vpop.xlane.xlu0 %5821  ;;  %v7450_v28 = vpop.xlane.xlu1 %7449 }
 0x8e0   : > { %v15125_v1 = vadd.f32 %v7450_v28, %v15027_v25  ;;  %v6213_v25 = vsel %vm6140_vm10, %v6114_v33, 0.0  ;;  %v5977_v5 = vrot.slane %v5822_v55, 1 }
 0x8e2   : > { %5845 = vadd.xlane.f32.xlu0 %v5844_v9  ;;  %6739 = vadd.xlane.f32.xlu1 %v6738_v12 }
 0x8e3   : > { %v6185_v13 = vpop.xlane.xlu0 %6184  ;;  %v15133_v17 = vpop.xlane.xlu1 %7632 }
 0x8e4   : > { %v6341_v30 = vrot.slane %v6185_v13, 2 }
 0x8e6   : > { %6214 = vadd.xlane.f32.xlu0 %v6213_v25  ;;  %7127 = vadd.xlane.f32.xlu1 %v7126_v42  ;;  %v6342_v3 = vsel %vm799_vm3, %v6340_v0, %v6341_v30  ;;  %v7129_v25 = vsel %vm5597_vm7, %v7031_v43, 0.0  ;;  %v5847_v42 = vsel %vm5774_vm9, %v5748_v48, 0.0  ;;  %v7938_v48 = vmul.f32 %v15147_v63, %v14190_v41 }
 0x8e7   : > { %v6521_v32 = vpop.xlane.xlu0 %6520  ;;  %v5819_v11 = vpop.xlane.xlu1 %5818 }
 0x8e8   : > { %v6593_v56 = vadd.f32 %v6521_v32, %v15041_v39  ;;  %v5975_v29 = vrot.slane %v5819_v11, 1 }
 0x8ea   : > { %v5976_v20 = vsel %vm622_vm1, %v5974_v38, %v5975_v29  ;;  %v5978_v34 = vsel %vm622_vm1, %v5975_v29, %v5977_v5  ;;  %6538 = vadd.xlane.f32.xlu0 %v6537_v47  ;;  %7467 = vadd.xlane.f32.xlu1 %v7466_v44  ;;  %v7573_v47 = vmul.f32 %v14084_v18, %v15120_v6 }
 0x8eb   : > { %v6719_v23 = vpop.xlane.xlu0 %6718  ;;  %v6188_v53 = vpop.xlane.xlu1 %6187  ;;  %v6064_v35 = vadd.f32 %v5976_v20, %v5698_v16  ;;  %v6065_v22 = vadd.f32 %v5978_v34, %v5699_v57  ;;  %v7469_v16 = vsel %vm5597_vm7, %v7409_v19, 0.0  ;;  %v6210_v57 = vsel %vm5597_vm7, %v6113_v37, 0.0  ;;  %v16926_v20 = vld [vmem:[#allocation9_spill] sm:$0xff] }
 0x8ec   : > { %v6343_v39 = vrot.slane %v6188_v53, 2  ;;  %v6886_v13 = vrot.slane %v6719_v23, 1  ;;  %v6644_v44 = vmul.f32 %v13927_v52, %v15120_v6  ;;  %v16927_v34 = vmax.f32 %v16926_v20, 0.0 }
 0x8ed   : > { %v15165_v55 = vadd.f32 %v6342_v3, %v6064_v35  ;;  %v8161_v19 = vrot.slane %v15099_v54, 2 }
 0x8ee   : > { %6742 = vadd.xlane.f32.xlu0 %v6741_v46  ;;  %8025 = vadd.xlane.f32.xlu1 %v8024_v15  ;;  %v6344_v28 = vsel %vm799_vm3, %v6341_v30, %v6343_v39  ;;  %v7664_v46 = vsel %vm5774_vm9, %v7573_v47, 0.0  ;;  %v6744_v15 = vsel %vm5774_vm9, %v6644_v44, 0.0 }
 0x8ef   : > { %v7107_v9 = vpop.xlane.xlu0 %7106  ;;  %v6716_v12 = vpop.xlane.xlu1 %6715  ;;  %v15168_v33 = vadd.f32 %v6344_v28, %v6065_v22  ;;  %v7795_v22 = vrot.slane %v15133_v17, 1  ;;  %v7032_v28 = vmul.f32 %v13939_v45, %v15120_v6 }
 0x8f0   : > { %v6884_v0 = vrot.slane %v6716_v12, 1  ;;  %v7274_v38 = vrot.slane %v7107_v9, 2  ;;  %v16928_v9 = vld [vmem:[#allocation31_spill] sm:$0xff] }
 0x8f2   : > { %v6885_v30 = vsel %vm622_vm1, %v6883_v49, %v6884_v0  ;;  %v6887_v3 = vsel %vm622_vm1, %v6884_v0, %v6886_v13  ;;  %7130 = vadd.xlane.f32.xlu0 %v7129_v25  ;;  %5848 = vadd.xlane.f32.xlu1 %v5847_v42 }
 0x8f3   : > { %v7453_v32 = vpop.xlane.xlu0 %7452  ;;  %v7104_v8 = vpop.xlane.xlu1 %7103  ;;  %v6980_v11 = vadd.f32 %v6885_v30, %v15110_v2  ;;  %v6981_v36 = vadd.f32 %v6887_v3, %v6593_v56  ;;  %v5351_v2 = vrot.slane %v16927_v34, 1  ;;  %v8027_v3 = vsel %vm5597_vm7, %v7938_v48, 0.0 }
 0x8f4   : > { %v7523_v5 = vadd.f32 %v7453_v32, %v15064_v7  ;;  %v7272_v29 = vrot.slane %v7104_v8, 2  ;;  %v7132_v32 = vsel %vm6140_vm10, %v7032_v28, 0.0 }
 0x8f5   : > { %v15205_v12 = vsel %vm429_vm0, %v5351_v2, %v16928_v9 }
 0x8f6   : > { %7470 = vadd.xlane.f32.xlu0 %v7469_v16  ;;  %6211 = vadd.xlane.f32.xlu1 %v6210_v57  ;;  %v7273_v26 = vsel %vm799_vm3, %v7271_v62, %v7272_v29  ;;  %v7275_v7 = vsel %vm799_vm3, %v7272_v29, %v7274_v38  ;;  %v5749_v8 = vmul.f32 %v13900_v50, %v15205_v12 }
 0x8f7   : > { %v7636_v56 = vpop.xlane.xlu0 %7635  ;;  %v7639_v23 = vpop.xlane.xlu1 %7638  ;;  %v15192_v53 = vadd.f32 %v7273_v26, %v6980_v11  ;;  %v15194_v35 = vadd.f32 %v7275_v7, %v6981_v36  ;;  %v7572_v11 = vmul.f32 %v14084_v18, %v14190_v41  ;;  %v6645_v41 = vmul.f32 %v13927_v52, %v15205_v12 }
 0x8f8   : > { %v7796_v39 = vrot.slane %v7636_v56, 1  ;;  %v7798_v43 = vrot.slane %v7639_v23, 1  ;;  %v5850_v29 = vsel %vm5767_vm6, %v5749_v8, 0.0  ;;  %v7939_v57 = vmul.f32 %v15147_v63, %v15120_v6 }
 0x8f9   : > { %v7661_v16 = vsel %vm5597_vm7, %v7572_v11, 0.0  ;;  %v6747_v20 = vsel %vm5767_vm6, %v6645_v41, 0.0  ;;  %v7033_v2 = vmul.f32 %v13939_v45, %v15205_v12  ;;  %v5585_v26 = vmul.f32 %v13903_v60, %v15205_v12 }
 0x8fa   : > { %v7797_v49 = vsel %vm622_vm1, %v7795_v22, %v7796_v39  ;;  %v7799_v17 = vsel %vm622_vm1, %v7796_v39, %v7798_v43  ;;  %7665 = vadd.xlane.f32.xlu0 %v7664_v46  ;;  %6745 = vadd.xlane.f32.xlu1 %v6744_v15  ;;  %v8030_v34 = vsel %vm6140_vm10, %v7939_v57, 0.0  ;;  %v7940_v23 = vmul.f32 %v15147_v63, %v15205_v12  ;;  %v16929_v46 = vld [vmem:[#allocation19_spill] sm:$0xff] }
 0x8fb   : > { %v7888_v13 = vadd.f32 %v7797_v49, %v15125_v1  ;;  %v7889_v0 = vadd.f32 %v7799_v17, %v7523_v5  ;;  %v8005_v25 = vpop.xlane.xlu0 %8004  ;;  %v8002_v42 = vpop.xlane.xlu1 %8001  ;;  %v7135_v22 = vsel %vm6133_vm8, %v7033_v2, 0.0  ;;  %v5652_v39 = vsel %vm5597_vm7, %v5585_v26, 0.0 }
 0x8fc   : > { %v8164_v37 = vrot.slane %v8005_v25, 2  ;;  %v8162_v30 = vrot.slane %v8002_v42, 2  ;;  %v6115_v43 = vmul.f32 %v13906_v10, %v15205_v12  ;;  %v16930_v15 = vmax.f32 %v16929_v46, 0.0  ;;  %v16931_v25 = vld [vmem:[#allocation21_spill] sm:$0xff] }
 0x8fd   : > { %v5586_v42 = vmul.f32 %v13903_v60, %v16931_v25  ;;  %v6116_v2 = vmul.f32 %v13906_v10, %v16931_v25  ;;  %v7574_v26 = vmul.f32 %v14084_v18, %v15205_v12  ;;  %v5750_v46 = vmul.f32 %v13900_v50, %v16931_v25 }
 0x8fe   : > { %v8163_v36 = vsel %vm799_vm3, %v8161_v19, %v8162_v30  ;;  %v8165_v1 = vsel %vm799_vm3, %v8162_v30, %v8164_v37  ;;  %8028 = vadd.xlane.f32.xlu0 %v8027_v3  ;;  %7133 = vadd.xlane.f32.xlu1 %v7132_v32  ;;  %v5495_v48 = vrot.slane %v16930_v15, 5  ;;  %v6472_v19 = vmul.f32 %v13917_v61, %v15205_v12  ;;  %v16932_v37 = vld [vmem:[#allocation20_spill] sm:$0xff] }
 0x8ff   : > { %v15219_v62 = vadd.f32 %v8163_v36, %v7888_v13  ;;  %v15221_v54 = vadd.f32 %v8165_v1, %v7889_v0  ;;  %v15223_v38 = vpop.xlane.xlu0 %6190  ;;  %v5636_v5 = vpop.xlane.xlu1 %5635  ;;  %v6216_v0 = vsel %vm6133_vm8, %v6115_v43, 0.0  ;;  %v5655_v36 = vsel %vm5597_vm7, %v5586_v42, 0.0 }
 0x900   : > { %v5700_v13 = vadd.f32 %v5636_v5, %v16913_v4  ;;  %v15257_v30 = vsel %vm429_vm0, %v16932_v37, %v5495_v48  ;;  %v6540_v1 = vsel %vm5597_vm7, %v6472_v19, 0.0  ;;  %v7667_v43 = vsel %vm5767_vm6, %v7574_v26, 0.0 }
 0x901   : > { %v5751_v5 = vmul.f32 %v13900_v50, %v15257_v30  ;;  %v5853_v42 = vsel %vm5597_vm7, %v5750_v46, 0.0  ;;  %v6647_v19 = vmul.f32 %v13927_v52, %v15257_v30  ;;  %v6117_v37 = vmul.f32 %v13906_v10, %v15257_v30 }
 0x902   : > { %5851 = vadd.xlane.f32.xlu0 %v5850_v29  ;;  %7662 = vadd.xlane.f32.xlu1 %v7661_v16  ;;  %v7410_v29 = vmul.f32 %v14058_v27, %v15205_v12  ;;  %v7411_v46 = vmul.f32 %v14058_v27, %v16931_v25 }
 0x903   : > { %v15231_v47 = vpop.xlane.xlu0 %7641  ;;  %v5825_v44 = vpop.xlane.xlu1 %5824 }
 0x904   : > { %v5979_v49 = vrot.slane %v5825_v44, 1 }
 0x906   : > { %6748 = vadd.xlane.f32.xlu0 %v6747_v20  ;;  %8031 = vadd.xlane.f32.xlu1 %v8030_v34  ;;  %v5856_v20 = vsel %vm5774_vm9, %v5751_v5, 0.0  ;;  %v7472_v34 = vsel %vm5597_vm7, %v7410_v29, 0.0 }
 0x907   : > { %v5639_v7 = vpop.xlane.xlu0 %5638  ;;  %v6524_v56 = vpop.xlane.xlu1 %6523 }
 0x908   : > { %v6594_v6 = vadd.f32 %v6524_v56, %v15165_v55  ;;  %v8033_v55 = vsel %vm6133_vm8, %v7940_v23, 0.0 }
 0x90a   : > { %7136 = vadd.xlane.f32.xlu0 %v7135_v22  ;;  %5653 = vadd.xlane.f32.xlu1 %v5652_v39  ;;  %v6219_v39 = vsel %vm5597_vm7, %v6116_v2, 0.0  ;;  %v6646_v2 = vmul.f32 %v13927_v52, %v16931_v25 }
 0x90b   : > { %v5828_v28 = vpop.xlane.xlu0 %5827  ;;  %v6722_v9 = vpop.xlane.xlu1 %6721 }
 0x90c   : > { %v5980_v17 = vrot.slane %v5828_v28, 1 }
 0x90e   : > { %v5981_v3 = vsel %vm622_vm1, %v5979_v49, %v5980_v17  ;;  %8034 = vadd.xlane.f32.xlu0 %v8033_v55  ;;  %6217 = vadd.xlane.f32.xlu1 %v6216_v0  ;;  %v5701_v0 = vadd.f32 %v5639_v7, %v16913_v4  ;;  %v6345_v7 = vrot.slane %v15223_v38, 2 }
 0x90f   : > { %v6197_v32 = vpop.xlane.xlu0 %6196  ;;  %v7110_v8 = vpop.xlane.xlu1 %7109  ;;  %v6066_v11 = vadd.f32 %v5981_v3, %v5700_v13 }
 0x910   : > { %v7276_v49 = vrot.slane %v7110_v8, 2  ;;  %v6348_v29 = vrot.slane %v6197_v32, 2 }
 0x912   : > { %5656 = vadd.xlane.f32.xlu0 %v5655_v36  ;;  %6541 = vadd.xlane.f32.xlu1 %v6540_v1 }
 0x913   : > { %v6527_v16 = vpop.xlane.xlu0 %6526  ;;  %v7456_v41 = vpop.xlane.xlu1 %7455 }
 0x914   : > { %v15267_v57 = vadd.f32 %v6527_v16, %v15168_v33  ;;  %v15270_v44 = vadd.f32 %v7456_v41, %v15192_v53  ;;  %v6888_v33 = vrot.slane %v6722_v9, 1  ;;  %v6473_v53 = vmul.f32 %v13917_v61, %v16931_v25 }
 0x916   : > { %5857 = vadd.xlane.f32.xlu0 %v5856_v20  ;;  %7473 = vadd.xlane.f32.xlu1 %v7472_v34  ;;  %v6543_v13 = vsel %vm5597_vm7, %v6473_v53, 0.0  ;;  %v6753_v20 = vsel %vm5774_vm9, %v6647_v19, 0.0  ;;  %v6222_v34 = vsel %vm6140_vm10, %v6117_v37, 0.0  ;;  %v7575_v19 = vmul.f32 %v14084_v18, %v16931_v25  ;;  %v16933_v37 = vld [vmem:[#allocation32_spill] sm:$0xff] }
 0x917   : > { %v6725_v56 = vpop.xlane.xlu0 %6724  ;;  %v15278_v23 = vpop.xlane.xlu1 %8007 }
 0x918   : > { %v6889_v22 = vrot.slane %v6725_v56, 1 }
 0x91a   : > { %v6890_v15 = vsel %vm622_vm1, %v6888_v33, %v6889_v22  ;;  %6220 = vadd.xlane.f32.xlu0 %v6219_v39  ;;  %7668 = vadd.xlane.f32.xlu1 %v7667_v43  ;;  %v6750_v43 = vsel %vm5597_vm7, %v6646_v2, 0.0  ;;  %v7941_v2 = vmul.f32 %v15147_v63, %v16931_v25 }
 0x91b   : > { %v7113_v12 = vpop.xlane.xlu0 %7112  ;;  %v5831_v48 = vpop.xlane.xlu1 %5830  ;;  %v6982_v28 = vadd.f32 %v6890_v15, %v6594_v6  ;;  %v7034_v15 = vmul.f32 %v13939_v45, %v16931_v25 }
 0x91c   : > { %v7277_v9 = vrot.slane %v7113_v12, 2  ;;  %v5982_v55 = vrot.slane %v5831_v48, 1  ;;  %v8036_v25 = vsel %vm5597_vm7, %v7941_v2, 0.0 }
 0x91e   : > { %v5983_v3 = vsel %vm622_vm1, %v5980_v17, %v5982_v55  ;;  %6544 = vadd.xlane.f32.xlu0 %v6543_v13  ;;  %5854 = vadd.xlane.f32.xlu1 %v5853_v42  ;;  %v7278_v6 = vsel %vm799_vm3, %v7276_v49, %v7277_v9  ;;  %v7035_v17 = vmul.f32 %v13939_v45, %v15257_v30  ;;  %v8166_v49 = vrot.slane %v15278_v23, 2 }
 0x91f   : > { %v7459_v8 = vpop.xlane.xlu0 %7458  ;;  %v6194_v36 = vpop.xlane.xlu1 %6193  ;;  %v15296_v1 = vadd.f32 %v7278_v6, %v6982_v28  ;;  %v6067_v5 = vadd.f32 %v5983_v3, %v5701_v0  ;;  %v7475_v0 = vsel %vm5597_vm7, %v7411_v46, 0.0  ;;  %v7138_v42 = vsel %vm5597_vm7, %v7034_v15, 0.0 }
 0x920   : > { %v7525_v16 = vadd.f32 %v7459_v8, %v15194_v35  ;;  %v6346_v41 = vrot.slane %v6194_v36, 2  ;;  %v7141_v39 = vsel %vm6140_vm10, %v7035_v17, 0.0  ;;  %v16934_v3 = vmax.f32 %v16933_v37, 0.0 }
 0x921   : > { %v7942_v17 = vmul.f32 %v15147_v63, %v15257_v30 }
 0x922   : > { %6754 = vadd.xlane.f32.xlu0 %v6753_v20  ;;  %6223 = vadd.xlane.f32.xlu1 %v6222_v34  ;;  %v6347_v26 = vsel %vm799_vm3, %v6345_v7, %v6346_v41  ;;  %v6349_v38 = vsel %vm799_vm3, %v6346_v41, %v6348_v29  ;;  %v5352_v6 = vrot.slane %v16934_v3, 1  ;;  %v7800_v7 = vrot.slane %v15231_v47, 1 }
 0x923   : > { %v7648_v32 = vpop.xlane.xlu0 %7647  ;;  %v6728_v56 = vpop.xlane.xlu1 %6727  ;;  %v15308_v35 = vadd.f32 %v6347_v26, %v6066_v11  ;;  %v15310_v33 = vadd.f32 %v6349_v38, %v6067_v5  ;;  %v7670_v20 = vsel %vm5597_vm7, %v7575_v19, 0.0 }
 0x924   : > { %v6891_v53 = vrot.slane %v6728_v56, 1  ;;  %v7803_v29 = vrot.slane %v7648_v32, 1 }
 0x926   : > { %v6892_v12 = vsel %vm622_vm1, %v6889_v22, %v6891_v53  ;;  %7142 = vadd.xlane.f32.xlu0 %v7141_v39  ;;  %6751 = vadd.xlane.f32.xlu1 %v6750_v43  ;;  %v7576_v22 = vmul.f32 %v14084_v18, %v15257_v30  ;;  %v8039_v43 = vsel %vm6140_vm10, %v7942_v17, 0.0 }
 0x927   : > { %v8011_v48 = vpop.xlane.xlu0 %8010  ;;  %v7116_v11 = vpop.xlane.xlu1 %7115  ;;  %v6983_v28 = vadd.f32 %v6892_v12, %v15267_v57 }
 0x928   : > { %v8167_v55 = vrot.slane %v8011_v48, 2  ;;  %v7279_v13 = vrot.slane %v7116_v11, 2  ;;  %v7673_v34 = vsel %vm5774_vm9, %v7576_v22, 0.0  ;;  %v16936_v22 = vld [vmem:[#allocation33_spill] sm:$0xff] }
 0x929   : > { %v5588_v37 = vmul.f32 %v13903_v60, %v16936_v22  ;;  %v5753_v17 = vmul.f32 %v13900_v50, %v16936_v22 }
 0x92a   : > { %v8168_v8 = vsel %vm799_vm3, %v8166_v49, %v8167_v55  ;;  %7476 = vadd.xlane.f32.xlu0 %v7475_v0  ;;  %7139 = vadd.xlane.f32.xlu1 %v7138_v42  ;;  %v7280_v57 = vsel %vm799_vm3, %v7277_v9, %v7279_v13  ;;  %v16935_v9 = vld [vmem:[#allocation22_spill] sm:$0xff] }
 0x92b   : > { %v15331_v23 = vpop.xlane.xlu0 %5833  ;;  %v7645_v36 = vpop.xlane.xlu1 %7644  ;;  %v15333_v5 = vadd.f32 %v7280_v57, %v6983_v28  ;;  %v15344_v26 = vsel %vm429_vm0, %v5352_v6, %v16935_v9  ;;  %v16937_v6 = vld [vmem:[#allocation10_spill] sm:$0xff]  ;;  %v16939_v9 = vld [vmem:[#allocation11_spill] sm:$0xff] }
 0x92c   : > { %v7801_v41 = vrot.slane %v7645_v36, 1  ;;  %v6118_v46 = vmul.f32 %v13906_v10, %v15344_v26  ;;  %v5587_v15 = vmul.f32 %v13903_v60, %v15344_v26  ;;  %v7577_v49 = vmul.f32 %v14084_v18, %v15344_v26 }
 0x92d   : > { %v5752_v13 = vmul.f32 %v13900_v50, %v15344_v26  ;;  %v6474_v3 = vmul.f32 %v13917_v61, %v15344_v26  ;;  %v16938_v57 = vmax.f32 %v16937_v6, 0.0  ;;  %v6648_v2 = vmul.f32 %v13927_v52, %v15344_v26 }
 0x92e   : > { %v7802_v38 = vsel %vm622_vm1, %v7800_v7, %v7801_v41  ;;  %v7804_v47 = vsel %vm622_vm1, %v7801_v41, %v7803_v29  ;;  %7671 = vadd.xlane.f32.xlu0 %v7670_v20  ;;  %7674 = vadd.xlane.f32.xlu1 %v7673_v34  ;;  %v6225_v11 = vsel %vm6133_vm8, %v6118_v46, 0.0  ;;  %v5658_v28 = vsel %vm5597_vm7, %v5587_v15, 0.0 }
 0x92f   : > { %v7890_v32 = vadd.f32 %v7802_v38, %v15270_v44  ;;  %v7891_v56 = vadd.f32 %v7804_v47, %v7525_v16  ;;  %v15349_v53 = vpop.xlane.xlu0 %6730  ;;  %v8014_v39 = vpop.xlane.xlu1 %8013  ;;  %v7676_v42 = vsel %vm5767_vm6, %v7577_v49, 0.0  ;;  %v5859_v19 = vsel %vm5767_vm6, %v5752_v13, 0.0 }
 0x930   : > { %v8169_v30 = vrot.slane %v8014_v39, 2  ;;  %v5496_v36 = vrot.slane %v16938_v57, 5  ;;  %v5661_v20 = vsel %vm5597_vm7, %v5588_v37, 0.0  ;;  %v6546_v34 = vsel %vm5597_vm7, %v6474_v3, 0.0 }
 0x931   : > { %v7036_v46 = vmul.f32 %v13939_v45, %v15344_v26  ;;  %v7412_v49 = vmul.f32 %v14058_v27, %v15344_v26  ;;  %v7943_v37 = vmul.f32 %v15147_v63, %v15344_v26  ;;  %v5984_v3 = vrot.slane %v15331_v23, 1 }
 0x932   : > { %v8170_v12 = vsel %vm799_vm3, %v8167_v55, %v8169_v30  ;;  %8040 = vadd.xlane.f32.xlu0 %v8039_v43  ;;  %8037 = vadd.xlane.f32.xlu1 %v8036_v25  ;;  %v15389_v38 = vsel %vm429_vm0, %v16939_v9, %v5496_v36  ;;  %v5862_v30 = vsel %vm5597_vm7, %v5753_v17, 0.0  ;;  %v6756_v43 = vsel %vm5767_vm6, %v6648_v2, 0.0 }
 0x933   : > { %v15358_v44 = vadd.f32 %v8170_v12, %v7891_v56  ;;  %v15360_v16 = vpop.xlane.xlu0 %7118  ;;  %v5642_v48 = vpop.xlane.xlu1 %5641  ;;  %v6120_v25 = vmul.f32 %v13906_v10, %v15389_v38  ;;  %v7478_v17 = vsel %vm5597_vm7, %v7412_v49, 0.0 }
 0x936   : > { %6226 = vadd.xlane.f32.xlu0 %v6225_v11  ;;  %5659 = vadd.xlane.f32.xlu1 %v5658_v28  ;;  %v7144_v11 = vsel %vm6133_vm8, %v7036_v46, 0.0  ;;  %v6475_v28 = vmul.f32 %v13917_v61, %v16936_v22 }
 0x937   : > { %v15368_v55 = vpop.xlane.xlu0 %8016  ;;  %v6200_v0 = vpop.xlane.xlu1 %6199 }
 0x93a   : > { %7677 = vadd.xlane.f32.xlu0 %v7676_v42  ;;  %5860 = vadd.xlane.f32.xlu1 %v5859_v19 }
 0x93b   : > { %v5645_v7 = vpop.xlane.xlu0 %5644  ;;  %v6530_v29 = vpop.xlane.xlu1 %6529 }
 0x93c   : > { %v15379_v41 = vadd.f32 %v6530_v29, %v15308_v35  ;;  %v15391_v35 = vadd.f32 %v8168_v8, %v7890_v32  ;;  %v6350_v8 = vrot.slane %v6200_v0, 2  ;;  %v6649_v0 = vmul.f32 %v13927_v52, %v16936_v22 }
 0x93d   : > { %v5702_v29 = vadd.f32 %v5642_v48, %v16913_v4  ;;  %v7037_v48 = vmul.f32 %v13939_v45, %v16936_v22 }
 0x93e   : > { %5662 = vadd.xlane.f32.xlu0 %v5661_v20  ;;  %6547 = vadd.xlane.f32.xlu1 %v6546_v34  ;;  %v5703_v20 = vadd.f32 %v5645_v7, %v16913_v4  ;;  %v6549_v34 = vsel %vm5597_vm7, %v6475_v28, 0.0  ;;  %v6759_v7 = vsel %vm5597_vm7, %v6649_v0, 0.0  ;;  %v6119_v0 = vmul.f32 %v13906_v10, %v16936_v22 }
 0x93f   : > { %v5840_v47 = vpop.xlane.xlu0 %5839  ;;  %v7462_v56 = vpop.xlane.xlu1 %7461 }
 0x940   : > { %v15394_v39 = vadd.f32 %v7462_v56, %v15296_v1  ;;  %v6231_v1 = vsel %vm6140_vm10, %v6120_v25, 0.0  ;;  %v5987_v6 = vrot.slane %v5840_v47, 1 }
 0x942   : > { %5863 = vadd.xlane.f32.xlu0 %v5862_v30  ;;  %6757 = vadd.xlane.f32.xlu1 %v6756_v43  ;;  %v8042_v30 = vsel %vm6133_vm8, %v7943_v37, 0.0  ;;  %v5754_v43 = vmul.f32 %v13900_v50, %v15389_v38 }
 0x943   : > { %v6203_v15 = vpop.xlane.xlu0 %6202  ;;  %v15402_v12 = vpop.xlane.xlu1 %7650 }
 0x944   : > { %v6351_v32 = vrot.slane %v6203_v15, 2 }
 0x946   : > { %6232 = vadd.xlane.f32.xlu0 %v6231_v1  ;;  %7145 = vadd.xlane.f32.xlu1 %v7144_v11  ;;  %v6352_v13 = vsel %vm799_vm3, %v6350_v8, %v6351_v32  ;;  %v6893_v11 = vrot.slane %v15349_v53, 1 }
 0x947   : > { %v6533_v42 = vpop.xlane.xlu0 %6532  ;;  %v5837_v19 = vpop.xlane.xlu1 %5836 }
 0x948   : > { %v6597_v57 = vadd.f32 %v6533_v42, %v15310_v33  ;;  %v5985_v36 = vrot.slane %v5837_v19, 1  ;;  %v7147_v42 = vsel %vm5597_vm7, %v7037_v48, 0.0  ;;  %v5865_v19 = vsel %vm5774_vm9, %v5754_v43, 0.0 }
 0x94a   : > { %v5986_v2 = vsel %vm622_vm1, %v5984_v3, %v5985_v36  ;;  %v5988_v9 = vsel %vm622_vm1, %v5985_v36, %v5987_v6  ;;  %6550 = vadd.xlane.f32.xlu0 %v6549_v34  ;;  %7479 = vadd.xlane.f32.xlu1 %v7478_v17 }
 0x94b   : > { %v6737_v26 = vpop.xlane.xlu0 %6736  ;;  %v6206_v23 = vpop.xlane.xlu1 %6205  ;;  %v6068_v47 = vadd.f32 %v5986_v2, %v5702_v29  ;;  %v6069_v56 = vadd.f32 %v5988_v9, %v5703_v20  ;;  %v7281_v29 = vrot.slane %v15360_v16, 2  ;;  %v6228_v9 = vsel %vm5597_vm7, %v6119_v0, 0.0 }
 0x94c   : > { %v6353_v33 = vrot.slane %v6206_v23, 2  ;;  %v6896_v28 = vrot.slane %v6737_v26, 1  ;;  %v7579_v26 = vmul.f32 %v14084_v18, %v15389_v38  ;;  %v6650_v23 = vmul.f32 %v13927_v52, %v15389_v38 }
 0x94d   : > { %v15429_v25 = vadd.f32 %v6352_v13, %v6068_v47  ;;  %v7413_v13 = vmul.f32 %v14058_v27, %v16936_v22  ;;  %v16940_v47 = vld [vmem:[#allocation23_spill] sm:$0xff] }
 0x94e   : > { %6760 = vadd.xlane.f32.xlu0 %v6759_v7  ;;  %8043 = vadd.xlane.f32.xlu1 %v8042_v30  ;;  %v6354_v46 = vsel %vm799_vm3, %v6351_v32, %v6353_v33  ;;  %v7805_v30 = vrot.slane %v15402_v12, 1 }
 0x94f   : > { %v7125_v15 = vpop.xlane.xlu0 %7124  ;;  %v6734_v8 = vpop.xlane.xlu1 %6733  ;;  %v15432_v1 = vadd.f32 %v6354_v46, %v6069_v56  ;;  %v7481_v2 = vsel %vm5597_vm7, %v7413_v13, 0.0  ;;  %v16941_v56 = vmax.f32 %v16940_v47, 0.0 }
 0x950   : > { %v6894_v49 = vrot.slane %v6734_v8, 1  ;;  %v7284_v20 = vrot.slane %v7125_v15, 2  ;;  %v7682_v15 = vsel %vm5774_vm9, %v7579_v26, 0.0  ;;  %v6762_v8 = vsel %vm5774_vm9, %v6650_v23, 0.0 }
 0x952   : > { %v6895_v32 = vsel %vm622_vm1, %v6893_v11, %v6894_v49  ;;  %v6897_v37 = vsel %vm622_vm1, %v6894_v49, %v6896_v28  ;;  %7148 = vadd.xlane.f32.xlu0 %v7147_v42  ;;  %5866 = vadd.xlane.f32.xlu1 %v5865_v19  ;;  %v7944_v11 = vmul.f32 %v15147_v63, %v16936_v22  ;;  %v16942_v49 = vld [vmem:[#allocation12_spill] sm:$0xff] }
 0x953   : > { %v7465_v3 = vpop.xlane.xlu0 %7464  ;;  %v7122_v53 = vpop.xlane.xlu1 %7121  ;;  %v6984_v6 = vadd.f32 %v6895_v32, %v15379_v41  ;;  %v6985_v36 = vadd.f32 %v6897_v37, %v6597_v57  ;;  %v5353_v41 = vrot.slane %v16941_v56, 1  ;;  %v7038_v28 = vmul.f32 %v13939_v45, %v15389_v38 }
 0x954   : > { %v7527_v34 = vadd.f32 %v7465_v3, %v15333_v5  ;;  %v7282_v17 = vrot.slane %v7122_v53, 2  ;;  %v8171_v3 = vrot.slane %v15368_v55, 2  ;;  %v7945_v56 = vmul.f32 %v15147_v63, %v15389_v38 }
 0x955   : > { %v15469_v42 = vsel %vm429_vm0, %v5353_v41, %v16942_v49  ;;  %v16943_v49 = vld [vmem:[#allocation24_spill] sm:$0xff] }
 0x956   : > { %7482 = vadd.xlane.f32.xlu0 %v7481_v2  ;;  %6229 = vadd.xlane.f32.xlu1 %v6228_v9  ;;  %v7283_v16 = vsel %vm799_vm3, %v7281_v29, %v7282_v17  ;;  %v7285_v5 = vsel %vm799_vm3, %v7282_v17, %v7284_v20  ;;  %v7150_v29 = vsel %vm6140_vm10, %v7038_v28, 0.0  ;;  %v5755_v20 = vmul.f32 %v13900_v50, %v15469_v42 }
 0x957   : > { %v7654_v57 = vpop.xlane.xlu0 %7653  ;;  %v7657_v33 = vpop.xlane.xlu1 %7656  ;;  %v15456_v48 = vadd.f32 %v7283_v16, %v6984_v6  ;;  %v15458_v7 = vadd.f32 %v7285_v5, %v6985_v36  ;;  %v8045_v36 = vsel %vm5597_vm7, %v7944_v11, 0.0  ;;  %v7578_v17 = vmul.f32 %v14084_v18, %v16936_v22 }
 0x958   : > { %v7806_v43 = vrot.slane %v7654_v57, 1  ;;  %v7808_v46 = vrot.slane %v7657_v33, 1  ;;  %v5868_v23 = vsel %vm5767_vm6, %v5755_v20, 0.0  ;;  %v6651_v22 = vmul.f32 %v13927_v52, %v15469_v42 }
 0x959   : > { %v7679_v47 = vsel %vm5597_vm7, %v7578_v17, 0.0  ;;  %v8048_v57 = vsel %vm6140_vm10, %v7945_v56, 0.0  ;;  %v7039_v33 = vmul.f32 %v13939_v45, %v15469_v42  ;;  %v7946_v11 = vmul.f32 %v15147_v63, %v15469_v42 }
 0x95a   : > { %v7807_v19 = vsel %vm622_vm1, %v7805_v30, %v7806_v43  ;;  %v7809_v12 = vsel %vm622_vm1, %v7806_v43, %v7808_v46  ;;  %7683 = vadd.xlane.f32.xlu0 %v7682_v15  ;;  %6763 = vadd.xlane.f32.xlu1 %v6762_v8  ;;  %v6765_v5 = vsel %vm5767_vm6, %v6651_v22, 0.0  ;;  %v5589_v30 = vmul.f32 %v13903_v60, %v15469_v42 }
 0x95b   : > { %v7892_v13 = vadd.f32 %v7807_v19, %v15394_v39  ;;  %v7893_v0 = vadd.f32 %v7809_v12, %v7527_v34  ;;  %v8023_v32 = vpop.xlane.xlu0 %8022  ;;  %v8020_v37 = vpop.xlane.xlu1 %8019  ;;  %v7153_v15 = vsel %vm6133_vm8, %v7039_v33, 0.0  ;;  %v6121_v28 = vmul.f32 %v13906_v10, %v15469_v42 }
 0x95c   : > { %v8174_v53 = vrot.slane %v8023_v32, 2  ;;  %v8172_v6 = vrot.slane %v8020_v37, 2  ;;  %v5664_v8 = vsel %vm5597_vm7, %v5589_v30, 0.0  ;;  %v16944_v19 = vmax.f32 %v16943_v49, 0.0 }
 0x95d   : > { %v6234_v63 = vsel %vm6133_vm8, %v6121_v28, 0.0  ;;  %v7414_v56 = vmul.f32 %v14058_v27, %v15469_v42 }
 0x95e   : > { %v8173_v2 = vsel %vm799_vm3, %v8171_v3, %v8172_v6  ;;  %v8175_v39 = vsel %vm799_vm3, %v8172_v6, %v8174_v53  ;;  %8046 = vadd.xlane.f32.xlu0 %v8045_v36  ;;  %7151 = vadd.xlane.f32.xlu1 %v7150_v29  ;;  %v5497_v12 = vrot.slane %v16944_v19, 5  ;;  %v8051_v6 = vsel %vm6133_vm8, %v7946_v11, 0.0  ;;  %v16946_v29 = vld [vmem:[#allocation25_spill] sm:$0xff] }
 0x95f   : > { %v15483_v34 = vadd.f32 %v8173_v2, %v7892_v13  ;;  %v15485_v55 = vadd.f32 %v8175_v39, %v7893_v0  ;;  %v15487_v9 = vpop.xlane.xlu0 %6208  ;;  %v5648_v26 = vpop.xlane.xlu1 %5647  ;;  %v6476_v36 = vmul.f32 %v13917_v61, %v15469_v42 }
 0x960   : > { %v5704_v53 = vadd.f32 %v5648_v26, %v16913_v4  ;;  %v15521_v20 = vsel %vm429_vm0, %v16946_v29, %v5497_v12 }
 0x961   : > { %v5757_v22 = vmul.f32 %v13900_v50, %v15521_v20 }
 0x962   : > { %5869 = vadd.xlane.f32.xlu0 %v5868_v23  ;;  %7680 = vadd.xlane.f32.xlu1 %v7679_v47  ;;  %v6552_v47 = vsel %vm5597_vm7, %v6476_v36, 0.0  ;;  %v6653_v36 = vmul.f32 %v13927_v52, %v15521_v20 }
 0x963   : > { %v15495_v41 = vpop.xlane.xlu0 %7659  ;;  %v5843_v16 = vpop.xlane.xlu1 %5842  ;;  %v5874_v30 = vsel %vm5774_vm9, %v5757_v22, 0.0 }
 0x964   : > { %v5989_v32 = vrot.slane %v5843_v16, 1 }
 0x966   : > { %6766 = vadd.xlane.f32.xlu0 %v6765_v5  ;;  %8049 = vadd.xlane.f32.xlu1 %v8048_v57 }
 0x967   : > { %v5651_v43 = vpop.xlane.xlu0 %5650  ;;  %v6536_v46 = vpop.xlane.xlu1 %6535 }
 0x968   : > { %v6598_v38 = vadd.f32 %v6536_v46, %v15429_v25  ;;  %v16945_v25 = vld [vmem:[#allocation8_spill] sm:$0xff]  ;;  %v7484_v46 = vsel %vm5597_vm7, %v7414_v56, 0.0  ;;  %v5705_v29 = vadd.f32 %v5651_v43, %v16913_v4  ;;  %v6355_v43 = vrot.slane %v15487_v9, 2 }
 0x969   : > { %v5590_v3 = vmul.f32 %v13903_v60, %v16945_v25  ;;  %v6477_v12 = vmul.f32 %v13917_v61, %v16945_v25 }
 0x96a   : > { %7154 = vadd.xlane.f32.xlu0 %v7153_v15  ;;  %5665 = vadd.xlane.f32.xlu1 %v5664_v8  ;;  %v6122_v15 = vmul.f32 %v13906_v10, %v16945_v25  ;;  %v7580_v8 = vmul.f32 %v14084_v18, %v15469_v42 }
 0x96b   : > { %v5846_v13 = vpop.xlane.xlu0 %5845  ;;  %v6740_v0 = vpop.xlane.xlu1 %6739  ;;  %v5667_v26 = vsel %vm5597_vm7, %v5590_v3, 0.0 }
 0x96c   : > { %v5990_v37 = vrot.slane %v5846_v13, 1  ;;  %v7685_v19 = vsel %vm5767_vm6, %v7580_v8, 0.0  ;;  %v5756_v13 = vmul.f32 %v13900_v50, %v16945_v25  ;;  %v6771_v8 = vsel %vm5774_vm9, %v6653_v36, 0.0 }
 0x96e   : > { %v5991_v17 = vsel %vm622_vm1, %v5989_v32, %v5990_v37  ;;  %8052 = vadd.xlane.f32.xlu0 %v8051_v6  ;;  %6235 = vadd.xlane.f32.xlu1 %v6234_v63 }
 0x96f   : > { %v6215_v2 = vpop.xlane.xlu0 %6214  ;;  %v7128_v39 = vpop.xlane.xlu1 %7127  ;;  %v6070_v23 = vadd.f32 %v5991_v17, %v5704_v53  ;;  %v6555_v17 = vsel %vm5597_vm7, %v6477_v12, 0.0 }
 0x970   : > { %v7286_v6 = vrot.slane %v7128_v39, 2 }
 0x972   : > { %5668 = vadd.xlane.f32.xlu0 %v5667_v26  ;;  %6553 = vadd.xlane.f32.xlu1 %v6552_v47  ;;  %v5871_v26 = vsel %vm5597_vm7, %v5756_v13, 0.0  ;;  %v6123_v47 = vmul.f32 %v13906_v10, %v15521_v20 }
 0x973   : > { %v6539_v16 = vpop.xlane.xlu0 %6538  ;;  %v7468_v5 = vpop.xlane.xlu1 %7467 }
 0x974   : > { %v15531_v57 = vadd.f32 %v6539_v16, %v15432_v1  ;;  %v15534_v33 = vadd.f32 %v7468_v5, %v15456_v48  ;;  %v6898_v1 = vrot.slane %v6740_v0, 1  ;;  %v6237_v48 = vsel %vm5597_vm7, %v6122_v15, 0.0 }
 0x976   : > { %5875 = vadd.xlane.f32.xlu0 %v5874_v30  ;;  %7485 = vadd.xlane.f32.xlu1 %v7484_v46  ;;  %v6358_v30 = vrot.slane %v6215_v2, 2 }
 0x977   : > { %v6743_v11 = vpop.xlane.xlu0 %6742  ;;  %v15542_v28 = vpop.xlane.xlu1 %8025 }
 0x978   : > { %v6899_v49 = vrot.slane %v6743_v11, 1  ;;  %v6240_v11 = vsel %vm6140_vm10, %v6123_v47, 0.0 }
 0x97a   : > { %v6900_v32 = vsel %vm622_vm1, %v6898_v1, %v6899_v49  ;;  %6238 = vadd.xlane.f32.xlu0 %v6237_v48  ;;  %7686 = vadd.xlane.f32.xlu1 %v7685_v19  ;;  %v6652_v1 = vmul.f32 %v13927_v52, %v16945_v25 }
 0x97b   : > { %v7131_v42 = vpop.xlane.xlu0 %7130  ;;  %v5849_v3 = vpop.xlane.xlu1 %5848  ;;  %v6986_v53 = vadd.f32 %v6900_v32, %v6598_v38 }
 0x97c   : > { %v7287_v0 = vrot.slane %v7131_v42, 2  ;;  %v5992_v63 = vrot.slane %v5849_v3, 1  ;;  %v6768_v42 = vsel %vm5597_vm7, %v6652_v1, 0.0  ;;  %v7415_v3 = vmul.f32 %v14058_v27, %v16945_v25 }
 0x97e   : > { %v5993_v22 = vsel %vm622_vm1, %v5990_v37, %v5992_v63  ;;  %6556 = vadd.xlane.f32.xlu0 %v6555_v17  ;;  %5872 = vadd.xlane.f32.xlu1 %v5871_v26  ;;  %v7288_v38 = vsel %vm799_vm3, %v7286_v6, %v7287_v0  ;;  %v7041_v37 = vmul.f32 %v13939_v45, %v15521_v20  ;;  %v7487_v47 = vsel %vm5597_vm7, %v7415_v3, 0.0 }
 0x97f   : > { %v7471_v39 = vpop.xlane.xlu0 %7470  ;;  %v6212_v56 = vpop.xlane.xlu1 %6211  ;;  %v15560_v16 = vadd.f32 %v7288_v38, %v6986_v53  ;;  %v6071_v5 = vadd.f32 %v5993_v22, %v5705_v29  ;;  %v7040_v53 = vmul.f32 %v13939_v45, %v16945_v25  ;;  %v8176_v29 = vrot.slane %v15542_v28, 2 }
 0x980   : > { %v7529_v46 = vadd.f32 %v7471_v39, %v15458_v7  ;;  %v6356_v15 = vrot.slane %v6212_v56, 2  ;;  %v7159_v32 = vsel %vm6140_vm10, %v7041_v37, 0.0  ;;  %v7581_v38 = vmul.f32 %v14084_v18, %v16945_v25  ;;  %v16947_v39 = vld [vmem:[#allocation34_spill] sm:$0xff] }
 0x981   : > { %v7156_v22 = vsel %vm5597_vm7, %v7040_v53, 0.0  ;;  %v16948_v56 = vmax.f32 %v16947_v39, 0.0 }
 0x982   : > { %6772 = vadd.xlane.f32.xlu0 %v6771_v8  ;;  %6241 = vadd.xlane.f32.xlu1 %v6240_v11  ;;  %v6357_v48 = vsel %vm799_vm3, %v6355_v43, %v6356_v15  ;;  %v6359_v9 = vsel %vm799_vm3, %v6356_v15, %v6358_v30  ;;  %v7810_v8 = vrot.slane %v15495_v41, 1  ;;  %v7688_v1 = vsel %vm5597_vm7, %v7581_v38, 0.0 }
 0x983   : > { %v7666_v2 = vpop.xlane.xlu0 %7665  ;;  %v6746_v19 = vpop.xlane.xlu1 %6745  ;;  %v15572_v7 = vadd.f32 %v6357_v48, %v6070_v23  ;;  %v15574_v12 = vadd.f32 %v6359_v9, %v6071_v5  ;;  %v5354_v5 = vrot.slane %v16948_v56, 1  ;;  %v15605_v9 = vld [vmem:[%s16507_s7 + $0x8] ss:$0 sm:$0xff] }
 0x984   : > { %v6901_v13 = vrot.slane %v6746_v19, 1  ;;  %v7813_v11 = vrot.slane %v7666_v2, 1  ;;  %v7947_v19 = vmul.f32 %v15605_v9, %v16945_v25 }
 0x986   : > { %v6902_v6 = vsel %vm622_vm1, %v6899_v49, %v6901_v13  ;;  %7160 = vadd.xlane.f32.xlu0 %v7159_v32  ;;  %6769 = vadd.xlane.f32.xlu1 %v6768_v42  ;;  %v7582_v49 = vmul.f32 %v14084_v18, %v15521_v20  ;;  %v16949_v13 = vld [vmem:[#allocation27_spill] sm:$0xff]  ;;  %v8054_v25 = vsel %vm5597_vm7, %v7947_v19, 0.0 }
 0x987   : > { %v8029_v63 = vpop.xlane.xlu0 %8028  ;;  %v7134_v23 = vpop.xlane.xlu1 %7133  ;;  %v6987_v36 = vadd.f32 %v6902_v6, %v15531_v57  ;;  %v15613_v41 = vsel %vm429_vm0, %v5354_v5, %v16949_v13 }
 0x988   : > { %v8177_v17 = vrot.slane %v8029_v63, 2  ;;  %v7289_v26 = vrot.slane %v7134_v23, 2  ;;  %v7691_v48 = vsel %vm5774_vm9, %v7582_v49, 0.0  ;;  %v6124_v23 = vmul.f32 %v13906_v10, %v15613_v41 }
 0x989   : > { %v7583_v38 = vmul.f32 %v14084_v18, %v15613_v41  ;;  %v5758_v49 = vmul.f32 %v13900_v50, %v15613_v41 }
 0x98a   : > { %v8178_v43 = vsel %vm799_vm3, %v8176_v29, %v8177_v17  ;;  %7488 = vadd.xlane.f32.xlu0 %v7487_v47  ;;  %7157 = vadd.xlane.f32.xlu1 %v7156_v22  ;;  %v7290_v57 = vsel %vm799_vm3, %v7287_v0, %v7289_v26  ;;  %v7948_v0 = vmul.f32 %v15605_v9, %v15521_v20  ;;  %v6243_v47 = vsel %vm6133_vm8, %v6124_v23, 0.0 }
 0x98b   : > { %v15595_v28 = vpop.xlane.xlu0 %5851  ;;  %v7663_v30 = vpop.xlane.xlu1 %7662  ;;  %v15597_v15 = vadd.f32 %v7290_v57, %v6987_v36  ;;  %v5591_v36 = vmul.f32 %v13903_v60, %v15613_v41  ;;  %v7694_v56 = vsel %vm5767_vm6, %v7583_v38, 0.0  ;;  %v5877_v5 = vsel %vm5767_vm6, %v5758_v49, 0.0  ;;  %v16950_v57 = vld [vmem:[#allocation36_spill] sm:$0xff] }
 0x98c   : > { %v7811_v37 = vrot.slane %v7663_v30, 1  ;;  %v8057_v63 = vsel %vm6140_vm10, %v7948_v0, 0.0  ;;  %v5592_v30 = vmul.f32 %v13903_v60, %v16950_v57 }
 0x98d   : > { %v5670_v22 = vsel %vm5597_vm7, %v5591_v36, 0.0 }
 0x98e   : > { %v7812_v2 = vsel %vm622_vm1, %v7810_v8, %v7811_v37  ;;  %v7814_v32 = vsel %vm622_vm1, %v7811_v37, %v7813_v11  ;;  %7689 = vadd.xlane.f32.xlu0 %v7688_v1  ;;  %7692 = vadd.xlane.f32.xlu1 %v7691_v48  ;;  %v6478_v8 = vmul.f32 %v13917_v61, %v15613_v41  ;;  %v16951_v11 = vld [vmem:[#allocation26_spill] sm:$0xff]  ;;  %v5673_v13 = vsel %vm5597_vm7, %v5592_v30, 0.0 }
 0x98f   : > { %v7894_v42 = vadd.f32 %v7812_v2, %v15534_v33  ;;  %v7895_v3 = vadd.f32 %v7814_v32, %v7529_v46  ;;  %v15618_v53 = vpop.xlane.xlu0 %6748  ;;  %v8032_v6 = vpop.xlane.xlu1 %8031  ;;  %v16952_v37 = vmax.f32 %v16951_v11, 0.0  ;;  %v5759_v32 = vmul.f32 %v13900_v50, %v16950_v57 }
 0x990   : > { %v8179_v20 = vrot.slane %v8032_v6, 2  ;;  %v6558_v2 = vsel %vm5597_vm7, %v6478_v8, 0.0  ;;  %v16953_v6 = vld [vmem:[#allocation13_spill] sm:$0xff]  ;;  %v7416_v30 = vmul.f32 %v14058_v27, %v15613_v41 }
 0x991   : > { %v5498_v1 = vrot.slane %v16952_v37, 5  ;;  %v5880_v36 = vsel %vm5597_vm7, %v5759_v32, 0.0 }
 0x992   : > { %v8180_v29 = vsel %vm799_vm3, %v8177_v17, %v8179_v20  ;;  %8058 = vadd.xlane.f32.xlu0 %v8057_v63  ;;  %8055 = vadd.xlane.f32.xlu1 %v8054_v25 }
 0x993   : > { %v15627_v33 = vadd.f32 %v8180_v29, %v7895_v3  ;;  %v15629_v46 = vpop.xlane.xlu0 %7136  ;;  %v5654_v26 = vpop.xlane.xlu1 %5653  ;;  %v6654_v3 = vmul.f32 %v13927_v52, %v15613_v41  ;;  %v15658_v20 = vsel %vm429_vm0, %v16953_v6, %v5498_v1  ;;  %v7949_v1 = vmul.f32 %v15605_v9, %v15613_v41 }
 0x995   : > { %v6774_v29 = vsel %vm5767_vm6, %v6654_v3, 0.0  ;;  %v5706_v3 = vadd.f32 %v5654_v26, %v16913_v4  ;;  %v7043_v26 = vmul.f32 %v13939_v45, %v16950_v57 }
 0x996   : > { %6244 = vadd.xlane.f32.xlu0 %v6243_v47  ;;  %5671 = vadd.xlane.f32.xlu1 %v5670_v22  ;;  %v6126_v47 = vmul.f32 %v13906_v10, %v15658_v20  ;;  %v7042_v22 = vmul.f32 %v13939_v45, %v15613_v41 }
 0x997   : > { %v15637_v17 = vpop.xlane.xlu0 %8034  ;;  %v6218_v39 = vpop.xlane.xlu1 %6217 }
 0x99a   : > { %7695 = vadd.xlane.f32.xlu0 %v7694_v56  ;;  %5878 = vadd.xlane.f32.xlu1 %v5877_v5  ;;  %v7162_v56 = vsel %vm6133_vm8, %v7042_v22, 0.0  ;;  %v6479_v5 = vmul.f32 %v13917_v61, %v16950_v57 }
 0x99b   : > { %v5657_v48 = vpop.xlane.xlu0 %5656  ;;  %v6542_v0 = vpop.xlane.xlu1 %6541 }
 0x99c   : > { %v15648_v19 = vadd.f32 %v6542_v0, %v15572_v7  ;;  %v15660_v7 = vadd.f32 %v8178_v43, %v7894_v42  ;;  %v6360_v43 = vrot.slane %v6218_v39, 2  ;;  %v6655_v39 = vmul.f32 %v13927_v52, %v16950_v57 }
 0x99d   : > { %v5994_v0 = vrot.slane %v15595_v28, 1  ;;  %v5707_v6 = vadd.f32 %v5657_v48, %v16913_v4 }
 0x99e   : > { %5674 = vadd.xlane.f32.xlu0 %v5673_v13  ;;  %6559 = vadd.xlane.f32.xlu1 %v6558_v2  ;;  %v6777_v48 = vsel %vm5597_vm7, %v6655_v39, 0.0  ;;  %v7165_v39 = vsel %vm5597_vm7, %v7043_v26, 0.0  ;;  %v6656_v26 = vmul.f32 %v13927_v52, %v15658_v20 }
 0x99f   : > { %v5858_v63 = vpop.xlane.xlu0 %5857  ;;  %v7474_v25 = vpop.xlane.xlu1 %7473 }
 0x9a0   : > { %v15663_v23 = vadd.f32 %v7474_v25, %v15560_v16  ;;  %v6249_v16 = vsel %vm6140_vm10, %v6126_v47, 0.0  ;;  %v5997_v13 = vrot.slane %v5858_v63, 1  ;;  %v6561_v25 = vsel %vm5597_vm7, %v6479_v5, 0.0 }
 0x9a2   : > { %5881 = vadd.xlane.f32.xlu0 %v5880_v36  ;;  %6775 = vadd.xlane.f32.xlu1 %v6774_v29  ;;  %v7490_v36 = vsel %vm5597_vm7, %v7416_v30, 0.0 }
 0x9a3   : > { %v6221_v38 = vpop.xlane.xlu0 %6220  ;;  %v15671_v49 = vpop.xlane.xlu1 %7668 }
 0x9a4   : > { %v6361_v42 = vrot.slane %v6221_v38, 2  ;;  %v8060_v38 = vsel %vm6133_vm8, %v7949_v1, 0.0 }
 0x9a6   : > { %6250 = vadd.xlane.f32.xlu0 %v6249_v16  ;;  %7163 = vadd.xlane.f32.xlu1 %v7162_v56  ;;  %v6362_v8 = vsel %vm799_vm3, %v6360_v43, %v6361_v42  ;;  %v5760_v43 = vmul.f32 %v13900_v50, %v15658_v20 }
 0x9a7   : > { %v6545_v11 = vpop.xlane.xlu0 %6544  ;;  %v5855_v37 = vpop.xlane.xlu1 %5854 }
 0x9a8   : > { %v6601_v2 = vadd.f32 %v6545_v11, %v15574_v12  ;;  %v5995_v32 = vrot.slane %v5855_v37, 1  ;;  %v6903_v37 = vrot.slane %v15618_v53, 1  ;;  %v5883_v1 = vsel %vm5774_vm9, %v5760_v43, 0.0 }
 0x9aa   : > { %v5996_v29 = vsel %vm622_vm1, %v5994_v0, %v5995_v32  ;;  %v5998_v47 = vsel %vm622_vm1, %v5995_v32, %v5997_v13  ;;  %6562 = vadd.xlane.f32.xlu0 %v6561_v25  ;;  %7491 = vadd.xlane.f32.xlu1 %v7490_v36  ;;  %v6125_v32 = vmul.f32 %v13906_v10, %v16950_v57 }
 0x9ab   : > { %v6755_v41 = vpop.xlane.xlu0 %6754  ;;  %v6224_v28 = vpop.xlane.xlu1 %6223  ;;  %v6072_v63 = vadd.f32 %v5996_v29, %v5706_v3  ;;  %v6073_v22 = vadd.f32 %v5998_v47, %v5707_v6  ;;  %v7291_v29 = vrot.slane %v15629_v46, 2 }
 0x9ac   : > { %v6363_v12 = vrot.slane %v6224_v28, 2  ;;  %v6906_v0 = vrot.slane %v6755_v41, 1 }
 0x9ad   : > { %v15698_v16 = vadd.f32 %v6362_v8, %v6072_v63  ;;  %v7417_v8 = vmul.f32 %v14058_v27, %v16950_v57 }
 0x9ae   : > { %6778 = vadd.xlane.f32.xlu0 %v6777_v48  ;;  %8061 = vadd.xlane.f32.xlu1 %v8060_v38  ;;  %v6364_v56 = vsel %vm799_vm3, %v6361_v42, %v6363_v12  ;;  %v7585_v12 = vmul.f32 %v14084_v18, %v15658_v20  ;;  %v16954_v48 = vld [vmem:[#allocation35_spill] sm:$0xff] }
 0x9af   : > { %v7143_v5 = vpop.xlane.xlu0 %7142  ;;  %v6752_v30 = vpop.xlane.xlu1 %6751  ;;  %v15701_v11 = vadd.f32 %v6364_v56, %v6073_v22  ;;  %v7493_v63 = vsel %vm5597_vm7, %v7417_v8, 0.0  ;;  %v6246_v22 = vsel %vm5597_vm7, %v6125_v32, 0.0  ;;  %v16955_v38 = vmax.f32 %v16954_v48, 0.0  ;;  %v16956_v32 = vld [vmem:[#allocation40_spill] sm:$0xff] }
 0x9b0   : > { %v6904_v13 = vrot.slane %v6752_v30, 1  ;;  %v7294_v47 = vrot.slane %v7143_v5, 2  ;;  %v7815_v30 = vrot.slane %v15671_v49, 1  ;;  %v7044_v8 = vmul.f32 %v13939_v45, %v15658_v20 }
 0x9b2   : > { %v6905_v42 = vsel %vm622_vm1, %v6903_v37, %v6904_v13  ;;  %v6907_v3 = vsel %vm622_vm1, %v6904_v13, %v6906_v0  ;;  %7166 = vadd.xlane.f32.xlu0 %v7165_v39  ;;  %5884 = vadd.xlane.f32.xlu1 %v5883_v1  ;;  %v7700_v13 = vsel %vm5774_vm9, %v7585_v12, 0.0  ;;  %v6780_v39 = vsel %vm5774_vm9, %v6656_v26, 0.0 }
 0x9b3   : > { %v7477_v6 = vpop.xlane.xlu0 %7476  ;;  %v7140_v53 = vpop.xlane.xlu1 %7139  ;;  %v6988_v25 = vadd.f32 %v6905_v42, %v15648_v19  ;;  %v6989_v36 = vadd.f32 %v6907_v3, %v6601_v2  ;;  %v5355_v19 = vrot.slane %v16955_v38, 1  ;;  %v7950_v1 = vmul.f32 %v15605_v9, %v16950_v57 }
 0x9b4   : > { %v7531_v41 = vadd.f32 %v7477_v6, %v15597_v15  ;;  %v7292_v28 = vrot.slane %v7140_v53, 2  ;;  %v7584_v26 = vmul.f32 %v14084_v18, %v16950_v57 }
 0x9b5   : > { %v15738_v42 = vsel %vm429_vm0, %v5355_v19, %v16956_v32 }
 0x9b6   : > { %7494 = vadd.xlane.f32.xlu0 %v7493_v63  ;;  %6247 = vadd.xlane.f32.xlu1 %v6246_v22  ;;  %v7293_v46 = vsel %vm799_vm3, %v7291_v29, %v7292_v28  ;;  %v7295_v15 = vsel %vm799_vm3, %v7292_v28, %v7294_v47  ;;  %v8181_v29 = vrot.slane %v15637_v17, 2  ;;  %v8063_v63 = vsel %vm5597_vm7, %v7950_v1, 0.0 }
 0x9b7   : > { %v7672_v2 = vpop.xlane.xlu0 %7671  ;;  %v7675_v43 = vpop.xlane.xlu1 %7674  ;;  %v15725_v56 = vadd.f32 %v7293_v46, %v6988_v25  ;;  %v15727_v5 = vadd.f32 %v7295_v15, %v6989_v36  ;;  %v7168_v22 = vsel %vm6140_vm10, %v7044_v8, 0.0  ;;  %v5761_v12 = vmul.f32 %v13900_v50, %v15738_v42 }
 0x9b8   : > { %v7816_v37 = vrot.slane %v7672_v2, 1  ;;  %v7818_v0 = vrot.slane %v7675_v43, 1  ;;  %v7697_v15 = vsel %vm5597_vm7, %v7584_v26, 0.0  ;;  %v6657_v57 = vmul.f32 %v13927_v52, %v15738_v42 }
 0x9b9   : > { %v5886_v46 = vsel %vm5767_vm6, %v5761_v12, 0.0  ;;  %v7951_v2 = vmul.f32 %v15605_v9, %v15658_v20 }
 0x9ba   : > { %v7817_v3 = vsel %vm622_vm1, %v7815_v30, %v7816_v37  ;;  %v7819_v49 = vsel %vm622_vm1, %v7816_v37, %v7818_v0  ;;  %7701 = vadd.xlane.f32.xlu0 %v7700_v13  ;;  %6781 = vadd.xlane.f32.xlu1 %v6780_v39  ;;  %v6783_v37 = vsel %vm5767_vm6, %v6657_v57, 0.0  ;;  %v7045_v13 = vmul.f32 %v13939_v45, %v15738_v42 }
 0x9bb   : > { %v7896_v6 = vadd.f32 %v7817_v3, %v15663_v23  ;;  %v7897_v53 = vadd.f32 %v7819_v49, %v7531_v41  ;;  %v8041_v25 = vpop.xlane.xlu0 %8040  ;;  %v8038_v36 = vpop.xlane.xlu1 %8037  ;;  %v8066_v0 = vsel %vm6140_vm10, %v7951_v2, 0.0  ;;  %v5593_v39 = vmul.f32 %v13903_v60, %v15738_v42 }
 0x9bc   : > { %v8184_v47 = vrot.slane %v8041_v25, 2  ;;  %v8182_v28 = vrot.slane %v8038_v36, 2  ;;  %v7171_v32 = vsel %vm6133_vm8, %v7045_v13, 0.0  ;;  %v7952_v49 = vmul.f32 %v15605_v9, %v15738_v42 }
 0x9bd   : > { %v5676_v3 = vsel %vm5597_vm7, %v5593_v39, 0.0  ;;  %v7418_v39 = vmul.f32 %v14058_v27, %v15738_v42 }
 0x9be   : > { %v8183_v48 = vsel %vm799_vm3, %v8181_v29, %v8182_v28  ;;  %v8185_v23 = vsel %vm799_vm3, %v8182_v28, %v8184_v47  ;;  %8064 = vadd.xlane.f32.xlu0 %v8063_v63  ;;  %7169 = vadd.xlane.f32.xlu1 %v7168_v22  ;;  %v8069_v26 = vsel %vm6133_vm8, %v7952_v49, 0.0 }
 0x9bf   : > { %v15752_v41 = vadd.f32 %v8183_v48, %v7896_v6  ;;  %v15754_v17 = vadd.f32 %v8185_v23, %v7897_v53  ;;  %v15756_v38 = vpop.xlane.xlu0 %6226  ;;  %v5660_v19 = vpop.xlane.xlu1 %5659  ;;  %v6127_v6 = vmul.f32 %v13906_v10, %v15738_v42  ;;  %v16957_v53 = vld [vmem:[#allocation37_spill] sm:$0xff]  ;;  %v6480_v23 = vmul.f32 %v13917_v61, %v15738_v42 }
 0x9c0   : > { %v16958_v25 = vmax.f32 %v16957_v53, 0.0  ;;  %v5708_v12 = vadd.f32 %v5660_v19, %v16913_v4  ;;  %v7496_v53 = vsel %vm5597_vm7, %v7418_v39, 0.0 }
 0x9c1   : > { %v6252_v48 = vsel %vm6133_vm8, %v6127_v6, 0.0 }
 0x9c2   : > { %5887 = vadd.xlane.f32.xlu0 %v5886_v46  ;;  %7698 = vadd.xlane.f32.xlu1 %v7697_v15  ;;  %v5499_v36 = vrot.slane %v16958_v25, 5  ;;  %v16960_v46 = vld [vmem:[#allocation39_spill] sm:$0xff] }
 0x9c3   : > { %v15764_v43 = vpop.xlane.xlu0 %7677  ;;  %v5861_v30 = vpop.xlane.xlu1 %5860 }
 0x9c4   : > { %v5999_v28 = vrot.slane %v5861_v30, 1  ;;  %v15790_v15 = vsel %vm429_vm0, %v16960_v46, %v5499_v36  ;;  %v7586_v36 = vmul.f32 %v14084_v18, %v15738_v42 }
 0x9c5   : > { %v5763_v13 = vmul.f32 %v13900_v50, %v15790_v15 }
 0x9c6   : > { %6784 = vadd.xlane.f32.xlu0 %v6783_v37  ;;  %8067 = vadd.xlane.f32.xlu1 %v8066_v0  ;;  %v6564_v0 = vsel %vm5597_vm7, %v6480_v23, 0.0 }
 0x9c7   : > { %v5663_v1 = vpop.xlane.xlu0 %5662  ;;  %v6548_v8 = vpop.xlane.xlu1 %6547  ;;  %v5892_v6 = vsel %vm5774_vm9, %v5763_v13, 0.0  ;;  %v6659_v13 = vmul.f32 %v13927_v52, %v15790_v15 }
 0x9c8   : > { %v6602_v20 = vadd.f32 %v6548_v8, %v15698_v16  ;;  %v16959_v16 = vld [vmem:[#allocation29_spill] sm:$0xff]  ;;  %v5709_v39 = vadd.f32 %v5663_v1, %v16913_v4  ;;  %v6365_v1 = vrot.slane %v15756_v38, 2 }
 0x9c9   : > { %v5594_v22 = vmul.f32 %v13903_v60, %v16959_v16  ;;  %v6128_v25 = vmul.f32 %v13906_v10, %v16959_v16 }
 0x9ca   : > { %7172 = vadd.xlane.f32.xlu0 %v7171_v32  ;;  %5677 = vadd.xlane.f32.xlu1 %v5676_v3 }
 0x9cb   : > { %v5864_v29 = vpop.xlane.xlu0 %5863  ;;  %v6758_v47 = vpop.xlane.xlu1 %6757  ;;  %v5679_v19 = vsel %vm5597_vm7, %v5594_v22, 0.0 }
 0x9cc   : > { %v6000_v63 = vrot.slane %v5864_v29, 1 }
 0x9ce   : > { %v6001_v57 = vsel %vm622_vm1, %v5999_v28, %v6000_v63  ;;  %8070 = vadd.xlane.f32.xlu0 %v8069_v26  ;;  %6253 = vadd.xlane.f32.xlu1 %v6252_v48  ;;  %v6481_v26 = vmul.f32 %v13917_v61, %v16959_v16  ;;  %v5762_v48 = vmul.f32 %v13900_v50, %v16959_v16 }
 0x9cf   : > { %v6233_v2 = vpop.xlane.xlu0 %6232  ;;  %v7146_v30 = vpop.xlane.xlu1 %7145  ;;  %v6074_v37 = vadd.f32 %v6001_v57, %v5708_v12  ;;  %v7703_v12 = vsel %vm5767_vm6, %v7586_v36, 0.0 }
 0x9d2   : > { %5680 = vadd.xlane.f32.xlu0 %v5679_v19  ;;  %6565 = vadd.xlane.f32.xlu1 %v6564_v0  ;;  %v7296_v19 = vrot.slane %v7146_v30, 2 }
 0x9d3   : > { %v6551_v8 = vpop.xlane.xlu0 %6550  ;;  %v7480_v32 = vpop.xlane.xlu1 %7479 }
 0x9d4   : > { %v15800_v3 = vadd.f32 %v6551_v8, %v15701_v11  ;;  %v15803_v49 = vadd.f32 %v7480_v32, %v15725_v56  ;;  %v6908_v11 = vrot.slane %v6758_v47, 1  ;;  %v6255_v56 = vsel %vm5597_vm7, %v6128_v25, 0.0 }
 0x9d5   : > { %v6567_v8 = vsel %vm5597_vm7, %v6481_v26, 0.0  ;;  %v5889_v32 = vsel %vm5597_vm7, %v5762_v48, 0.0  ;;  %v6789_v26 = vsel %vm5774_vm9, %v6659_v13, 0.0 }
 0x9d6   : > { %5893 = vadd.xlane.f32.xlu0 %v5892_v6  ;;  %7497 = vadd.xlane.f32.xlu1 %v7496_v53  ;;  %v6129_v6 = vmul.f32 %v13906_v10, %v15790_v15 }
 0x9d7   : > { %v6761_v29 = vpop.xlane.xlu0 %6760  ;;  %v15811_v28 = vpop.xlane.xlu1 %8043 }
 0x9d8   : > { %v6909_v22 = vrot.slane %v6761_v29, 1  ;;  %v6258_v48 = vsel %vm6140_vm10, %v6129_v6, 0.0 }
 0x9da   : > { %v6910_v23 = vsel %vm622_vm1, %v6908_v11, %v6909_v22  ;;  %6256 = vadd.xlane.f32.xlu0 %v6255_v56  ;;  %7704 = vadd.xlane.f32.xlu1 %v7703_v12  ;;  %v6368_v11 = vrot.slane %v6233_v2, 2 }
 0x9db   : > { %v7149_v42 = vpop.xlane.xlu0 %7148  ;;  %v5867_v46 = vpop.xlane.xlu1 %5866  ;;  %v6990_v57 = vadd.f32 %v6910_v23, %v6602_v20  ;;  %v6658_v23 = vmul.f32 %v13927_v52, %v16959_v16 }
 0x9dc   : > { %v7297_v47 = vrot.slane %v7149_v42, 2  ;;  %v6002_v0 = vrot.slane %v5867_v46, 1 }
 0x9dd   : > { %v6786_v13 = vsel %vm5597_vm7, %v6658_v23, 0.0 }
 0x9de   : > { %v6003_v53 = vsel %vm622_vm1, %v6000_v63, %v6002_v0  ;;  %6568 = vadd.xlane.f32.xlu0 %v6567_v8  ;;  %5890 = vadd.xlane.f32.xlu1 %v5889_v32  ;;  %v7298_v20 = vsel %vm799_vm3, %v7296_v19, %v7297_v47  ;;  %v7047_v63 = vmul.f32 %v13939_v45, %v15790_v15 }
 0x9df   : > { %v7483_v30 = vpop.xlane.xlu0 %7482  ;;  %v6230_v25 = vpop.xlane.xlu1 %6229  ;;  %v15829_v36 = vadd.f32 %v7298_v20, %v6990_v57  ;;  %v6075_v29 = vadd.f32 %v6003_v53, %v5709_v39  ;;  %v7419_v39 = vmul.f32 %v14058_v27, %v16959_v16  ;;  %v7046_v8 = vmul.f32 %v13939_v45, %v16959_v16 }
 0x9e0   : > { %v7533_v56 = vadd.f32 %v7483_v30, %v15727_v5  ;;  %v6366_v12 = vrot.slane %v6230_v25, 2  ;;  %v7177_v0 = vsel %vm6140_vm10, %v7047_v63, 0.0  ;;  %v8186_v20 = vrot.slane %v15811_v28, 2 }
 0x9e2   : > { %6790 = vadd.xlane.f32.xlu0 %v6789_v26  ;;  %6259 = vadd.xlane.f32.xlu1 %v6258_v48  ;;  %v6367_v42 = vsel %vm799_vm3, %v6365_v1, %v6366_v12  ;;  %v6369_v38 = vsel %vm799_vm3, %v6366_v12, %v6368_v11  ;;  %v7174_v1 = vsel %vm5597_vm7, %v7046_v8, 0.0  ;;  %v7587_v11 = vmul.f32 %v14084_v18, %v16959_v16  ;;  %v16961_v12 = vld [vmem:[#allocation38_spill] sm:$0xff] }
 0x9e3   : > { %v7684_v2 = vpop.xlane.xlu0 %7683  ;;  %v6764_v46 = vpop.xlane.xlu1 %6763  ;;  %v15841_v5 = vadd.f32 %v6367_v42, %v6074_v37  ;;  %v15843_v57 = vadd.f32 %v6369_v38, %v6075_v29  ;;  %v7499_v29 = vsel %vm5597_vm7, %v7419_v39, 0.0  ;;  %v16962_v26 = vmax.f32 %v16961_v12, 0.0 }
 0x9e4   : > { %v6911_v19 = vrot.slane %v6764_v46, 1  ;;  %v7820_v38 = vrot.slane %v15764_v43, 1  ;;  %v7823_v46 = vrot.slane %v7684_v2, 1  ;;  %v7954_v39 = vmul.f32 %v15605_v9, %v15790_v15 }
 0x9e5   : > { %v5356_v48 = vrot.slane %v16962_v26, 1  ;;  %v7953_v8 = vmul.f32 %v15605_v9, %v16959_v16 }
 0x9e6   : > { %v6912_v32 = vsel %vm622_vm1, %v6909_v22, %v6911_v19  ;;  %7178 = vadd.xlane.f32.xlu0 %v7177_v0  ;;  %6787 = vadd.xlane.f32.xlu1 %v6786_v13  ;;  %v7588_v22 = vmul.f32 %v14084_v18, %v15790_v15  ;;  %v7706_v0 = vsel %vm5597_vm7, %v7587_v11, 0.0 }
 0x9e7   : > { %v8047_v6 = vpop.xlane.xlu0 %8046  ;;  %v7152_v37 = vpop.xlane.xlu1 %7151  ;;  %v6991_v53 = vadd.f32 %v6912_v32, %v15800_v3  ;;  %v8072_v16 = vsel %vm5597_vm7, %v7953_v8, 0.0 }
 0x9e8   : > { %v8187_v30 = vrot.slane %v8047_v6, 2  ;;  %v7299_v25 = vrot.slane %v7152_v37, 2  ;;  %v7709_v13 = vsel %vm5774_vm9, %v7588_v22, 0.0 }
 0x9ea   : > { %v8188_v63 = vsel %vm799_vm3, %v8186_v20, %v8187_v30  ;;  %7500 = vadd.xlane.f32.xlu0 %v7499_v29  ;;  %7175 = vadd.xlane.f32.xlu1 %v7174_v1  ;;  %v7300_v3 = vsel %vm799_vm3, %v7297_v47, %v7299_v25  ;;  %v16963_v47 = vld [vmem:[#allocation6_spill] sm:$0xff]  ;;  %v8075_v25 = vsel %vm6140_vm10, %v7954_v39, 0.0 }
 0x9eb   : > { %v15864_v28 = vpop.xlane.xlu0 %5869  ;;  %v7681_v23 = vpop.xlane.xlu1 %7680  ;;  %v15866_v42 = vadd.f32 %v7300_v3, %v6991_v53  ;;  %v15877_v32 = vsel %vm429_vm0, %v5356_v48, %v16963_v47  ;;  %v16966_v39 = vld [vmem:[#allocation14_spill] sm:$0xff] }
 0x9ec   : > { %v7821_v19 = vrot.slane %v7681_v23, 1  ;;  %v6130_v29 = vmul.f32 %v13906_v10, %v15877_v32  ;;  %v5595_v1 = vmul.f32 %v13903_v60, %v15877_v32  ;;  %v7589_v48 = vmul.f32 %v14084_v18, %v15877_v32 }
 0x9ed   : > { %v5764_v3 = vmul.f32 %v13900_v50, %v15877_v32  ;;  %v16967_v8 = vmax.f32 %v16966_v39, 0.0 }
 0x9ee   : > { %v7822_v6 = vsel %vm622_vm1, %v7820_v38, %v7821_v19  ;;  %v7824_v43 = vsel %vm622_vm1, %v7821_v19, %v7823_v46  ;;  %7707 = vadd.xlane.f32.xlu0 %v7706_v0  ;;  %7710 = vadd.xlane.f32.xlu1 %v7709_v13  ;;  %v6261_v12 = vsel %vm6133_vm8, %v6130_v29, 0.0  ;;  %v5682_v26 = vsel %vm5597_vm7, %v5595_v1, 0.0  ;;  %v16965_v19 = vld [vmem:[#allocation7_spill] sm:$0xff] }
 0x9ef   : > { %v7898_v2 = vadd.f32 %v7822_v6, %v15803_v49  ;;  %v7899_v37 = vadd.f32 %v7824_v43, %v7533_v56  ;;  %v15882_v53 = vpop.xlane.xlu0 %6766  ;;  %v8050_v20 = vpop.xlane.xlu1 %8049  ;;  %v7712_v38 = vsel %vm5767_vm6, %v7589_v48, 0.0  ;;  %v5895_v46 = vsel %vm5767_vm6, %v5764_v3, 0.0  ;;  %v16968_v29 = vld [vmem:[#allocation15_spill] sm:$0xff] }
 0x9f0   : > { %v8189_v15 = vrot.slane %v8050_v20, 2  ;;  %v5596_v0 = vmul.f32 %v13903_v60, %v16965_v19  ;;  %v6482_v13 = vmul.f32 %v13917_v61, %v15877_v32  ;;  %v5500_v47 = vrot.slane %v16967_v8, 5 }
 0x9f1   : > { %v5765_v60 = vmul.f32 %v13900_v50, %v16965_v19  ;;  %v7048_v48 = vmul.f32 %v13939_v45, %v15877_v32 }
 0x9f2   : > { %v8190_v11 = vsel %vm799_vm3, %v8187_v30, %v8189_v15  ;;  %8076 = vadd.xlane.f32.xlu0 %v8075_v25  ;;  %8073 = vadd.xlane.f32.xlu1 %v8072_v16  ;;  %v5685_v15 = vsel %vm5597_vm7, %v5596_v0, 0.0  ;;  %v6570_v25 = vsel %vm5597_vm7, %v6482_v13, 0.0  ;;  %v6660_v16 = vmul.f32 %v13927_v52, %v15877_v32 }
 0x9f3   : > { %v15891_v49 = vadd.f32 %v8190_v11, %v7899_v37  ;;  %v15893_v56 = vpop.xlane.xlu0 %7154  ;;  %v5666_v22 = vpop.xlane.xlu1 %5665  ;;  %v15911_v37 = vadd.f32 %v8188_v63, %v7898_v2  ;;  %v15924_v1 = vsel %vm429_vm0, %v16968_v29, %v5500_v47  ;;  %v5898_v11 = vsel %vm5597_vm7, %v5765_v60, 0.0 }
 0x9f4   : > { %v7180_v8 = vsel %vm6133_vm8, %v7048_v48, 0.0  ;;  %v7955_v48 = vmul.f32 %v15605_v9, %v15877_v32 }
 0x9f5   : > { %16964 = vst [vmem:[#allocation28_spill] sm:$0xff] %v15891_v49 }
 0x9f6   : > { %6262 = vadd.xlane.f32.xlu0 %v6261_v12  ;;  %5683 = vadd.xlane.f32.xlu1 %v5682_v26  ;;  %v6792_v12 = vsel %vm5767_vm6, %v6660_v16, 0.0  ;;  %v6132_v26 = vmul.f32 %v13906_v10, %v15924_v1  ;;  %v6004_v16 = vrot.slane %v15864_v28, 1 }
 0x9f7   : > { %v15901_v30 = vpop.xlane.xlu0 %8052  ;;  %v6236_v23 = vpop.xlane.xlu1 %6235 }
 0x9f8   : > { %v6370_v0 = vrot.slane %v6236_v23, 2  ;;  %v6267_v39 = vsel %vm6140_vm10, %v6132_v26, 0.0  ;;  %v6661_v26 = vmul.f32 %v13927_v52, %v16965_v19 }
 0x9fa   : > { %7713 = vadd.xlane.f32.xlu0 %v7712_v38  ;;  %5896 = vadd.xlane.f32.xlu1 %v5895_v46  ;;  %v6483_v46 = vmul.f32 %v13917_v61, %v16965_v19 }
 0x9fb   : > { %v5669_v6 = vpop.xlane.xlu0 %5668  ;;  %v6554_v43 = vpop.xlane.xlu1 %6553 }
 0x9fc   : > { %v15914_v20 = vadd.f32 %v6554_v43, %v15841_v5 }
 0x9fe   : > { %5686 = vadd.xlane.f32.xlu0 %v5685_v15  ;;  %6571 = vadd.xlane.f32.xlu1 %v6570_v25  ;;  %v6573_v25 = vsel %vm5597_vm7, %v6483_v46, 0.0 }
 0x9ff   : > { %v5876_v63 = vpop.xlane.xlu0 %5875  ;;  %v7486_v2 = vpop.xlane.xlu1 %7485 }
 0xa00   : > { %v15927_v5 = vadd.f32 %v7486_v2, %v15829_v36  ;;  %v7420_v36 = vmul.f32 %v14058_v27, %v15877_v32  ;;  %v6007_v29 = vrot.slane %v5876_v63, 1  ;;  %v5766_v32 = vmul.f32 %v13900_v50, %v15924_v1 }
 0xa02   : > { %5899 = vadd.xlane.f32.xlu0 %v5898_v11  ;;  %6793 = vadd.xlane.f32.xlu1 %v6792_v12  ;;  %v7502_v60 = vsel %vm5597_vm7, %v7420_v36, 0.0  ;;  %v5710_v11 = vadd.f32 %v5666_v22, %v16913_v4  ;;  %v5711_v12 = vadd.f32 %v5669_v6, %v16913_v4  ;;  %v7049_v6 = vmul.f32 %v13939_v45, %v16965_v19 }
 0xa03   : > { %v6239_v3 = vpop.xlane.xlu0 %6238  ;;  %v15935_v38 = vpop.xlane.xlu1 %7686  ;;  %v5901_v50 = vsel %vm5774_vm9, %v5766_v32, 0.0 }
 0xa04   : > { %v6371_v13 = vrot.slane %v6239_v3, 2  ;;  %v7825_v32 = vrot.slane %v15935_v38, 1 }
 0xa06   : > { %6268 = vadd.xlane.f32.xlu0 %v6267_v39  ;;  %7181 = vadd.xlane.f32.xlu1 %v7180_v8  ;;  %v6372_v47 = vsel %vm799_vm3, %v6370_v0, %v6371_v13  ;;  %v6795_v0 = vsel %vm5597_vm7, %v6661_v26, 0.0  ;;  %v8078_v39 = vsel %vm6133_vm8, %v7955_v48, 0.0  ;;  %v7301_v48 = vrot.slane %v15893_v56, 2 }
 0xa07   : > { %v6557_v43 = vpop.xlane.xlu0 %6556  ;;  %v5873_v15 = vpop.xlane.xlu1 %5872 }
 0xa08   : > { %v15948_v23 = vadd.f32 %v6557_v43, %v15843_v57  ;;  %v6005_v2 = vrot.slane %v5873_v15, 1 }
 0xa0a   : > { %v6006_v3 = vsel %vm622_vm1, %v6004_v16, %v6005_v2  ;;  %v6008_v46 = vsel %vm622_vm1, %v6005_v2, %v6007_v29  ;;  %6574 = vadd.xlane.f32.xlu0 %v6573_v25  ;;  %7503 = vadd.xlane.f32.xlu1 %v7502_v60  ;;  %v6913_v16 = vrot.slane %v15882_v53, 1  ;;  %v7183_v2 = vsel %vm5597_vm7, %v7049_v6, 0.0 }
 0xa0b   : > { %v15958_v28 = vpop.xlane.xlu0 %6772  ;;  %v6242_v57 = vpop.xlane.xlu1 %6241  ;;  %v6076_v63 = vadd.f32 %v6006_v3, %v5710_v11  ;;  %v6077_v36 = vadd.f32 %v6008_v46, %v5711_v12 }
 0xa0c   : > { %v6373_v22 = vrot.slane %v6242_v57, 2  ;;  %v7591_v57 = vmul.f32 %v14084_v18, %v15924_v1 }
 0xa0d   : > { %v15966_v8 = vadd.f32 %v6372_v47, %v6076_v63  ;;  %v7421_v47 = vmul.f32 %v14058_v27, %v16965_v19  ;;  %v6662_v63 = vmul.f32 %v13927_v52, %v15924_v1 }
 0xa0e   : > { %6796 = vadd.xlane.f32.xlu0 %v6795_v0  ;;  %8079 = vadd.xlane.f32.xlu1 %v8078_v39  ;;  %v6374_v43 = vsel %vm799_vm3, %v6371_v13, %v6373_v22  ;;  %v6131_v13 = vmul.f32 %v13906_v10, %v16965_v19 }
 0xa0f   : > { %v15969_v15 = vpop.xlane.xlu0 %7160  ;;  %v15971_v25 = vpop.xlane.xlu1 %6769  ;;  %v15973_v60 = vadd.f32 %v6374_v43, %v6077_v36  ;;  %v7505_v46 = vsel %vm5597_vm7, %v7421_v47, 0.0  ;;  %v16969_v36 = vld [vmem:[#allocation16_spill] sm:$0xff]  ;;  %v7050_v47 = vmul.f32 %v13939_v45, %v15924_v1 }
 0xa10   : > { %v16705_v29 = vrot.slane %v15971_v25, 1  ;;  %v6264_v10 = vsel %vm5597_vm7, %v6131_v13, 0.0  ;;  %v16970_v22 = vmax.f32 %v16969_v36, 0.0  ;;  %v16971_v13 = vld [vmem:[#allocation42_spill] sm:$0xff] }
 0xa11   : > { %v7186_v36 = vsel %vm6140_vm10, %v7050_v47, 0.0 }
 0xa12   : > { %v6915_v11 = vsel %vm622_vm1, %v6913_v16, %v16705_v29  ;;  %7184 = vadd.xlane.f32.xlu0 %v7183_v2  ;;  %5902 = vadd.xlane.f32.xlu1 %v5901_v50  ;;  %v5357_v6 = vrot.slane %v16970_v22, 1  ;;  %v7718_v16 = vsel %vm5774_vm9, %v7591_v57, 0.0  ;;  %v6798_v2 = vsel %vm5774_vm9, %v6662_v63, 0.0 }
 0xa13   : > { %v15986_v12 = vpop.xlane.xlu0 %7488  ;;  %v15988_v53 = vpop.xlane.xlu1 %7157  ;;  %v6992_v26 = vadd.f32 %v6915_v11, %v15914_v20  ;;  %v7956_v50 = vmul.f32 %v15605_v9, %v16965_v19 }
 0xa14   : > { %v16703_v3 = vrot.slane %v15988_v53, 2  ;;  %v5533_v11 = vsel %vm429_vm0, %v5357_v6, %v16971_v13  ;;  %v7590_v6 = vmul.f32 %v14084_v18, %v16965_v19  ;;  %v7957_v19 = vmul.f32 %v15605_v9, %v15924_v1 }
 0xa15   : > { %v8081_v63 = vsel %vm5597_vm7, %v7956_v50, 0.0  ;;  %v6663_v22 = vmul.f32 %v13927_v52, %v5533_v11  ;;  %v7051_v50 = vmul.f32 %v13939_v45, %v5533_v11 }
 0xa16   : > { %7506 = vadd.xlane.f32.xlu0 %v7505_v46  ;;  %6265 = vadd.xlane.f32.xlu1 %v6264_v10  ;;  %v7303_v56 = vsel %vm799_vm3, %v7301_v48, %v16703_v3  ;;  %v8191_v10 = vrot.slane %v15901_v30, 2  ;;  %v16977_v3 = vld [vmem:[#allocation43_spill] sm:$0xff] }
 0xa17   : > { %v16004_v20 = vpop.xlane.xlu0 %7689  ;;  %v16006_v0 = vpop.xlane.xlu1 %7692  ;;  %v16008_v39 = vadd.f32 %v7303_v56, %v6992_v26 }
 0xa18   : > { %v16704_v43 = vrot.slane %v16004_v20, 1 }
 0xa1a   : > { %v7827_v26 = vsel %vm622_vm1, %v7825_v32, %v16704_v43  ;;  %7719 = vadd.xlane.f32.xlu0 %v7718_v16  ;;  %6799 = vadd.xlane.f32.xlu1 %v6798_v2  ;;  %v6801_v16 = vsel %vm5767_vm6, %v6663_v22, 0.0  ;;  %v7715_v2 = vsel %vm5597_vm7, %v7590_v6, 0.0  ;;  %v7592_v43 = vmul.f32 %v14084_v18, %v5533_v11 }
 0xa1b   : > { %v7900_v38 = vadd.f32 %v7827_v26, %v15927_v5  ;;  %v16024_v48 = vpop.xlane.xlu0 %8058  ;;  %v16026_v46 = vpop.xlane.xlu1 %8055  ;;  %v7189_v26 = vsel %vm6133_vm8, %v7051_v50, 0.0  ;;  %v16976_v50 = vld [vmem:[#allocation44_spill] sm:$0xff] }
 0xa1c   : > { %v16702_v57 = vrot.slane %v16026_v46, 2 }
 0xa1e   : > { %v8193_v5 = vsel %vm799_vm3, %v8191_v10, %v16702_v57  ;;  %8082 = vadd.xlane.f32.xlu0 %v8081_v63  ;;  %7187 = vadd.xlane.f32.xlu1 %v7186_v36  ;;  %v7958_v10 = vmul.f32 %v15605_v9, %v5533_v11  ;;  %v6484_v63 = vmul.f32 %v13917_v61, %v5533_v11  ;;  %v16973_v36 = vld [vmem:[#allocation41_spill] sm:$0xff] }
 0xa1f   : > { %v16038_v56 = vadd.f32 %v8193_v5, %v7900_v38  ;;  %v16040_v30 = vpop.xlane.xlu0 %6244  ;;  %v16042_v32 = vpop.xlane.xlu1 %5671  ;;  %v8084_v38 = vsel %vm6140_vm10, %v7957_v19, 0.0  ;;  %v16974_v22 = vmax.f32 %v16973_v36, 0.0  ;;  %v6485_v19 = vmul.f32 %v13917_v61, %v16976_v50 }
 0xa20   : > { %v7422_v57 = vmul.f32 %v14058_v27, %v5533_v11 }
 0xa21   : > { %16972 = vst [vmem:[#allocation30_spill] sm:$0xff] %v16038_v56  ;;  %v5501_v6 = vrot.slane %v16974_v22, 5  ;;  %v6579_v22 = vsel %vm5597_vm7, %v6485_v19, 0.0  ;;  %v6664_v19 = vmul.f32 %v13927_v52, %v16976_v50 }
 0xa22   : > { %6802 = vadd.xlane.f32.xlu0 %v6801_v16  ;;  %7716 = vadd.xlane.f32.xlu1 %v7715_v2  ;;  %v8087_v16 = vsel %vm6133_vm8, %v7958_v10, 0.0  ;;  %v6576_v2 = vsel %vm5597_vm7, %v6484_v63, 0.0  ;;  %v7508_v10 = vsel %vm5597_vm7, %v7422_v57, 0.0 }
 0xa23   : > { %v16049_v47 = vpop.xlane.xlu0 %7695  ;;  %v16051_v13 = vpop.xlane.xlu1 %5878  ;;  %v5549_v36 = vsel %vm429_vm0, %v16977_v3, %v5501_v6  ;;  %v7721_v6 = vsel %vm5767_vm6, %v7592_v43, 0.0  ;;  %v7052_v43 = vmul.f32 %v13939_v45, %v16976_v50  ;;  %vm8562_vm0 = vcmask 1045509  }
 0xa24   : > { %v6665_v63 = vmul.f32 %v13927_v52, %v5549_v36 }
 0xa26   : > { %7190 = vadd.xlane.f32.xlu0 %v7189_v26  ;;  %8085 = vadd.xlane.f32.xlu1 %v8084_v38  ;;  %v6807_v3 = vsel %vm5774_vm9, %v6665_v63, 0.0  ;;  %v7423_v63 = vmul.f32 %v14058_v27, %v16976_v50 }
 0xa27   : > { %v16059_v1 = vpop.xlane.xlu0 %5674  ;;  %v16061_v5 = vpop.xlane.xlu1 %6559 }
 0xa28   : > { %16975 = vst [vmem:[#allocation18_spill] sm:$0xff] %v16059_v1  ;;  %v7960_v1 = vmul.f32 %v15605_v9, %v5549_v36 }
 0xa2a   : > { %8088 = vadd.xlane.f32.xlu0 %v8087_v16  ;;  %6577 = vadd.xlane.f32.xlu1 %v6576_v2  ;;  %v7053_v2 = vmul.f32 %v13939_v45, %v5549_v36 }
 0xa2b   : > { %v16070_v26 = vpop.xlane.xlu0 %5881  ;;  %v16072_v38 = vpop.xlane.xlu1 %6775 }
 0xa2e   : > { %6580 = vadd.xlane.f32.xlu0 %v6579_v22  ;;  %7509 = vadd.xlane.f32.xlu1 %v7508_v10  ;;  %v7195_v22 = vsel %vm6140_vm10, %v7053_v2, 0.0  ;;  %v6804_v10 = vsel %vm5597_vm7, %v6664_v19, 0.0  ;;  %v7593_v2 = vmul.f32 %v14084_v18, %v16976_v50  ;;  %v7594_v19 = vmul.f32 %v14084_v18, %v5549_v36 }
 0xa2f   : > { %v16078_v61 = vpop.xlane.xlu0 %6250  ;;  %v16080_v16 = vpop.xlane.xlu1 %7163 }
 0xa30   : > { %16978 = vst [vmem:[#allocation9_spill] sm:$0xff] %v16078_v61 }
 0xa32   : > { %6808 = vadd.xlane.f32.xlu0 %v6807_v3  ;;  %7722 = vadd.xlane.f32.xlu1 %v7721_v6  ;;  %v7511_v3 = vsel %vm5597_vm7, %v7423_v63, 0.0  ;;  %v7192_v6 = vsel %vm5597_vm7, %v7052_v43, 0.0  ;;  %v7959_v63 = vmul.f32 %v15605_v9, %v16976_v50 }
 0xa33   : > { %v16087_v57 = vpop.xlane.xlu0 %6562  ;;  %v16089_v11 = vpop.xlane.xlu1 %7491 }
 0xa36   : > { %7196 = vadd.xlane.f32.xlu0 %v7195_v22  ;;  %6805 = vadd.xlane.f32.xlu1 %v6804_v10  ;;  %v7724_v22 = vsel %vm5597_vm7, %v7593_v2, 0.0  ;;  %v7727_v10 = vsel %vm5774_vm9, %v7594_v19, 0.0 }
 0xa37   : > { %v16097_v29 = vpop.xlane.xlu0 %6778  ;;  %v16099_v52 = vpop.xlane.xlu1 %8061 }
 0xa38   : > { %16979 = vst [vmem:[#allocation31_spill] sm:$0xff] %v16099_v52  ;;  %v6009_v52 = vrot.slane %v16051_v13, 1 }
 0xa3a   : > { %7512 = vadd.xlane.f32.xlu0 %v7511_v3  ;;  %7193 = vadd.xlane.f32.xlu1 %v7192_v6  ;;  %v8093_v3 = vsel %vm6140_vm10, %v7960_v1, 0.0  ;;  %v8090_v6 = vsel %vm5597_vm7, %v7959_v63, 0.0 }
 0xa3b   : > { %v16106_v27 = vpop.xlane.xlu0 %7166  ;;  %v16108_v45 = vpop.xlane.xlu1 %5884 }
 0xa3c   : > { %16980 = vst [vmem:[#allocation19_spill] sm:$0xff] %v16108_v45 }
 0xa3e   : > { %7725 = vadd.xlane.f32.xlu0 %v7724_v22  ;;  %7728 = vadd.xlane.f32.xlu1 %v7727_v10 }
 0xa3f   : > { %v16115_v43 = vpop.xlane.xlu0 %7494  ;;  %v16117_v18 = vpop.xlane.xlu1 %6247 }
 0xa40   : > { %16981 = vst [vmem:[#allocation21_spill] sm:$0xff] %v16115_v43 }
 0xa42   : > { %8094 = vadd.xlane.f32.xlu0 %v8093_v3  ;;  %8091 = vadd.xlane.f32.xlu1 %v8090_v6 }
 0xa43   : > { %v16121_v2 = vpop.xlane.xlu0 %7701  ;;  %v16123_v19 = vpop.xlane.xlu1 %6781 }
 0xa47   : > { %v16125_v36 = vpop.xlane.xlu0 %8064  ;;  %v16127_v61 = vpop.xlane.xlu1 %7169 }
 0xa4b   : > { %v5888_v9 = vpop.xlane.xlu0 %5887  ;;  %v16129_v50 = vpop.xlane.xlu1 %7698 }
 0xa4f   : > { %v16131_v22 = vpop.xlane.xlu0 %6784  ;;  %v16133_v10 = vpop.xlane.xlu1 %8067 }
 0xa50   : > { %16982 = vst [vmem:[#allocation20_spill] sm:$0xff] %v16133_v10 }
 0xa53   : > { %v16135_v1 = vpop.xlane.xlu0 %7172  ;;  %8317 = vperm.xlu1 %9741, %v14858_v14   ;;  %v5678_v63 = vpop.xlane.xlu1 %5677 }
 0xa57   : > { %v16138_v3 = vpop.xlane.xlu0 %8070  ;;  %8320 = vperm.xlu1 %9741, %v14820_v58   ;;  %v6254_v6 = vpop.xlane.xlu1 %6253 }
 0xa58   : > { %16983 = vst [vmem:[#allocation32_spill] sm:$0xff] %v16138_v3  ;;  %8314 = vperm.xlu0 %9415, %v14679_v24   ;;  %v6380_v3 = vrot.slane %v6254_v6, 2 }
 0xa5b   : > { %v5681_v45 = vpop.xlane.xlu0 %5680  ;;  %8311 = vperm.xlu1 %9741, %v14832_v31   ;;  %v6566_v56 = vpop.xlane.xlu1 %6565  ;;  %v16706_v31 = vrot.slane %v16070_v26, 1 }
 0xa5c   : > { %8323 = vperm.xlu0 %9415, %v14950_v40   ;;  %v5715_v6 = vadd.f32 %v5681_v45, %v16913_v4 }
 0xa5d   : > { %v6011_v13 = vsel %vm622_vm1, %v6009_v52, %v16706_v31 }
 0xa5f   : > { %v5894_v49 = vpop.xlane.xlu0 %5893  ;;  %8326 = vperm.xlu1 %9741, %v14952_v59   ;;  %v16145_v43 = vpop.xlane.xlu1 %7497 }
 0xa60   : > { %16984 = vst [vmem:[#allocation22_spill] sm:$0xff] %v16145_v43  ;;  %8329 = vperm.xlu0 %9415, %v15122_v21   ;;  %v6376_v43 = vrot.slane %v16117_v18, 2  ;;  %v6017_v10 = vrot.slane %v5894_v49, 1  ;;  %v5712_v49 = vadd.f32 %v16042_v32, %v16913_v4 }
 0xa62   : > { %v6078_v52 = vadd.f32 %v6011_v13, %v5712_v49  ;;  %v16986_v13 = vrot.slane %v15971_v25, 1  ;;  %v7831_v25 = vrot.slane %v16129_v50, 1  ;;  %v6918_v49 = vrot.slane %v16072_v38, 1 }
 0xa63   : > { %v6257_v14 = vpop.xlane.xlu0 %6256  ;;  %8332 = vperm.xlu1 %9741, %v15089_v51   ;;  %v16149_v58 = vpop.xlane.xlu1 %7704  ;;  %v6014_v51 = vrot.slane %v5888_v9, 1  ;;  %v6921_v38 = vrot.slane %v16123_v19, 1  ;;  %v7536_v19 = vadd.f32 %v16089_v11, %v16008_v39  ;;  %v16991_v11 = vld [vmem:[#allocation31_spill] sm:$0xff] }
 0xa64   : > { %16985 = vst [vmem:[#allocation33_spill] sm:$0xff] %v16149_v58  ;;  %v6381_v24 = vrot.slane %v6257_v14, 2  ;;  %8335 = vperm.xlu0 %9415, %v15219_v62   ;;  %v5714_v62 = vadd.f32 %v5678_v63, %v16913_v4 }
 0xa66   : > { %v6382_v40 = vsel %vm799_vm3, %v6380_v3, %v6381_v24  ;;  %v6375_v3 = vrot.slane %v16040_v30, 2 }
 0xa67   : > { %v16155_v59 = vpop.xlane.xlu0 %6568  ;;  %8338 = vperm.xlu1 %9741, %v15221_v54   ;;  %v5891_v21 = vpop.xlane.xlu1 %5890 }
 0xa68   : > { %v6015_v58 = vrot.slane %v5891_v21, 1  ;;  %8341 = vperm.xlu0 %9415, %v15391_v35   ;;  %v6377_v30 = vsel %vm799_vm3, %v6375_v3, %v6376_v43 }
 0xa6a   : > { %v6016_v54 = vsel %vm622_vm1, %v6014_v51, %v6015_v58  ;;  %v6018_v14 = vsel %vm622_vm1, %v6015_v58, %v6017_v10  ;;  %v7828_v10 = vrot.slane %v16006_v0, 1  ;;  %v6444_v58 = vadd.f32 %v6377_v30, %v6078_v52 }
 0xa6b   : > { %v16170_v9 = vpop.xlane.xlu0 %6790  ;;  %8344 = vperm.xlu1 %9741, %v15358_v44   ;;  %v6260_v35 = vpop.xlane.xlu1 %6259  ;;  %v6080_v63 = vadd.f32 %v6016_v54, %v5714_v62  ;;  %v6081_v45 = vadd.f32 %v6018_v14, %v5715_v6  ;;  %v6916_v6 = vrot.slane %v15958_v28, 1  ;;  %v7304_v0 = vrot.slane %v15969_v15, 2 }
 0xa6c   : > { %v6383_v21 = vrot.slane %v6260_v35, 2  ;;  %8347 = vperm.xlu0 %9415, %v15483_v34   ;;  %v6923_v34 = vrot.slane %v16131_v22, 1  ;;  %v6608_v3 = vadd.f32 %v6566_v56, %v6444_v58  ;;  %v16987_v54 = vrot.slane %v16004_v20, 1 }
 0xa6d   : > { %v16177_v51 = vadd.f32 %v6382_v40, %v6080_v63  ;;  %v6919_v28 = vrot.slane %v16097_v29, 1  ;;  %v16988_v15 = vrot.slane %v15988_v53, 2  ;;  %v7307_v35 = vrot.slane %v16106_v27, 2 }
 0xa6e   : > { %v6384_v32 = vsel %vm799_vm3, %v6381_v24, %v6383_v21  ;;  %v8194_v24 = vrot.slane %v16024_v48, 2  ;;  %v7829_v14 = vsel %vm622_vm1, %v16987_v54, %v7828_v10  ;;  %v7311_v63 = vrot.slane %v16135_v1, 2 }
 0xa6f   : > { %v16181_v31 = vpop.xlane.xlu0 %7178  ;;  %8350 = vperm.xlu1 %9741, %v15485_v55   ;;  %v16184_v44 = vpop.xlane.xlu1 %6787  ;;  %v16186_v62 = vadd.f32 %v6384_v32, %v6081_v45  ;;  %v6917_v55 = vsel %vm622_vm1, %v16986_v13, %v6916_v6  ;;  %v7305_v48 = vsel %vm799_vm3, %v16988_v15, %v7304_v0  ;;  %v16989_v53 = vrot.slane %v16026_v46, 2  ;;  %v16990_v0 = vld [vmem:[#allocation20_spill] sm:$0xff]  ;;  %v16995_v15 = vld [vmem:[#allocation30_spill] sm:$0xff] }
 0xa70   : > { %v6924_v40 = vrot.slane %v16184_v44, 1  ;;  %8353 = vperm.xlu0 %9415, %v15660_v7   ;;  %v7535_v7 = vadd.f32 %v15986_v12, %v15866_v42  ;;  %v6993_v45 = vadd.f32 %v6917_v55, %v15948_v23  ;;  %v7306_v30 = vrot.slane %v16080_v16, 2 }
 0xa71   : > { %v8195_v50 = vsel %vm799_vm3, %v16989_v53, %v8194_v24  ;;  %v6920_v27 = vsel %vm622_vm1, %v6918_v49, %v6919_v28  ;;  %v7309_v10 = vrot.slane %v16127_v61, 2  ;;  %v7833_v6 = vrot.slane %v16121_v2, 1  ;;  %v16997_v53 = vld [vmem:[#allocation22_spill] sm:$0xff] }
 0xa72   : > { %v6925_v22 = vsel %vm622_vm1, %v6923_v34, %v6924_v40  ;;  %v7901_v12 = vadd.f32 %v7829_v14, %v7535_v7  ;;  %v7381_v46 = vadd.f32 %v7305_v48, %v6993_v45  ;;  %v7308_v32 = vsel %vm799_vm3, %v7306_v30, %v7307_v35  ;;  %v16996_v48 = vld [vmem:[#allocation32_spill] sm:$0xff] }
 0xa73   : > { %v16210_v56 = vpop.xlane.xlu0 %7500  ;;  %8356 = vperm.xlu1 %9741, %v15627_v33   ;;  %v16213_v20 = vpop.xlane.xlu1 %7175  ;;  %v6996_v29 = vadd.f32 %v6925_v22, %v6608_v3  ;;  %v7830_v33 = vrot.slane %v16049_v47, 1  ;;  %v8199_v24 = vrot.slane %v16990_v0, 2  ;;  %v6922_v39 = vsel %vm622_vm1, %v6919_v28, %v6921_v38  ;;  %v16992_v3 = vld [vmem:[#allocation21_spill] sm:$0xff] }
 0xa74   : > { %v7312_v42 = vrot.slane %v16213_v20, 2  ;;  %8359 = vperm.xlu0 %9415, %v15752_v41   ;;  %v6606_v41 = vadd.f32 %v16061_v5, %v15966_v8  ;;  %v8267_v16 = vadd.f32 %v8195_v50, %v7901_v12  ;;  %v6607_v8 = vadd.f32 %v16087_v57, %v15973_v60  ;;  %v16994_v60 = vld [vmem:[#allocation28_spill] sm:$0xff] }
 0xa75   : > { %v7832_v21 = vsel %vm622_vm1, %v7830_v33, %v7831_v25  ;;  %v8197_v5 = vrot.slane %v16125_v36, 2  ;;  %v8196_v61 = vrot.slane %v16991_v11, 2  ;;  %v7537_v13 = vadd.f32 %v16992_v3, %v7381_v46 }
 0xa76   : > { %v7313_v1 = vsel %vm799_vm3, %v7311_v63, %v7312_v42  ;;  %v6994_v58 = vadd.f32 %v6920_v27, %v6606_v41  ;;  %v7902_v34 = vadd.f32 %v7832_v21, %v7536_v19  ;;  %v7834_v36 = vsel %vm622_vm1, %v7831_v25, %v7833_v6 }
 0xa77   : > { %v7708_v52 = vpop.xlane.xlu0 %7707  ;;  %8362 = vperm.xlu1 %9741, %v15754_v17   ;;  %v7711_v23 = vpop.xlane.xlu1 %7710  ;;  %v16235_v47 = vadd.f32 %v7313_v1, %v6996_v29  ;;  %v7310_v2 = vsel %vm799_vm3, %v7307_v35, %v7309_v10  ;;  %v8198_v28 = vsel %vm799_vm3, %v8196_v61, %v8197_v5  ;;  %v8201_v29 = vrot.slane %v16996_v48, 2 }
 0xa78   : > { %8365 = vperm.xlu0 %9415, %v15911_v37   ;;  %v7836_v17 = vrot.slane %v7708_v52, 1  ;;  %v7382_v55 = vadd.f32 %v7308_v32, %v6994_v58  ;;  %v16993_v37 = vld [vmem:[#allocation33_spill] sm:$0xff]  ;;  %v7838_v22 = vrot.slane %v7711_v23, 1  ;;  %v6995_v49 = vadd.f32 %v6922_v39, %v6607_v8 }
 0xa79   : > { %v7835_v54 = vrot.slane %v16993_v37, 1  ;;  %v8200_v12 = vsel %vm799_vm3, %v8197_v5, %v8199_v24  ;;  %v8268_v45 = vadd.f32 %v8198_v28, %v7902_v34  ;;  %v7903_v25 = vadd.f32 %v7834_v36, %v7537_v13 }
 0xa7a   : > { %v7538_v50 = vadd.f32 %v16997_v53, %v7382_v55  ;;  %v7383_v30 = vadd.f32 %v7310_v2, %v6995_v49  ;;  %v7839_v41 = vsel %vm622_vm1, %v7836_v17, %v7838_v22  ;;  %v16998_v55 = vld [vmem:[#allocation19_spill] sm:$0xff]  ;;  %v17000_v28 = vrot.slane %v16070_v26, 1  ;;  %v17001_v49 = vld [vmem:[#allocation18_spill] sm:$0xff] }
 0xa7b   : > { %v8077_v14 = vpop.xlane.xlu0 %8076  ;;  %8368 = vperm.xlu1 %9741, %v16994_v60   ;;  %v8074_v57 = vpop.xlane.xlu1 %8073  ;;  %v7837_v63 = vsel %vm622_vm1, %v7835_v54, %v7836_v17  ;;  %v8269_v46 = vadd.f32 %v8200_v12, %v7903_v25  ;;  %v6012_v37 = vrot.slane %v16998_v55, 1  ;;  %v6926_v25 = vrot.slane %v16170_v9, 1 }
 0xa7c   : > { %v8202_v7 = vrot.slane %v8074_v57, 2  ;;  %8371 = vperm.xlu0 %9415, %v16995_v15   ;;  %v8204_v33 = vrot.slane %v8077_v14, 2  ;;  %v7904_v1 = vadd.f32 %v7837_v63, %v7538_v50  ;;  %v7539_v21 = vadd.f32 %v16210_v56, %v7383_v30 }
 0xa7d   : > { %v6013_v48 = vsel %vm622_vm1, %v17000_v28, %v6012_v37  ;;  %v5713_v63 = vadd.f32 %v17001_v49, %v16913_v4 }
 0xa7e   : > { %v8203_v35 = vsel %vm799_vm3, %v8201_v29, %v8202_v7  ;;  %v8205_v52 = vsel %vm799_vm3, %v8202_v7, %v8204_v33  ;;  %v7905_v19 = vadd.f32 %v7839_v41, %v7539_v21  ;;  %v16999_v7 = vld [vmem:[#allocation9_spill] sm:$0xff] }
 0xa7f   : > { %v6263_v38 = vpop.xlane.xlu0 %6262  ;;  %8374 = vperm.xlu1 %9741, %v8267_v16   ;;  %v5684_v27 = vpop.xlane.xlu1 %5683  ;;  %v8270_v23 = vadd.f32 %v8203_v35, %v7904_v1  ;;  %v6378_v15 = vrot.slane %v16999_v7, 2 }
 0xa80   : > { %8377 = vperm.xlu0 %9415, %v8268_v45   ;;  %v8271_v8 = vadd.f32 %v8205_v52, %v7905_v19  ;;  %v5716_v14 = vadd.f32 %v5684_v27, %v16913_v4  ;;  %v6385_v36 = vrot.slane %v6263_v38, 2  ;;  %v6079_v45 = vadd.f32 %v6013_v48, %v5713_v63 }
 0xa81   : > { %v6379_v33 = vsel %vm799_vm3, %v6376_v43, %v6378_v15  ;;  %v7314_v38 = vrot.slane %v16181_v31, 2  ;;  %v6927_v27 = vsel %vm622_vm1, %v6924_v40, %v6926_v25 }
 0xa82   : > { %v6445_v26 = vadd.f32 %v6379_v33, %v6079_v45 }
 0xa83   : > { %v7714_v10 = vpop.xlane.xlu0 %7713  ;;  %8380 = vperm.xlu1 %9741, %v8269_v46   ;;  %v5897_v32 = vpop.xlane.xlu1 %5896  ;;  %v7315_v18 = vsel %vm799_vm3, %v7312_v42, %v7314_v38 }
 0xa84   : > { %8383 = vperm.xlu0 %9415, %v8270_v23   ;;  %v6019_v13 = vrot.slane %v5897_v32, 1  ;;  %v6609_v1 = vadd.f32 %v16155_v59, %v6445_v26  ;;  %v7840_v9 = vrot.slane %v7714_v10, 1 }
 0xa86   : > { %v6997_v43 = vadd.f32 %v6927_v27, %v6609_v1 }
 0xa87   : > { %v16264_v5 = vpop.xlane.xlu0 %5686  ;;  %8386 = vperm.xlu1 %9741, %v8271_v8   ;;  %v16266_v16 = vpop.xlane.xlu1 %6571 }
 0xa88   : > { %v7385_v19 = vadd.f32 %v7315_v18, %v6997_v43  ;;  %v5717_v48 = vadd.f32 %v16264_v5, %v16913_v4 }
 0xa8b   : > { %v16268_v58 = vpop.xlane.xlu0 %5899  ;;  %v16270_v17 = vpop.xlane.xlu1 %6793 }
 0xa8c   : > { %v6020_v11 = vrot.slane %v16268_v58, 1 }
 0xa8e   : > { %v6021_v54 = vsel %vm622_vm1, %v6019_v13, %v6020_v11 }
 0xa8f   : > { %v16272_v6 = vpop.xlane.xlu0 %6268  ;;  %v16274_v56 = vpop.xlane.xlu1 %7181  ;;  %v6082_v22 = vadd.f32 %v6021_v54, %v5716_v14 }
 0xa90   : > { %v6388_v15 = vrot.slane %v16272_v6, 2 }
 0xa93   : > { %v16276_v34 = vpop.xlane.xlu0 %6574  ;;  %v16278_v0 = vpop.xlane.xlu1 %7503 }
 0xa94   : > { %v7540_v31 = vadd.f32 %v16278_v0, %v16235_v47 }
 0xa97   : > { %v16280_v24 = vpop.xlane.xlu0 %6796  ;;  %v8080_v39 = vpop.xlane.xlu1 %8079 }
 0xa98   : > { %v8206_v44 = vrot.slane %v8080_v39, 2  ;;  %v6929_v49 = vrot.slane %v16280_v24, 1  ;;  %v7316_v24 = vrot.slane %v16274_v56, 2 }
 0xa9b   : > { %v16283_v61 = vpop.xlane.xlu0 %7184  ;;  %v5903_v3 = vpop.xlane.xlu1 %5902 }
 0xa9f   : > { %v16288_v60 = vpop.xlane.xlu0 %7506  ;;  %v6266_v57 = vpop.xlane.xlu1 %6265 }
 0xaa0   : > { %v6386_v2 = vrot.slane %v6266_v57, 2  ;;  %v7541_v20 = vadd.f32 %v16288_v60, %v7385_v19 }
 0xaa2   : > { %v6387_v29 = vsel %vm799_vm3, %v6385_v36, %v6386_v2  ;;  %v6022_v36 = vrot.slane %v5903_v3, 1 }
 0xaa3   : > { %v7720_v12 = vpop.xlane.xlu0 %7719  ;;  %v16297_v53 = vpop.xlane.xlu1 %6799  ;;  %v16299_v50 = vadd.f32 %v6387_v29, %v6082_v22  ;;  %v6389_v29 = vsel %vm799_vm3, %v6386_v2, %v6388_v15 }
 0xaa4   : > { %v7843_v21 = vrot.slane %v7720_v12, 1  ;;  %v6023_v28 = vsel %vm622_vm1, %v6020_v11, %v6022_v36  ;;  %v6931_v45 = vrot.slane %v16297_v53, 1  ;;  %v7317_v11 = vrot.slane %v16283_v61, 2 }
 0xaa5   : > { %v6083_v63 = vadd.f32 %v6023_v28, %v5717_v48 }
 0xaa7   : > { %v8083_v30 = vpop.xlane.xlu0 %8082  ;;  %v16305_v35 = vpop.xlane.xlu1 %7187  ;;  %v6449_v6 = vadd.f32 %v6389_v29, %v6083_v63 }
 0xaa8   : > { %v8207_v52 = vrot.slane %v8083_v30, 2  ;;  %v6928_v30 = vrot.slane %v16270_v17, 1  ;;  %v7319_v38 = vrot.slane %v16305_v35, 2  ;;  %v6932_v17 = vsel %vm622_vm1, %v6929_v49, %v6931_v45 }
 0xaa9   : > { %v6610_v35 = vadd.f32 %v16266_v16, %v16177_v51 }
 0xaaa   : > { %v16326_v8 = vsel %vm799_vm3, %v8206_v44, %v8207_v52  ;;  %v6930_v2 = vsel %vm622_vm1, %v6928_v30, %v6929_v49 }
 0xaab   : > { %v6803_v41 = vpop.xlane.xlu0 %6802  ;;  %v7717_v46 = vpop.xlane.xlu1 %7716 }
 0xaac   : > { %v7841_v23 = vrot.slane %v7717_v46, 1  ;;  %v6933_v25 = vrot.slane %v6803_v41, 1  ;;  %v6611_v46 = vadd.f32 %v16276_v34, %v16186_v62 }
 0xaae   : > { %v16318_v40 = vsel %vm622_vm1, %v7840_v9, %v7841_v23  ;;  %v16321_v59 = vsel %vm622_vm1, %v7841_v23, %v7843_v21  ;;  %v7318_v21 = vsel %vm799_vm3, %v7316_v24, %v7317_v11  ;;  %v6999_v19 = vadd.f32 %v6932_v17, %v6611_v46 }
 0xaaf   : > { %v7906_v42 = vadd.f32 %v16318_v40, %v7540_v31  ;;  %v7191_v32 = vpop.xlane.xlu0 %7190  ;;  %v8086_v10 = vpop.xlane.xlu1 %8085  ;;  %v7907_v47 = vadd.f32 %v16321_v59, %v7541_v20  ;;  %v6998_v31 = vadd.f32 %v6930_v2, %v6610_v35 }
 0xab0   : > { %v8209_v58 = vrot.slane %v8086_v10, 2  ;;  %v7321_v43 = vrot.slane %v7191_v32, 2 }
 0xab1   : > { %v8272_v39 = vadd.f32 %v16326_v8, %v7906_v42  ;;  %v7386_v62 = vadd.f32 %v7318_v21, %v6998_v31 }
 0xab2   : > { %v16331_v13 = vsel %vm799_vm3, %v8207_v52, %v8209_v58 }
 0xab3   : > { %v8273_v55 = vadd.f32 %v16331_v13, %v7907_v47  ;;  %v16334_v37 = vpop.xlane.xlu0 %8088  ;;  %8389 = vperm.xlu0 %9415, %v8272_v39   ;;  %v6578_v54 = vpop.xlane.xlu1 %6577 }
 0xab4   : > { %v6612_v53 = vadd.f32 %v6578_v54, %v16299_v50  ;;  %v7320_v50 = vsel %vm799_vm3, %v7317_v11, %v7319_v38  ;;  %v8211_v15 = vrot.slane %v16334_v37, 2  ;;  %v17002_v38 = vlaneseq }
 0xab5   : > { %8392 = vperm.xlu1 %9741, %v8273_v55   ;;  %v7387_v34 = vadd.f32 %v7320_v50, %v6999_v19 }
 0xab7   : > { %v6581_v14 = vpop.xlane.xlu0 %6580  ;;  %v7510_v57 = vpop.xlane.xlu1 %7509 }
 0xab8   : > { %v6613_v27 = vadd.f32 %v6581_v14, %v6449_v6  ;;  %v7542_v39 = vadd.f32 %v7510_v57, %v7386_v62 }
 0xabb   : > { %v6809_v22 = vpop.xlane.xlu0 %6808  ;;  %v7723_v7 = vpop.xlane.xlu1 %7722 }
 0xabc   : > { %v6936_v3 = vrot.slane %v6809_v22, 1  ;;  %v7845_v51 = vrot.slane %v7723_v7, 1 }
 0xabf   : > { %v7197_v12 = vpop.xlane.xlu0 %7196  ;;  %v6806_v33 = vpop.xlane.xlu1 %6805 }
 0xac0   : > { %v6934_v26 = vrot.slane %v6806_v33, 1  ;;  %v7324_v41 = vrot.slane %v7197_v12, 2 }
 0xac2   : > { %v6935_v4 = vsel %vm622_vm1, %v6933_v25, %v6934_v26  ;;  %v6937_v5 = vsel %vm622_vm1, %v6934_v26, %v6936_v3 }
 0xac3   : > { %v7513_v1 = vpop.xlane.xlu0 %7512  ;;  %v7194_v18 = vpop.xlane.xlu1 %7193  ;;  %v7000_v9 = vadd.f32 %v6935_v4, %v6612_v53  ;;  %v7001_v56 = vadd.f32 %v6937_v5, %v6613_v27  ;;  %v8407_v4 = vand.u32 127, %v17002_v38  ;;  %v17003_v53 = vld [vmem:[#allocation17_spill] sm:$0xff] }
 0xac4   : > { %v7322_v61 = vrot.slane %v7194_v18, 2  ;;  %v7543_v55 = vadd.f32 %v7513_v1, %v7387_v34 }
 0xac5   : > { %v8412_v24 = vadd.s32 4294967288, %v8407_v4  ;;  %v16373_v27 = vsub.s32 %v8407_v4, %v17003_v53 }
 0xac6   : > { %v7323_v52 = vsel %vm799_vm3, %v7321_v43, %v7322_v61  ;;  %v7325_v23 = vsel %vm799_vm3, %v7322_v61, %v7324_v41 }
 0xac7   : > { %v7388_v44 = vadd.f32 %v7323_v52, %v7000_v9  ;;  %v7389_v20 = vadd.f32 %v7325_v23, %v7001_v56  ;;  %v7726_v42 = vpop.xlane.xlu0 %7725  ;;  %v7729_v32 = vpop.xlane.xlu1 %7728 }
 0xac8   : > { %v7846_v16 = vrot.slane %v7726_v42, 1  ;;  %v7848_v10 = vrot.slane %v7729_v32, 1 }
 0xac9   : > { %v7544_v54 = vadd.f32 %v16278_v0, %v7388_v44  ;;  %v7545_v14 = vadd.f32 %v16288_v60, %v7389_v20 }
 0xaca   : > { %v7847_v58 = vsel %vm622_vm1, %v7845_v51, %v7846_v16  ;;  %v7849_v47 = vsel %vm622_vm1, %v7846_v16, %v7848_v10  ;;  %vm8564_vm1 = vcmask 1046534  }
 0xacb   : > { %v8095_v36 = vpop.xlane.xlu0 %8094  ;;  %v8092_v22 = vpop.xlane.xlu1 %8091  ;;  %v7908_v48 = vadd.f32 %v7847_v58, %v7542_v39  ;;  %v7909_v29 = vadd.f32 %v7849_v47, %v7543_v55  ;;  %v7911_v45 = vadd.f32 %v16321_v59, %v7545_v14  ;;  %v7910_v0 = vadd.f32 %v16318_v40, %v7544_v54 }
 0xacc   : > { %v8214_v28 = vrot.slane %v8095_v36, 2  ;;  %v8212_v7 = vrot.slane %v8092_v22, 2 }
 0xacd   : > { %v8277_v37 = vadd.f32 %v16331_v13, %v7911_v45  ;;  %v8276_v3 = vadd.f32 %v16326_v8, %v7910_v0  ;;  %v16376_v13 = vsub.s32 %v8412_v24, %v17003_v53 }
 0xace   : > { %v8213_v49 = vsel %vm799_vm3, %v8211_v15, %v8212_v7  ;;  %v8215_v63 = vsel %vm799_vm3, %v8212_v7, %v8214_v28 }
 0xacf   : > { %v8274_v12 = vadd.f32 %v8213_v49, %v7908_v48  ;;  %v8275_v33 = vadd.f32 %v8215_v63, %v7909_v29  ;;  %v8318_v57 = vpop.permute.xlu1 %8317 }
 0xad0   : > { %v8422_v9 = vrot.slane %v8318_v57, %v16373_v27 }
 0xad1   : > { %8398 = vperm.xlu1 %9741, %v8275_v33   ;;  %8395 = vperm.xlu0 %9415, %v8274_v12  }
 0xad3   : > { %v8315_v60 = vpop.permute.xlu0 %8314  ;;  %v8321_v25 = vpop.permute.xlu1 %8320 }
 0xad4   : > { %v8416_v43 = vrot.slane %v8315_v60, %v16376_v13  ;;  %v8426_v41 = vrot.slane %v8321_v25, %v16376_v13 }
 0xad5   : > { %8404 = vperm.xlu1 %9741, %v8277_v37   ;;  %8401 = vperm.xlu0 %9415, %v8276_v3  }
 0xad6   : > { %v8427_v44 = vsel %vm8417_vm11, %v8426_v41, %v8422_v9 }
 0xad7   : > { %v8324_v26 = vpop.permute.xlu0 %8323  ;;  %v8312_v30 = vpop.permute.xlu1 %8311 }
 0xad8   : > { %v8411_v8 = vrot.slane %v8312_v30, %v16373_v27  ;;  %v8431_v35 = vrot.slane %v8324_v26, %v16373_v27 }
 0xada   : > { %v8418_v56 = vsel %vm8417_vm11, %v8416_v43, %v8411_v8 }
 0xadb   : > { %v8330_v6 = vpop.permute.xlu0 %8329  ;;  %v8327_v11 = vpop.permute.xlu1 %8326  ;;  %v8555_v51 = vsel %vm8554_vm12, %v8427_v44, %v8418_v56 }
 0xadc   : > { %v8435_v1 = vrot.slane %v8327_v11, %v16376_v13  ;;  %v8440_v21 = vrot.slane %v8330_v6, %v16373_v27 }
 0xade   : > { %v8436_v52 = vsel %vm8417_vm11, %v8435_v1, %v8431_v35 }
 0xadf   : > { %v8336_v5 = vpop.permute.xlu0 %8335  ;;  %v8333_v59 = vpop.permute.xlu1 %8332  ;;  %v8557_v62 = vsel %vm8556_vm13, %v8436_v52, %v8555_v51 }
 0xae0   : > { %v8444_v61 = vrot.slane %v8333_v59, %v16376_v13  ;;  %v8449_v23 = vrot.slane %v8336_v5, %v16373_v27 }
 0xae2   : > { %v8445_v20 = vsel %vm8417_vm11, %v8444_v61, %v8440_v21 }
 0xae3   : > { %v8342_v40 = vpop.permute.xlu0 %8341  ;;  %v8339_v2 = vpop.permute.xlu1 %8338  ;;  %v8559_v58 = vsel %vm8558_vm14, %v8445_v20, %v8557_v62 }
 0xae4   : > { %v8453_v46 = vrot.slane %v8339_v2, %v16376_v13  ;;  %v8458_v42 = vrot.slane %v8342_v40, %v16373_v27 }
 0xae6   : > { %v8454_v16 = vsel %vm8417_vm11, %v8453_v46, %v8449_v23 }
 0xae7   : > { %v8348_v18 = vpop.permute.xlu0 %8347  ;;  %v8345_v17 = vpop.permute.xlu1 %8344  ;;  %v8561_v54 = vsel %vm8560_vm15, %v8454_v16, %v8559_v58 }
 0xae8   : > { %v8462_v50 = vrot.slane %v8345_v17, %v16376_v13  ;;  %v8467_v10 = vrot.slane %v8348_v18, %v16373_v27 }
 0xaea   : > { %v8463_v34 = vsel %vm8417_vm11, %v8462_v50, %v8458_v42 }
 0xaeb   : > { %v8354_v31 = vpop.permute.xlu0 %8353  ;;  %v8351_v19 = vpop.permute.xlu1 %8350  ;;  %v8563_v22 = vsel %vm8562_vm0, %v8463_v34, %v8561_v54 }
 0xaec   : > { %v8471_v32 = vrot.slane %v8351_v19, %v16376_v13  ;;  %v8476_v14 = vrot.slane %v8354_v31, %v16373_v27 }
 0xaee   : > { %v8472_v47 = vsel %vm8417_vm11, %v8471_v32, %v8467_v10 }
 0xaef   : > { %v8360_v39 = vpop.permute.xlu0 %8359  ;;  %v8357_v55 = vpop.permute.xlu1 %8356  ;;  %v8565_v15 = vsel %vm8564_vm1, %v8472_v47, %v8563_v22 }
 0xaf0   : > { %v8480_v36 = vrot.slane %v8357_v55, %v16376_v13  ;;  %v8485_v45 = vrot.slane %v8360_v39, %v16373_v27 }
 0xaf2   : > { %v8481_v28 = vsel %vm8417_vm11, %v8480_v36, %v8476_v14 }
 0xaf3   : > { %v8567_v7 = vsel %vm8566_vm2, %v8481_v28, %v8565_v15  ;;  %v8366_v48 = vpop.permute.xlu0 %8365  ;;  %v8363_v29 = vpop.permute.xlu1 %8362 }
 0xaf4   : > { %8577 = vst.msk [vmem:[%s16412_s30] sm:$0xff] %vm5597_vm7, %v8567_v7  ;;  %v8494_v33 = vrot.slane %v8366_v48, %v16373_v27  ;;  %v8489_v57 = vrot.slane %v8363_v29, %v16376_v13 }
 0xaf6   : > { %v8490_v26 = vsel %vm8417_vm11, %v8489_v57, %v8485_v45 }
 0xaf7   : > { %v8372_v49 = vpop.permute.xlu0 %8371  ;;  %v8369_v63 = vpop.permute.xlu1 %8368 }
 0xaf8   : > { %v8498_v12 = vrot.slane %v8369_v63, %v16376_v13  ;;  %v8503_v37 = vrot.slane %v8372_v49, %v16373_v27 }
 0xafa   : > { %v8499_v0 = vsel %vm8417_vm11, %v8498_v12, %v8494_v33 }
 0xafb   : > { %v8378_v60 = vpop.permute.xlu0 %8377  ;;  %v8375_v25 = vpop.permute.xlu1 %8374  ;;  %v8568_v30 = vsel %vm8554_vm12, %v8499_v0, %v8490_v26 }
 0xafc   : > { %v8507_v3 = vrot.slane %v8375_v25, %v16376_v13  ;;  %v8512_v4 = vrot.slane %v8378_v60, %v16373_v27 }
 0xafe   : > { %v8508_v6 = vsel %vm8417_vm11, %v8507_v3, %v8503_v37 }
 0xaff   : > { %v8569_v11 = vsel %vm8556_vm13, %v8508_v6, %v8568_v30  ;;  %v8381_v38 = vpop.permute.xlu1 %8380  ;;  %v8384_v59 = vpop.permute.xlu0 %8383 }
 0xb00   : > { %v8516_v5 = vrot.slane %v8381_v38, %v16376_v13  ;;  %v8521_v53 = vrot.slane %v8384_v59, %v16373_v27 }
 0xb02   : > { %v8517_v24 = vsel %vm8417_vm11, %v8516_v5, %v8512_v4 }
 0xb03   : > { %v8570_v40 = vsel %vm8558_vm14, %v8517_v24, %v8569_v11  ;;  %v8387_v2 = vpop.permute.xlu1 %8386 }
 0xb04   : > { %v8525_v8 = vrot.slane %v8387_v2, %v16376_v13 }
 0xb06   : > { %v8526_v1 = vsel %vm8417_vm11, %v8525_v8, %v8521_v53 }
 0xb07   : > { %v8571_v18 = vsel %vm8560_vm15, %v8526_v1, %v8570_v40 }
 0xb2e   : > { %v8390_v17 = vpop.permute.xlu0 %8389 }
 0xb2f   : > { %v8530_v46 = vrot.slane %v8390_v17, %v16373_v27 }
 0xb30   : > { %v8393_v43 = vpop.permute.xlu1 %8392 }
 0xb31   : > { %v8534_v41 = vrot.slane %v8393_v43, %v16376_v13 }
 0xb33   : > { %v8535_v21 = vsel %vm8417_vm11, %v8534_v41, %v8530_v46 }
 0xb34   : > { %v8572_v44 = vsel %vm8562_vm0, %v8535_v21, %v8571_v18 }
 0xb4c   : > { %v8396_v61 = vpop.permute.xlu0 %8395  ;;  %v8399_v35 = vpop.permute.xlu1 %8398 }
 0xb4d   : > { %v8539_v9 = vrot.slane %v8396_v61, %v16373_v27  ;;  %v8543_v56 = vrot.slane %v8399_v35, %v16376_v13 }
 0xb4f   : > { %v8544_v50 = vsel %vm8417_vm11, %v8543_v56, %v8539_v9 }
 0xb50   : > { %v8402_v52 = vpop.permute.xlu0 %8401  ;;  %v8405_v23 = vpop.permute.xlu1 %8404  ;;  %v8573_v20 = vsel %vm8564_vm1, %v8544_v50, %v8572_v44 }
 0xb51   : > { %v8548_v31 = vrot.slane %v8402_v52, %v16373_v27  ;;  %v8552_v19 = vrot.slane %v8405_v23, %v16376_v13 }
 0xb53   : > { %v8553_v42 = vsel %vm8417_vm11, %v8552_v19, %v8548_v31 }
 0xb54   : > { %v8574_v27 = vsel %vm8566_vm2, %v8553_v42, %v8573_v20 }
 0xb55   : > { %8578 = vst.msk [vmem:[%s16412_s30 + $0x8] sm:$0xff] %vm5597_vm7, %v8574_v27 }
 0xb56   : > { %9773 = shalt.err (!%p9770_p3)
}
 0xb57   : > { %s9774_s29 = scalar_lea.hbm %s16449_s23, 256  ;;  %s9778_s30 = scalar_lea.hbm %s16509_s9, 512 }
 0xb58   : > { %p9775_p4 = scmp.ne.s32.totalorder %s16449_s23, %s9774_s29  ;;  %p9779_p9 = scmp.lt.s32.totalorder %s16449_s23, %s16509_s9 }
 0xb59   : > { %p9780_p10 = scmp.lt.s32.totalorder %s9778_s30, %s9774_s29 }
 0xb5a   : > { %p9776_p7 = pnand %p9775_p4, %p9921_p5 }
 0xb5b   : > { %p9781_p11 = por %p9780_p10, %p9779_p9 }
 0xb5c   : > { %p9777_p8 = pneg %p9776_p7 }
 0xb5e   : > { %p9782_p12 = pnand %p9781_p11, %p9777_p8 }
 0xb60   : > { %9785 = shalt.err (!%p9782_p12)
}
 0xb61   : > { %s9828_s18 = smov 128   ;;  %s9829_s24 = smov 8  }
 0xb62   : > { %9134 = dma.vmem_to_hbm [thread:$0]  (%p9921_p5), %s16451_s15, 256, %s16449_s23, %s16460_s8, %s9828_s18, %s9828_s18, %s9829_s24  }
 0xb63 PF: > { %p9140_p13 = scmp.ge.s32.totalorder %s9820_s14, 2  ;;  %s8608_s25 = sand.u32 1, %s9808_s11  }
 0xb64   : > { %s8609_s26 = scalar_lea.sflag [#allocation4], %s8608_s25 }
 0xb65   : > { %p9137_p0 = pnand %p9140_p13, %p9925_p6 }
 0xb67   : > { %p9138_p1 = pneg %p9137_p0 }
 0xb69   : > { %9803 = dma.done.wait (%p9138_p1), %s8609_s26, 256  }
 0xb6a   : > { %9805 = vsyncadd (%p9138_p1), %s8609_s26, 4294967040  ;;  %p21_p2 = scmp.ge.s32.totalorder %s9908_s16, 4   ;;  %s17004_s11 = smov %s9812_s12 }
 0xb6b   : > { %s17005_s12 = smov %s9816_s13  ;;  %s17006_s13 = smov %s9919_s19 }
 0xb6c   : > { %s17007_s14 = smov %s9908_s16  ;;  %23 = sbr.rel (!%p21_p2) target bundleno = 6 (0x6), region = 91 }
 0xb71   :  { %8614 = vsyncpa [#allocation4], 1 }
 0xb72   :  { %8616 = vsyncpa [#allocation4 + $0x1], 1 }

</bundles_post_ra>
